<compile_context>
chip_gen: v7x
topology: tpu7x:2x2x1
jax: 0.10.0
libtpu: 0.0.40
codegen_flags: <defaults>
</compile_context>

<pallas_src>
import functools

import jax
import jax.numpy as jnp
import numpy as np
from jax import lax
from jax.experimental import pallas as pl
from jax.experimental.pallas import tpu as pltpu

ROWS_PER_IMG = 8       # activation row layout: row = b*8 + h (h = conv spatial row)
BATCH_TILE_MAX = 32    # images per grid step (fits v7x's 64 MiB VMEM with margin)


def _round_up(n, m):
    return ((n + m - 1) // m) * m


# --------------------------------------------------------------------------- #
# Fused forward kernel (one grid step = one batch tile)
# --------------------------------------------------------------------------- #
def _fused_forward_kernel(strips_ref, w1_ref, b1_ref, w2_ref, b2_ref, w3_ref,
                          b3_ref, fc1w_ref, fc1b_ref, fc2w_ref, fc2b_ref,
                          fc3w_ref, fc3b_ref, out_ref, *, batch_tile):
    f32, bf16 = jnp.float32, jnp.bfloat16
    rows = batch_tile * ROWS_PER_IMG

    def conv_band(act, w_ref, bias, kh):
        # act:   (rows, 512) f32, rows = (b, h); lanes = (w_in, cin).
        # w_ref: (kh, 512, 512) bf16 banded (Toeplitz) weights, one per kh offset.
        # Row shift by oi: zero-extend once (aligned concat) + static sublane
        # slice per offset -> no MXU shift matmuls, no wrap-around concerns.
        acc = jnp.dot(act.astype(bf16), w_ref[0], preferred_element_type=f32)
        ext = jnp.concatenate(
            [act, jnp.zeros((ROWS_PER_IMG, act.shape[1]), act.dtype)], axis=0)
        for oi in range(1, kh):
            src = ext[oi:oi + rows, :].astype(bf16)      # src[r] = act[r + oi]
            acc = acc + jnp.dot(src, w_ref[oi], preferred_element_type=f32)
        return jnp.maximum(acc + bias, 0.0)

    # ---- conv1 (7x7, Cin=1): ONE banded matmul on the height-strip layout ----
    a1 = jnp.maximum(
        jnp.dot(strips_ref[...], w1_ref[...], preferred_element_type=f32)
        + b1_ref[...], 0.0)                              # (rows, 8*64)

    # ---- conv2: 8x8x64 -> 4x4x128 (5x5), conv3: 4x4x128 -> 2x2x256 (3x3) ----
    a2 = conv_band(a1, w2_ref, b2_ref[...], kh=5)        # (rows, 4*128)
    a3 = conv_band(a2, w3_ref, b3_ref[...], kh=3)        # (rows, 2*256)

    # ---- row compaction before the FC tail: pick rows h=0 and h=1 of every
    # 8-row image group with tiny 0/1 select matmuls; lane order (h, w, c)
    # matches the packed fc1 weight rows.
    a3_bf = a3.astype(bf16)
    p = lax.broadcasted_iota(jnp.int32, (batch_tile, rows), 0)
    r = lax.broadcasted_iota(jnp.int32, (batch_tile, rows), 1)
    sel0 = (r == p * ROWS_PER_IMG).astype(bf16)
    sel1 = (r == p * ROWS_PER_IMG + 1).astype(bf16)
    flat = jnp.concatenate(
        [jnp.dot(sel0, a3_bf, preferred_element_type=f32),
         jnp.dot(sel1, a3_bf, preferred_element_type=f32)],
        axis=-1).astype(bf16)                            # (batch_tile, 1024)

    # ---- fc1 / fc2 / fc3 at M = batch_tile ----
    h1 = jnp.maximum(
        jnp.dot(flat, fc1w_ref[...], preferred_element_type=f32)
        + fc1b_ref[...], 0.0)                            # (batch_tile, 1024)
    h2 = jnp.maximum(
        jnp.dot(h1.astype(bf16), fc2w_ref[...], preferred_element_type=f32)
        + fc2b_ref[...], 0.0)                            # (batch_tile, 512)
    out_ref[...] = (
        jnp.dot(h2.astype(bf16), fc3w_ref[...], preferred_element_type=f32)
        + fc3b_ref[...])                                 # (batch_tile, 128)


# --------------------------------------------------------------------------- #
# Wrapper
# --------------------------------------------------------------------------- #
def queen_of_aurora_forward(x, packed):
    """x: (B, 1, 14, 14) float32 NCHW -> (B, 10) float32 logits."""
    batch = x.shape[0]
    if batch >= BATCH_TILE_MAX:
        batch_tile = BATCH_TILE_MAX
    else:
        batch_tile = _round_up(batch, ROWS_PER_IMG)
    b_pad = _round_up(batch, batch_tile)
    num_tiles = b_pad // batch_tile
    rows_t = batch_tile * ROWS_PER_IMG

    # conv1 height-strip layout: row (b, h) holds input rows h..h+6 in lanes
    # (oi, w) = oi*16 + w (width padded 14->16, lanes padded 112->128).
    img = x[:, 0].astype(jnp.float32)
    img = jnp.pad(img, ((0, b_pad - batch), (0, 0), (0, 2)))       # (b_pad, 14, 16)
    strips = jnp.stack([lax.slice_in_dim(img, h, h + 7, axis=1)
                        for h in range(8)], axis=1)                # (b_pad, 8, 7, 16)
    strips = strips.reshape(b_pad * ROWS_PER_IMG, 7 * 16)
    strips = jnp.pad(strips, ((0, 0), (0, 128 - 7 * 16))).astype(jnp.bfloat16)

    def resident(name):
        shape = packed[name].shape
        return pl.BlockSpec(shape, lambda i: (0,) * len(shape))

    weight_names = ("w1", "b1", "w2", "b2", "w3", "b3",
                    "fc1_w", "fc1_b", "fc2_w", "fc2_b", "fc3_w", "fc3_b")
    in_specs = [pl.BlockSpec((rows_t, 128), lambda i: (i, 0))]
    in_specs += [resident(n) for n in weight_names]

    out = pl.pallas_call(
        functools.partial(_fused_forward_kernel, batch_tile=batch_tile),
        out_shape=jax.ShapeDtypeStruct((b_pad, 128), jnp.float32),
        grid=(num_tiles,),
        in_specs=in_specs,
        out_specs=pl.BlockSpec((batch_tile, 128), lambda i: (i, 0)),
        compiler_params=pltpu.CompilerParams(
            dimension_semantics=("parallel",),
            vmem_limit_bytes=48 * 1024 * 1024),
    )(strips, *(packed[n] for n in weight_names))
    # Real logits are the first 10 lanes; padded batch rows are dropped.
    return out[:batch, :10]


# --------------------------------------------------------------------------- #
# Parameters: init (PyTorch-equivalent layout) + one-time kernel repack
# --------------------------------------------------------------------------- #
def init_params(key):
    """Deterministic synthetic parameters in PyTorch-equivalent layouts."""
    ks = jax.random.split(key, 12)

    def w_init(k, shape, fan_in):
        bound = 1.0 / jnp.sqrt(jnp.float32(fan_in))
        return jax.random.uniform(k, shape, jnp.float32, -bound, bound)

    return {
        "conv1_w": w_init(ks[0], (64, 1, 7, 7), 1 * 7 * 7),
        "conv1_b": w_init(ks[1], (64,), 1 * 7 * 7),
        "conv2_w": w_init(ks[2], (128, 64, 5, 5), 64 * 5 * 5),
        "conv2_b": w_init(ks[3], (128,), 64 * 5 * 5),
        "conv3_w": w_init(ks[4], (256, 128, 3, 3), 128 * 3 * 3),
        "conv3_b": w_init(ks[5], (256,), 128 * 3 * 3),
        # FC weights stored as (in, out); "in" follows torch's NCHW flatten order.
        "fc1_w": w_init(ks[6], (256 * 2 * 2, 1024), 256 * 2 * 2),
        "fc1_b": w_init(ks[7], (1024,), 256 * 2 * 2),
        "fc2_w": w_init(ks[8], (1024, 512), 1024),
        "fc2_b": w_init(ks[9], (512,), 1024),
        "fc3_w": w_init(ks[10], (512, 10), 512),
        "fc3_b": w_init(ks[11], (10,), 512),
    }


def pack_params(params):
    """One-time repack of PyTorch-layout params into kernel-ready arrays."""
    def conv1_strip_weight(w_oihw):
        # (co,1,kh,kw) -> banded (128, 8*64): rows = (oi, w_in), cols = (j, co).
        w = np.transpose(np.asarray(w_oihw, np.float32)[:, 0], (1, 2, 0))  # (kh,kw,co)
        band = np.zeros((128, 8 * 64), np.float32)
        for oi in range(7):
            for j in range(8):
                for oj in range(7):
                    band[oi * 16 + j + oj, j * 64:(j + 1) * 64] = w[oi, oj]
        return band

    def banded_conv_weight(w_oihw, w_in, w_out):
        # (co,ci,kh,kw) -> (kh, w_in*ci, w_out*co) banded Toeplitz per kh offset.
        co, ci, kh, kw = w_oihw.shape
        w = np.transpose(np.asarray(w_oihw, np.float32), (2, 3, 1, 0))     # (kh,kw,ci,co)
        band = np.zeros((kh, w_in * ci, w_out * co), np.float32)
        for j in range(w_out):
            for oj in range(kw):
                band[:, (j + oj) * ci:(j + oj + 1) * ci,
                     j * co:(j + 1) * co] = w[:, oj]
        return band

    # fc1 rows permuted from torch's NCHW flatten (c,h,w) to (h,w,c).
    fc1 = np.asarray(params["fc1_w"], np.float32).reshape(256, 2, 2, 1024)
    fc1 = np.transpose(fc1, (1, 2, 0, 3)).reshape(1024, 1024)
    fc3_w = np.pad(np.asarray(params["fc3_w"], np.float32), ((0, 0), (0, 118)))
    fc3_b = np.pad(np.asarray(params["fc3_b"], np.float32), (0, 118))

    bf16, f32 = jnp.bfloat16, jnp.float32
    return {
        "w1": jnp.asarray(conv1_strip_weight(params["conv1_w"]), bf16),        # (128, 512)
        "b1": jnp.asarray(np.tile(np.asarray(params["conv1_b"]), 8)[None], f32),
        "w2": jnp.asarray(banded_conv_weight(params["conv2_w"], 8, 4), bf16),  # (5, 512, 512)
        "b2": jnp.asarray(np.tile(np.asarray(params["conv2_b"]), 4)[None], f32),
        "w3": jnp.asarray(banded_conv_weight(params["conv3_w"], 4, 2), bf16),  # (3, 512, 512)
        "b3": jnp.asarray(np.tile(np.asarray(params["conv3_b"]), 2)[None], f32),
        "fc1_w": jnp.asarray(fc1, bf16),                                       # (1024, 1024)
        "fc1_b": jnp.asarray(params["fc1_b"], f32)[None, :],
        "fc2_w": jnp.asarray(params["fc2_w"], bf16),                           # (1024, 512)
        "fc2_b": jnp.asarray(params["fc2_b"], f32)[None, :],
        "fc3_w": jnp.asarray(fc3_w, bf16),                                     # (512, 128)
        "fc3_b": jnp.asarray(fc3_b, f32)[None, :],
    }


def reference_forward(x, params):
    """Pure-JAX float32 reference mirroring the PyTorch module exactly."""
    def conv(h, w, b):
        y = lax.conv_general_dilated(h, w, (1, 1), "VALID",
                                     dimension_numbers=("NCHW", "OIHW", "NCHW"))
        return jnp.maximum(y + b[None, :, None, None], 0.0)

    h = conv(x, params["conv1_w"], params["conv1_b"])
    h = conv(h, params["conv2_w"], params["conv2_b"])
    h = conv(h, params["conv3_w"], params["conv3_b"])
    h = h.reshape(h.shape[0], -1)                     # NCHW flatten == torch .view
    h = jnp.maximum(h @ params["fc1_w"] + params["fc1_b"], 0.0)
    h = jnp.maximum(h @ params["fc2_w"] + params["fc2_b"], 0.0)
    return h @ params["fc3_w"] + params["fc3_b"]


if __name__ == "__main__":
    key = jax.random.PRNGKey(0)
    pkey, xkey = jax.random.split(key)
    params = init_params(pkey)
    packed = pack_params(params)   # one-time weight repack (banded layout, bf16)
    x = jax.random.normal(xkey, (2, 1, 14, 14), jnp.float32)

    fwd = jax.jit(queen_of_aurora_forward)
    out = jax.block_until_ready(fwd(x, packed))

    assert out.shape == (2, 10), out.shape
    assert out.dtype == jnp.float32
    assert bool(jnp.all(jnp.isfinite(out)))

    # Numerical check against a pure-JAX f32 reference (bf16 MXU operands in the
    # kernel => allow a few-percent, scale-aware tolerance).
    ref = reference_forward(x, params)
    scale = float(jnp.max(jnp.abs(ref))) + 1e-6
    max_err = float(jnp.max(jnp.abs(out - ref)))
    assert max_err <= 0.08 * scale + 1e-3, (max_err, scale)

    print("KERNEL_OK")
</pallas_src>

<mosaic_0001>
module attributes {stable_mosaic.version = 11 : i64} {
  func.func @_fused_forward_kernel(%arg0: i32, %arg1: memref<64x128xbf16, #tpu.memory_space<vmem>>, %arg2: memref<128x512xbf16, #tpu.memory_space<vmem>>, %arg3: memref<1x512xf32, #tpu.memory_space<vmem>>, %arg4: memref<5x512x512xbf16, #tpu.memory_space<vmem>>, %arg5: memref<1x512xf32, #tpu.memory_space<vmem>>, %arg6: memref<3x512x512xbf16, #tpu.memory_space<vmem>>, %arg7: memref<1x512xf32, #tpu.memory_space<vmem>>, %arg8: memref<1024x1024xbf16, #tpu.memory_space<vmem>>, %arg9: memref<1x1024xf32, #tpu.memory_space<vmem>>, %arg10: memref<1024x512xbf16, #tpu.memory_space<vmem>>, %arg11: memref<1x512xf32, #tpu.memory_space<vmem>>, %arg12: memref<512x128xbf16, #tpu.memory_space<vmem>>, %arg13: memref<1x128xf32, #tpu.memory_space<vmem>>, %arg14: memref<8x128xf32, #tpu.memory_space<vmem>>) attributes {dimension_semantics = [#tpu.dimension_semantics<parallel>], iteration_bounds = array<i64: 1>, scalar_prefetch = 0 : i64, scratch_operands = 0 : i64, tpu.core_type = #tpu.core_type<tc>, window_params = [{transform_indices = @transform_0, window_bounds = array<i64: 64, 128>}, {pipeline_mode = #tpu.pipeline_mode<synchronous>, transform_indices = @transform_1, window_bounds = array<i64: 128, 512>}, {pipeline_mode = #tpu.pipeline_mode<synchronous>, transform_indices = @transform_2, window_bounds = array<i64: 1, 512>}, {pipeline_mode = #tpu.pipeline_mode<synchronous>, transform_indices = @transform_3, window_bounds = array<i64: 5, 512, 512>}, {pipeline_mode = #tpu.pipeline_mode<synchronous>, transform_indices = @transform_4, window_bounds = array<i64: 1, 512>}, {pipeline_mode = #tpu.pipeline_mode<synchronous>, transform_indices = @transform_5, window_bounds = array<i64: 3, 512, 512>}, {pipeline_mode = #tpu.pipeline_mode<synchronous>, transform_indices = @transform_6, window_bounds = array<i64: 1, 512>}, {pipeline_mode = #tpu.pipeline_mode<synchronous>, transform_indices = @transform_7, window_bounds = array<i64: 1024, 1024>}, {pipeline_mode = #tpu.pipeline_mode<synchronous>, transform_indices = @transform_8, window_bounds = array<i64: 1, 1024>}, {pipeline_mode = #tpu.pipeline_mode<synchronous>, transform_indices = @transform_9, window_bounds = array<i64: 1024, 512>}, {pipeline_mode = #tpu.pipeline_mode<synchronous>, transform_indices = @transform_10, window_bounds = array<i64: 1, 512>}, {pipeline_mode = #tpu.pipeline_mode<synchronous>, transform_indices = @transform_11, window_bounds = array<i64: 512, 128>}, {pipeline_mode = #tpu.pipeline_mode<synchronous>, transform_indices = @transform_12, window_bounds = array<i64: 1, 128>}, {transform_indices = @transform_13, window_bounds = array<i64: 8, 128>}]} {
    %c0 = arith.constant 0 : index
    %c0_0 = arith.constant 0 : index
    %0 = vector.load %arg1[%c0, %c0_0] : memref<64x128xbf16, #tpu.memory_space<vmem>>, vector<64x128xbf16>
    %c0_1 = arith.constant 0 : index
    %c0_2 = arith.constant 0 : index
    %1 = vector.load %arg2[%c0_1, %c0_2] : memref<128x512xbf16, #tpu.memory_space<vmem>>, vector<128x512xbf16>
    %cst = arith.constant dense<0.000000e+00> : vector<64x512xf32>
    %2 = tpu.matmul %0, %1, %cst {dimension_numbers = #tpu.dot_dimension_numbers<[1], [0], [0], [1], [0, 0, 1, 1], [], []>} : vector<64x128xbf16>, vector<128x512xbf16>, vector<64x512xf32> -> vector<64x512xf32>
    %c0_3 = arith.constant 0 : index
    %c0_4 = arith.constant 0 : index
    %3 = vector.load %arg3[%c0_3, %c0_4] : memref<1x512xf32, #tpu.memory_space<vmem>>, vector<1x512xf32>
    %4 = vector.broadcast %3 : vector<1x512xf32> to vector<64x512xf32>
    %5 = arith.addf %2, %4 : vector<64x512xf32>
    %cst_5 = arith.constant 0.000000e+00 : f32
    %6 = vector.broadcast %cst_5 : f32 to vector<64x512xf32>
    %7 = arith.maximumf %5, %6 : vector<64x512xf32>
    %c0_6 = arith.constant 0 : index
    %c0_7 = arith.constant 0 : index
    %8 = vector.load %arg5[%c0_6, %c0_7] : memref<1x512xf32, #tpu.memory_space<vmem>>, vector<1x512xf32>
    %9 = arith.truncf %7 : vector<64x512xf32> to vector<64x512xbf16>
    %c0_8 = arith.constant 0 : index
    %c0_9 = arith.constant 0 : index
    %c0_10 = arith.constant 0 : index
    %10 = vector.load %arg4[%c0_8, %c0_9, %c0_10] : memref<5x512x512xbf16, #tpu.memory_space<vmem>>, vector<1x512x512xbf16>
    %11 = vector.shape_cast %10 : vector<1x512x512xbf16> to vector<512x512xbf16>
    %cst_11 = arith.constant dense<0.000000e+00> : vector<64x512xf32>
    %12 = tpu.matmul %9, %11, %cst_11 {dimension_numbers = #tpu.dot_dimension_numbers<[1], [0], [0], [1], [0, 0, 1, 1], [], []>} : vector<64x512xbf16>, vector<512x512xbf16>, vector<64x512xf32> -> vector<64x512xf32>
    %cst_12 = arith.constant 0.000000e+00 : f32
    %13 = vector.broadcast %cst_12 : f32 to vector<8x512xf32>
    %14 = tpu.concatenate %7, %13 in 0 : vector<64x512xf32>, vector<8x512xf32> -> vector<72x512xf32>
    %15 = vector.extract_strided_slice %14 {offsets = [1, 0], sizes = [64, 512], strides = [1, 1]} : vector<72x512xf32> to vector<64x512xf32>
    %16 = arith.truncf %15 : vector<64x512xf32> to vector<64x512xbf16>
    %c1 = arith.constant 1 : index
    %c0_13 = arith.constant 0 : index
    %c0_14 = arith.constant 0 : index
    %17 = vector.load %arg4[%c1, %c0_13, %c0_14] : memref<5x512x512xbf16, #tpu.memory_space<vmem>>, vector<1x512x512xbf16>
    %18 = vector.shape_cast %17 : vector<1x512x512xbf16> to vector<512x512xbf16>
    %cst_15 = arith.constant dense<0.000000e+00> : vector<64x512xf32>
    %19 = tpu.matmul %16, %18, %cst_15 {dimension_numbers = #tpu.dot_dimension_numbers<[1], [0], [0], [1], [0, 0, 1, 1], [], []>} : vector<64x512xbf16>, vector<512x512xbf16>, vector<64x512xf32> -> vector<64x512xf32>
    %20 = arith.addf %12, %19 : vector<64x512xf32>
    %21 = vector.extract_strided_slice %14 {offsets = [2, 0], sizes = [64, 512], strides = [1, 1]} : vector<72x512xf32> to vector<64x512xf32>
    %22 = arith.truncf %21 : vector<64x512xf32> to vector<64x512xbf16>
    %c2 = arith.constant 2 : index
    %c0_16 = arith.constant 0 : index
    %c0_17 = arith.constant 0 : index
    %23 = vector.load %arg4[%c2, %c0_16, %c0_17] : memref<5x512x512xbf16, #tpu.memory_space<vmem>>, vector<1x512x512xbf16>
    %24 = vector.shape_cast %23 : vector<1x512x512xbf16> to vector<512x512xbf16>
    %cst_18 = arith.constant dense<0.000000e+00> : vector<64x512xf32>
    %25 = tpu.matmul %22, %24, %cst_18 {dimension_numbers = #tpu.dot_dimension_numbers<[1], [0], [0], [1], [0, 0, 1, 1], [], []>} : vector<64x512xbf16>, vector<512x512xbf16>, vector<64x512xf32> -> vector<64x512xf32>
    %26 = arith.addf %20, %25 : vector<64x512xf32>
    %27 = vector.extract_strided_slice %14 {offsets = [3, 0], sizes = [64, 512], strides = [1, 1]} : vector<72x512xf32> to vector<64x512xf32>
    %28 = arith.truncf %27 : vector<64x512xf32> to vector<64x512xbf16>
    %c3 = arith.constant 3 : index
    %c0_19 = arith.constant 0 : index
    %c0_20 = arith.constant 0 : index
    %29 = vector.load %arg4[%c3, %c0_19, %c0_20] : memref<5x512x512xbf16, #tpu.memory_space<vmem>>, vector<1x512x512xbf16>
    %30 = vector.shape_cast %29 : vector<1x512x512xbf16> to vector<512x512xbf16>
    %cst_21 = arith.constant dense<0.000000e+00> : vector<64x512xf32>
    %31 = tpu.matmul %28, %30, %cst_21 {dimension_numbers = #tpu.dot_dimension_numbers<[1], [0], [0], [1], [0, 0, 1, 1], [], []>} : vector<64x512xbf16>, vector<512x512xbf16>, vector<64x512xf32> -> vector<64x512xf32>
    %32 = arith.addf %26, %31 : vector<64x512xf32>
    %33 = vector.extract_strided_slice %14 {offsets = [4, 0], sizes = [64, 512], strides = [1, 1]} : vector<72x512xf32> to vector<64x512xf32>
    %34 = arith.truncf %33 : vector<64x512xf32> to vector<64x512xbf16>
    %c4 = arith.constant 4 : index
    %c0_22 = arith.constant 0 : index
    %c0_23 = arith.constant 0 : index
    %35 = vector.load %arg4[%c4, %c0_22, %c0_23] : memref<5x512x512xbf16, #tpu.memory_space<vmem>>, vector<1x512x512xbf16>
    %36 = vector.shape_cast %35 : vector<1x512x512xbf16> to vector<512x512xbf16>
    %cst_24 = arith.constant dense<0.000000e+00> : vector<64x512xf32>
    %37 = tpu.matmul %34, %36, %cst_24 {dimension_numbers = #tpu.dot_dimension_numbers<[1], [0], [0], [1], [0, 0, 1, 1], [], []>} : vector<64x512xbf16>, vector<512x512xbf16>, vector<64x512xf32> -> vector<64x512xf32>
    %38 = arith.addf %32, %37 : vector<64x512xf32>
    %39 = vector.broadcast %8 : vector<1x512xf32> to vector<64x512xf32>
    %40 = arith.addf %38, %39 : vector<64x512xf32>
    %cst_25 = arith.constant 0.000000e+00 : f32
    %41 = vector.broadcast %cst_25 : f32 to vector<64x512xf32>
    %42 = arith.maximumf %40, %41 : vector<64x512xf32>
    %c0_26 = arith.constant 0 : index
    %c0_27 = arith.constant 0 : index
    %43 = vector.load %arg7[%c0_26, %c0_27] : memref<1x512xf32, #tpu.memory_space<vmem>>, vector<1x512xf32>
    %44 = arith.truncf %42 : vector<64x512xf32> to vector<64x512xbf16>
    %c0_28 = arith.constant 0 : index
    %c0_29 = arith.constant 0 : index
    %c0_30 = arith.constant 0 : index
    %45 = vector.load %arg6[%c0_28, %c0_29, %c0_30] : memref<3x512x512xbf16, #tpu.memory_space<vmem>>, vector<1x512x512xbf16>
    %46 = vector.shape_cast %45 : vector<1x512x512xbf16> to vector<512x512xbf16>
    %cst_31 = arith.constant dense<0.000000e+00> : vector<64x512xf32>
    %47 = tpu.matmul %44, %46, %cst_31 {dimension_numbers = #tpu.dot_dimension_numbers<[1], [0], [0], [1], [0, 0, 1, 1], [], []>} : vector<64x512xbf16>, vector<512x512xbf16>, vector<64x512xf32> -> vector<64x512xf32>
    %cst_32 = arith.constant 0.000000e+00 : f32
    %48 = vector.broadcast %cst_32 : f32 to vector<8x512xf32>
    %49 = tpu.concatenate %42, %48 in 0 : vector<64x512xf32>, vector<8x512xf32> -> vector<72x512xf32>
    %50 = vector.extract_strided_slice %49 {offsets = [1, 0], sizes = [64, 512], strides = [1, 1]} : vector<72x512xf32> to vector<64x512xf32>
    %51 = arith.truncf %50 : vector<64x512xf32> to vector<64x512xbf16>
    %c1_33 = arith.constant 1 : index
    %c0_34 = arith.constant 0 : index
    %c0_35 = arith.constant 0 : index
    %52 = vector.load %arg6[%c1_33, %c0_34, %c0_35] : memref<3x512x512xbf16, #tpu.memory_space<vmem>>, vector<1x512x512xbf16>
    %53 = vector.shape_cast %52 : vector<1x512x512xbf16> to vector<512x512xbf16>
    %cst_36 = arith.constant dense<0.000000e+00> : vector<64x512xf32>
    %54 = tpu.matmul %51, %53, %cst_36 {dimension_numbers = #tpu.dot_dimension_numbers<[1], [0], [0], [1], [0, 0, 1, 1], [], []>} : vector<64x512xbf16>, vector<512x512xbf16>, vector<64x512xf32> -> vector<64x512xf32>
    %55 = arith.addf %47, %54 : vector<64x512xf32>
    %56 = vector.extract_strided_slice %49 {offsets = [2, 0], sizes = [64, 512], strides = [1, 1]} : vector<72x512xf32> to vector<64x512xf32>
    %57 = arith.truncf %56 : vector<64x512xf32> to vector<64x512xbf16>
    %c2_37 = arith.constant 2 : index
    %c0_38 = arith.constant 0 : index
    %c0_39 = arith.constant 0 : index
    %58 = vector.load %arg6[%c2_37, %c0_38, %c0_39] : memref<3x512x512xbf16, #tpu.memory_space<vmem>>, vector<1x512x512xbf16>
    %59 = vector.shape_cast %58 : vector<1x512x512xbf16> to vector<512x512xbf16>
    %cst_40 = arith.constant dense<0.000000e+00> : vector<64x512xf32>
    %60 = tpu.matmul %57, %59, %cst_40 {dimension_numbers = #tpu.dot_dimension_numbers<[1], [0], [0], [1], [0, 0, 1, 1], [], []>} : vector<64x512xbf16>, vector<512x512xbf16>, vector<64x512xf32> -> vector<64x512xf32>
    %61 = arith.addf %55, %60 : vector<64x512xf32>
    %62 = vector.broadcast %43 : vector<1x512xf32> to vector<64x512xf32>
    %63 = arith.addf %61, %62 : vector<64x512xf32>
    %cst_41 = arith.constant 0.000000e+00 : f32
    %64 = vector.broadcast %cst_41 : f32 to vector<64x512xf32>
    %65 = arith.maximumf %63, %64 : vector<64x512xf32>
    %66 = arith.truncf %65 : vector<64x512xf32> to vector<64x512xbf16>
    %67 = tpu.iota {dimensions = array<i32: 0>} : vector<8x64xi32>
    %68 = tpu.iota {dimensions = array<i32: 1>} : vector<8x64xi32>
    %c8_i32 = arith.constant 8 : i32
    %69 = vector.broadcast %c8_i32 : i32 to vector<8x64xi32>
    %70 = arith.muli %67, %69 : vector<8x64xi32>
    %71 = arith.cmpi eq, %68, %70 : vector<8x64xi32>
    %72 = arith.extui %71 : vector<8x64xi1> to vector<8x64xi32>
    %73 = arith.sitofp %72 : vector<8x64xi32> to vector<8x64xf32>
    %74 = arith.truncf %73 : vector<8x64xf32> to vector<8x64xbf16>
    %c8_i32_42 = arith.constant 8 : i32
    %75 = vector.broadcast %c8_i32_42 : i32 to vector<8x64xi32>
    %76 = arith.muli %67, %75 : vector<8x64xi32>
    %c1_i32 = arith.constant 1 : i32
    %77 = vector.broadcast %c1_i32 : i32 to vector<8x64xi32>
    %78 = arith.addi %76, %77 : vector<8x64xi32>
    %79 = arith.cmpi eq, %68, %78 : vector<8x64xi32>
    %80 = arith.extui %79 : vector<8x64xi1> to vector<8x64xi32>
    %81 = arith.sitofp %80 : vector<8x64xi32> to vector<8x64xf32>
    %82 = arith.truncf %81 : vector<8x64xf32> to vector<8x64xbf16>
    %cst_43 = arith.constant dense<0.000000e+00> : vector<8x512xf32>
    %83 = tpu.matmul %74, %66, %cst_43 {dimension_numbers = #tpu.dot_dimension_numbers<[1], [0], [0], [1], [0, 0, 1, 1], [], []>} : vector<8x64xbf16>, vector<64x512xbf16>, vector<8x512xf32> -> vector<8x512xf32>
    %cst_44 = arith.constant dense<0.000000e+00> : vector<8x512xf32>
    %84 = tpu.matmul %82, %66, %cst_44 {dimension_numbers = #tpu.dot_dimension_numbers<[1], [0], [0], [1], [0, 0, 1, 1], [], []>} : vector<8x64xbf16>, vector<64x512xbf16>, vector<8x512xf32> -> vector<8x512xf32>
    %85 = tpu.concatenate %83, %84 in 1 : vector<8x512xf32>, vector<8x512xf32> -> vector<8x1024xf32>
    %86 = arith.truncf %85 : vector<8x1024xf32> to vector<8x1024xbf16>
    %c0_45 = arith.constant 0 : index
    %c0_46 = arith.constant 0 : index
    %87 = vector.load %arg8[%c0_45, %c0_46] : memref<1024x1024xbf16, #tpu.memory_space<vmem>>, vector<1024x1024xbf16>
    %cst_47 = arith.constant dense<0.000000e+00> : vector<8x1024xf32>
    %88 = tpu.matmul %86, %87, %cst_47 {dimension_numbers = #tpu.dot_dimension_numbers<[1], [0], [0], [1], [0, 0, 1, 1], [], []>} : vector<8x1024xbf16>, vector<1024x1024xbf16>, vector<8x1024xf32> -> vector<8x1024xf32>
    %c0_48 = arith.constant 0 : index
    %c0_49 = arith.constant 0 : index
    %89 = vector.load %arg9[%c0_48, %c0_49] : memref<1x1024xf32, #tpu.memory_space<vmem>>, vector<1x1024xf32>
    %90 = vector.broadcast %89 : vector<1x1024xf32> to vector<8x1024xf32>
    %91 = arith.addf %88, %90 : vector<8x1024xf32>
    %cst_50 = arith.constant 0.000000e+00 : f32
    %92 = vector.broadcast %cst_50 : f32 to vector<8x1024xf32>
    %93 = arith.maximumf %91, %92 : vector<8x1024xf32>
    %94 = arith.truncf %93 : vector<8x1024xf32> to vector<8x1024xbf16>
    %c0_51 = arith.constant 0 : index
    %c0_52 = arith.constant 0 : index
    %95 = vector.load %arg10[%c0_51, %c0_52] : memref<1024x512xbf16, #tpu.memory_space<vmem>>, vector<1024x512xbf16>
    %cst_53 = arith.constant dense<0.000000e+00> : vector<8x512xf32>
    %96 = tpu.matmul %94, %95, %cst_53 {dimension_numbers = #tpu.dot_dimension_numbers<[1], [0], [0], [1], [0, 0, 1, 1], [], []>} : vector<8x1024xbf16>, vector<1024x512xbf16>, vector<8x512xf32> -> vector<8x512xf32>
    %c0_54 = arith.constant 0 : index
    %c0_55 = arith.constant 0 : index
    %97 = vector.load %arg11[%c0_54, %c0_55] : memref<1x512xf32, #tpu.memory_space<vmem>>, vector<1x512xf32>
    %98 = vector.broadcast %97 : vector<1x512xf32> to vector<8x512xf32>
    %99 = arith.addf %96, %98 : vector<8x512xf32>
    %cst_56 = arith.constant 0.000000e+00 : f32
    %100 = vector.broadcast %cst_56 : f32 to vector<8x512xf32>
    %101 = arith.maximumf %99, %100 : vector<8x512xf32>
    %102 = arith.truncf %101 : vector<8x512xf32> to vector<8x512xbf16>
    %c0_57 = arith.constant 0 : index
    %c0_58 = arith.constant 0 : index
    %103 = vector.load %arg12[%c0_57, %c0_58] : memref<512x128xbf16, #tpu.memory_space<vmem>>, vector<512x128xbf16>
    %cst_59 = arith.constant dense<0.000000e+00> : vector<8x128xf32>
    %104 = tpu.matmul %102, %103, %cst_59 {dimension_numbers = #tpu.dot_dimension_numbers<[1], [0], [0], [1], [0, 0, 1, 1], [], []>} : vector<8x512xbf16>, vector<512x128xbf16>, vector<8x128xf32> -> vector<8x128xf32>
    %c0_60 = arith.constant 0 : index
    %c0_61 = arith.constant 0 : index
    %105 = vector.load %arg13[%c0_60, %c0_61] : memref<1x128xf32, #tpu.memory_space<vmem>>, vector<1x128xf32>
    %106 = vector.broadcast %105 : vector<1x128xf32> to vector<8x128xf32>
    %107 = arith.addf %104, %106 : vector<8x128xf32>
    %c0_62 = arith.constant 0 : index
    %c0_63 = arith.constant 0 : index
    %108 = vector.load %arg14[%c0_62, %c0_63] : memref<8x128xf32, #tpu.memory_space<vmem>>, vector<8x128xf32>
    tpu.vector_store %arg14[%c0_62, %c0_63], %107 {strides = array<i32>} : memref<8x128xf32, #tpu.memory_space<vmem>>, vector<8x128xf32>,
    return
  }
  func.func @transform_0(%arg0: i32) -> (i32, i32) {
    %c0_i32 = arith.constant 0 : i32
    %c0_i32_0 = arith.constant 0 : i32
    return %arg0, %c0_i32 : i32, i32
  }
  func.func @transform_1(%arg0: i32) -> (i32, i32) {
    %c0_i32 = arith.constant 0 : i32
    %c0_i32_0 = arith.constant 0 : i32
    %c0_i32_1 = arith.constant 0 : i32
    return %c0_i32, %c0_i32_0 : i32, i32
  }
  func.func @transform_2(%arg0: i32) -> (i32, i32) {
    %c0_i32 = arith.constant 0 : i32
    %c0_i32_0 = arith.constant 0 : i32
    %c0_i32_1 = arith.constant 0 : i32
    return %c0_i32, %c0_i32_0 : i32, i32
  }
  func.func @transform_3(%arg0: i32) -> (i32, i32, i32) {
    %c0_i32 = arith.constant 0 : i32
    %c0_i32_0 = arith.constant 0 : i32
    %c0_i32_1 = arith.constant 0 : i32
    %c0_i32_2 = arith.constant 0 : i32
    return %c0_i32, %c0_i32_0, %c0_i32_1 : i32, i32, i32
  }
  func.func @transform_4(%arg0: i32) -> (i32, i32) {
    %c0_i32 = arith.constant 0 : i32
    %c0_i32_0 = arith.constant 0 : i32
    %c0_i32_1 = arith.constant 0 : i32
    return %c0_i32, %c0_i32_0 : i32, i32
  }
  func.func @transform_5(%arg0: i32) -> (i32, i32, i32) {
    %c0_i32 = arith.constant 0 : i32
    %c0_i32_0 = arith.constant 0 : i32
    %c0_i32_1 = arith.constant 0 : i32
    %c0_i32_2 = arith.constant 0 : i32
    return %c0_i32, %c0_i32_0, %c0_i32_1 : i32, i32, i32
  }
  func.func @transform_6(%arg0: i32) -> (i32, i32) {
    %c0_i32 = arith.constant 0 : i32
    %c0_i32_0 = arith.constant 0 : i32
    %c0_i32_1 = arith.constant 0 : i32
    return %c0_i32, %c0_i32_0 : i32, i32
  }
  func.func @transform_7(%arg0: i32) -> (i32, i32) {
    %c0_i32 = arith.constant 0 : i32
    %c0_i32_0 = arith.constant 0 : i32
    %c0_i32_1 = arith.constant 0 : i32
    return %c0_i32, %c0_i32_0 : i32, i32
  }
  func.func @transform_8(%arg0: i32) -> (i32, i32) {
    %c0_i32 = arith.constant 0 : i32
    %c0_i32_0 = arith.constant 0 : i32
    %c0_i32_1 = arith.constant 0 : i32
    return %c0_i32, %c0_i32_0 : i32, i32
  }
  func.func @transform_9(%arg0: i32) -> (i32, i32) {
    %c0_i32 = arith.constant 0 : i32
    %c0_i32_0 = arith.constant 0 : i32
    %c0_i32_1 = arith.constant 0 : i32
    return %c0_i32, %c0_i32_0 : i32, i32
  }
  func.func @transform_10(%arg0: i32) -> (i32, i32) {
    %c0_i32 = arith.constant 0 : i32
    %c0_i32_0 = arith.constant 0 : i32
    %c0_i32_1 = arith.constant 0 : i32
    return %c0_i32, %c0_i32_0 : i32, i32
  }
  func.func @transform_11(%arg0: i32) -> (i32, i32) {
    %c0_i32 = arith.constant 0 : i32
    %c0_i32_0 = arith.constant 0 : i32
    %c0_i32_1 = arith.constant 0 : i32
    return %c0_i32, %c0_i32_0 : i32, i32
  }
  func.func @transform_12(%arg0: i32) -> (i32, i32) {
    %c0_i32 = arith.constant 0 : i32
    %c0_i32_0 = arith.constant 0 : i32
    %c0_i32_1 = arith.constant 0 : i32
    return %c0_i32, %c0_i32_0 : i32, i32
  }
  func.func @transform_13(%arg0: i32) -> (i32, i32) {
    %c0_i32 = arith.constant 0 : i32
    %c0_i32_0 = arith.constant 0 : i32
    return %arg0, %c0_i32 : i32, i32
  }
}

</mosaic_0001>

<bundles_post_ra>
// kernel: queen_of_aurora_forward.1
= control target key start
LH: loop header
LB: loop body
LE: loop exit
PB: predicated region body
PF: predicated region fallthrough
CT: control target
= control target key end

     0   :  { %18 = vsyncpa [#allocation3], 0  ;;  %s22205_s0 = inlined_call_operand.vmem [shape: bf16[64,128], index: 0, kind: input, shape index: {}]   ;;  %s22206_s1 = inlined_call_operand.hbm [shape: bf16[128,512], index: 1, kind: input, shape index: {}]   ;;  %s22207_s2 = inlined_call_operand.hbm [shape: f32[1,512], index: 2, kind: input, shape index: {}]   ;;  %s22208_s3 = inlined_call_operand.hbm [shape: bf16[5,512,512], index: 3, kind: input, shape index: {}]   ;;  %s22209_s4 = inlined_call_operand.hbm [shape: f32[1,512], index: 4, kind: input, shape index: {}]   ;;  %s22210_s5 = inlined_call_operand.hbm [shape: bf16[3,512,512], index: 5, kind: input, shape index: {}]   ;;  %s22211_s6 = inlined_call_operand.hbm [shape: f32[1,512], index: 6, kind: input, shape index: {}]   ;;  %s22212_s7 = inlined_call_operand.hbm [shape: bf16[1024,1024], index: 7, kind: input, shape index: {}]   ;;  %s22213_s8 = inlined_call_operand.hbm [shape: f32[1,1024], index: 8, kind: input, shape index: {}]   ;;  %s22214_s9 = inlined_call_operand.hbm [shape: bf16[1024,512], index: 9, kind: input, shape index: {}]   ;;  %s22215_s10 = inlined_call_operand.hbm [shape: f32[1,512], index: 10, kind: input, shape index: {}]   ;;  %s22216_s11 = inlined_call_operand.hbm [shape: bf16[512,128], index: 11, kind: input, shape index: {}]   ;;  %s22217_s12 = inlined_call_operand.hbm [shape: f32[1,128], index: 12, kind: input, shape index: {}]   ;;  %s22218_s13 = inlined_call_operand.vmem [shape: f32[8,128], index: 13, kind: output, shape index: {}]  }
   0x1   :  { %19 = vsyncpa [#allocation5], 0 }
   0x2   :  { %20 = vsyncpa [#allocation8], 0 }
   0x3   :  { %21 = vsyncpa [#allocation11], 0 }
   0x4   :  { %22 = vsyncpa [#allocation14], 0 }
   0x5   :  { %23 = vsyncpa [#allocation17], 0 }
   0x6   :  { %24 = vsyncpa [#allocation20], 0  ;;  %s20990_s25 = smov [#allocation4]   ;;  %s20991_s27 = smov [#allocation7]  }
   0x7   :  { %s45_s26 = sshll.u32 %s20990_s25, 4  ;;  %s67_s28 = sshll.u32 %s20991_s27, 4  ;;  %s46_s26 = int_to_ptr.vmem [resolvable:$true] %s45_s26  ;;  %s68_s28 = int_to_ptr.vmem [resolvable:$true] %s67_s28 }
   0x8   :  { %s20712_s14 = scalar_lea.hbm %s22207_s2, 64 }
   0x9   :  { %p20713_p0 = scmp.ne.s32.totalorder %s22207_s2, %s20712_s14  ;;  %p20716_p1 = scmp.lt.u32.totalorder %s20712_s14, %s22207_s2 }
   0xb   :  { %p20718_p2 = pnand %p20716_p1, %p20713_p0 }
   0xd   :  { %20721 = shalt.err (!%p20718_p2)
}
   0xe   :  { %s20722_s19 = scalar_lea.vmem %s46_s26, 64  ;;  %p20727_p4 = scmp.lt.s32.totalorder %s46_s26, %s46_s26 }
   0xf   :  { %p20723_p3 = scmp.ne.s32.totalorder %s46_s26, %s20722_s19  ;;  %p20728_p5 = scmp.lt.s32.totalorder %s20722_s19, %s20722_s19 }
  0x11   :  { %p20729_p6 = por %p20728_p5, %p20727_p4 }
  0x13   :  { %p20730_p7 = pnand %p20729_p6, %p20723_p3 }
  0x15   :  { %20733 = shalt.err (!%p20730_p7)
}
  0x16   :  { %48 = dma.hbm_to_vmem [thread:$0]  %s22207_s2, 64, %s46_s26, [#allocation5]  }
  0x17   :  { %s20734_s24 = scalar_lea.hbm %s22209_s4, 64 }
  0x18   :  { %p20735_p8 = scmp.ne.s32.totalorder %s22209_s4, %s20734_s24  ;;  %p20738_p9 = scmp.lt.u32.totalorder %s20734_s24, %s22209_s4 }
  0x1a   :  { %p20740_p10 = pnand %p20738_p9, %p20735_p8 }
  0x1c   :  { %20743 = shalt.err (!%p20740_p10)
}
  0x1d   :  { %s20744_s14 = scalar_lea.vmem %s68_s28, 64  ;;  %p20749_p12 = scmp.lt.s32.totalorder %s68_s28, %s68_s28 }
  0x1e   :  { %p20745_p11 = scmp.ne.s32.totalorder %s68_s28, %s20744_s14  ;;  %p20750_p13 = scmp.lt.s32.totalorder %s20744_s14, %s20744_s14 }
  0x20   :  { %p20751_p0 = por %p20750_p13, %p20749_p12 }
  0x22   :  { %p20752_p1 = pnand %p20751_p0, %p20745_p11 }
  0x24   :  { %20755 = shalt.err (!%p20752_p1)
}
  0x25   :  { %70 = dma.hbm_to_vmem [thread:$0]  %s22209_s4, 64, %s68_s28, [#allocation8]  }
  0x26   :  { %s20992_s15 = smov [#allocation10]   ;;  %s20993_s17 = smov [#allocation13]  }
  0x27   :  { %s89_s16 = sshll.u32 %s20992_s15, 4  ;;  %s111_s18 = sshll.u32 %s20993_s17, 4  ;;  %s90_s16 = int_to_ptr.vmem [resolvable:$true] %s89_s16  ;;  %s112_s18 = int_to_ptr.vmem [resolvable:$true] %s111_s18 }
  0x28   :  { %s20756_s21 = scalar_lea.hbm %s22211_s6, 64 }
  0x29   :  { %p20757_p2 = scmp.ne.s32.totalorder %s22211_s6, %s20756_s21  ;;  %p20760_p3 = scmp.lt.u32.totalorder %s20756_s21, %s22211_s6 }
  0x2b   :  { %p20762_p4 = pnand %p20760_p3, %p20757_p2 }
  0x2d   :  { %20765 = shalt.err (!%p20762_p4)
}
  0x2e   :  { %s20766_s4 = scalar_lea.vmem %s90_s16, 64  ;;  %p20771_p6 = scmp.lt.s32.totalorder %s90_s16, %s90_s16 }
  0x2f   :  { %p20767_p5 = scmp.ne.s32.totalorder %s90_s16, %s20766_s4  ;;  %p20772_p7 = scmp.lt.s32.totalorder %s20766_s4, %s20766_s4 }
  0x31   :  { %p20773_p8 = por %p20772_p7, %p20771_p6 }
  0x33   :  { %p20774_p9 = pnand %p20773_p8, %p20767_p5 }
  0x35   :  { %20777 = shalt.err (!%p20774_p9)
}
  0x36   :  { %92 = dma.hbm_to_vmem [thread:$0]  %s22211_s6, 64, %s90_s16, [#allocation11]  }
  0x37   :  { %s20778_s14 = scalar_lea.hbm %s22213_s8, 128 }
  0x38   :  { %p20779_p10 = scmp.ne.s32.totalorder %s22213_s8, %s20778_s14  ;;  %p20782_p11 = scmp.lt.u32.totalorder %s20778_s14, %s22213_s8 }
  0x3a   :  { %p20784_p12 = pnand %p20782_p11, %p20779_p10 }
  0x3c   :  { %20787 = shalt.err (!%p20784_p12)
}
  0x3d   :  { %s20788_s19 = scalar_lea.vmem %s112_s18, 128  ;;  %p20793_p0 = scmp.lt.s32.totalorder %s112_s18, %s112_s18 }
  0x3e   :  { %p20789_p13 = scmp.ne.s32.totalorder %s112_s18, %s20788_s19  ;;  %p20794_p1 = scmp.lt.s32.totalorder %s20788_s19, %s20788_s19 }
  0x40   :  { %p20795_p2 = por %p20794_p1, %p20793_p0 }
  0x42   :  { %p20796_p3 = pnand %p20795_p2, %p20789_p13 }
  0x44   :  { %20799 = shalt.err (!%p20796_p3)
}
  0x45   :  { %114 = dma.hbm_to_vmem [thread:$0]  %s22213_s8, 128, %s112_s18, [#allocation14]  }
  0x46   :  { %s20994_s20 = smov [#allocation16]   ;;  %s20995_s22 = smov [#allocation2]  }
  0x47   :  { %s133_s21 = sshll.u32 %s20994_s20, 4  ;;  %s32_s23 = sshll.u32 %s20995_s22, 4  ;;  %s134_s21 = int_to_ptr.vmem [resolvable:$true] %s133_s21  ;;  %s21129_s23 = int_to_ptr.vmem [resolvable:$true] %s32_s23 }
  0x48   :  { %s20800_s4 = scalar_lea.hbm %s22215_s10, 64 }
  0x49   :  { %p20801_p4 = scmp.ne.s32.totalorder %s22215_s10, %s20800_s4  ;;  %p20804_p5 = scmp.lt.u32.totalorder %s20800_s4, %s22215_s10 }
  0x4b   :  { %p20806_p6 = pnand %p20804_p5, %p20801_p4 }
  0x4d   :  { %20809 = shalt.err (!%p20806_p6)
}
  0x4e   :  { %s20810_s8 = scalar_lea.vmem %s134_s21, 64  ;;  %p20815_p8 = scmp.lt.s32.totalorder %s134_s21, %s134_s21 }
  0x4f   :  { %p20811_p7 = scmp.ne.s32.totalorder %s134_s21, %s20810_s8  ;;  %p20816_p9 = scmp.lt.s32.totalorder %s20810_s8, %s20810_s8 }
  0x51   :  { %p20817_p10 = por %p20816_p9, %p20815_p8 }
  0x53   :  { %p20818_p11 = pnand %p20817_p10, %p20811_p7 }
  0x55   :  { %20821 = shalt.err (!%p20818_p11)
}
  0x56   :  { %136 = dma.hbm_to_vmem [thread:$0]  %s22215_s10, 64, %s134_s21, [#allocation17]  }
  0x57   :  { %s20822_s15 = scalar_lea.hbm %s22206_s1, 4096 }
  0x58   :  { %p20823_p12 = scmp.ne.s32.totalorder %s22206_s1, %s20822_s15  ;;  %p20826_p13 = scmp.lt.u32.totalorder %s20822_s15, %s22206_s1 }
  0x5a   :  { %p20828_p0 = pnand %p20826_p13, %p20823_p12 }
  0x5c   :  { %20831 = shalt.err (!%p20828_p0)
}
  0x5d   :  { %s20832_s20 = scalar_lea.vmem %s21129_s23, 4096  ;;  %p20837_p2 = scmp.lt.s32.totalorder %s21129_s23, %s21129_s23 }
  0x5e   :  { %p20833_p1 = scmp.ne.s32.totalorder %s21129_s23, %s20832_s20  ;;  %p20838_p3 = scmp.lt.s32.totalorder %s20832_s20, %s20832_s20 }
  0x60   :  { %p20839_p4 = por %p20838_p3, %p20837_p2 }
  0x62   :  { %p20840_p5 = pnand %p20839_p4, %p20833_p1 }
  0x64   :  { %20843 = shalt.err (!%p20840_p5)
}
  0x65   :  { %s20996_s10 = smov 256   ;;  %s20997_s21 = smov 16  }
  0x66   :  { %38 = dma.hbm_to_vmem [thread:$0]  %s22206_s1, 4096, %s21129_s23, [#allocation3], %s20996_s10, %s20996_s10, %s20997_s21  }
  0x67   :  { %s20998_s25 = smov [#allocation6]   ;;  %s20999_s28 = smov [#allocation9]  }
  0x68   :  { %s54_s4 = sshll.u32 %s20998_s25, 4  ;;  %s76_s27 = sshll.u32 %s20999_s28, 4  ;;  %s55_s4 = int_to_ptr.vmem [resolvable:$true] %s54_s4  ;;  %s21163_s27 = int_to_ptr.vmem [resolvable:$true] %s76_s27 }
  0x69   :  { %s20844_s8 = scalar_lea.hbm %s22208_s3, 81920 }
  0x6a   :  { %p20845_p6 = scmp.ne.s32.totalorder %s22208_s3, %s20844_s8  ;;  %p20848_p7 = scmp.lt.u32.totalorder %s20844_s8, %s22208_s3 }
  0x6c   :  { %p20850_p8 = pnand %p20848_p7, %p20845_p6 }
  0x6e   :  { %20853 = shalt.err (!%p20850_p8)
}
  0x6f   :  { %s20854_s1 = scalar_lea.vmem %s55_s4, 81920  ;;  %p20859_p10 = scmp.lt.s32.totalorder %s55_s4, %s55_s4 }
  0x70   :  { %p20855_p9 = scmp.ne.s32.totalorder %s55_s4, %s20854_s1  ;;  %p20860_p11 = scmp.lt.s32.totalorder %s20854_s1, %s20854_s1 }
  0x72   :  { %p20861_p12 = por %p20860_p11, %p20859_p10 }
  0x74   :  { %p20862_p13 = pnand %p20861_p12, %p20855_p9 }
  0x76   :  { %20865 = shalt.err (!%p20862_p13)
}
  0x77   :  { %60 = dma.hbm_to_vmem [thread:$0]  %s22208_s3, 81920, %s55_s4, [#allocation5], %s20996_s10, %s20996_s10, %s20997_s21  }
  0x78   :  { %s20866_s6 = scalar_lea.hbm %s22210_s5, 49152 }
  0x79   :  { %p20867_p0 = scmp.ne.s32.totalorder %s22210_s5, %s20866_s6  ;;  %p20870_p1 = scmp.lt.u32.totalorder %s20866_s6, %s22210_s5 }
  0x7b   :  { %p20872_p2 = pnand %p20870_p1, %p20867_p0 }
  0x7d   :  { %20875 = shalt.err (!%p20872_p2)
}
  0x7e   :  { %s20876_s25 = scalar_lea.vmem %s21163_s27, 49152  ;;  %p20881_p4 = scmp.lt.s32.totalorder %s21163_s27, %s21163_s27 }
  0x7f   :  { %p20877_p3 = scmp.ne.s32.totalorder %s21163_s27, %s20876_s25  ;;  %p20882_p5 = scmp.lt.s32.totalorder %s20876_s25, %s20876_s25 }
  0x81   :  { %p20883_p6 = por %p20882_p5, %p20881_p4 }
  0x83   :  { %p20884_p7 = pnand %p20883_p6, %p20877_p3 }
  0x85   :  { %20887 = shalt.err (!%p20884_p7)
}
  0x86   :  { %82 = dma.hbm_to_vmem [thread:$0]  %s22210_s5, 49152, %s21163_s27, [#allocation8], %s20996_s10, %s20996_s10, %s20997_s21  }
  0x87   :  { %s21000_s28 = smov [#allocation12]   ;;  %s20888_s18 = scalar_lea.hbm %s22212_s7, 65536 }
  0x88   :  { %s98_s29 = sshll.u32 %s21000_s28, 4  ;;  %p20889_p8 = scmp.ne.s32.totalorder %s22212_s7, %s20888_s18  ;;  %s99_s29 = int_to_ptr.vmem [resolvable:$true] %s98_s29 }
  0x89   :  { %p20892_p9 = scmp.lt.u32.totalorder %s20888_s18, %s22212_s7 }
  0x8b   :  { %p20894_p10 = pnand %p20892_p9, %p20889_p8 }
  0x8d   :  { %20897 = shalt.err (!%p20894_p10)
}
  0x8e   :  { %s20898_s23 = scalar_lea.vmem %s99_s29, 65536  ;;  %p20903_p12 = scmp.lt.s32.totalorder %s99_s29, %s99_s29 }
  0x8f   :  { %p20899_p11 = scmp.ne.s32.totalorder %s99_s29, %s20898_s23  ;;  %p20904_p13 = scmp.lt.s32.totalorder %s20898_s23, %s20898_s23 }
  0x91   :  { %p20905_p0 = por %p20904_p13, %p20903_p12 }
  0x93   :  { %p20906_p1 = pnand %p20905_p0, %p20899_p11 }
  0x95   :  { %20909 = shalt.err (!%p20906_p1)
}
  0x96   :  { %s21001_s5 = smov 512   ;;  %s21002_s27 = smov 32  }
  0x97   :  { %104 = dma.hbm_to_vmem [thread:$0]  %s22212_s7, 65536, %s99_s29, [#allocation11], %s21001_s5, %s21001_s5, %s21002_s27  }
  0x98   :  { %s21003_s19 = smov [#allocation15]   ;;  %s21004_s16 = smov [#allocation18]  }
  0x99   :  { %s120_s6 = sshll.u32 %s21003_s19, 4  ;;  %s142_s20 = sshll.u32 %s21004_s16, 4  ;;  %s121_s6 = int_to_ptr.vmem [resolvable:$true] %s120_s6  ;;  %s143_s20 = int_to_ptr.vmem [resolvable:$true] %s142_s20 }
  0x9a   :  { %s20910_s25 = scalar_lea.hbm %s22214_s9, 32768 }
  0x9b   :  { %p20911_p2 = scmp.ne.s32.totalorder %s22214_s9, %s20910_s25  ;;  %p20914_p3 = scmp.lt.u32.totalorder %s20910_s25, %s22214_s9 }
  0x9d   :  { %p20916_p4 = pnand %p20914_p3, %p20911_p2 }
  0x9f   :  { %20919 = shalt.err (!%p20916_p4)
}
  0xa0   :  { %s20920_s7 = scalar_lea.vmem %s121_s6, 32768  ;;  %p20925_p6 = scmp.lt.s32.totalorder %s121_s6, %s121_s6 }
  0xa1   :  { %p20921_p5 = scmp.ne.s32.totalorder %s121_s6, %s20920_s7  ;;  %p20926_p7 = scmp.lt.s32.totalorder %s20920_s7, %s20920_s7 }
  0xa3   :  { %p20927_p8 = por %p20926_p7, %p20925_p6 }
  0xa5   :  { %p20928_p9 = pnand %p20927_p8, %p20921_p5 }
  0xa7   :  { %20931 = shalt.err (!%p20928_p9)
}
  0xa8   :  { %126 = dma.hbm_to_vmem [thread:$0]  %s22214_s9, 32768, %s121_s6, [#allocation14], %s20996_s10, %s20996_s10, %s20997_s21  }
  0xa9   :  { %s20932_s2 = scalar_lea.hbm %s22216_s11, 4096 }
  0xaa   :  { %p20933_p10 = scmp.ne.s32.totalorder %s22216_s11, %s20932_s2  ;;  %p20936_p11 = scmp.lt.u32.totalorder %s20932_s2, %s22216_s11 }
  0xac   :  { %p20938_p12 = pnand %p20936_p11, %p20933_p10 }
  0xae   :  { %20941 = shalt.err (!%p20938_p12)
}
  0xaf   :  { %s20942_s27 = scalar_lea.vmem %s143_s20, 4096  ;;  %p20947_p0 = scmp.lt.s32.totalorder %s143_s20, %s143_s20 }
  0xb0   :  { %p20943_p13 = scmp.ne.s32.totalorder %s143_s20, %s20942_s27  ;;  %p20948_p1 = scmp.lt.s32.totalorder %s20942_s27, %s20942_s27 }
  0xb2   :  { %p20949_p2 = por %p20948_p1, %p20947_p0 }
  0xb4   :  { %p20950_p3 = pnand %p20949_p2, %p20943_p13 }
  0xb6   :  { %20953 = shalt.err (!%p20950_p3)
}
  0xb7   :  { %s21005_s9 = smov 64   ;;  %s21006_s10 = smov 4  }
  0xb8   :  { %148 = dma.hbm_to_vmem [thread:$0]  %s22216_s11, 4096, %s143_s20, [#allocation17], %s21005_s9, %s21005_s9, %s21006_s10  }
  0xb9   :  { %s21007_s17 = smov [#allocation19]   ;;  %s20954_s22 = scalar_lea.hbm %s22217_s12, 16 }
  0xba   :  { %s155_s19 = sshll.u32 %s21007_s17, 4  ;;  %p20955_p4 = scmp.ne.s32.totalorder %s22217_s12, %s20954_s22  ;;  %s156_s19 = int_to_ptr.vmem [resolvable:$true] %s155_s19 }
  0xbb   :  { %p20958_p5 = scmp.lt.u32.totalorder %s20954_s22, %s22217_s12 }
  0xbd   :  { %p20960_p6 = pnand %p20958_p5, %p20955_p4 }
  0xbf   :  { %20963 = shalt.err (!%p20960_p6)
}
  0xc0   :  { %s20964_s28 = scalar_lea.vmem %s156_s19, 16  ;;  %s20968_s11 = scalar_lea.vmem %s156_s19, 32 }
  0xc1   :  { %p20965_p7 = scmp.ne.s32.totalorder %s156_s19, %s20964_s28  ;;  %p20969_p8 = scmp.lt.s32.totalorder %s156_s19, %s156_s19 }
  0xc2   :  { %p20970_p9 = scmp.lt.s32.totalorder %s20968_s11, %s20964_s28 }
  0xc4   :  { %p20971_p10 = por %p20970_p9, %p20969_p8 }
  0xc6   :  { %p20972_p11 = pnand %p20971_p10, %p20965_p7 }
  0xc8   :  { %20975 = shalt.err (!%p20972_p11)
}
  0xc9   :  { %158 = dma.hbm_to_vmem [thread:$0]  %s22217_s12, 16, %s156_s19, [#allocation20]  }
  0xca   :  { %20976 = dma.done.wait [#allocation3], 4096  }
  0xcb   :  { %20977 = vsyncadd [#allocation3], 4294963200 }
  0xcc   :  { %20978 = dma.done.wait [#allocation5], 81984  }
  0xcd   :  { %20979 = vsyncadd [#allocation5], 4294885312 }
  0xce   :  { %20980 = dma.done.wait [#allocation8], 49216  }
  0xcf   :  { %20981 = vsyncadd [#allocation8], 4294918080 }
  0xd0   :  { %20982 = dma.done.wait [#allocation11], 65600  }
  0xd1   :  { %20983 = vsyncadd [#allocation11], 4294901696 }
  0xd2   :  { %20984 = dma.done.wait [#allocation14], 32896  }
  0xd3   :  { %20985 = vsyncadd [#allocation14], 4294934400 }
  0xd4   :  { %20986 = dma.done.wait [#allocation17], 4160  }
  0xd5   :  { %20987 = vsyncadd [#allocation17], 4294963136 }
  0xd6   :  { %20988 = dma.done.wait [#allocation20], 16  }
  0xd7   :  { %20989 = vsyncadd [#allocation20], 4294967280  ;;  %v22221_v0 = vmov 0   ;;  %v18707_v1 = vld [vmem:[#allocation2 + $0x4] ss:$16 sps:$4 sm:$0xff]   ;;  %v18732_v37 = vld [vmem:[%s22205_s0 + $0x8] sm:$0xff]  }
  0xd8   :  { %474 = vmatprep.mubr.bf16.mxu0 %v22221_v0  ;;  %547 = vmatprep.mubr.bf16.mxu1 %v22221_v0  ;;  %v18709_v2 = vld [vmem:[#allocation2] ss:$16 sps:$4 sm:$0xff]   ;;  %v18710_v3 = vld [vmem:[#allocation2 + $0x24] ss:$16 sps:$4 sm:$0xff]   ;;  %v18734_v11 = vld [vmem:[#allocation2 + $0xc] ss:$16 sps:$4 sm:$0xff]  }
  0xd9   :  { %442 = vmatprep.subr.bf16.mxu0 %v18707_v1  ;;  %v18712_v4 = vld [vmem:[#allocation2 + $0x20] ss:$16 sps:$4 sm:$0xff]   ;;  %v18713_v5 = vld [vmem:[#allocation2 + $0x44] ss:$16 sps:$4 sm:$0xff]   ;;  %v18736_v12 = vld [vmem:[#allocation2 + $0x8] ss:$16 sps:$4 sm:$0xff]   ;;  %515 = vmatprep.subr.bf16.mxu1 %v18734_v11 }
  0xda   :  { %443 = vmatpush1.bf16.msra.mxu0 %v18709_v2  ;;  %v18715_v6 = vld [vmem:[#allocation2 + $0x40] ss:$16 sps:$4 sm:$0xff]   ;;  %v18716_v7 = vld [vmem:[#allocation2 + $0x64] ss:$16 sps:$4 sm:$0xff]   ;;  %v18737_v13 = vld [vmem:[#allocation2 + $0x2c] ss:$16 sps:$4 sm:$0xff]   ;;  %516 = vmatpush1.bf16.msra.mxu1 %v18736_v12 }
  0xdb   :  { %444 = vmatprep.subr.bf16.mxu0 %v18710_v3  ;;  %v18718_v8 = vld [vmem:[#allocation2 + $0x60] ss:$16 sps:$4 sm:$0xff]   ;;  %v18719_v9 = vld [vmem:[#allocation2 + $0x84] ss:$16 sps:$4 sm:$0xff]   ;;  %v18739_v15 = vld [vmem:[#allocation2 + $0x28] ss:$16 sps:$4 sm:$0xff]   ;;  %517 = vmatprep.subr.bf16.mxu1 %v18737_v13 }
  0xdc   :  { %v18721_v10 = vld [vmem:[#allocation2 + $0x80] ss:$16 sps:$4 sm:$0xff]   ;;  %v18722_v14 = vld [vmem:[#allocation2 + $0xa4] ss:$16 sps:$4 sm:$0xff]   ;;  %v18740_v16 = vld [vmem:[#allocation2 + $0x4c] ss:$16 sps:$4 sm:$0xff]  }
  0xdd   :  { %v18724_v17 = vld [vmem:[#allocation2 + $0xa0] ss:$16 sps:$4 sm:$0xff]   ;;  %v18725_v18 = vld [vmem:[#allocation2 + $0xc4] ss:$16 sps:$4 sm:$0xff]   ;;  %v18742_v19 = vld [vmem:[#allocation2 + $0x48] ss:$16 sps:$4 sm:$0xff]  }
  0xde   :  { %445 = vmatpush1.bf16.msra.mxu0 %v18712_v4  ;;  %518 = vmatpush1.bf16.msra.mxu1 %v18739_v15  ;;  %v18743_v20 = vld [vmem:[#allocation2 + $0x6c] ss:$16 sps:$4 sm:$0xff]   ;;  %v18727_v21 = vld [vmem:[#allocation2 + $0xc0] ss:$16 sps:$4 sm:$0xff]   ;;  %v18728_v22 = vld [vmem:[#allocation2 + $0xe4] ss:$16 sps:$4 sm:$0xff]  }
  0xdf   :  { %446 = vmatprep.subr.bf16.mxu0 %v18713_v5  ;;  %519 = vmatprep.subr.bf16.mxu1 %v18740_v16  ;;  %v18745_v23 = vld [vmem:[#allocation2 + $0x68] ss:$16 sps:$4 sm:$0xff]   ;;  %v18746_v24 = vld [vmem:[#allocation2 + $0x8c] ss:$16 sps:$4 sm:$0xff]   ;;  %v18730_v25 = vld [vmem:[#allocation2 + $0xe0] ss:$16 sps:$4 sm:$0xff]  }
  0xe0   :  { %v18761_v26 = vld [vmem:[#allocation6 + $0x404] ss:$16 sps:$4 sm:$0xff]   ;;  %v18731_v28 = vld [vmem:[%s22205_s0] sm:$0xff]   ;;  %v18749_v29 = vld [vmem:[#allocation2 + $0xac] ss:$16 sps:$4 sm:$0xff]   ;;  %vm5376_vm2 = vcmask 1045504  }
  0xe1   :  { %v18748_v27 = vld [vmem:[#allocation2 + $0x88] ss:$16 sps:$4 sm:$0xff]   ;;  %v18759_v30 = vld [vmem:[#allocation6 + $0x400] ss:$16 sps:$4 sm:$0xff]   ;;  %v18753_v33 = vld [vmem:[#allocation2 + $0xcc] ss:$16 sps:$4 sm:$0xff]  }
  0xe2   :  { %447 = vmatpush1.bf16.msra.mxu0 %v18715_v6  ;;  %520 = vmatpush1.bf16.msra.mxu1 %v18742_v19  ;;  %v18767_v31 = vld [vmem:[#allocation6 + $0x424] ss:$16 sps:$4 sm:$0xff]   ;;  %v18765_v34 = vld [vmem:[#allocation6 + $0x420] ss:$16 sps:$4 sm:$0xff]   ;;  %v18756_v38 = vld [vmem:[#allocation2 + $0xec] ss:$16 sps:$4 sm:$0xff]  }
  0xe3   :  { %448 = vmatprep.subr.bf16.mxu0 %v18716_v7  ;;  %521 = vmatprep.subr.bf16.mxu1 %v18743_v20  ;;  %v18751_v32 = vld [vmem:[#allocation2 + $0xa8] ss:$16 sps:$4 sm:$0xff]   ;;  %v18771_v39 = vld [vmem:[#allocation6 + $0x440] ss:$16 sps:$4 sm:$0xff]   ;;  %v18764_v42 = vld [vmem:[#allocation6 + $0x40c] ss:$16 sps:$4 sm:$0xff]  }
  0xe4   :  { %v18773_v35 = vld [vmem:[#allocation6 + $0x444] ss:$16 sps:$4 sm:$0xff]   ;;  %v18777_v43 = vld [vmem:[#allocation6 + $0x460] ss:$16 sps:$4 sm:$0xff]   ;;  %v18762_v45 = vld [vmem:[#allocation6 + $0x408] ss:$16 sps:$4 sm:$0xff]  }
  0xe5   :  { %v18755_v36 = vld [vmem:[#allocation2 + $0xc8] ss:$16 sps:$4 sm:$0xff]   ;;  %v18733_v46 = vld [vmem:[%s22205_s0 + $0x10] sm:$0xff]   ;;  %v18768_v50 = vld [vmem:[#allocation6 + $0x428] ss:$16 sps:$4 sm:$0xff]   ;;  %vm3054_vm3 = vcmask 1046528  }
  0xe6   :  { %449 = vmatpush1.bf16.msra.mxu0 %v18718_v8  ;;  %522 = vmatpush1.bf16.msra.mxu1 %v18745_v23  ;;  %v18779_v40 = vld [vmem:[#allocation6 + $0x464] ss:$16 sps:$4 sm:$0xff]   ;;  %v18770_v47 = vld [vmem:[#allocation6 + $0x42c] ss:$16 sps:$4 sm:$0xff]   ;;  %v18783_v48 = vld [vmem:[#allocation6 + $0x480] ss:$16 sps:$4 sm:$0xff]  }
  0xe7   :  { %450 = vmatprep.subr.bf16.mxu0 %v18719_v9  ;;  %523 = vmatprep.subr.bf16.mxu1 %v18746_v24  ;;  %v18758_v41 = vld [vmem:[#allocation2 + $0xe8] ss:$16 sps:$4 sm:$0xff]   ;;  %v18776_v51 = vld [vmem:[#allocation6 + $0x44c] ss:$16 sps:$4 sm:$0xff]   ;;  %v18789_v52 = vld [vmem:[#allocation6 + $0x4a0] ss:$16 sps:$4 sm:$0xff]  }
  0xe8   :  { %v18785_v44 = vld [vmem:[#allocation6 + $0x484] ss:$16 sps:$4 sm:$0xff]   ;;  %v18774_v55 = vld [vmem:[#allocation6 + $0x448] ss:$16 sps:$4 sm:$0xff]   ;;  %v18782_v56 = vld [vmem:[#allocation6 + $0x46c] ss:$16 sps:$4 sm:$0xff]  }
  0xe9   :  { %v18791_v49 = vld [vmem:[#allocation6 + $0x4a4] ss:$16 sps:$4 sm:$0xff]   ;;  %v18795_v57 = vld [vmem:[#allocation6 + $0x4c0] ss:$16 sps:$4 sm:$0xff]   ;;  %v18780_v59 = vld [vmem:[#allocation6 + $0x468] ss:$16 sps:$4 sm:$0xff]  }
  0xea   :  { %451 = vmatpush1.bf16.msra.mxu0 %v18721_v10  ;;  %524 = vmatpush1.bf16.msra.mxu1 %v18748_v27  ;;  %v18752_v53 = vld [vmem:[%s22205_s0 + $0x18] sm:$0xff]   ;;  %v18788_v60 = vld [vmem:[#allocation6 + $0x48c] ss:$16 sps:$4 sm:$0xff]   ;;  %v18801_v61 = vld [vmem:[#allocation6 + $0x4e0] ss:$16 sps:$4 sm:$0xff]   ;;  %vm10029_vm5 = vcmask 523264  }
  0xeb   :  { %452 = vmatprep.subr.bf16.mxu0 %v18722_v14  ;;  %525 = vmatprep.subr.bf16.mxu1 %v18749_v29  ;;  %v18797_v54 = vld [vmem:[#allocation6 + $0x4c4] ss:$16 sps:$4 sm:$0xff]   ;;  %v18786_v63 = vld [vmem:[#allocation6 + $0x488] ss:$16 sps:$4 sm:$0xff]   ;;  %v18794_v1 = vld [vmem:[#allocation6 + $0x4ac] ss:$16 sps:$4 sm:$0xff]  }
  0xec   :  { %v18803_v58 = vld [vmem:[#allocation6 + $0x4e4] ss:$16 sps:$4 sm:$0xff]   ;;  %v18807_v2 = vld [vmem:[#allocation6 + $0x500] ss:$16 sps:$4 sm:$0xff]   ;;  %v18792_v4 = vld [vmem:[#allocation6 + $0x4a8] ss:$16 sps:$4 sm:$0xff]  }
  0xed   :  { %v18809_v62 = vld [vmem:[#allocation6 + $0x504] ss:$16 sps:$4 sm:$0xff]   ;;  %v18800_v5 = vld [vmem:[#allocation6 + $0x4cc] ss:$16 sps:$4 sm:$0xff]   ;;  %v18813_v6 = vld [vmem:[#allocation6 + $0x520] ss:$16 sps:$4 sm:$0xff]  }
  0xee   :  { %453 = vmatpush1.bf16.msra.mxu0 %v18724_v17  ;;  %526 = vmatpush1.bf16.msra.mxu1 %v18751_v32  ;;  %v18815_v3 = vld [vmem:[#allocation6 + $0x524] ss:$16 sps:$4 sm:$0xff]   ;;  %v18798_v8 = vld [vmem:[#allocation6 + $0x4c8] ss:$16 sps:$4 sm:$0xff]   ;;  %v18806_v9 = vld [vmem:[#allocation6 + $0x4ec] ss:$16 sps:$4 sm:$0xff]  }
  0xef   :  { %454 = vmatprep.subr.bf16.mxu0 %v18725_v18  ;;  %527 = vmatprep.subr.bf16.mxu1 %v18753_v33  ;;  %v18821_v7 = vld [vmem:[#allocation6 + $0x544] ss:$16 sps:$4 sm:$0xff]   ;;  %v18819_v10 = vld [vmem:[#allocation6 + $0x540] ss:$16 sps:$4 sm:$0xff]   ;;  %v18804_v11 = vld [vmem:[#allocation6 + $0x4e8] ss:$16 sps:$4 sm:$0xff]  }
  0xf0   :  { %v18812_v12 = vld [vmem:[#allocation6 + $0x50c] ss:$16 sps:$4 sm:$0xff]   ;;  %v18810_v13 = vld [vmem:[#allocation6 + $0x508] ss:$16 sps:$4 sm:$0xff]   ;;  %v18827_v18 = vld [vmem:[#allocation6 + $0x564] ss:$16 sps:$4 sm:$0xff]  }
  0xf1   :  { %v18818_v14 = vld [vmem:[#allocation6 + $0x52c] ss:$16 sps:$4 sm:$0xff]   ;;  %v18816_v15 = vld [vmem:[#allocation6 + $0x528] ss:$16 sps:$4 sm:$0xff]   ;;  %v18825_v20 = vld [vmem:[#allocation6 + $0x560] ss:$16 sps:$4 sm:$0xff]  }
  0xf2   :  { %455 = vmatpush1.bf16.msra.mxu0 %v18727_v21  ;;  %528 = vmatpush1.bf16.msra.mxu1 %v18755_v36  ;;  %v18824_v16 = vld [vmem:[#allocation6 + $0x54c] ss:$16 sps:$4 sm:$0xff]   ;;  %v18822_v17 = vld [vmem:[#allocation6 + $0x548] ss:$16 sps:$4 sm:$0xff]   ;;  %v18831_v24 = vld [vmem:[#allocation6 + $0x580] ss:$16 sps:$4 sm:$0xff]  }
  0xf3   :  { %456 = vmatprep.subr.bf16.mxu0 %v18728_v22  ;;  %529 = vmatprep.subr.bf16.mxu1 %v18756_v38  ;;  %v18830_v19 = vld [vmem:[#allocation6 + $0x56c] ss:$16 sps:$4 sm:$0xff]   ;;  %v18828_v21 = vld [vmem:[#allocation6 + $0x568] ss:$16 sps:$4 sm:$0xff]   ;;  %v18833_v22 = vld [vmem:[#allocation6 + $0x584] ss:$16 sps:$4 sm:$0xff]  }
  0xf4   :  { %v18836_v23 = vld [vmem:[#allocation6 + $0x58c] ss:$16 sps:$4 sm:$0xff]   ;;  %v18840_v29 = vld [vmem:[#allocation6 + $0x5a8] ss:$16 sps:$4 sm:$0xff]   ;;  %v18843_v32 = vld [vmem:[#allocation6 + $0x5c0] ss:$16 sps:$4 sm:$0xff]  }
  0xf5   :  { %v18842_v27 = vld [vmem:[#allocation6 + $0x5ac] ss:$16 sps:$4 sm:$0xff]   ;;  %v18846_v33 = vld [vmem:[#allocation6 + $0x5c8] ss:$16 sps:$4 sm:$0xff]   ;;  %v18849_v36 = vld [vmem:[#allocation6 + $0x5e0] ss:$16 sps:$4 sm:$0xff]  }
  0xf6   :  { %457 = vmatpush1.bf16.msra.mxu0 %v18730_v25  ;;  %530 = vmatpush1.bf16.msra.mxu1 %v18758_v41  ;;  %v18834_v25 = vld [vmem:[#allocation6 + $0x588] ss:$16 sps:$4 sm:$0xff]   ;;  %v18857_v38 = vld [vmem:[#allocation6 + $0x604] ss:$16 sps:$4 sm:$0xff]   ;;  %vm895_vm0 = vsmask.f32 7424 }
  0xf7   :  { %1684 = vmatprep.subr.bf16.mxu0 %v18761_v26  ;;  %1830 = vmatprep.subr.bf16.mxu1 %v18764_v42  ;;  %v18839_v26 = vld [vmem:[#allocation6 + $0x5a4] ss:$16 sps:$4 sm:$0xff]   ;;  %vm4197_vm1 = vsmask.f32 6400 }
  0xf9   :  { %475 = vmatmul.mubr.bf16.vlgmr.msra.gmra.mrb[0].mxu0 %v18731_v28  ;;  %548 = vmatmul.mubr.bf16.vlgmr.msra.gmra.mrb[0].mxu1 %v18731_v28  ;;  %v18837_v28 = vld [vmem:[#allocation6 + $0x5a0] ss:$16 sps:$4 sm:$0xff]  }
  0xfa   :  { %484 = vmatprep.mubr.bf16.mxu0 %v22221_v0  ;;  %1685 = vmatpush1.bf16.msra.mxu0 %v18759_v30  ;;  %v18845_v30 = vld [vmem:[#allocation6 + $0x5c4] ss:$16 sps:$4 sm:$0xff]  }
  0xfb   :  { %1686 = vmatprep.subr.bf16.mxu0 %v18767_v31  ;;  %557 = vmatprep.mubr.bf16.mxu1 %v22221_v0  ;;  %v18848_v31 = vld [vmem:[#allocation6 + $0x5cc] ss:$16 sps:$4 sm:$0xff]  }
  0xfc   :  { %1831 = vmatpush1.bf16.msra.mxu1 %v18762_v45 }
  0xfd   :  { %1832 = vmatprep.subr.bf16.mxu1 %v18770_v47 }
  0xfe   :  { %1687 = vmatpush1.bf16.msra.mxu0 %v18765_v34  ;;  %v18851_v34 = vld [vmem:[#allocation6 + $0x5e4] ss:$16 sps:$4 sm:$0xff]  }
  0xff   :  { %1688 = vmatprep.subr.bf16.mxu0 %v18773_v35  ;;  %v18854_v35 = vld [vmem:[#allocation6 + $0x5ec] ss:$16 sps:$4 sm:$0xff]  }
 0x100   :  { %1833 = vmatpush1.bf16.msra.mxu1 %v18768_v50 }
 0x101   :  { %485 = vmatmul.mubr.bf16.gmra.mrb[4].mxu0 %v18732_v37  ;;  %1834 = vmatprep.subr.bf16.mxu1 %v18776_v51 }
 0x102   :  { %494 = vmatprep.mubr.bf16.mxu0 %v22221_v0  ;;  %1689 = vmatpush1.bf16.msra.mxu0 %v18771_v39  ;;  %v18860_v39 = vld [vmem:[#allocation6 + $0x60c] ss:$16 sps:$4 sm:$0xff]  }
 0x103   :  { %1690 = vmatprep.subr.bf16.mxu0 %v18779_v40  ;;  %558 = vmatmul.mubr.bf16.gmra.mrb[4].mxu1 %v18732_v37  ;;  %v18852_v37 = vld [vmem:[#allocation6 + $0x5e8] ss:$16 sps:$4 sm:$0xff]   ;;  %v22219_v40 = vlaneseq }
 0x104   :  { %567 = vmatprep.mubr.bf16.mxu1 %v22221_v0  ;;  %1835 = vmatpush1.bf16.msra.mxu1 %v18774_v55 }
 0x105   :  { %1836 = vmatprep.subr.bf16.mxu1 %v18782_v56  ;;  %v21272_v41 = vshrl.u32 %v22219_v40, 7 }
 0x106   :  { %1691 = vmatpush1.bf16.msra.mxu0 %v18777_v43  ;;  %v236_v43 = vld [vmem:[#allocation4] sm:$0xf] }
 0x107   :  { %1692 = vmatprep.subr.bf16.mxu0 %v18785_v44  ;;  %22239 = vst [vmem:[#allocation28_spill] sm:$0xff] %v21272_v41  ;;  %v21275_v42 = vsub.s32 0, %v21272_v41  ;;  %v21278_v44 = vsub.s32 1, %v21272_v41 }
 0x108   :  { %1837 = vmatpush1.bf16.msra.mxu1 %v18780_v59 }
 0x109   :  { %495 = vmatmul.mubr.bf16.gmra.mrb[8].mxu0 %v18733_v46  ;;  %1838 = vmatprep.subr.bf16.mxu1 %v18788_v60  ;;  %v21281_v45 = vrot.slane %v236_v43, %v21275_v42  ;;  %v21293_v60 = vsub.s32 2, %v21272_v41 }
 0x10a   :  { %504 = vmatprep.mubr.bf16.mxu0 %v22221_v0  ;;  %1693 = vmatpush1.bf16.msra.mxu0 %v18783_v48 }
 0x10b   :  { %1694 = vmatprep.subr.bf16.mxu0 %v18791_v49  ;;  %568 = vmatmul.mubr.bf16.gmra.mrb[8].mxu1 %v18733_v46  ;;  %v21284_v46 = vrot.slane %v236_v43, %v21278_v44 }
 0x10c   :  { %577 = vmatprep.mubr.bf16.mxu1 %v22221_v0  ;;  %1839 = vmatpush1.bf16.msra.mxu1 %v18786_v63 }
 0x10d   :  { %1840 = vmatprep.subr.bf16.mxu1 %v18794_v1 }
 0x10e   :  { %1695 = vmatpush1.bf16.msra.mxu0 %v18789_v52 }
 0x10f   :  { %1696 = vmatprep.subr.bf16.mxu0 %v18797_v54 }
 0x110   :  { %1841 = vmatpush1.bf16.msra.mxu1 %v18792_v4 }
 0x111   :  { %505 = vmatmul.mubr.bf16.gmra.mrb[12].mxu0 %v18752_v53  ;;  %1842 = vmatprep.subr.bf16.mxu1 %v18800_v5 }
 0x112   :  { %1697 = vmatpush1.bf16.msra.mxu0 %v18795_v57 }
 0x113   :  { %1698 = vmatprep.subr.bf16.mxu0 %v18803_v58  ;;  %578 = vmatmul.mubr.bf16.gmra.mrb[12].mxu1 %v18752_v53 }
 0x114   :  { %1843 = vmatpush1.bf16.msra.mxu1 %v18798_v8 }
 0x115   :  { %1844 = vmatprep.subr.bf16.mxu1 %v18806_v9 }
 0x116   :  { %1699 = vmatpush1.bf16.msra.mxu0 %v18801_v61 }
 0x117   :  { %1700 = vmatprep.subr.bf16.mxu0 %v18809_v62 }
 0x118   :  { %1845 = vmatpush1.bf16.msra.mxu1 %v18804_v11 }
 0x119   :  { %1846 = vmatprep.subr.bf16.mxu1 %v18812_v12 }
 0x11a   :  { %1701 = vmatpush1.bf16.msra.mxu0 %v18807_v2 }
 0x11b   :  { %1702 = vmatprep.subr.bf16.mxu0 %v18815_v3  ;;  %v21300_v3 = vsub.s32 3, %v21272_v41  ;;  %v18974_v41 = vld [vmem:[#allocation6 + $0x6c] ss:$16 sps:$4 sm:$0xff]  }
 0x11c   :  { %1847 = vmatpush1.bf16.msra.mxu1 %v18810_v13 }
 0x11d   :  { %1848 = vmatprep.subr.bf16.mxu1 %v18818_v14 }
 0x11e   :  { %1703 = vmatpush1.bf16.msra.mxu0 %v18813_v6 }
 0x11f   :  { %1704 = vmatprep.subr.bf16.mxu0 %v18821_v7 }
 0x120   :  { %1849 = vmatpush1.bf16.msra.mxu1 %v18816_v15 }
 0x121   :  { %1850 = vmatprep.subr.bf16.mxu1 %v18824_v16  ;;  %v21312_v16 = vrot.slane %v236_v43, %v21300_v3 }
 0x122   :  { %1705 = vmatpush1.bf16.msra.mxu0 %v18819_v10  ;;  %v21307_v10 = vrot.slane %v236_v43, %v21293_v60 }
 0x123   :  { %1706 = vmatprep.subr.bf16.mxu0 %v18827_v18 }
 0x124   :  { %1851 = vmatpush1.bf16.msra.mxu1 %v18822_v17 }
 0x125   :  { %1852 = vmatprep.subr.bf16.mxu1 %v18830_v19 }
 0x126   :  { %1707 = vmatpush1.bf16.msra.mxu0 %v18825_v20 }
 0x127   :  { %1708 = vmatprep.subr.bf16.mxu0 %v18833_v22 }
 0x128   :  { %1853 = vmatpush1.bf16.msra.mxu1 %v18828_v21 }
 0x129   :  { %1854 = vmatprep.subr.bf16.mxu1 %v18836_v23 }
 0x12a   :  { %1709 = vmatpush1.bf16.msra.mxu0 %v18831_v24 }
 0x12b   :  { %1710 = vmatprep.subr.bf16.mxu0 %v18839_v26 }
 0x12c   :  { %1855 = vmatpush1.bf16.msra.mxu1 %v18834_v25 }
 0x12d   :  { %1856 = vmatprep.subr.bf16.mxu1 %v18842_v27 }
 0x12e   :  { %1711 = vmatpush1.bf16.msra.mxu0 %v18837_v28 }
 0x12f   :  { %1712 = vmatprep.subr.bf16.mxu0 %v18845_v30 }
 0x130   :  { %1857 = vmatpush1.bf16.msra.mxu1 %v18840_v29 }
 0x131   :  { %1858 = vmatprep.subr.bf16.mxu1 %v18848_v31 }
 0x132   :  { %1713 = vmatpush1.bf16.msra.mxu0 %v18843_v32 }
 0x133   :  { %1714 = vmatprep.subr.bf16.mxu0 %v18851_v34 }
 0x134   :  { %1859 = vmatpush1.bf16.msra.mxu1 %v18846_v33 }
 0x135   :  { %1860 = vmatprep.subr.bf16.mxu1 %v18854_v35 }
 0x136   :  { %1715 = vmatpush1.bf16.msra.mxu0 %v18849_v36 }
 0x137   :  { %1757 = vmatprep.subr.bf16.mxu0 %v18857_v38 }
 0x138   :  { %1861 = vmatpush1.bf16.msra.mxu1 %v18852_v37 }
 0x139   :  { %1903 = vmatprep.subr.bf16.mxu1 %v18860_v39 }
 0x1cc   :  { %v476_v47 = vpop.f32.mrb[0].mxu0  ;;  %v549_v22 = vpop.f32.mrb[0].mxu1 }
 0x1cd   :  { %v477_v48 = vadd.f32 %v476_v47, %v21281_v45  ;;  %v478_v49 = vpop.f32.mrb[1].mxu0  ;;  %v550_v24 = vadd.f32 %v549_v22, %v21307_v10  ;;  %v551_v25 = vpop.f32.mrb[1].mxu1 }
 0x1ce   :  { %v479_v50 = vadd.f32 %v478_v49, %v21284_v46  ;;  %v480_v51 = vpop.f32.mrb[2].mxu0  ;;  %v553_v29 = vpop.f32.mrb[2].mxu1  ;;  %v552_v35 = vadd.f32 %v551_v25, %v21312_v16 }
 0x1cf   :  { %v481_v52 = vadd.f32 %v480_v51, %v21281_v45  ;;  %v482_v53 = vpop.f32.mrb[3].mxu0  ;;  %v588_v55 = vmax.f32 %v477_v48, 0.0  ;;  %v555_v36 = vpop.f32.mrb[3].mxu1  ;;  %v18855_v51 = vld [vmem:[#allocation6 + $0x600] ss:$16 sps:$4 sm:$0xff]  }
 0x1d0   :  { %v483_v54 = vadd.f32 %v482_v53, %v21284_v46  ;;  %v589_v57 = vmax.f32 %v479_v50, 0.0 }
 0x1d1   :  { %v592_v56 = vmax.f32 %v481_v52, 0.0  ;;  %v18858_v52 = vld [vmem:[#allocation6 + $0x608] ss:$16 sps:$4 sm:$0xff]  }
 0x1d2   :  { %v593_v58 = vmax.f32 %v483_v54, 0.0  ;;  %v590_v54 = vmax.f32 %v550_v24, 0.0  ;;  %v18869_v24 = vld [vmem:[#allocation6 + $0x644] ss:$16 sps:$4 sm:$0xff]  }
 0x1d3   :  { %v21290_v59 = vpack.c.bf16 %v592_v56, %v588_v55 }
 0x1d4   :  { %v21295_v61 = vpack.c.bf16 %v593_v58, %v589_v57  ;;  %v486_v62 = vpop.f32.mrb[4].mxu0  ;;  %v18863_v58 = vld [vmem:[#allocation6 + $0x624] ss:$16 sps:$4 sm:$0xff]  }
 0x1d5   :  { %v487_v63 = vadd.f32 %v486_v62, %v21281_v45  ;;  %v488_v1 = vpop.f32.mrb[5].mxu0  ;;  %v899_v2 = vshll.u32 %v21290_v59, 16  ;;  %v897_v13 = vshrl.u32 %v21290_v59, 16  ;;  %v18866_v62 = vld [vmem:[#allocation6 + $0x62c] ss:$16 sps:$4 sm:$0xff]  }
 0x1d6   :  { %v489_v4 = vadd.f32 %v488_v1, %v21284_v46  ;;  %v490_v5 = vpop.f32.mrb[6].mxu0  ;;  %v909_v6 = vshrl.u32 %v21295_v61, 16  ;;  %v911_v7 = vshll.u32 %v21295_v61, 16 }
 0x1d7   :  { %v491_v8 = vadd.f32 %v490_v5, %v21281_v45  ;;  %v492_v9 = vpop.f32.mrb[7].mxu0  ;;  %v596_v11 = vmax.f32 %v487_v63, 0.0  ;;  %v901_v14 = vrot.slane %v899_v2, 1  ;;  %v21325_v30 = vrot.slane %v897_v13, 1 }
 0x1d8   :  { %v493_v12 = vadd.f32 %v492_v9, %v21284_v46  ;;  %v21314_v17 = vrot.slane %v909_v6, 1  ;;  %v21316_v18 = vrot.slane %v911_v7, 2  ;;  %v597_v19 = vmax.f32 %v489_v4, 0.0  ;;  %v559_v9 = vpop.f32.mrb[4].mxu1 }
 0x1d9   :  { %v600_v15 = vmax.f32 %v491_v8, 0.0  ;;  %v913_v21 = vrot.slane %v911_v7, 1  ;;  %v902_v33 = vor.u32 %v901_v14, %v897_v13  ;;  %v21332_v47 = vrot.slane %v899_v2, 2  ;;  %v18864_v13 = vld [vmem:[#allocation6 + $0x628] ss:$16 sps:$4 sm:$0xff]  }
 0x1da   :  { %v601_v20 = vmax.f32 %v493_v12, 0.0  ;;  %v4207_v26 = vor.u32 %v21316_v18, %v21314_v17  ;;  %v554_v63 = vadd.f32 %v553_v29, %v21307_v10  ;;  %v591_v2 = vmax.f32 %v552_v35, 0.0  ;;  %v18861_v12 = vld [vmem:[#allocation6 + $0x620] ss:$16 sps:$4 sm:$0xff]  }
 0x1db   :  { %v21318_v23 = vpack.c.bf16 %v600_v15, %v596_v11  ;;  %v914_v39 = vor.u32 %v913_v21, %v909_v6  ;;  %v556_v4 = vadd.f32 %v555_v36, %v21312_v16  ;;  %v21347_v15 = vadd.f32 %v559_v9, %v21307_v10 }
 0x1dc   :  { %v21323_v27 = vpack.c.bf16 %v601_v20, %v597_v19  ;;  %v496_v28 = vpop.f32.mrb[8].mxu0  ;;  %v594_v8 = vmax.f32 %v554_v63, 0.0  ;;  %v561_v19 = vpop.f32.mrb[5].mxu1  ;;  %v4200_v20 = vor.u32 %v21332_v47, %v21325_v30 }
 0x1dd   :  { %v497_v31 = vadd.f32 %v496_v28, %v21281_v45  ;;  %v498_v32 = vpop.f32.mrb[9].mxu0  ;;  %v904_v34 = vshll.u32 %v21318_v23, 16  ;;  %v595_v14 = vmax.f32 %v556_v4, 0.0  ;;  %v944_v25 = vshrl.u32 %v21318_v23, 16  ;;  %v18878_v4 = vld [vmem:[#allocation6 + $0x66c] ss:$16 sps:$4 sm:$0xff]  }
 0x1de   :  { %v499_v37 = vadd.f32 %v498_v32, %v21284_v46  ;;  %v500_v38 = vpop.f32.mrb[10].mxu0  ;;  %v916_v43 = vshll.u32 %v21323_v27, 16  ;;  %v952_v22 = vshrl.u32 %v21323_v27, 16  ;;  %v21355_v29 = vpack.c.bf16 %v594_v8, %v590_v54  ;;  %v18867_v54 = vld [vmem:[#allocation6 + $0x640] ss:$16 sps:$4 sm:$0xff]  }
 0x1df   :  { %v604_v48 = vmax.f32 %v497_v31, 0.0  ;;  %v501_v49 = vadd.f32 %v500_v38, %v21281_v45  ;;  %v502_v50 = vpop.f32.mrb[11].mxu0  ;;  %v906_v53 = vrot.slane %v904_v34, 1  ;;  %v563_v31 = vpop.f32.mrb[6].mxu1  ;;  %v21359_v36 = vpack.c.bf16 %v595_v14, %v591_v2  ;;  %v18875_v2 = vld [vmem:[#allocation6 + $0x664] ss:$16 sps:$4 sm:$0xff]  }
 0x1e0   :  { %v605_v55 = vmax.f32 %v499_v37, 0.0  ;;  %v503_v56 = vadd.f32 %v502_v50, %v21284_v46  ;;  %v918_v57 = vrot.slane %v916_v43, 1  ;;  %v562_v37 = vadd.f32 %v561_v19, %v21312_v16  ;;  %v565_v38 = vpop.f32.mrb[7].mxu1 }
 0x1e1   :  { %v608_v1 = vmax.f32 %v501_v49, 0.0  ;;  %v907_v7 = vsel %vm895_vm0, %v902_v33, %v906_v53  ;;  %v18872_v49 = vld [vmem:[#allocation6 + $0x64c] ss:$16 sps:$4 sm:$0xff]   ;;  %v946_v50 = vor.u32 %v944_v25, %v906_v53 }
 0x1e2   :  { %v609_v5 = vmax.f32 %v503_v56, 0.0  ;;  %v919_v6 = vsel %vm895_vm0, %v914_v39, %v918_v57  ;;  %v954_v39 = vor.u32 %v952_v22, %v918_v57  ;;  %v598_v57 = vmax.f32 %v21347_v15, 0.0 }
 0x1e3   :  { %v21344_v11 = vpack.c.bf16 %v608_v1, %v604_v48  ;;  %1716 = vmatprep.mubr.bf16.mxu0 %v919_v6  ;;  %1862 = vmatprep.mubr.bf16.mxu1 %v919_v6  ;;  %v564_v6 = vadd.f32 %v563_v31, %v21307_v10  ;;  %v599_v9 = vmax.f32 %v562_v37, 0.0 }
 0x1e4   :  { %v21351_v21 = vpack.c.bf16 %v609_v5, %v605_v55  ;;  %1717 = vmatmul.mubr.bf16.vlgmr.msra.gmra.mrb[16].mxu0 %v907_v7  ;;  %1863 = vmatmul.mubr.bf16.vlgmr.msra.gmra.mrb[16].mxu1 %v907_v7  ;;  %v506_v28 = vpop.f32.mrb[12].mxu0  ;;  %v18870_v55 = vld [vmem:[#allocation6 + $0x648] ss:$16 sps:$4 sm:$0xff]  }
 0x1e5   :  { %1758 = vmatpush1.bf16.msra.mxu0 %v18855_v51  ;;  %1904 = vmatpush1.bf16.msra.mxu1 %v18858_v52  ;;  %v948_v32 = vshll.u32 %v21344_v11, 16  ;;  %v507_v33 = vadd.f32 %v506_v28, %v21281_v45  ;;  %v508_v35 = vpop.f32.mrb[13].mxu0  ;;  %v976_v8 = vshrl.u32 %v21344_v11, 16  ;;  %v602_v19 = vmax.f32 %v564_v6, 0.0  ;;  %v569_v28 = vpop.f32.mrb[8].mxu1 }
 0x1e6   :  { %1759 = vmatprep.subr.bf16.mxu0 %v18863_v58  ;;  %1905 = vmatprep.subr.bf16.mxu1 %v18866_v62  ;;  %v956_v48 = vshll.u32 %v21351_v21, 16  ;;  %v509_v51 = vadd.f32 %v508_v35, %v21284_v46  ;;  %v510_v52 = vpop.f32.mrb[14].mxu0  ;;  %v18873_v35 = vld [vmem:[#allocation6 + $0x660] ss:$16 sps:$4 sm:$0xff]  }
 0x1e7   :  { %v950_v56 = vrot.slane %v948_v32, 1  ;;  %v612_v63 = vmax.f32 %v507_v33, 0.0  ;;  %v511_v58 = vadd.f32 %v510_v52, %v21281_v45  ;;  %v512_v62 = vpop.f32.mrb[15].mxu0  ;;  %v566_v45 = vadd.f32 %v565_v38, %v21312_v16  ;;  %v571_v33 = vpop.f32.mrb[9].mxu1  ;;  %v18879_v6 = vld [vmem:[#allocation6 + $0x680] ss:$16 sps:$4 sm:$0xff]  }
 0x1e8   :  { %v958_v1 = vrot.slane %v956_v48, 1  ;;  %v613_v53 = vmax.f32 %v509_v51, 0.0  ;;  %v513_v5 = vadd.f32 %v512_v62, %v21284_v46  ;;  %v21386_v38 = vpack.c.bf16 %v602_v19, %v598_v57  ;;  %v18881_v51 = vld [vmem:[#allocation6 + $0x684] ss:$16 sps:$4 sm:$0xff]  }
 0x1e9   :  { %1760 = vmatpush1.bf16.msra.mxu0 %v18861_v12  ;;  %1906 = vmatpush1.bf16.msra.mxu1 %v18864_v13  ;;  %v616_v7 = vmax.f32 %v511_v58, 0.0  ;;  %v951_v46 = vsel %vm895_vm0, %v946_v50, %v950_v56  ;;  %v603_v12 = vmax.f32 %v566_v45, 0.0  ;;  %v570_v13 = vadd.f32 %v569_v28, %v21307_v10  ;;  %v18876_v50 = vld [vmem:[#allocation6 + $0x668] ss:$16 sps:$4 sm:$0xff]   ;;  %v18887_v19 = vld [vmem:[#allocation6 + $0x6a4] ss:$16 sps:$4 sm:$0xff]  }
 0x1ea   :  { %v959_v14 = vsel %vm895_vm0, %v954_v39, %v958_v1  ;;  %1761 = vmatprep.subr.bf16.mxu0 %v18869_v24  ;;  %1907 = vmatprep.subr.bf16.mxu1 %v18872_v49  ;;  %v617_v15 = vmax.f32 %v513_v5, 0.0  ;;  %v984_v24 = vshrl.u32 %v21351_v21, 16  ;;  %v572_v39 = vadd.f32 %v571_v33, %v21312_v16  ;;  %v573_v49 = vpop.f32.mrb[10].mxu1  ;;  %v18890_v28 = vld [vmem:[#allocation6 + $0x6ac] ss:$16 sps:$4 sm:$0xff]  }
 0x1eb   :  { %1726 = vmatprep.mubr.bf16.mxu0 %v959_v14  ;;  %1872 = vmatprep.mubr.bf16.mxu1 %v959_v14  ;;  %v21380_v31 = vpack.c.bf16 %v616_v7, %v612_v63  ;;  %v978_v52 = vor.u32 %v976_v8, %v950_v56  ;;  %v21392_v58 = vpack.c.bf16 %v603_v12, %v599_v9  ;;  %v575_v62 = vpop.f32.mrb[11].mxu1  ;;  %v21401_v7 = vrot.slane %v22221_v0, 1 }
 0x1ec   :  { %1727 = vmatmul.mubr.bf16.gmra.mrb[20].mxu0 %v951_v46  ;;  %1873 = vmatmul.mubr.bf16.gmra.mrb[20].mxu1 %v951_v46  ;;  %v21383_v37 = vpack.c.bf16 %v617_v15, %v613_v53  ;;  %v18884_v53 = vld [vmem:[#allocation6 + $0x68c] ss:$16 sps:$4 sm:$0xff]   ;;  %v986_v57 = vor.u32 %v984_v24, %v958_v1  ;;  %v607_v9 = vmax.f32 %v572_v39, 0.0  ;;  %v22220_v15 = vshll.u32 %v21359_v36, 16 }
 0x1ed   :  { %1762 = vmatpush1.bf16.msra.mxu0 %v18867_v54  ;;  %1908 = vmatpush1.bf16.msra.mxu1 %v18870_v55  ;;  %v980_v63 = vshll.u32 %v21380_v31, 16  ;;  %v606_v54 = vmax.f32 %v570_v13, 0.0  ;;  %v574_v55 = vadd.f32 %v573_v49, %v21307_v10  ;;  %v579_v49 = vpop.f32.mrb[12].mxu1 }
 0x1ee   :  { %1763 = vmatprep.subr.bf16.mxu0 %v18875_v2  ;;  %1909 = vmatprep.subr.bf16.mxu1 %v18878_v4  ;;  %v988_v5 = vshll.u32 %v21383_v37, 16  ;;  %v576_v2 = vadd.f32 %v575_v62, %v21312_v16  ;;  %v18882_v4 = vld [vmem:[#allocation6 + $0x688] ss:$16 sps:$4 sm:$0xff]   ;;  %v1016_v1 = vshrl.u32 %v21383_v37, 16  ;;  %v933_v62 = vshrl.u32 %v21359_v36, 16 }
 0x1ef   :  { %v982_v56 = vrot.slane %v980_v63, 1  ;;  %v610_v14 = vmax.f32 %v574_v55, 0.0  ;;  %v940_v55 = vshll.u32 %v21392_v58, 16 }
 0x1f0   :  { %v990_v45 = vrot.slane %v988_v5, 1  ;;  %v611_v12 = vmax.f32 %v576_v2, 0.0 }
 0x1f1   :  { %1764 = vmatpush1.bf16.msra.mxu0 %v18873_v35  ;;  %1910 = vmatpush1.bf16.msra.mxu1 %v18876_v50  ;;  %v983_v46 = vsel %vm895_vm0, %v978_v52, %v982_v56  ;;  %v21412_v39 = vpack.c.bf16 %v610_v14, %v606_v54  ;;  %v1008_v35 = vshrl.u32 %v21380_v31, 16  ;;  %v580_v52 = vadd.f32 %v579_v49, %v21307_v10  ;;  %v18893_v14 = vld [vmem:[#allocation6 + $0x6c4] ss:$16 sps:$4 sm:$0xff]  }
 0x1f2   :  { %1765 = vmatprep.subr.bf16.mxu0 %v18881_v51  ;;  %1911 = vmatprep.subr.bf16.mxu1 %v18884_v53  ;;  %v991_v13 = vsel %vm895_vm0, %v986_v57, %v990_v45  ;;  %v1018_v33 = vor.u32 %v1016_v1, %v990_v45  ;;  %v21415_v50 = vpack.c.bf16 %v611_v12, %v607_v9  ;;  %v581_v51 = vpop.f32.mrb[13].mxu1  ;;  %v18885_v53 = vld [vmem:[#allocation6 + $0x6a0] ss:$16 sps:$4 sm:$0xff]   ;;  %v937_v54 = vrot.slane %v22220_v15, 1  ;;  %v18888_v45 = vld [vmem:[#allocation6 + $0x6a8] ss:$16 sps:$4 sm:$0xff]  }
 0x1f3   :  { %1736 = vmatprep.mubr.bf16.mxu0 %v991_v13  ;;  %1882 = vmatprep.mubr.bf16.mxu1 %v991_v13  ;;  %v582_v2 = vadd.f32 %v581_v51, %v21312_v16  ;;  %v583_v9 = vpop.f32.mrb[14].mxu1  ;;  %v1010_v12 = vor.u32 %v1008_v35, %v982_v56  ;;  %v18891_v51 = vld [vmem:[#allocation6 + $0x6c0] ss:$16 sps:$4 sm:$0xff]  }
 0x1f4   :  { %1737 = vmatmul.mubr.bf16.gmra.mrb[24].mxu0 %v983_v46  ;;  %1883 = vmatmul.mubr.bf16.gmra.mrb[24].mxu1 %v983_v46  ;;  %v1019_v57 = vsel %vm895_vm0, %v1018_v33, %v21401_v7  ;;  %v585_v13 = vpop.f32.mrb[15].mxu1  ;;  %v18896_v46 = vld [vmem:[#allocation6 + $0x6cc] ss:$16 sps:$4 sm:$0xff]   ;;  %v614_v33 = vmax.f32 %v580_v52, 0.0  ;;  %v584_v40 = vadd.f32 %v583_v9, %v21307_v10  ;;  %v18899_v52 = vld [vmem:[#allocation6 + $0x6e4] ss:$16 sps:$4 sm:$0xff]  }
 0x1f5   :  { %1766 = vmatpush1.bf16.msra.mxu0 %v18879_v6  ;;  %1912 = vmatpush1.bf16.msra.mxu1 %v18882_v4  ;;  %v615_v49 = vmax.f32 %v582_v2, 0.0  ;;  %v586_v15 = vadd.f32 %v585_v13, %v21312_v16  ;;  %v938_v6 = vor.u32 %v937_v54, %v933_v62  ;;  %v21433_v4 = vrot.slane %v940_v55, 1  ;;  %v18902_v2 = vld [vmem:[#allocation6 + $0x6ec] ss:$16 sps:$4 sm:$0xff]   ;;  %v18905_v54 = vld [vmem:[#allocation6 + $0x704] ss:$16 sps:$4 sm:$0xff]  }
 0x1f6   :  { %1767 = vmatprep.subr.bf16.mxu0 %v18887_v19  ;;  %1913 = vmatprep.subr.bf16.mxu1 %v18890_v28  ;;  %v618_v56 = vmax.f32 %v584_v40, 0.0  ;;  %v18894_v28 = vld [vmem:[#allocation6 + $0x6c8] ss:$16 sps:$4 sm:$0xff]   ;;  %v1015_v10 = vsel %vm895_vm0, %v1010_v12, %v21401_v7  ;;  %v18908_v9 = vld [vmem:[#allocation6 + $0x70c] ss:$16 sps:$4 sm:$0xff]   ;;  %v22224_v17 = vshrl.u32 %v21415_v50, 16 }
 0x1f7   :  { %1746 = vmatprep.mubr.bf16.mxu0 %v1019_v57  ;;  %1892 = vmatprep.mubr.bf16.mxu1 %v1019_v57  ;;  %v619_v19 = vmax.f32 %v586_v15, 0.0  ;;  %v943_v40 = vsel %vm895_vm0, %v938_v6, %v21433_v4  ;;  %v18897_v15 = vld [vmem:[#allocation6 + $0x6e0] ss:$16 sps:$4 sm:$0xff]   ;;  %v18911_v12 = vld [vmem:[#allocation6 + $0x724] ss:$16 sps:$4 sm:$0xff]  }
 0x1f8   :  { %v21437_v16 = vpack.c.bf16 %v618_v56, %v614_v33  ;;  %v18914_v13 = vld [vmem:[#allocation6 + $0x72c] ss:$16 sps:$4 sm:$0xff]   ;;  %v18909_v33 = vld [vmem:[#allocation6 + $0x720] ss:$16 sps:$4 sm:$0xff]   ;;  %v18917_v6 = vld [vmem:[#allocation6 + $0x744] ss:$16 sps:$4 sm:$0xff]  }
 0x1f9   :  { %1768 = vmatpush1.bf16.msra.mxu0 %v18885_v53  ;;  %1914 = vmatpush1.bf16.msra.mxu1 %v18888_v45  ;;  %v21439_v57 = vpack.c.bf16 %v619_v19, %v615_v49  ;;  %v18900_v53 = vld [vmem:[#allocation6 + $0x6e8] ss:$16 sps:$4 sm:$0xff]   ;;  %v18903_v45 = vld [vmem:[#allocation6 + $0x700] ss:$16 sps:$4 sm:$0xff]   ;;  %v18920_v56 = vld [vmem:[#allocation6 + $0x74c] ss:$16 sps:$4 sm:$0xff]  }
 0x1fa   :  { %1769 = vmatprep.subr.bf16.mxu0 %v18893_v14  ;;  %1915 = vmatprep.subr.bf16.mxu1 %v18896_v46  ;;  %v18906_v14 = vld [vmem:[#allocation6 + $0x708] ss:$16 sps:$4 sm:$0xff]   ;;  %v4261_v46 = vrot.slane %v22221_v0, 2  ;;  %v22227_v19 = vshrl.u32 %v21355_v29, 16  ;;  %v4227_v0 = vrot.slane %v948_v32, 2 }
 0x1fb   :  { %v18912_v49 = vld [vmem:[#allocation6 + $0x728] ss:$16 sps:$4 sm:$0xff]  }
 0x1fc   :  { %1747 = vmatmul.mubr.bf16.gmra.mrb[28].mxu0 %v1015_v10  ;;  %1893 = vmatmul.mubr.bf16.gmra.mrb[28].mxu1 %v1015_v10  ;;  %v22228_v10 = vshll.u32 %v21355_v29, 16 }
 0x1fd   :  { %1770 = vmatpush1.bf16.msra.mxu0 %v18891_v51  ;;  %1916 = vmatpush1.bf16.msra.mxu1 %v18894_v28  ;;  %v4201_v51 = vrot.slane %v944_v25, 1  ;;  %v4208_v28 = vrot.slane %v952_v22, 1  ;;  %v22226_v25 = vshll.u32 %v21386_v38, 16  ;;  %v18918_v22 = vld [vmem:[#allocation6 + $0x748] ss:$16 sps:$4 sm:$0xff]  }
 0x1fe   :  { %1771 = vmatprep.subr.bf16.mxu0 %v18899_v52  ;;  %1917 = vmatprep.subr.bf16.mxu1 %v18902_v2  ;;  %v4209_v52 = vrot.slane %v916_v43, 2  ;;  %v4202_v2 = vrot.slane %v904_v34, 2  ;;  %v22223_v34 = vshrl.u32 %v21386_v38, 16  ;;  %v4246_v43 = vrot.slane %v1016_v1, 1  ;;  %v18921_v1 = vld [vmem:[#allocation6 + $0x760] ss:$16 sps:$4 sm:$0xff]  }
 0x1ff   :  { %1789 = vmatprep.mubr.bf16.mxu0 %v943_v40  ;;  %1935 = vmatprep.mubr.bf16.mxu1 %v943_v40  ;;  %v4230_v40 = vrot.slane %v984_v24, 1  ;;  %v4231_v24 = vrot.slane %v956_v48, 2 }
 0x201   :  { %1772 = vmatpush1.bf16.msra.mxu0 %v18897_v15  ;;  %1918 = vmatpush1.bf16.msra.mxu1 %v18900_v53  ;;  %v21458_v15 = vor.u32 %v4261_v46, %v21401_v7  ;;  %v18915_v53 = vld [vmem:[#allocation6 + $0x740] ss:$16 sps:$4 sm:$0xff]   ;;  %v4226_v46 = vrot.slane %v976_v8, 1  ;;  %v4232_v8 = vor.u32 %v4231_v24, %v4230_v40  ;;  %v18935_v24 = vld [vmem:[#allocation6 + $0x7a4] ss:$16 sps:$4 sm:$0xff]  }
 0x202   :  { %1773 = vmatprep.subr.bf16.mxu0 %v18905_v54  ;;  %1919 = vmatprep.subr.bf16.mxu1 %v18908_v9  ;;  %v22225_v54 = vshrl.u32 %v21392_v58, 16  ;;  %v4247_v9 = vrot.slane %v988_v5, 2  ;;  %v4243_v5 = vrot.slane %v980_v63, 2  ;;  %v22240_v63 = vshll.u32 %v21359_v36, 16 }
 0x203   :  { %v4228_v18 = vor.u32 %v4227_v0, %v4226_v46  ;;  %v18938_v46 = vld [vmem:[#allocation6 + $0x7ac] ss:$16 sps:$4 sm:$0xff]  }
 0x205   :  { %1774 = vmatpush1.bf16.msra.mxu0 %v18903_v45  ;;  %1920 = vmatpush1.bf16.msra.mxu1 %v18906_v14  ;;  %v18923_v45 = vld [vmem:[#allocation6 + $0x764] ss:$16 sps:$4 sm:$0xff]   ;;  %v18926_v14 = vld [vmem:[#allocation6 + $0x76c] ss:$16 sps:$4 sm:$0xff]  }
 0x206   :  { %1775 = vmatprep.subr.bf16.mxu0 %v18911_v12  ;;  %1921 = vmatprep.subr.bf16.mxu1 %v18914_v13  ;;  %v4210_v12 = vor.u32 %v4209_v52, %v4208_v28  ;;  %v4203_v13 = vor.u32 %v4202_v2, %v4201_v51  ;;  %v4242_v51 = vrot.slane %v1008_v35, 1  ;;  %v18924_v35 = vld [vmem:[#allocation6 + $0x768] ss:$16 sps:$4 sm:$0xff]   ;;  %v22229_v28 = vshrl.u32 %v21412_v39, 16 }
 0x207   :  { %v4222_v2 = vrot.slane %v22225_v54, 1  ;;  %v18936_v54 = vld [vmem:[#allocation6 + $0x7a8] ss:$16 sps:$4 sm:$0xff]  }
 0x208   :  { %v21480_v48 = vsel %vm4197_vm1, %v4207_v26, %v4210_v12  ;;  %v21486_v32 = vsel %vm4197_vm1, %v4200_v20, %v4203_v13  ;;  %v21493_v26 = vor.u32 %v4247_v9, %v4246_v43  ;;  %v21496_v30 = vsel %vm4197_vm1, %v4210_v12, %v4232_v8  ;;  %v18927_v43 = vld [vmem:[#allocation6 + $0x780] ss:$16 sps:$4 sm:$0xff]   ;;  %v18930_v9 = vld [vmem:[#allocation6 + $0x788] ss:$16 sps:$4 sm:$0xff]  }
 0x209   :  { %1776 = vmatpush1.bf16.msra.mxu0 %v18909_v33  ;;  %1922 = vmatpush1.bf16.msra.mxu1 %v18912_v49  ;;  %v4215_v33 = vrot.slane %v22223_v34, 1  ;;  %v18929_v49 = vld [vmem:[#allocation6 + $0x784] ss:$16 sps:$4 sm:$0xff]   ;;  %v4244_v47 = vor.u32 %v4243_v5, %v4242_v51  ;;  %v4219_v20 = vrot.slane %v933_v62, 1  ;;  %v21504_v0 = vsel %vm4197_vm1, %v4203_v13, %v4228_v18 }
 0x20a   :  { %1777 = vmatprep.subr.bf16.mxu0 %v18917_v6  ;;  %1923 = vmatprep.subr.bf16.mxu1 %v18920_v56  ;;  %v18932_v6 = vld [vmem:[#allocation6 + $0x78c] ss:$16 sps:$4 sm:$0xff]   ;;  %v4220_v56 = vrot.slane %v22240_v63, 2  ;;  %v21508_v52 = vsel %vm4197_vm1, %v4232_v8, %v21493_v26  ;;  %v1004_v12 = vshll.u32 %v21439_v57, 16  ;;  %v22236_v13 = vshll.u32 %v21437_v16, 16 }
 0x20b   :  { %v21513_v62 = vsel %vm4197_vm1, %v4228_v18, %v4244_v47  ;;  %v21517_v40 = vsel %vm4197_vm1, %v4244_v47, %v21458_v15  ;;  %v4212_v8 = vrot.slane %v22227_v19, 1  ;;  %v4213_v5 = vrot.slane %v22228_v10, 2  ;;  %v18941_v19 = vld [vmem:[#allocation6 + $0x7c4] ss:$16 sps:$4 sm:$0xff]   ;;  %v18944_v10 = vld [vmem:[#allocation6 + $0x7cc] ss:$16 sps:$4 sm:$0xff]  }
 0x20c   :  { %v4238_v18 = vrot.slane %v22224_v17, 1  ;;  %v22241_v47 = vshll.u32 %v21415_v50, 16  ;;  %v4234_v63 = vrot.slane %v22229_v28, 1  ;;  %v18933_v17 = vld [vmem:[#allocation6 + $0x7a0] ss:$16 sps:$4 sm:$0xff]  }
 0x20d   :  { %1778 = vmatpush1.bf16.msra.mxu0 %v18915_v53  ;;  %1924 = vmatpush1.bf16.msra.mxu1 %v18918_v22  ;;  %v4221_v53 = vor.u32 %v4220_v56, %v4219_v20  ;;  %v4223_v22 = vrot.slane %v940_v55, 2  ;;  %v4216_v55 = vrot.slane %v22226_v25, 2  ;;  %v22242_v56 = vshll.u32 %v21412_v39, 16 }
 0x20e   :  { %1779 = vmatprep.subr.bf16.mxu0 %v18923_v45  ;;  %1925 = vmatprep.subr.bf16.mxu1 %v18926_v14  ;;  %v22234_v45 = vshrl.u32 %v21439_v57, 16  ;;  %v22232_v14 = vshrl.u32 %v21437_v16, 16  ;;  %v4239_v20 = vrot.slane %v22241_v47, 2  ;;  %v4214_v34 = vor.u32 %v4213_v5, %v4212_v8 }
 0x20f   :  { %v4224_v51 = vor.u32 %v4223_v22, %v4222_v2  ;;  %v4235_v2 = vrot.slane %v22242_v56, 2  ;;  %v18947_v56 = vld [vmem:[#allocation6 + $0x7e4] ss:$16 sps:$4 sm:$0xff]  }
 0x210   :  { %v4240_v25 = vor.u32 %v4239_v20, %v4238_v18  ;;  %v18942_v18 = vld [vmem:[#allocation6 + $0x7c8] ss:$16 sps:$4 sm:$0xff]   ;;  %v22230_v20 = vmov 0.0|0.0  }
 0x211   :  { %1780 = vmatpush1.bf16.msra.mxu0 %v18921_v1  ;;  %1926 = vmatpush1.bf16.msra.mxu1 %v18924_v35  ;;  %v21540_v22 = vsel %vm4197_vm1, %v4221_v53, %v4224_v51  ;;  %v4217_v1 = vor.u32 %v4216_v55, %v4215_v33  ;;  %v4254_v35 = vrot.slane %v22234_v45, 1  ;;  %v4236_v47 = vor.u32 %v4235_v2, %v4234_v63  ;;  %v18939_v55 = vld [vmem:[#allocation6 + $0x7c0] ss:$16 sps:$4 sm:$0xff]   ;;  %v18950_v2 = vld [vmem:[#allocation6 + $0x7ec] ss:$16 sps:$4 sm:$0xff]  }
 0x212   :  { %1781 = vmatprep.subr.bf16.mxu0 %v18929_v49  ;;  %1927 = vmatprep.subr.bf16.mxu1 %v18932_v6  ;;  %v4255_v49 = vrot.slane %v1004_v12, 2  ;;  %v4250_v6 = vrot.slane %v22232_v14, 1  ;;  %v4251_v33 = vrot.slane %v22236_v13, 2  ;;  %v21554_v53 = vsel %vm4197_vm1, %v4224_v51, %v4240_v25  ;;  %v18968_v45 = vld [vmem:[#allocation6 + $0x4c] ss:$16 sps:$4 sm:$0xff]  }
 0x213   :  { %v21545_v28 = vsel %vm4197_vm1, %v4214_v34, %v4217_v1  ;;  %v21557_v8 = vsel %vm4197_vm1, %v4217_v1, %v4236_v47  ;;  %v21560_v63 = vrot.slane %v22230_v20, 2  ;;  %v22231_v51 = vrot.slane %v21380_v31, 2  ;;  %v18945_v1 = vld [vmem:[#allocation6 + $0x7e0] ss:$16 sps:$4 sm:$0xff]   ;;  %v18954_v20 = vld [vmem:[#allocation6 + $0x8] ss:$16 sps:$4 sm:$0xff]  }
 0x214   :  { %v4256_v34 = vor.u32 %v4255_v49, %v4254_v35  ;;  %v4252_v5 = vor.u32 %v4251_v33, %v4250_v6  ;;  %v22243_v35 = vshll.u32 %v21355_v29, 16  ;;  %v18953_v49 = vld [vmem:[#allocation6 + $0x4] ss:$16 sps:$4 sm:$0xff]   ;;  %v18956_v6 = vld [vmem:[#allocation6 + $0xc] ss:$16 sps:$4 sm:$0xff]  }
 0x215   :  { %1782 = vmatpush1.bf16.msra.mxu0 %v18927_v43  ;;  %1928 = vmatpush1.bf16.msra.mxu1 %v18930_v9  ;;  %v21583_v33 = vsel %vm5376_vm2, %v22231_v51, %v21560_v63  ;;  %v22246_v51 = vshrl.u32 %v21392_v58, 16  ;;  %v18971_v13 = vld [vmem:[#allocation6 + $0x64] ss:$16 sps:$4 sm:$0xff]  }
 0x216   :  { %1783 = vmatprep.subr.bf16.mxu0 %v18935_v24  ;;  %1929 = vmatprep.subr.bf16.mxu1 %v18938_v46  ;;  %v21563_v43 = vsel %vm4197_vm1, %v4240_v25, %v4256_v34  ;;  %v21566_v9 = vsel %vm4197_vm1, %v4236_v47, %v4252_v5  ;;  %v21570_v24 = vsel %vm4197_vm1, %v4256_v34, %v21458_v15  ;;  %v18948_v25 = vld [vmem:[#allocation6 + $0x7e8] ss:$16 sps:$4 sm:$0xff]   ;;  %v925_v47 = vrot.slane %v22243_v35, 1  ;;  %v18951_v35 = vld [vmem:[#allocation6] ss:$16 sps:$4 sm:$0xff]  }
 0x217   :  { %v21574_v46 = vsel %vm4197_vm1, %v4252_v5, %v21458_v15  ;;  %v22245_v34 = vshll.u32 %v21386_v38, 16  ;;  %v970_v14 = vor.u32 %v22246_v51, %v21433_v4 }
 0x219   :  { %1784 = vmatpush1.bf16.msra.mxu0 %v18933_v17  ;;  %1930 = vmatpush1.bf16.msra.mxu1 %v18936_v54  ;;  %v22244_v54 = vshrl.u32 %v21355_v29, 16  ;;  %v930_v5 = vrot.slane %v22245_v34, 1  ;;  %v18957_v34 = vld [vmem:[#allocation6 + $0x20] ss:$16 sps:$4 sm:$0xff]  }
 0x21a   :  { %1785 = vmatprep.subr.bf16.mxu0 %v18941_v19  ;;  %1931 = vmatprep.subr.bf16.mxu1 %v18944_v10  ;;  %v22233_v19 = vrot.slane %v21439_v57, 2  ;;  %v22235_v10 = vrot.slane %v21437_v16, 2 }
 0x21b   :  { %v926_v17 = vor.u32 %v925_v47, %v22244_v54  ;;  %v18959_v47 = vld [vmem:[#allocation6 + $0x24] ss:$16 sps:$4 sm:$0xff]   ;;  %v18962_v54 = vld [vmem:[#allocation6 + $0x2c] ss:$16 sps:$4 sm:$0xff]  }
 0x21d   :  { %1786 = vmatpush1.bf16.msra.mxu0 %v18939_v55  ;;  %1932 = vmatpush1.bf16.msra.mxu1 %v18942_v18  ;;  %v22247_v55 = vshll.u32 %v21415_v50, 16  ;;  %v931_v4 = vsel %vm895_vm0, %v926_v17, %v930_v5 }
 0x21e   :  { %1787 = vmatprep.subr.bf16.mxu0 %v18947_v56  ;;  %1933 = vmatprep.subr.bf16.mxu1 %v18950_v2  ;;  %v21600_v56 = vsel %vm5376_vm2, %v22233_v19, %v21560_v63  ;;  %v21606_v2 = vsel %vm5376_vm2, %v22235_v10, %v21560_v63  ;;  %v18965_v19 = vld [vmem:[#allocation6 + $0x44] ss:$16 sps:$4 sm:$0xff]   ;;  %v18963_v10 = vld [vmem:[#allocation6 + $0x40] ss:$16 sps:$4 sm:$0xff]  }
 0x21f   :  { %v974_v18 = vrot.slane %v22247_v55, 1  ;;  %v18960_v55 = vld [vmem:[#allocation6 + $0x28] ss:$16 sps:$4 sm:$0xff]  }
 0x221   :  { %1788 = vmatpush1.bf16.msra.mxu0 %v18945_v1  ;;  %1934 = vmatpush1.bf16.msra.mxu1 %v18948_v25  ;;  %v975_v51 = vsel %vm895_vm0, %v970_v14, %v974_v18  ;;  %v22248_v1 = vshrl.u32 %v21415_v50, 16  ;;  %v22250_v14 = vshll.u32 %v21412_v39, 16 }
 0x222   :  { %2616 = vmatprep.subr.bf16.mxu0 %v18953_v49  ;;  %2762 = vmatprep.subr.bf16.mxu1 %v18956_v6  ;;  %v1006_v49 = vrot.slane %v1004_v12, 1  ;;  %v22249_v6 = vshrl.u32 %v21386_v38, 16  ;;  %v18969_v12 = vld [vmem:[#allocation6 + $0x60] ss:$16 sps:$4 sm:$0xff]  }
 0x223   :  { %v1002_v25 = vor.u32 %v22248_v1, %v974_v18  ;;  %v18972_v18 = vld [vmem:[#allocation6 + $0x68] ss:$16 sps:$4 sm:$0xff]  }
 0x224   :  { %1790 = vmatmul.mubr.bf16.vlgmr.msra.gmra.mrb[16].mxu0 %v931_v4  ;;  %1936 = vmatmul.mubr.bf16.vlgmr.msra.gmra.mrb[16].mxu1 %v931_v4  ;;  %v962_v17 = vor.u32 %v22249_v6, %v930_v5  ;;  %v966_v4 = vrot.slane %v22250_v14, 1  ;;  %v22251_v5 = vshrl.u32 %v21412_v39, 16  ;;  %v18978_v6 = vld [vmem:[#allocation6 + $0x88] ss:$16 sps:$4 sm:$0xff]   ;;  %v18983_v14 = vld [vmem:[#allocation6 + $0xa4] ss:$16 sps:$4 sm:$0xff]  }
 0x225   :  { %1799 = vmatprep.mubr.bf16.mxu0 %v975_v51  ;;  %1945 = vmatprep.mubr.bf16.mxu1 %v975_v51  ;;  %v18966_v51 = vld [vmem:[#allocation6 + $0x48] ss:$16 sps:$4 sm:$0xff]  }
 0x226   :  { %2617 = vmatpush1.bf16.msra.mxu0 %v18951_v35  ;;  %2763 = vmatpush1.bf16.msra.mxu1 %v18954_v20  ;;  %v1007_v20 = vsel %vm895_vm0, %v1002_v25, %v1006_v49  ;;  %v967_v35 = vsel %vm895_vm0, %v962_v17, %v966_v4  ;;  %v22253_v25 = vshrl.u32 %v21439_v57, 16 }
 0x227   :  { %2618 = vmatprep.subr.bf16.mxu0 %v18959_v47  ;;  %2764 = vmatprep.subr.bf16.mxu1 %v18962_v54  ;;  %v994_v47 = vor.u32 %v22251_v5, %v966_v4  ;;  %v22252_v54 = vshll.u32 %v21437_v16, 16 }
 0x229   :  { %v998_v1 = vrot.slane %v22252_v54, 1  ;;  %v18998_v54 = vld [vmem:[#allocation6 + $0xec] ss:$16 sps:$4 sm:$0xff]  }
 0x22a   :  { %2619 = vmatpush1.bf16.msra.mxu0 %v18957_v34  ;;  %2765 = vmatpush1.bf16.msra.mxu1 %v18960_v55  ;;  %v18977_v34 = vld [vmem:[#allocation6 + $0x84] ss:$16 sps:$4 sm:$0xff]   ;;  %v18980_v55 = vld [vmem:[#allocation6 + $0x8c] ss:$16 sps:$4 sm:$0xff]  }
 0x22b   :  { %2620 = vmatprep.subr.bf16.mxu0 %v18965_v19  ;;  %2766 = vmatprep.subr.bf16.mxu1 %v18968_v45  ;;  %v1026_v19 = vor.u32 %v22253_v25, %v1006_v49  ;;  %v18975_v45 = vld [vmem:[#allocation6 + $0x80] ss:$16 sps:$4 sm:$0xff]   ;;  %v999_v17 = vsel %vm895_vm0, %v994_v47, %v998_v1  ;;  %v18989_v49 = vld [vmem:[#allocation6 + $0xc4] ss:$16 sps:$4 sm:$0xff]   ;;  %v19004_v25 = vld [vmem:[#allocation6 + $0x10c] ss:$16 sps:$4 sm:$0xff]  }
 0x22c   :  { %1800 = vmatmul.mubr.bf16.gmra.mrb[20].mxu0 %v967_v35  ;;  %1946 = vmatmul.mubr.bf16.gmra.mrb[20].mxu1 %v967_v35  ;;  %v18992_v35 = vld [vmem:[#allocation6 + $0xcc] ss:$16 sps:$4 sm:$0xff]   ;;  %v18995_v47 = vld [vmem:[#allocation6 + $0xe4] ss:$16 sps:$4 sm:$0xff]  }
 0x22d   :  { %1809 = vmatprep.mubr.bf16.mxu0 %v1007_v20  ;;  %1955 = vmatprep.mubr.bf16.mxu1 %v1007_v20  ;;  %v18986_v20 = vld [vmem:[#allocation6 + $0xac] ss:$16 sps:$4 sm:$0xff]   ;;  %v1027_v4 = vsel %vm895_vm0, %v1026_v19, %v21401_v7  ;;  %v18999_v19 = vld [vmem:[#allocation6 + $0x100] ss:$16 sps:$4 sm:$0xff]  }
 0x22e   :  { %2621 = vmatpush1.bf16.msra.mxu0 %v18963_v10  ;;  %2767 = vmatpush1.bf16.msra.mxu1 %v18966_v51  ;;  %v18981_v10 = vld [vmem:[#allocation6 + $0xa0] ss:$16 sps:$4 sm:$0xff]   ;;  %v18984_v51 = vld [vmem:[#allocation6 + $0xa8] ss:$16 sps:$4 sm:$0xff]  }
 0x22f   :  { %2622 = vmatprep.subr.bf16.mxu0 %v18971_v13  ;;  %2768 = vmatprep.subr.bf16.mxu1 %v18974_v41  ;;  %v22254_v41 = vshrl.u32 %v21437_v16, 16 }
 0x231   :  { %v1022_v13 = vor.u32 %v22254_v41, %v998_v1  ;;  %v18993_v1 = vld [vmem:[#allocation6 + $0xe0] ss:$16 sps:$4 sm:$0xff]   ;;  %v19014_v41 = vld [vmem:[#allocation6 + $0x148] ss:$16 sps:$4 sm:$0xff]  }
 0x232   :  { %2623 = vmatpush1.bf16.msra.mxu0 %v18969_v12  ;;  %2769 = vmatpush1.bf16.msra.mxu1 %v18972_v18  ;;  %v18987_v12 = vld [vmem:[#allocation6 + $0xc0] ss:$16 sps:$4 sm:$0xff]   ;;  %v18990_v18 = vld [vmem:[#allocation6 + $0xc8] ss:$16 sps:$4 sm:$0xff]  }
 0x233   :  { %2624 = vmatprep.subr.bf16.mxu0 %v18977_v34  ;;  %2770 = vmatprep.subr.bf16.mxu1 %v18980_v55  ;;  %v1023_v5 = vsel %vm895_vm0, %v1022_v13, %v21401_v7  ;;  %v18996_v34 = vld [vmem:[#allocation6 + $0xe8] ss:$16 sps:$4 sm:$0xff]   ;;  %v19001_v55 = vld [vmem:[#allocation6 + $0x104] ss:$16 sps:$4 sm:$0xff]  }
 0x234   :  { %1810 = vmatmul.mubr.bf16.gmra.mrb[24].mxu0 %v999_v17  ;;  %1956 = vmatmul.mubr.bf16.gmra.mrb[24].mxu1 %v999_v17  ;;  %v19010_v17 = vld [vmem:[#allocation6 + $0x12c] ss:$16 sps:$4 sm:$0xff]   ;;  %v19019_v13 = vld [vmem:[#allocation6 + $0x164] ss:$16 sps:$4 sm:$0xff]  }
 0x235   :  { %1819 = vmatprep.mubr.bf16.mxu0 %v1027_v4  ;;  %1965 = vmatprep.mubr.bf16.mxu1 %v1027_v4  ;;  %v19013_v4 = vld [vmem:[#allocation6 + $0x144] ss:$16 sps:$4 sm:$0xff]  }
 0x236   :  { %2625 = vmatpush1.bf16.msra.mxu0 %v18975_v45  ;;  %2771 = vmatpush1.bf16.msra.mxu1 %v18978_v6  ;;  %v19002_v45 = vld [vmem:[#allocation6 + $0x108] ss:$16 sps:$4 sm:$0xff]   ;;  %v19007_v6 = vld [vmem:[#allocation6 + $0x124] ss:$16 sps:$4 sm:$0xff]  }
 0x237   :  { %2626 = vmatprep.subr.bf16.mxu0 %v18983_v14  ;;  %2772 = vmatprep.subr.bf16.mxu1 %v18986_v20  ;;  %v19005_v14 = vld [vmem:[#allocation6 + $0x120] ss:$16 sps:$4 sm:$0xff]   ;;  %v19008_v20 = vld [vmem:[#allocation6 + $0x128] ss:$16 sps:$4 sm:$0xff]  }
 0x23a   :  { %2627 = vmatpush1.bf16.msra.mxu0 %v18981_v10  ;;  %2773 = vmatpush1.bf16.msra.mxu1 %v18984_v51  ;;  %v19016_v10 = vld [vmem:[#allocation6 + $0x14c] ss:$16 sps:$4 sm:$0xff]   ;;  %v19011_v51 = vld [vmem:[#allocation6 + $0x140] ss:$16 sps:$4 sm:$0xff]  }
 0x23b   :  { %2628 = vmatprep.subr.bf16.mxu0 %v18989_v49  ;;  %2774 = vmatprep.subr.bf16.mxu1 %v18992_v35  ;;  %v19022_v49 = vld [vmem:[#allocation6 + $0x16c] ss:$16 sps:$4 sm:$0xff]   ;;  %v19017_v35 = vld [vmem:[#allocation6 + $0x160] ss:$16 sps:$4 sm:$0xff]  }
 0x23c   :  { %1820 = vmatmul.mubr.bf16.gmra.mrb[28].mxu0 %v1023_v5  ;;  %1966 = vmatmul.mubr.bf16.gmra.mrb[28].mxu1 %v1023_v5  ;;  %v19028_v5 = vld [vmem:[#allocation6 + $0x18c] ss:$16 sps:$4 sm:$0xff]  }
 0x23d   :  { %2648 = vmatprep.mubr.bf16.mxu0 %v21295_v61  ;;  %2794 = vmatprep.mubr.bf16.mxu1 %v21295_v61 }
 0x23e   :  { %2629 = vmatpush1.bf16.msra.mxu0 %v18987_v12  ;;  %2775 = vmatpush1.bf16.msra.mxu1 %v18990_v18  ;;  %v19020_v12 = vld [vmem:[#allocation6 + $0x168] ss:$16 sps:$4 sm:$0xff]   ;;  %v19025_v18 = vld [vmem:[#allocation6 + $0x184] ss:$16 sps:$4 sm:$0xff]  }
 0x23f   :  { %2630 = vmatprep.subr.bf16.mxu0 %v18995_v47  ;;  %2776 = vmatprep.subr.bf16.mxu1 %v18998_v54  ;;  %v19023_v47 = vld [vmem:[#allocation6 + $0x180] ss:$16 sps:$4 sm:$0xff]   ;;  %v19026_v54 = vld [vmem:[#allocation6 + $0x188] ss:$16 sps:$4 sm:$0xff]  }
 0x242   :  { %2631 = vmatpush1.bf16.msra.mxu0 %v18993_v1  ;;  %2777 = vmatpush1.bf16.msra.mxu1 %v18996_v34  ;;  %v19031_v1 = vld [vmem:[#allocation6 + $0x1a4] ss:$16 sps:$4 sm:$0xff]   ;;  %v19034_v34 = vld [vmem:[#allocation6 + $0x1ac] ss:$16 sps:$4 sm:$0xff]  }
 0x243   :  { %2632 = vmatprep.subr.bf16.mxu0 %v19001_v55  ;;  %2778 = vmatprep.subr.bf16.mxu1 %v19004_v25  ;;  %v19029_v55 = vld [vmem:[#allocation6 + $0x1a0] ss:$16 sps:$4 sm:$0xff]   ;;  %v19032_v25 = vld [vmem:[#allocation6 + $0x1a8] ss:$16 sps:$4 sm:$0xff]  }
 0x246   :  { %2633 = vmatpush1.bf16.msra.mxu0 %v18999_v19  ;;  %2779 = vmatpush1.bf16.msra.mxu1 %v19002_v45  ;;  %v19037_v19 = vld [vmem:[#allocation6 + $0x1c4] ss:$16 sps:$4 sm:$0xff]   ;;  %v19040_v45 = vld [vmem:[#allocation6 + $0x1cc] ss:$16 sps:$4 sm:$0xff]  }
 0x247   :  { %2634 = vmatprep.subr.bf16.mxu0 %v19007_v6  ;;  %2780 = vmatprep.subr.bf16.mxu1 %v19010_v17  ;;  %v19035_v6 = vld [vmem:[#allocation6 + $0x1c0] ss:$16 sps:$4 sm:$0xff]   ;;  %v19038_v17 = vld [vmem:[#allocation6 + $0x1c8] ss:$16 sps:$4 sm:$0xff]  }
 0x24a   :  { %2635 = vmatpush1.bf16.msra.mxu0 %v19005_v14  ;;  %2781 = vmatpush1.bf16.msra.mxu1 %v19008_v20  ;;  %v19043_v14 = vld [vmem:[#allocation6 + $0x1e4] ss:$16 sps:$4 sm:$0xff]   ;;  %v19046_v20 = vld [vmem:[#allocation6 + $0x1ec] ss:$16 sps:$4 sm:$0xff]  }
 0x24b   :  { %2636 = vmatprep.subr.bf16.mxu0 %v19013_v4  ;;  %2782 = vmatprep.subr.bf16.mxu1 %v19016_v10  ;;  %v19041_v4 = vld [vmem:[#allocation6 + $0x1e0] ss:$16 sps:$4 sm:$0xff]   ;;  %v19044_v10 = vld [vmem:[#allocation6 + $0x1e8] ss:$16 sps:$4 sm:$0xff]  }
 0x24e   :  { %2637 = vmatpush1.bf16.msra.mxu0 %v19011_v51  ;;  %2783 = vmatpush1.bf16.msra.mxu1 %v19014_v41  ;;  %v19049_v51 = vld [vmem:[#allocation6 + $0x204] ss:$16 sps:$4 sm:$0xff]   ;;  %v19052_v41 = vld [vmem:[#allocation6 + $0x20c] ss:$16 sps:$4 sm:$0xff]  }
 0x24f   :  { %2638 = vmatprep.subr.bf16.mxu0 %v19019_v13  ;;  %2784 = vmatprep.subr.bf16.mxu1 %v19022_v49  ;;  %v19047_v13 = vld [vmem:[#allocation6 + $0x200] ss:$16 sps:$4 sm:$0xff]   ;;  %v19050_v49 = vld [vmem:[#allocation6 + $0x208] ss:$16 sps:$4 sm:$0xff]  }
 0x252   :  { %2639 = vmatpush1.bf16.msra.mxu0 %v19017_v35  ;;  %2785 = vmatpush1.bf16.msra.mxu1 %v19020_v12  ;;  %v19055_v35 = vld [vmem:[#allocation6 + $0x224] ss:$16 sps:$4 sm:$0xff]   ;;  %v19058_v12 = vld [vmem:[#allocation6 + $0x22c] ss:$16 sps:$4 sm:$0xff]  }
 0x253   :  { %2640 = vmatprep.subr.bf16.mxu0 %v19025_v18  ;;  %2786 = vmatprep.subr.bf16.mxu1 %v19028_v5  ;;  %v19053_v18 = vld [vmem:[#allocation6 + $0x220] ss:$16 sps:$4 sm:$0xff]   ;;  %v19056_v5 = vld [vmem:[#allocation6 + $0x228] ss:$16 sps:$4 sm:$0xff]  }
 0x256   :  { %2641 = vmatpush1.bf16.msra.mxu0 %v19023_v47  ;;  %2787 = vmatpush1.bf16.msra.mxu1 %v19026_v54  ;;  %v19061_v47 = vld [vmem:[#allocation6 + $0x244] ss:$16 sps:$4 sm:$0xff]   ;;  %v19064_v54 = vld [vmem:[#allocation6 + $0x24c] ss:$16 sps:$4 sm:$0xff]  }
 0x257   :  { %2642 = vmatprep.subr.bf16.mxu0 %v19031_v1  ;;  %2788 = vmatprep.subr.bf16.mxu1 %v19034_v34  ;;  %v19059_v1 = vld [vmem:[#allocation6 + $0x240] ss:$16 sps:$4 sm:$0xff]   ;;  %v19062_v34 = vld [vmem:[#allocation6 + $0x248] ss:$16 sps:$4 sm:$0xff]  }
 0x25a   :  { %2643 = vmatpush1.bf16.msra.mxu0 %v19029_v55  ;;  %2789 = vmatpush1.bf16.msra.mxu1 %v19032_v25  ;;  %v19067_v55 = vld [vmem:[#allocation6 + $0x264] ss:$16 sps:$4 sm:$0xff]   ;;  %v19070_v25 = vld [vmem:[#allocation6 + $0x26c] ss:$16 sps:$4 sm:$0xff]  }
 0x25b   :  { %2644 = vmatprep.subr.bf16.mxu0 %v19037_v19  ;;  %2790 = vmatprep.subr.bf16.mxu1 %v19040_v45  ;;  %v19065_v19 = vld [vmem:[#allocation6 + $0x260] ss:$16 sps:$4 sm:$0xff]   ;;  %v19068_v45 = vld [vmem:[#allocation6 + $0x268] ss:$16 sps:$4 sm:$0xff]  }
 0x25e   :  { %2645 = vmatpush1.bf16.msra.mxu0 %v19035_v6  ;;  %2791 = vmatpush1.bf16.msra.mxu1 %v19038_v17  ;;  %v19073_v6 = vld [vmem:[#allocation6 + $0x284] ss:$16 sps:$4 sm:$0xff]   ;;  %v19076_v17 = vld [vmem:[#allocation6 + $0x28c] ss:$16 sps:$4 sm:$0xff]  }
 0x25f   :  { %2646 = vmatprep.subr.bf16.mxu0 %v19043_v14  ;;  %2792 = vmatprep.subr.bf16.mxu1 %v19046_v20  ;;  %v19071_v14 = vld [vmem:[#allocation6 + $0x280] ss:$16 sps:$4 sm:$0xff]   ;;  %v19074_v20 = vld [vmem:[#allocation6 + $0x288] ss:$16 sps:$4 sm:$0xff]  }
 0x262   :  { %2647 = vmatpush1.bf16.msra.mxu0 %v19041_v4  ;;  %2793 = vmatpush1.bf16.msra.mxu1 %v19044_v10  ;;  %v19079_v4 = vld [vmem:[#allocation6 + $0x2a4] ss:$16 sps:$4 sm:$0xff]   ;;  %v19082_v10 = vld [vmem:[#allocation6 + $0x2ac] ss:$16 sps:$4 sm:$0xff]  }
 0x263   :  { %2689 = vmatprep.subr.bf16.mxu0 %v19049_v51  ;;  %2835 = vmatprep.subr.bf16.mxu1 %v19052_v41  ;;  %v19077_v51 = vld [vmem:[#allocation6 + $0x2a0] ss:$16 sps:$4 sm:$0xff]   ;;  %v19080_v41 = vld [vmem:[#allocation6 + $0x2a8] ss:$16 sps:$4 sm:$0xff]  }
 0x265   :  { %2649 = vmatmul.mubr.bf16.vlgmr.msra.gmra.mrb[16].mxu0 %v21290_v59  ;;  %2795 = vmatmul.mubr.bf16.vlgmr.msra.gmra.mrb[16].mxu1 %v21290_v59 }
 0x266   :  { %2658 = vmatprep.mubr.bf16.mxu0 %v21323_v27  ;;  %2690 = vmatpush1.bf16.msra.mxu0 %v19047_v13  ;;  %v19085_v13 = vld [vmem:[#allocation6 + $0x2c4] ss:$16 sps:$4 sm:$0xff]  }
 0x267   :  { %2804 = vmatprep.mubr.bf16.mxu1 %v21323_v27  ;;  %2836 = vmatpush1.bf16.msra.mxu1 %v19050_v49  ;;  %v19088_v49 = vld [vmem:[#allocation6 + $0x2cc] ss:$16 sps:$4 sm:$0xff]  }
 0x268   :  { %2691 = vmatprep.subr.bf16.mxu0 %v19055_v35  ;;  %2837 = vmatprep.subr.bf16.mxu1 %v19058_v12  ;;  %v19083_v35 = vld [vmem:[#allocation6 + $0x2c0] ss:$16 sps:$4 sm:$0xff]   ;;  %v19086_v12 = vld [vmem:[#allocation6 + $0x2c8] ss:$16 sps:$4 sm:$0xff]  }
 0x26a   :  { %2692 = vmatpush1.bf16.msra.mxu0 %v19053_v18  ;;  %v19091_v18 = vld [vmem:[#allocation6 + $0x2e4] ss:$16 sps:$4 sm:$0xff]  }
 0x26b   :  { %2838 = vmatpush1.bf16.msra.mxu1 %v19056_v5  ;;  %2693 = vmatprep.subr.bf16.mxu0 %v19061_v47  ;;  %v19094_v5 = vld [vmem:[#allocation6 + $0x2ec] ss:$16 sps:$4 sm:$0xff]   ;;  %v19089_v47 = vld [vmem:[#allocation6 + $0x2e0] ss:$16 sps:$4 sm:$0xff]  }
 0x26c   :  { %2839 = vmatprep.subr.bf16.mxu1 %v19064_v54  ;;  %v19092_v54 = vld [vmem:[#allocation6 + $0x2e8] ss:$16 sps:$4 sm:$0xff]  }
 0x26d   :  { %2659 = vmatmul.mubr.bf16.gmra.mrb[20].mxu0 %v21318_v23  ;;  %2805 = vmatmul.mubr.bf16.gmra.mrb[20].mxu1 %v21318_v23 }
 0x26e   :  { %2668 = vmatprep.mubr.bf16.mxu0 %v21351_v21  ;;  %2694 = vmatpush1.bf16.msra.mxu0 %v19059_v1  ;;  %v19097_v1 = vld [vmem:[#allocation6 + $0x304] ss:$16 sps:$4 sm:$0xff]  }
 0x26f   :  { %2814 = vmatprep.mubr.bf16.mxu1 %v21351_v21  ;;  %2840 = vmatpush1.bf16.msra.mxu1 %v19062_v34  ;;  %v19100_v34 = vld [vmem:[#allocation6 + $0x30c] ss:$16 sps:$4 sm:$0xff]  }
 0x270   :  { %2695 = vmatprep.subr.bf16.mxu0 %v19067_v55  ;;  %2841 = vmatprep.subr.bf16.mxu1 %v19070_v25  ;;  %v19095_v55 = vld [vmem:[#allocation6 + $0x300] ss:$16 sps:$4 sm:$0xff]   ;;  %v19098_v25 = vld [vmem:[#allocation6 + $0x308] ss:$16 sps:$4 sm:$0xff]  }
 0x272   :  { %2696 = vmatpush1.bf16.msra.mxu0 %v19065_v19  ;;  %v19103_v19 = vld [vmem:[#allocation6 + $0x324] ss:$16 sps:$4 sm:$0xff]  }
 0x273   :  { %2842 = vmatpush1.bf16.msra.mxu1 %v19068_v45  ;;  %2697 = vmatprep.subr.bf16.mxu0 %v19073_v6  ;;  %v19106_v45 = vld [vmem:[#allocation6 + $0x32c] ss:$16 sps:$4 sm:$0xff]   ;;  %v19101_v6 = vld [vmem:[#allocation6 + $0x320] ss:$16 sps:$4 sm:$0xff]  }
 0x274   :  { %2843 = vmatprep.subr.bf16.mxu1 %v19076_v17  ;;  %v19104_v17 = vld [vmem:[#allocation6 + $0x328] ss:$16 sps:$4 sm:$0xff]  }
 0x275   :  { %2669 = vmatmul.mubr.bf16.gmra.mrb[24].mxu0 %v21344_v11  ;;  %2815 = vmatmul.mubr.bf16.gmra.mrb[24].mxu1 %v21344_v11 }
 0x276   :  { %2678 = vmatprep.mubr.bf16.mxu0 %v21383_v37  ;;  %2698 = vmatpush1.bf16.msra.mxu0 %v19071_v14  ;;  %v19109_v14 = vld [vmem:[#allocation6 + $0x344] ss:$16 sps:$4 sm:$0xff]  }
 0x277   :  { %2824 = vmatprep.mubr.bf16.mxu1 %v21383_v37  ;;  %2844 = vmatpush1.bf16.msra.mxu1 %v19074_v20  ;;  %v19112_v20 = vld [vmem:[#allocation6 + $0x34c] ss:$16 sps:$4 sm:$0xff]  }
 0x278   :  { %2699 = vmatprep.subr.bf16.mxu0 %v19079_v4  ;;  %2845 = vmatprep.subr.bf16.mxu1 %v19082_v10  ;;  %v19107_v4 = vld [vmem:[#allocation6 + $0x340] ss:$16 sps:$4 sm:$0xff]   ;;  %v19110_v10 = vld [vmem:[#allocation6 + $0x348] ss:$16 sps:$4 sm:$0xff]  }
 0x27a   :  { %2700 = vmatpush1.bf16.msra.mxu0 %v19077_v51  ;;  %v19115_v51 = vld [vmem:[#allocation6 + $0x364] ss:$16 sps:$4 sm:$0xff]  }
 0x27b   :  { %2846 = vmatpush1.bf16.msra.mxu1 %v19080_v41  ;;  %2701 = vmatprep.subr.bf16.mxu0 %v19085_v13  ;;  %v19118_v41 = vld [vmem:[#allocation6 + $0x36c] ss:$16 sps:$4 sm:$0xff]   ;;  %v19113_v13 = vld [vmem:[#allocation6 + $0x360] ss:$16 sps:$4 sm:$0xff]  }
 0x27c   :  { %2847 = vmatprep.subr.bf16.mxu1 %v19088_v49  ;;  %v19116_v49 = vld [vmem:[#allocation6 + $0x368] ss:$16 sps:$4 sm:$0xff]  }
 0x27d   :  { %2679 = vmatmul.mubr.bf16.gmra.mrb[28].mxu0 %v21380_v31  ;;  %2825 = vmatmul.mubr.bf16.gmra.mrb[28].mxu1 %v21380_v31 }
 0x27e   :  { %2702 = vmatpush1.bf16.msra.mxu0 %v19083_v35  ;;  %2721 = vmatprep.mubr.bf16.mxu0 %v21359_v36  ;;  %v19121_v35 = vld [vmem:[#allocation6 + $0x384] ss:$16 sps:$4 sm:$0xff]  }
 0x27f   :  { %2848 = vmatpush1.bf16.msra.mxu1 %v19086_v12  ;;  %2867 = vmatprep.mubr.bf16.mxu1 %v21359_v36  ;;  %v19124_v12 = vld [vmem:[#allocation6 + $0x38c] ss:$16 sps:$4 sm:$0xff]  }
 0x280   :  { %2703 = vmatprep.subr.bf16.mxu0 %v19091_v18  ;;  %2849 = vmatprep.subr.bf16.mxu1 %v19094_v5  ;;  %v19119_v18 = vld [vmem:[#allocation6 + $0x380] ss:$16 sps:$4 sm:$0xff]   ;;  %v19122_v5 = vld [vmem:[#allocation6 + $0x388] ss:$16 sps:$4 sm:$0xff]  }
 0x282   :  { %2704 = vmatpush1.bf16.msra.mxu0 %v19089_v47  ;;  %v19127_v47 = vld [vmem:[#allocation6 + $0x3a4] ss:$16 sps:$4 sm:$0xff]  }
 0x283   :  { %2850 = vmatpush1.bf16.msra.mxu1 %v19092_v54  ;;  %2705 = vmatprep.subr.bf16.mxu0 %v19097_v1  ;;  %v19130_v54 = vld [vmem:[#allocation6 + $0x3ac] ss:$16 sps:$4 sm:$0xff]   ;;  %v19125_v1 = vld [vmem:[#allocation6 + $0x3a0] ss:$16 sps:$4 sm:$0xff]  }
 0x284   :  { %2851 = vmatprep.subr.bf16.mxu1 %v19100_v34  ;;  %v19128_v34 = vld [vmem:[#allocation6 + $0x3a8] ss:$16 sps:$4 sm:$0xff]  }
 0x286   :  { %2706 = vmatpush1.bf16.msra.mxu0 %v19095_v55  ;;  %v19133_v55 = vld [vmem:[#allocation6 + $0x3c4] ss:$16 sps:$4 sm:$0xff]  }
 0x287   :  { %2852 = vmatpush1.bf16.msra.mxu1 %v19098_v25  ;;  %2707 = vmatprep.subr.bf16.mxu0 %v19103_v19  ;;  %v19136_v25 = vld [vmem:[#allocation6 + $0x3cc] ss:$16 sps:$4 sm:$0xff]   ;;  %v19131_v19 = vld [vmem:[#allocation6 + $0x3c0] ss:$16 sps:$4 sm:$0xff]  }
 0x288   :  { %2853 = vmatprep.subr.bf16.mxu1 %v19106_v45  ;;  %v19134_v45 = vld [vmem:[#allocation6 + $0x3c8] ss:$16 sps:$4 sm:$0xff]  }
 0x28a   :  { %2708 = vmatpush1.bf16.msra.mxu0 %v19101_v6  ;;  %v19139_v6 = vld [vmem:[#allocation6 + $0x3e4] ss:$16 sps:$4 sm:$0xff]  }
 0x28b   :  { %2854 = vmatpush1.bf16.msra.mxu1 %v19104_v17  ;;  %2709 = vmatprep.subr.bf16.mxu0 %v19109_v14  ;;  %v19142_v17 = vld [vmem:[#allocation6 + $0x3ec] ss:$16 sps:$4 sm:$0xff]   ;;  %v19137_v14 = vld [vmem:[#allocation6 + $0x3e0] ss:$16 sps:$4 sm:$0xff]  }
 0x28c   :  { %2855 = vmatprep.subr.bf16.mxu1 %v19112_v20  ;;  %v19140_v20 = vld [vmem:[#allocation6 + $0x3e8] ss:$16 sps:$4 sm:$0xff]  }
 0x28e   :  { %2710 = vmatpush1.bf16.msra.mxu0 %v19107_v4  ;;  %v19145_v4 = vld [vmem:[#allocation6 + $0x804] ss:$16 sps:$4 sm:$0xff]  }
 0x28f   :  { %2856 = vmatpush1.bf16.msra.mxu1 %v19110_v10  ;;  %2711 = vmatprep.subr.bf16.mxu0 %v19115_v51  ;;  %v19148_v10 = vld [vmem:[#allocation6 + $0x80c] ss:$16 sps:$4 sm:$0xff]   ;;  %v19143_v51 = vld [vmem:[#allocation6 + $0x800] ss:$16 sps:$4 sm:$0xff]  }
 0x290   :  { %2857 = vmatprep.subr.bf16.mxu1 %v19118_v41  ;;  %v19146_v41 = vld [vmem:[#allocation6 + $0x808] ss:$16 sps:$4 sm:$0xff]  }
 0x292   :  { %2712 = vmatpush1.bf16.msra.mxu0 %v19113_v13  ;;  %v19151_v13 = vld [vmem:[#allocation6 + $0x824] ss:$16 sps:$4 sm:$0xff]  }
 0x293   :  { %2858 = vmatpush1.bf16.msra.mxu1 %v19116_v49  ;;  %2713 = vmatprep.subr.bf16.mxu0 %v19121_v35  ;;  %v19154_v49 = vld [vmem:[#allocation6 + $0x82c] ss:$16 sps:$4 sm:$0xff]   ;;  %v19149_v35 = vld [vmem:[#allocation6 + $0x820] ss:$16 sps:$4 sm:$0xff]  }
 0x294   :  { %2859 = vmatprep.subr.bf16.mxu1 %v19124_v12  ;;  %v19152_v12 = vld [vmem:[#allocation6 + $0x828] ss:$16 sps:$4 sm:$0xff]  }
 0x296   :  { %2714 = vmatpush1.bf16.msra.mxu0 %v19119_v18  ;;  %v19157_v18 = vld [vmem:[#allocation6 + $0x844] ss:$16 sps:$4 sm:$0xff]  }
 0x297   :  { %2860 = vmatpush1.bf16.msra.mxu1 %v19122_v5  ;;  %2715 = vmatprep.subr.bf16.mxu0 %v19127_v47  ;;  %v19160_v5 = vld [vmem:[#allocation6 + $0x84c] ss:$16 sps:$4 sm:$0xff]   ;;  %v19155_v47 = vld [vmem:[#allocation6 + $0x840] ss:$16 sps:$4 sm:$0xff]  }
 0x298   :  { %2861 = vmatprep.subr.bf16.mxu1 %v19130_v54  ;;  %v19158_v54 = vld [vmem:[#allocation6 + $0x848] ss:$16 sps:$4 sm:$0xff]  }
 0x29a   :  { %2716 = vmatpush1.bf16.msra.mxu0 %v19125_v1  ;;  %v19163_v1 = vld [vmem:[#allocation6 + $0x864] ss:$16 sps:$4 sm:$0xff]  }
 0x29b   :  { %2862 = vmatpush1.bf16.msra.mxu1 %v19128_v34  ;;  %2717 = vmatprep.subr.bf16.mxu0 %v19133_v55  ;;  %v19166_v34 = vld [vmem:[#allocation6 + $0x86c] ss:$16 sps:$4 sm:$0xff]   ;;  %v19161_v55 = vld [vmem:[#allocation6 + $0x860] ss:$16 sps:$4 sm:$0xff]  }
 0x29c   :  { %2863 = vmatprep.subr.bf16.mxu1 %v19136_v25  ;;  %v19164_v25 = vld [vmem:[#allocation6 + $0x868] ss:$16 sps:$4 sm:$0xff]  }
 0x29e   :  { %2718 = vmatpush1.bf16.msra.mxu0 %v19131_v19  ;;  %v19169_v19 = vld [vmem:[#allocation6 + $0x884] ss:$16 sps:$4 sm:$0xff]  }
 0x29f   :  { %2864 = vmatpush1.bf16.msra.mxu1 %v19134_v45  ;;  %2719 = vmatprep.subr.bf16.mxu0 %v19139_v6  ;;  %v19172_v45 = vld [vmem:[#allocation6 + $0x88c] ss:$16 sps:$4 sm:$0xff]   ;;  %v19167_v6 = vld [vmem:[#allocation6 + $0x880] ss:$16 sps:$4 sm:$0xff]  }
 0x2a0   :  { %2865 = vmatprep.subr.bf16.mxu1 %v19142_v17  ;;  %v19170_v17 = vld [vmem:[#allocation6 + $0x888] ss:$16 sps:$4 sm:$0xff]  }
 0x2a2   :  { %2720 = vmatpush1.bf16.msra.mxu0 %v19137_v14  ;;  %v19175_v14 = vld [vmem:[#allocation6 + $0x8a4] ss:$16 sps:$4 sm:$0xff]  }
 0x2a3   :  { %2866 = vmatpush1.bf16.msra.mxu1 %v19140_v20  ;;  %3744 = vmatprep.subr.bf16.mxu0 %v19145_v4  ;;  %v19178_v20 = vld [vmem:[#allocation6 + $0x8ac] ss:$16 sps:$4 sm:$0xff]   ;;  %v19173_v4 = vld [vmem:[#allocation6 + $0x8a0] ss:$16 sps:$4 sm:$0xff]  }
 0x2a4   :  { %3890 = vmatprep.subr.bf16.mxu1 %v19148_v10  ;;  %v19176_v10 = vld [vmem:[#allocation6 + $0x8a8] ss:$16 sps:$4 sm:$0xff]  }
 0x2a5   :  { %2722 = vmatmul.mubr.bf16.vlgmr.msra.gmra.mrb[16].mxu0 %v21355_v29 }
 0x2a6   :  { %2868 = vmatmul.mubr.bf16.vlgmr.msra.gmra.mrb[16].mxu1 %v21355_v29  ;;  %2731 = vmatprep.mubr.bf16.mxu0 %v21392_v58 }
 0x2a7   :  { %2877 = vmatprep.mubr.bf16.mxu1 %v21392_v58  ;;  %3745 = vmatpush1.bf16.msra.mxu0 %v19143_v51  ;;  %v19181_v51 = vld [vmem:[#allocation6 + $0x8c4] ss:$16 sps:$4 sm:$0xff]  }
 0x2a8   :  { %3891 = vmatpush1.bf16.msra.mxu1 %v19146_v41  ;;  %3746 = vmatprep.subr.bf16.mxu0 %v19151_v13  ;;  %v19184_v41 = vld [vmem:[#allocation6 + $0x8cc] ss:$16 sps:$4 sm:$0xff]   ;;  %v3059_v13 = vrot.slane %v21323_v27, 1 }
 0x2a9   :  { %3892 = vmatprep.subr.bf16.mxu1 %v19154_v49  ;;  %v19179_v49 = vld [vmem:[#allocation6 + $0x8c0] ss:$16 sps:$4 sm:$0xff]  }
 0x2ab   :  { %3747 = vmatpush1.bf16.msra.mxu0 %v19149_v35  ;;  %v19182_v35 = vld [vmem:[#allocation6 + $0x8c8] ss:$16 sps:$4 sm:$0xff]  }
 0x2ac   :  { %3893 = vmatpush1.bf16.msra.mxu1 %v19152_v12  ;;  %3748 = vmatprep.subr.bf16.mxu0 %v19157_v18  ;;  %v19187_v12 = vld [vmem:[#allocation6 + $0x8e4] ss:$16 sps:$4 sm:$0xff]   ;;  %v3058_v18 = vrot.slane %v21295_v61, 1 }
 0x2ad   :  { %2732 = vmatmul.mubr.bf16.gmra.mrb[20].mxu0 %v21386_v38  ;;  %3894 = vmatprep.subr.bf16.mxu1 %v19160_v5  ;;  %v19190_v5 = vld [vmem:[#allocation6 + $0x8ec] ss:$16 sps:$4 sm:$0xff]  }
 0x2ae   :  { %2878 = vmatmul.mubr.bf16.gmra.mrb[20].mxu1 %v21386_v38  ;;  %2741 = vmatprep.mubr.bf16.mxu0 %v21415_v50 }
 0x2af   :  { %2887 = vmatprep.mubr.bf16.mxu1 %v21415_v50  ;;  %3749 = vmatpush1.bf16.msra.mxu0 %v19155_v47  ;;  %v3060_v47 = vsel %vm3054_vm3, %v3058_v18, %v3059_v13  ;;  %v19217_v18 = vld [vmem:[#allocation6 + $0x984] ss:$16 sps:$4 sm:$0xff]  }
 0x2b0   :  { %3895 = vmatpush1.bf16.msra.mxu1 %v19158_v54  ;;  %3750 = vmatprep.subr.bf16.mxu0 %v19163_v1  ;;  %v19185_v54 = vld [vmem:[#allocation6 + $0x8e0] ss:$16 sps:$4 sm:$0xff]   ;;  %v19188_v1 = vld [vmem:[#allocation6 + $0x8e8] ss:$16 sps:$4 sm:$0xff]  }
 0x2b1   :  { %3896 = vmatprep.subr.bf16.mxu1 %v19166_v34  ;;  %v19193_v34 = vld [vmem:[#allocation6 + $0x904] ss:$16 sps:$4 sm:$0xff]  }
 0x2b3   :  { %3751 = vmatpush1.bf16.msra.mxu0 %v19161_v55  ;;  %v19196_v55 = vld [vmem:[#allocation6 + $0x90c] ss:$16 sps:$4 sm:$0xff]  }
 0x2b4   :  { %3897 = vmatpush1.bf16.msra.mxu1 %v19164_v25  ;;  %3752 = vmatprep.subr.bf16.mxu0 %v19169_v19  ;;  %v19191_v25 = vld [vmem:[#allocation6 + $0x900] ss:$16 sps:$4 sm:$0xff]   ;;  %v19194_v19 = vld [vmem:[#allocation6 + $0x908] ss:$16 sps:$4 sm:$0xff]  }
 0x2b5   :  { %2742 = vmatmul.mubr.bf16.gmra.mrb[24].mxu0 %v21412_v39  ;;  %3898 = vmatprep.subr.bf16.mxu1 %v19172_v45  ;;  %v19199_v45 = vld [vmem:[#allocation6 + $0x924] ss:$16 sps:$4 sm:$0xff]  }
 0x2b6   :  { %2888 = vmatmul.mubr.bf16.gmra.mrb[24].mxu1 %v21412_v39  ;;  %2751 = vmatprep.mubr.bf16.mxu0 %v21439_v57 }
 0x2b7   :  { %2897 = vmatprep.mubr.bf16.mxu1 %v21439_v57  ;;  %3753 = vmatpush1.bf16.msra.mxu0 %v19167_v6  ;;  %v19202_v6 = vld [vmem:[#allocation6 + $0x92c] ss:$16 sps:$4 sm:$0xff]  }
 0x2b8   :  { %3899 = vmatpush1.bf16.msra.mxu1 %v19170_v17  ;;  %3754 = vmatprep.subr.bf16.mxu0 %v19175_v14  ;;  %v19197_v17 = vld [vmem:[#allocation6 + $0x920] ss:$16 sps:$4 sm:$0xff]   ;;  %v19200_v14 = vld [vmem:[#allocation6 + $0x928] ss:$16 sps:$4 sm:$0xff]  }
 0x2b9   :  { %3900 = vmatprep.subr.bf16.mxu1 %v19178_v20  ;;  %v19205_v20 = vld [vmem:[#allocation6 + $0x944] ss:$16 sps:$4 sm:$0xff]  }
 0x2bb   :  { %3755 = vmatpush1.bf16.msra.mxu0 %v19173_v4  ;;  %v19208_v4 = vld [vmem:[#allocation6 + $0x94c] ss:$16 sps:$4 sm:$0xff]  }
 0x2bc   :  { %3901 = vmatpush1.bf16.msra.mxu1 %v19176_v10  ;;  %3756 = vmatprep.subr.bf16.mxu0 %v19181_v51  ;;  %v19203_v10 = vld [vmem:[#allocation6 + $0x940] ss:$16 sps:$4 sm:$0xff]   ;;  %v19206_v51 = vld [vmem:[#allocation6 + $0x948] ss:$16 sps:$4 sm:$0xff]  }
 0x2bd   :  { %2752 = vmatmul.mubr.bf16.gmra.mrb[28].mxu0 %v21437_v16  ;;  %3902 = vmatprep.subr.bf16.mxu1 %v19184_v41  ;;  %v19211_v41 = vld [vmem:[#allocation6 + $0x964] ss:$16 sps:$4 sm:$0xff]  }
 0x2be   :  { %2898 = vmatmul.mubr.bf16.gmra.mrb[28].mxu1 %v21437_v16  ;;  %3776 = vmatprep.mubr.bf16.mxu0 %v3060_v47 }
 0x2bf   :  { %3757 = vmatpush1.bf16.msra.mxu0 %v19179_v49  ;;  %3922 = vmatprep.mubr.bf16.mxu1 %v3060_v47  ;;  %v19214_v49 = vld [vmem:[#allocation6 + $0x96c] ss:$16 sps:$4 sm:$0xff]   ;;  %v19215_v47 = vld [vmem:[#allocation6 + $0x980] ss:$16 sps:$4 sm:$0xff]  }
 0x2c0   :  { %3903 = vmatpush1.bf16.msra.mxu1 %v19182_v35  ;;  %3758 = vmatprep.subr.bf16.mxu0 %v19187_v12  ;;  %v19209_v35 = vld [vmem:[#allocation6 + $0x960] ss:$16 sps:$4 sm:$0xff]   ;;  %v19212_v12 = vld [vmem:[#allocation6 + $0x968] ss:$16 sps:$4 sm:$0xff]  }
 0x2c1   :  { %3904 = vmatprep.subr.bf16.mxu1 %v19190_v5  ;;  %v19220_v5 = vld [vmem:[#allocation6 + $0x98c] ss:$16 sps:$4 sm:$0xff]  }
 0x2c3   :  { %3759 = vmatpush1.bf16.msra.mxu0 %v19185_v54  ;;  %v19218_v54 = vld [vmem:[#allocation6 + $0x988] ss:$16 sps:$4 sm:$0xff]  }
 0x2c4   :  { %3905 = vmatpush1.bf16.msra.mxu1 %v19188_v1  ;;  %3760 = vmatprep.subr.bf16.mxu0 %v19193_v34  ;;  %v19223_v1 = vld [vmem:[#allocation6 + $0x9a4] ss:$16 sps:$4 sm:$0xff]   ;;  %v19226_v34 = vld [vmem:[#allocation6 + $0x9ac] ss:$16 sps:$4 sm:$0xff]  }
 0x2c5   :  { %3906 = vmatprep.subr.bf16.mxu1 %v19196_v55  ;;  %v19221_v55 = vld [vmem:[#allocation6 + $0x9a0] ss:$16 sps:$4 sm:$0xff]  }
 0x2c7   :  { %3761 = vmatpush1.bf16.msra.mxu0 %v19191_v25  ;;  %v19224_v25 = vld [vmem:[#allocation6 + $0x9a8] ss:$16 sps:$4 sm:$0xff]  }
 0x2c8   :  { %3907 = vmatpush1.bf16.msra.mxu1 %v19194_v19  ;;  %3762 = vmatprep.subr.bf16.mxu0 %v19199_v45  ;;  %v19229_v19 = vld [vmem:[#allocation6 + $0x9c4] ss:$16 sps:$4 sm:$0xff]   ;;  %v19232_v45 = vld [vmem:[#allocation6 + $0x9cc] ss:$16 sps:$4 sm:$0xff]  }
 0x2c9   :  { %3908 = vmatprep.subr.bf16.mxu1 %v19202_v6  ;;  %v19227_v6 = vld [vmem:[#allocation6 + $0x9c0] ss:$16 sps:$4 sm:$0xff]  }
 0x2cb   :  { %3763 = vmatpush1.bf16.msra.mxu0 %v19197_v17  ;;  %v19230_v17 = vld [vmem:[#allocation6 + $0x9c8] ss:$16 sps:$4 sm:$0xff]  }
 0x2cc   :  { %3909 = vmatpush1.bf16.msra.mxu1 %v19200_v14  ;;  %3764 = vmatprep.subr.bf16.mxu0 %v19205_v20  ;;  %v19235_v14 = vld [vmem:[#allocation6 + $0x9e4] ss:$16 sps:$4 sm:$0xff]   ;;  %v19238_v20 = vld [vmem:[#allocation6 + $0x9ec] ss:$16 sps:$4 sm:$0xff]  }
 0x2cd   :  { %3910 = vmatprep.subr.bf16.mxu1 %v19208_v4  ;;  %v19233_v4 = vld [vmem:[#allocation6 + $0x9e0] ss:$16 sps:$4 sm:$0xff]  }
 0x2cf   :  { %3765 = vmatpush1.bf16.msra.mxu0 %v19203_v10  ;;  %v19236_v10 = vld [vmem:[#allocation6 + $0x9e8] ss:$16 sps:$4 sm:$0xff]  }
 0x2d0   :  { %3911 = vmatpush1.bf16.msra.mxu1 %v19206_v51  ;;  %3766 = vmatprep.subr.bf16.mxu0 %v19211_v41  ;;  %v19241_v51 = vld [vmem:[#allocation6 + $0xa04] ss:$16 sps:$4 sm:$0xff]   ;;  %v19244_v41 = vld [vmem:[#allocation6 + $0xa0c] ss:$16 sps:$4 sm:$0xff]  }
 0x2d1   :  { %3912 = vmatprep.subr.bf16.mxu1 %v19214_v49  ;;  %v3056_v49 = vrot.slane %v21318_v23, 1 }
 0x2d3   :  { %3767 = vmatpush1.bf16.msra.mxu0 %v19209_v35  ;;  %v19239_v35 = vld [vmem:[#allocation6 + $0xa00] ss:$16 sps:$4 sm:$0xff]  }
 0x2d4   :  { %3913 = vmatpush1.bf16.msra.mxu1 %v19212_v12  ;;  %3768 = vmatprep.subr.bf16.mxu0 %v19217_v18  ;;  %v3069_v12 = vrot.slane %v21351_v21, 1  ;;  %v3055_v18 = vrot.slane %v21290_v59, 1 }
 0x2d5   :  { %3914 = vmatprep.subr.bf16.mxu1 %v19220_v5  ;;  %v19242_v5 = vld [vmem:[#allocation6 + $0xa08] ss:$16 sps:$4 sm:$0xff]  }
 0x2d7   :  { %3769 = vmatpush1.bf16.msra.mxu0 %v19215_v47  ;;  %v19247_v47 = vld [vmem:[#allocation6 + $0xa24] ss:$16 sps:$4 sm:$0xff]  }
 0x2d8   :  { %3915 = vmatpush1.bf16.msra.mxu1 %v19218_v54  ;;  %3770 = vmatprep.subr.bf16.mxu0 %v19223_v1  ;;  %v19250_v54 = vld [vmem:[#allocation6 + $0xa2c] ss:$16 sps:$4 sm:$0xff]   ;;  %v3057_v1 = vsel %vm3054_vm3, %v3055_v18, %v3056_v49  ;;  %v3075_v18 = vrot.slane %v21380_v31, 1 }
 0x2d9   :  { %3916 = vmatprep.subr.bf16.mxu1 %v19226_v34  ;;  %v3070_v34 = vsel %vm3054_vm3, %v3059_v13, %v3069_v12  ;;  %v19262_v13 = vld [vmem:[#allocation6 + $0xa6c] ss:$16 sps:$4 sm:$0xff]  }
 0x2db   :  { %3771 = vmatpush1.bf16.msra.mxu0 %v19221_v55  ;;  %v19245_v55 = vld [vmem:[#allocation6 + $0xa20] ss:$16 sps:$4 sm:$0xff]  }
 0x2dc   :  { %3917 = vmatpush1.bf16.msra.mxu1 %v19224_v25  ;;  %3772 = vmatprep.subr.bf16.mxu0 %v19229_v19  ;;  %v19248_v25 = vld [vmem:[#allocation6 + $0xa28] ss:$16 sps:$4 sm:$0xff]   ;;  %v3067_v19 = vrot.slane %v21344_v11, 1 }
 0x2dd   :  { %3918 = vmatprep.subr.bf16.mxu1 %v19232_v45  ;;  %v19253_v45 = vld [vmem:[#allocation6 + $0xa44] ss:$16 sps:$4 sm:$0xff]  }
 0x2df   :  { %3773 = vmatpush1.bf16.msra.mxu0 %v19227_v6  ;;  %v19256_v6 = vld [vmem:[#allocation6 + $0xa4c] ss:$16 sps:$4 sm:$0xff]  }
 0x2e0   :  { %3919 = vmatpush1.bf16.msra.mxu1 %v19230_v17  ;;  %3774 = vmatprep.subr.bf16.mxu0 %v19235_v14  ;;  %v3077_v17 = vrot.slane %v21383_v37, 1  ;;  %v19251_v14 = vld [vmem:[#allocation6 + $0xa40] ss:$16 sps:$4 sm:$0xff]  }
 0x2e1   :  { %3920 = vmatprep.subr.bf16.mxu1 %v19238_v20  ;;  %v19254_v20 = vld [vmem:[#allocation6 + $0xa48] ss:$16 sps:$4 sm:$0xff]  }
 0x2e3   :  { %3775 = vmatpush1.bf16.msra.mxu0 %v19233_v4  ;;  %v19259_v4 = vld [vmem:[#allocation6 + $0xa64] ss:$16 sps:$4 sm:$0xff]  }
 0x2e4   :  { %3921 = vmatpush1.bf16.msra.mxu1 %v19236_v10  ;;  %3817 = vmatprep.subr.bf16.mxu0 %v19241_v51  ;;  %v3068_v10 = vsel %vm3054_vm3, %v3056_v49, %v3067_v19  ;;  %v3078_v51 = vsel %vm3054_vm3, %v3069_v12, %v3077_v17  ;;  %v19274_v12 = vld [vmem:[#allocation6 + $0xaac] ss:$16 sps:$4 sm:$0xff]  }
 0x2e5   :  { %3963 = vmatprep.subr.bf16.mxu1 %v19244_v41  ;;  %v19257_v41 = vld [vmem:[#allocation6 + $0xa60] ss:$16 sps:$4 sm:$0xff]  }
 0x2e6   :  { %3777 = vmatmul.mubr.bf16.vlgmr.msra.gmra.mrb[16].mxu0 %v3057_v1 }
 0x2e7   :  { %3923 = vmatmul.mubr.bf16.vlgmr.msra.gmra.mrb[16].mxu1 %v3057_v1  ;;  %3786 = vmatprep.mubr.bf16.mxu0 %v3070_v34  ;;  %v19263_v1 = vld [vmem:[#allocation6 + $0xa80] ss:$16 sps:$4 sm:$0xff]  }
 0x2e8   :  { %3818 = vmatpush1.bf16.msra.mxu0 %v19239_v35  ;;  %3932 = vmatprep.mubr.bf16.mxu1 %v3070_v34  ;;  %v19260_v35 = vld [vmem:[#allocation6 + $0xa68] ss:$16 sps:$4 sm:$0xff]  }
 0x2e9   :  { %3964 = vmatpush1.bf16.msra.mxu1 %v19242_v5  ;;  %3819 = vmatprep.subr.bf16.mxu0 %v19247_v47  ;;  %v19265_v5 = vld [vmem:[#allocation6 + $0xa84] ss:$16 sps:$4 sm:$0xff]   ;;  %v19268_v47 = vld [vmem:[#allocation6 + $0xa8c] ss:$16 sps:$4 sm:$0xff]   ;;  %v19266_v34 = vld [vmem:[#allocation6 + $0xa88] ss:$16 sps:$4 sm:$0xff]  }
 0x2ea   :  { %3965 = vmatprep.subr.bf16.mxu1 %v19250_v54  ;;  %v22255_v54 = vmov 0.0|0.0  }
 0x2eb   :  { %v21683_v49 = vrot.slane %v22255_v54, 1  ;;  %v19284_v54 = vld [vmem:[#allocation6 + $0xae8] ss:$16 sps:$4 sm:$0xff]  }
 0x2ec   :  { %3820 = vmatpush1.bf16.msra.mxu0 %v19245_v55  ;;  %v19271_v55 = vld [vmem:[#allocation6 + $0xaa4] ss:$16 sps:$4 sm:$0xff]  }
 0x2ed   :  { %3966 = vmatpush1.bf16.msra.mxu1 %v19248_v25  ;;  %3821 = vmatprep.subr.bf16.mxu0 %v19253_v45  ;;  %v3076_v25 = vsel %vm3054_vm3, %v3067_v19, %v3075_v18  ;;  %v3085_v45 = vsel %vm3054_vm3, %v3077_v17, %v21683_v49  ;;  %v3065_v19 = vrot.slane %v21392_v58, 1  ;;  %v19286_v17 = vld [vmem:[#allocation6 + $0xaec] ss:$16 sps:$4 sm:$0xff]  }
 0x2ee   :  { %3787 = vmatmul.mubr.bf16.gmra.mrb[20].mxu0 %v3068_v10  ;;  %3967 = vmatprep.subr.bf16.mxu1 %v19256_v6  ;;  %v19269_v6 = vld [vmem:[#allocation6 + $0xaa0] ss:$16 sps:$4 sm:$0xff]  }
 0x2ef   :  { %3933 = vmatmul.mubr.bf16.gmra.mrb[20].mxu1 %v3068_v10  ;;  %3796 = vmatprep.mubr.bf16.mxu0 %v3078_v51  ;;  %v19275_v10 = vld [vmem:[#allocation6 + $0xac0] ss:$16 sps:$4 sm:$0xff]  }
 0x2f0   :  { %3822 = vmatpush1.bf16.msra.mxu0 %v19251_v14  ;;  %3942 = vmatprep.mubr.bf16.mxu1 %v3078_v51  ;;  %v19272_v14 = vld [vmem:[#allocation6 + $0xaa8] ss:$16 sps:$4 sm:$0xff]  }
 0x2f1   :  { %3968 = vmatpush1.bf16.msra.mxu1 %v19254_v20  ;;  %3823 = vmatprep.subr.bf16.mxu0 %v19259_v4  ;;  %v19277_v20 = vld [vmem:[#allocation6 + $0xac4] ss:$16 sps:$4 sm:$0xff]   ;;  %v19280_v4 = vld [vmem:[#allocation6 + $0xacc] ss:$16 sps:$4 sm:$0xff]   ;;  %v19278_v51 = vld [vmem:[#allocation6 + $0xac8] ss:$16 sps:$4 sm:$0xff]  }
 0x2f2   :  { %3969 = vmatprep.subr.bf16.mxu1 %v19262_v13  ;;  %v3064_v13 = vrot.slane %v21359_v36, 1 }
 0x2f4   :  { %3824 = vmatpush1.bf16.msra.mxu0 %v19257_v41  ;;  %v19283_v41 = vld [vmem:[#allocation6 + $0xae4] ss:$16 sps:$4 sm:$0xff]  }
 0x2f5   :  { %3970 = vmatpush1.bf16.msra.mxu1 %v19260_v35  ;;  %3825 = vmatprep.subr.bf16.mxu0 %v19265_v5  ;;  %v3084_v35 = vsel %vm3054_vm3, %v3075_v18, %v21683_v49  ;;  %v3066_v5 = vsel %vm3054_vm3, %v3064_v13, %v3065_v19  ;;  %v19290_v18 = vld [vmem:[#allocation6 + $0xb08] ss:$16 sps:$4 sm:$0xff]  }
 0x2f6   :  { %3797 = vmatmul.mubr.bf16.gmra.mrb[24].mxu0 %v3076_v25  ;;  %3971 = vmatprep.subr.bf16.mxu1 %v19268_v47  ;;  %v19281_v47 = vld [vmem:[#allocation6 + $0xae0] ss:$16 sps:$4 sm:$0xff]   ;;  %v19302_v13 = vld [vmem:[#allocation6 + $0xb48] ss:$16 sps:$4 sm:$0xff]  }
 0x2f7   :  { %3943 = vmatmul.mubr.bf16.gmra.mrb[24].mxu1 %v3076_v25  ;;  %3806 = vmatprep.mubr.bf16.mxu0 %v3085_v45  ;;  %v19298_v25 = vld [vmem:[#allocation6 + $0xb2c] ss:$16 sps:$4 sm:$0xff]  }
 0x2f8   :  { %3826 = vmatpush1.bf16.msra.mxu0 %v19263_v1  ;;  %3952 = vmatprep.mubr.bf16.mxu1 %v3085_v45  ;;  %v19289_v1 = vld [vmem:[#allocation6 + $0xb04] ss:$16 sps:$4 sm:$0xff]   ;;  %v19293_v45 = vld [vmem:[#allocation6 + $0xb20] ss:$16 sps:$4 sm:$0xff]  }
 0x2f9   :  { %3972 = vmatpush1.bf16.msra.mxu1 %v19266_v34  ;;  %3827 = vmatprep.subr.bf16.mxu0 %v19271_v55  ;;  %v19292_v34 = vld [vmem:[#allocation6 + $0xb0c] ss:$16 sps:$4 sm:$0xff]   ;;  %v19287_v55 = vld [vmem:[#allocation6 + $0xb00] ss:$16 sps:$4 sm:$0xff]  }
 0x2fa   :  { %3973 = vmatprep.subr.bf16.mxu1 %v19274_v12  ;;  %v19295_v12 = vld [vmem:[#allocation6 + $0xb24] ss:$16 sps:$4 sm:$0xff]  }
 0x2fc   :  { %3828 = vmatpush1.bf16.msra.mxu0 %v19269_v6  ;;  %v19296_v6 = vld [vmem:[#allocation6 + $0xb28] ss:$16 sps:$4 sm:$0xff]  }
 0x2fd   :  { %3974 = vmatpush1.bf16.msra.mxu1 %v19272_v14  ;;  %3829 = vmatprep.subr.bf16.mxu0 %v19277_v20  ;;  %v19301_v14 = vld [vmem:[#allocation6 + $0xb44] ss:$16 sps:$4 sm:$0xff]   ;;  %v19304_v20 = vld [vmem:[#allocation6 + $0xb4c] ss:$16 sps:$4 sm:$0xff]  }
 0x2fe   :  { %3807 = vmatmul.mubr.bf16.gmra.mrb[28].mxu0 %v3084_v35  ;;  %3975 = vmatprep.subr.bf16.mxu1 %v19280_v4  ;;  %v19299_v4 = vld [vmem:[#allocation6 + $0xb40] ss:$16 sps:$4 sm:$0xff]  }
 0x2ff   :  { %3953 = vmatmul.mubr.bf16.gmra.mrb[28].mxu1 %v3084_v35  ;;  %3849 = vmatprep.mubr.bf16.mxu0 %v3066_v5  ;;  %v19313_v35 = vld [vmem:[#allocation6 + $0xb84] ss:$16 sps:$4 sm:$0xff]  }
 0x300   :  { %3830 = vmatpush1.bf16.msra.mxu0 %v19275_v10  ;;  %3995 = vmatprep.mubr.bf16.mxu1 %v3066_v5  ;;  %v19307_v10 = vld [vmem:[#allocation6 + $0xb64] ss:$16 sps:$4 sm:$0xff]   ;;  %v19316_v5 = vld [vmem:[#allocation6 + $0xb8c] ss:$16 sps:$4 sm:$0xff]  }
 0x301   :  { %3976 = vmatpush1.bf16.msra.mxu1 %v19278_v51  ;;  %3831 = vmatprep.subr.bf16.mxu0 %v19283_v41  ;;  %v19310_v51 = vld [vmem:[#allocation6 + $0xb6c] ss:$16 sps:$4 sm:$0xff]   ;;  %v19305_v41 = vld [vmem:[#allocation6 + $0xb60] ss:$16 sps:$4 sm:$0xff]  }
 0x302   :  { %3977 = vmatprep.subr.bf16.mxu1 %v19286_v17  ;;  %v19308_v17 = vld [vmem:[#allocation6 + $0xb68] ss:$16 sps:$4 sm:$0xff]  }
 0x304   :  { %3832 = vmatpush1.bf16.msra.mxu0 %v19281_v47  ;;  %v19311_v47 = vld [vmem:[#allocation6 + $0xb80] ss:$16 sps:$4 sm:$0xff]  }
 0x305   :  { %3978 = vmatpush1.bf16.msra.mxu1 %v19284_v54  ;;  %3833 = vmatprep.subr.bf16.mxu0 %v19289_v1  ;;  %v19314_v54 = vld [vmem:[#allocation6 + $0xb88] ss:$16 sps:$4 sm:$0xff]   ;;  %v19319_v1 = vld [vmem:[#allocation6 + $0xba4] ss:$16 sps:$4 sm:$0xff]  }
 0x306   :  { %3979 = vmatprep.subr.bf16.mxu1 %v19292_v34  ;;  %v19322_v34 = vld [vmem:[#allocation6 + $0xbac] ss:$16 sps:$4 sm:$0xff]  }
 0x308   :  { %3834 = vmatpush1.bf16.msra.mxu0 %v19287_v55  ;;  %v19317_v55 = vld [vmem:[#allocation6 + $0xba0] ss:$16 sps:$4 sm:$0xff]  }
 0x309   :  { %3980 = vmatpush1.bf16.msra.mxu1 %v19290_v18  ;;  %3835 = vmatprep.subr.bf16.mxu0 %v19295_v12  ;;  %v19320_v18 = vld [vmem:[#allocation6 + $0xba8] ss:$16 sps:$4 sm:$0xff]   ;;  %v19325_v12 = vld [vmem:[#allocation6 + $0xbc4] ss:$16 sps:$4 sm:$0xff]  }
 0x30a   :  { %3981 = vmatprep.subr.bf16.mxu1 %v19298_v25  ;;  %v19328_v25 = vld [vmem:[#allocation6 + $0xbcc] ss:$16 sps:$4 sm:$0xff]  }
 0x30c   :  { %3836 = vmatpush1.bf16.msra.mxu0 %v19293_v45  ;;  %v19323_v45 = vld [vmem:[#allocation6 + $0xbc0] ss:$16 sps:$4 sm:$0xff]  }
 0x30d   :  { %3982 = vmatpush1.bf16.msra.mxu1 %v19296_v6  ;;  %3837 = vmatprep.subr.bf16.mxu0 %v19301_v14  ;;  %v19326_v6 = vld [vmem:[#allocation6 + $0xbc8] ss:$16 sps:$4 sm:$0xff]   ;;  %v19331_v14 = vld [vmem:[#allocation6 + $0xbe4] ss:$16 sps:$4 sm:$0xff]  }
 0x30e   :  { %3983 = vmatprep.subr.bf16.mxu1 %v19304_v20  ;;  %v19334_v20 = vld [vmem:[#allocation6 + $0xbec] ss:$16 sps:$4 sm:$0xff]  }
 0x310   :  { %3838 = vmatpush1.bf16.msra.mxu0 %v19299_v4  ;;  %v19329_v4 = vld [vmem:[#allocation6 + $0xbe0] ss:$16 sps:$4 sm:$0xff]  }
 0x311   :  { %3984 = vmatpush1.bf16.msra.mxu1 %v19302_v13  ;;  %3839 = vmatprep.subr.bf16.mxu0 %v19307_v10  ;;  %v19332_v13 = vld [vmem:[#allocation6 + $0xbe8] ss:$16 sps:$4 sm:$0xff]   ;;  %v19337_v10 = vld [vmem:[#allocation6 + $0xc04] ss:$16 sps:$4 sm:$0xff]  }
 0x312   :  { %3985 = vmatprep.subr.bf16.mxu1 %v19310_v51  ;;  %v19340_v51 = vld [vmem:[#allocation6 + $0xc0c] ss:$16 sps:$4 sm:$0xff]  }
 0x314   :  { %3840 = vmatpush1.bf16.msra.mxu0 %v19305_v41  ;;  %v3061_v41 = vrot.slane %v21355_v29, 1 }
 0x315   :  { %3986 = vmatpush1.bf16.msra.mxu1 %v19308_v17  ;;  %3841 = vmatprep.subr.bf16.mxu0 %v19313_v35  ;;  %v3062_v17 = vrot.slane %v21386_v38, 1  ;;  %v19335_v35 = vld [vmem:[#allocation6 + $0xc00] ss:$16 sps:$4 sm:$0xff]  }
 0x316   :  { %3987 = vmatprep.subr.bf16.mxu1 %v19316_v5  ;;  %v3073_v5 = vrot.slane %v21415_v50, 1 }
 0x318   :  { %3842 = vmatpush1.bf16.msra.mxu0 %v19311_v47  ;;  %v19338_v47 = vld [vmem:[#allocation6 + $0xc08] ss:$16 sps:$4 sm:$0xff]  }
 0x319   :  { %3988 = vmatpush1.bf16.msra.mxu1 %v19314_v54  ;;  %3843 = vmatprep.subr.bf16.mxu0 %v19319_v1  ;;  %v19343_v54 = vld [vmem:[#allocation6 + $0xc24] ss:$16 sps:$4 sm:$0xff]   ;;  %v19346_v1 = vld [vmem:[#allocation6 + $0xc2c] ss:$16 sps:$4 sm:$0xff]  }
 0x31a   :  { %3989 = vmatprep.subr.bf16.mxu1 %v19322_v34  ;;  %v3063_v34 = vsel %vm3054_vm3, %v3061_v41, %v3062_v17  ;;  %v19353_v41 = vld [vmem:[#allocation6 + $0xc60] ss:$16 sps:$4 sm:$0xff]  }
 0x31c   :  { %3844 = vmatpush1.bf16.msra.mxu0 %v19317_v55  ;;  %v3074_v55 = vsel %vm3054_vm3, %v3065_v19, %v3073_v5  ;;  %v19358_v19 = vld [vmem:[#allocation6 + $0xc6c] ss:$16 sps:$4 sm:$0xff]  }
 0x31d   :  { %3990 = vmatpush1.bf16.msra.mxu1 %v19320_v18  ;;  %3845 = vmatprep.subr.bf16.mxu0 %v19325_v12  ;;  %v19341_v18 = vld [vmem:[#allocation6 + $0xc20] ss:$16 sps:$4 sm:$0xff]   ;;  %v19344_v12 = vld [vmem:[#allocation6 + $0xc28] ss:$16 sps:$4 sm:$0xff]  }
 0x31e   :  { %3991 = vmatprep.subr.bf16.mxu1 %v19328_v25  ;;  %v3071_v25 = vrot.slane %v21412_v39, 1 }
 0x320   :  { %3846 = vmatpush1.bf16.msra.mxu0 %v19323_v45  ;;  %v19349_v45 = vld [vmem:[#allocation6 + $0xc44] ss:$16 sps:$4 sm:$0xff]  }
 0x321   :  { %3992 = vmatpush1.bf16.msra.mxu1 %v19326_v6  ;;  %3847 = vmatprep.subr.bf16.mxu0 %v19331_v14  ;;  %v19352_v6 = vld [vmem:[#allocation6 + $0xc4c] ss:$16 sps:$4 sm:$0xff]   ;;  %v3081_v14 = vrot.slane %v21439_v57, 1 }
 0x322   :  { %3993 = vmatprep.subr.bf16.mxu1 %v19334_v20  ;;  %v19347_v20 = vld [vmem:[#allocation6 + $0xc40] ss:$16 sps:$4 sm:$0xff]  }
 0x324   :  { %3848 = vmatpush1.bf16.msra.mxu0 %v19329_v4  ;;  %v19350_v4 = vld [vmem:[#allocation6 + $0xc48] ss:$16 sps:$4 sm:$0xff]  }
 0x325   :  { %3994 = vmatpush1.bf16.msra.mxu1 %v19332_v13  ;;  %4923 = vmatprep.subr.bf16.mxu0 %v19337_v10  ;;  %v19355_v13 = vld [vmem:[#allocation6 + $0xc64] ss:$16 sps:$4 sm:$0xff]   ;;  %v3072_v10 = vsel %vm3054_vm3, %v3062_v17, %v3071_v25  ;;  %v19362_v17 = vld [vmem:[#allocation6 + $0xc88] ss:$16 sps:$4 sm:$0xff]  }
 0x326   :  { %5069 = vmatprep.subr.bf16.mxu1 %v19340_v51  ;;  %v3082_v51 = vsel %vm3054_vm3, %v3073_v5, %v3081_v14 }
 0x327   :  { %3850 = vmatmul.mubr.bf16.vlgmr.msra.gmra.mrb[16].mxu0 %v3063_v34 }
 0x328   :  { %3996 = vmatmul.mubr.bf16.vlgmr.msra.gmra.mrb[16].mxu1 %v3063_v34  ;;  %3859 = vmatprep.mubr.bf16.mxu0 %v3074_v55  ;;  %v19359_v34 = vld [vmem:[#allocation6 + $0xc80] ss:$16 sps:$4 sm:$0xff]  }
 0x329   :  { %4005 = vmatprep.mubr.bf16.mxu1 %v3074_v55  ;;  %4924 = vmatpush1.bf16.msra.mxu0 %v19335_v35  ;;  %v19356_v35 = vld [vmem:[#allocation6 + $0xc68] ss:$16 sps:$4 sm:$0xff]   ;;  %v19367_v55 = vld [vmem:[#allocation6 + $0xca4] ss:$16 sps:$4 sm:$0xff]  }
 0x32a   :  { %5070 = vmatpush1.bf16.msra.mxu1 %v19338_v47  ;;  %4925 = vmatprep.subr.bf16.mxu0 %v19343_v54  ;;  %v3079_v47 = vrot.slane %v21437_v16, 1  ;;  %v19361_v54 = vld [vmem:[#allocation6 + $0xc84] ss:$16 sps:$4 sm:$0xff]  }
 0x32b   :  { %5071 = vmatprep.subr.bf16.mxu1 %v19346_v1  ;;  %v19364_v1 = vld [vmem:[#allocation6 + $0xc8c] ss:$16 sps:$4 sm:$0xff]  }
 0x32c   :  { %v3080_v5 = vsel %vm3054_vm3, %v3071_v25, %v3079_v47  ;;  %v19379_v25 = vld [vmem:[#allocation6 + $0xce4] ss:$16 sps:$4 sm:$0xff]  }
 0x32d   :  { %4926 = vmatpush1.bf16.msra.mxu0 %v19341_v18  ;;  %v19370_v18 = vld [vmem:[#allocation6 + $0xcac] ss:$16 sps:$4 sm:$0xff]  }
 0x32e   :  { %5072 = vmatpush1.bf16.msra.mxu1 %v19344_v12  ;;  %4927 = vmatprep.subr.bf16.mxu0 %v19349_v45  ;;  %v3087_v12 = vsel %vm3054_vm3, %v3081_v14, %v21683_v49  ;;  %v19365_v45 = vld [vmem:[#allocation6 + $0xca0] ss:$16 sps:$4 sm:$0xff]   ;;  %v3086_v14 = vsel %vm3054_vm3, %v3079_v47, %v21683_v49  ;;  %v19394_v47 = vld [vmem:[#allocation6 + $0xd2c] ss:$16 sps:$4 sm:$0xff]  }
 0x32f   :  { %3860 = vmatmul.mubr.bf16.gmra.mrb[20].mxu0 %v3072_v10  ;;  %5073 = vmatprep.subr.bf16.mxu1 %v19352_v6  ;;  %v19368_v6 = vld [vmem:[#allocation6 + $0xca8] ss:$16 sps:$4 sm:$0xff]  }
 0x330   :  { %4006 = vmatmul.mubr.bf16.gmra.mrb[20].mxu1 %v3072_v10  ;;  %3869 = vmatprep.mubr.bf16.mxu0 %v3082_v51  ;;  %v19382_v10 = vld [vmem:[#allocation6 + $0xcec] ss:$16 sps:$4 sm:$0xff]  }
 0x331   :  { %4015 = vmatprep.mubr.bf16.mxu1 %v3082_v51  ;;  %4928 = vmatpush1.bf16.msra.mxu0 %v19347_v20  ;;  %v19373_v20 = vld [vmem:[#allocation6 + $0xcc4] ss:$16 sps:$4 sm:$0xff]   ;;  %v19377_v51 = vld [vmem:[#allocation6 + $0xce0] ss:$16 sps:$4 sm:$0xff]  }
 0x332   :  { %5074 = vmatpush1.bf16.msra.mxu1 %v19350_v4  ;;  %4929 = vmatprep.subr.bf16.mxu0 %v19355_v13  ;;  %v19376_v4 = vld [vmem:[#allocation6 + $0xccc] ss:$16 sps:$4 sm:$0xff]   ;;  %v19371_v13 = vld [vmem:[#allocation6 + $0xcc0] ss:$16 sps:$4 sm:$0xff]  }
 0x333   :  { %5075 = vmatprep.subr.bf16.mxu1 %v19358_v19  ;;  %v19374_v19 = vld [vmem:[#allocation6 + $0xcc8] ss:$16 sps:$4 sm:$0xff]  }
 0x335   :  { %4930 = vmatpush1.bf16.msra.mxu0 %v19353_v41  ;;  %v19380_v41 = vld [vmem:[#allocation6 + $0xce8] ss:$16 sps:$4 sm:$0xff]  }
 0x336   :  { %5076 = vmatpush1.bf16.msra.mxu1 %v19356_v35  ;;  %4931 = vmatprep.subr.bf16.mxu0 %v19361_v54  ;;  %v19385_v35 = vld [vmem:[#allocation6 + $0xd04] ss:$16 sps:$4 sm:$0xff]   ;;  %v19388_v54 = vld [vmem:[#allocation6 + $0xd0c] ss:$16 sps:$4 sm:$0xff]  }
 0x337   :  { %3870 = vmatmul.mubr.bf16.gmra.mrb[24].mxu0 %v3080_v5  ;;  %5077 = vmatprep.subr.bf16.mxu1 %v19364_v1  ;;  %v19383_v1 = vld [vmem:[#allocation6 + $0xd00] ss:$16 sps:$4 sm:$0xff]  }
 0x338   :  { %4016 = vmatmul.mubr.bf16.gmra.mrb[24].mxu1 %v3080_v5  ;;  %3879 = vmatprep.mubr.bf16.mxu0 %v3087_v12  ;;  %v19397_v5 = vld [vmem:[#allocation6 + $0xd44] ss:$16 sps:$4 sm:$0xff]  }
 0x339   :  { %4025 = vmatprep.mubr.bf16.mxu1 %v3087_v12  ;;  %4932 = vmatpush1.bf16.msra.mxu0 %v19359_v34  ;;  %v19386_v34 = vld [vmem:[#allocation6 + $0xd08] ss:$16 sps:$4 sm:$0xff]   ;;  %v19400_v12 = vld [vmem:[#allocation6 + $0xd4c] ss:$16 sps:$4 sm:$0xff]  }
 0x33a   :  { %5078 = vmatpush1.bf16.msra.mxu1 %v19362_v17  ;;  %4933 = vmatprep.subr.bf16.mxu0 %v19367_v55  ;;  %v19391_v17 = vld [vmem:[#allocation6 + $0xd24] ss:$16 sps:$4 sm:$0xff]   ;;  %v19389_v55 = vld [vmem:[#allocation6 + $0xd20] ss:$16 sps:$4 sm:$0xff]  }
 0x33b   :  { %5079 = vmatprep.subr.bf16.mxu1 %v19370_v18  ;;  %v19392_v18 = vld [vmem:[#allocation6 + $0xd28] ss:$16 sps:$4 sm:$0xff]  }
 0x33d   :  { %4934 = vmatpush1.bf16.msra.mxu0 %v19365_v45  ;;  %v19398_v45 = vld [vmem:[#allocation6 + $0xd48] ss:$16 sps:$4 sm:$0xff]  }
 0x33e   :  { %5080 = vmatpush1.bf16.msra.mxu1 %v19368_v6  ;;  %4935 = vmatprep.subr.bf16.mxu0 %v19373_v20  ;;  %v19403_v6 = vld [vmem:[#allocation6 + $0xd64] ss:$16 sps:$4 sm:$0xff]   ;;  %v19406_v20 = vld [vmem:[#allocation6 + $0xd6c] ss:$16 sps:$4 sm:$0xff]  }
 0x33f   :  { %3880 = vmatmul.mubr.bf16.gmra.mrb[28].mxu0 %v3086_v14  ;;  %5081 = vmatprep.subr.bf16.mxu1 %v19376_v4  ;;  %v19401_v4 = vld [vmem:[#allocation6 + $0xd60] ss:$16 sps:$4 sm:$0xff]  }
 0x340   :  { %4026 = vmatmul.mubr.bf16.gmra.mrb[28].mxu1 %v3086_v14  ;;  %4955 = vmatprep.mubr.bf16.mxu0 %v21480_v48  ;;  %v19410_v14 = vld [vmem:[#allocation6 + $0xd88] ss:$16 sps:$4 sm:$0xff]  }
 0x341   :  { %4936 = vmatpush1.bf16.msra.mxu0 %v19371_v13  ;;  %5101 = vmatprep.mubr.bf16.mxu1 %v21480_v48  ;;  %v19395_v48 = vld [vmem:[#allocation6 + $0xd40] ss:$16 sps:$4 sm:$0xff]   ;;  %v19404_v13 = vld [vmem:[#allocation6 + $0xd68] ss:$16 sps:$4 sm:$0xff]  }
 0x342   :  { %5082 = vmatpush1.bf16.msra.mxu1 %v19374_v19  ;;  %4937 = vmatprep.subr.bf16.mxu0 %v19379_v25  ;;  %v19409_v19 = vld [vmem:[#allocation6 + $0xd84] ss:$16 sps:$4 sm:$0xff]   ;;  %v19412_v25 = vld [vmem:[#allocation6 + $0xd8c] ss:$16 sps:$4 sm:$0xff]  }
 0x343   :  { %5083 = vmatprep.subr.bf16.mxu1 %v19382_v10  ;;  %v19407_v10 = vld [vmem:[#allocation6 + $0xd80] ss:$16 sps:$4 sm:$0xff]  }
 0x345   :  { %4938 = vmatpush1.bf16.msra.mxu0 %v19377_v51  ;;  %v19415_v51 = vld [vmem:[#allocation6 + $0xda4] ss:$16 sps:$4 sm:$0xff]  }
 0x346   :  { %5084 = vmatpush1.bf16.msra.mxu1 %v19380_v41  ;;  %4939 = vmatprep.subr.bf16.mxu0 %v19385_v35  ;;  %v19418_v41 = vld [vmem:[#allocation6 + $0xdac] ss:$16 sps:$4 sm:$0xff]   ;;  %v19413_v35 = vld [vmem:[#allocation6 + $0xda0] ss:$16 sps:$4 sm:$0xff]  }
 0x347   :  { %5085 = vmatprep.subr.bf16.mxu1 %v19388_v54  ;;  %v19416_v54 = vld [vmem:[#allocation6 + $0xda8] ss:$16 sps:$4 sm:$0xff]  }
 0x349   :  { %4940 = vmatpush1.bf16.msra.mxu0 %v19383_v1  ;;  %v19421_v1 = vld [vmem:[#allocation6 + $0xdc4] ss:$16 sps:$4 sm:$0xff]  }
 0x34a   :  { %5086 = vmatpush1.bf16.msra.mxu1 %v19386_v34  ;;  %4941 = vmatprep.subr.bf16.mxu0 %v19391_v17  ;;  %v19424_v34 = vld [vmem:[#allocation6 + $0xdcc] ss:$16 sps:$4 sm:$0xff]   ;;  %v19419_v17 = vld [vmem:[#allocation6 + $0xdc0] ss:$16 sps:$4 sm:$0xff]  }
 0x34b   :  { %5087 = vmatprep.subr.bf16.mxu1 %v19394_v47  ;;  %v19422_v47 = vld [vmem:[#allocation6 + $0xdc8] ss:$16 sps:$4 sm:$0xff]  }
 0x34d   :  { %4942 = vmatpush1.bf16.msra.mxu0 %v19389_v55  ;;  %v19427_v55 = vld [vmem:[#allocation6 + $0xde4] ss:$16 sps:$4 sm:$0xff]  }
 0x34e   :  { %5088 = vmatpush1.bf16.msra.mxu1 %v19392_v18  ;;  %4943 = vmatprep.subr.bf16.mxu0 %v19397_v5  ;;  %v19430_v18 = vld [vmem:[#allocation6 + $0xdec] ss:$16 sps:$4 sm:$0xff]   ;;  %v19425_v5 = vld [vmem:[#allocation6 + $0xde0] ss:$16 sps:$4 sm:$0xff]  }
 0x34f   :  { %5089 = vmatprep.subr.bf16.mxu1 %v19400_v12  ;;  %v19428_v12 = vld [vmem:[#allocation6 + $0xde8] ss:$16 sps:$4 sm:$0xff]  }
 0x351   :  { %4944 = vmatpush1.bf16.msra.mxu0 %v19395_v48  ;;  %v19433_v48 = vld [vmem:[#allocation6 + $0xe04] ss:$16 sps:$4 sm:$0xff]  }
 0x352   :  { %5090 = vmatpush1.bf16.msra.mxu1 %v19398_v45  ;;  %4945 = vmatprep.subr.bf16.mxu0 %v19403_v6  ;;  %v19436_v45 = vld [vmem:[#allocation6 + $0xe0c] ss:$16 sps:$4 sm:$0xff]   ;;  %v19431_v6 = vld [vmem:[#allocation6 + $0xe00] ss:$16 sps:$4 sm:$0xff]  }
 0x353   :  { %5091 = vmatprep.subr.bf16.mxu1 %v19406_v20  ;;  %v19434_v20 = vld [vmem:[#allocation6 + $0xe08] ss:$16 sps:$4 sm:$0xff]  }
 0x355   :  { %4946 = vmatpush1.bf16.msra.mxu0 %v19401_v4  ;;  %v19439_v4 = vld [vmem:[#allocation6 + $0xe24] ss:$16 sps:$4 sm:$0xff]  }
 0x356   :  { %5092 = vmatpush1.bf16.msra.mxu1 %v19404_v13  ;;  %4947 = vmatprep.subr.bf16.mxu0 %v19409_v19  ;;  %v19442_v13 = vld [vmem:[#allocation6 + $0xe2c] ss:$16 sps:$4 sm:$0xff]   ;;  %v19437_v19 = vld [vmem:[#allocation6 + $0xe20] ss:$16 sps:$4 sm:$0xff]  }
 0x357   :  { %5093 = vmatprep.subr.bf16.mxu1 %v19412_v25  ;;  %v19440_v25 = vld [vmem:[#allocation6 + $0xe28] ss:$16 sps:$4 sm:$0xff]  }
 0x359   :  { %4948 = vmatpush1.bf16.msra.mxu0 %v19407_v10  ;;  %v19445_v10 = vld [vmem:[#allocation6 + $0xe44] ss:$16 sps:$4 sm:$0xff]  }
 0x35a   :  { %5094 = vmatpush1.bf16.msra.mxu1 %v19410_v14  ;;  %4949 = vmatprep.subr.bf16.mxu0 %v19415_v51  ;;  %v19448_v14 = vld [vmem:[#allocation6 + $0xe4c] ss:$16 sps:$4 sm:$0xff]   ;;  %v19443_v51 = vld [vmem:[#allocation6 + $0xe40] ss:$16 sps:$4 sm:$0xff]  }
 0x35b   :  { %5095 = vmatprep.subr.bf16.mxu1 %v19418_v41  ;;  %v19446_v41 = vld [vmem:[#allocation6 + $0xe48] ss:$16 sps:$4 sm:$0xff]  }
 0x35d   :  { %4950 = vmatpush1.bf16.msra.mxu0 %v19413_v35  ;;  %v19451_v35 = vld [vmem:[#allocation6 + $0xe64] ss:$16 sps:$4 sm:$0xff]  }
 0x35e   :  { %5096 = vmatpush1.bf16.msra.mxu1 %v19416_v54  ;;  %4951 = vmatprep.subr.bf16.mxu0 %v19421_v1  ;;  %v19454_v54 = vld [vmem:[#allocation6 + $0xe6c] ss:$16 sps:$4 sm:$0xff]   ;;  %v19457_v1 = vld [vmem:[#allocation6 + $0xe84] ss:$16 sps:$4 sm:$0xff]  }
 0x35f   :  { %5097 = vmatprep.subr.bf16.mxu1 %v19424_v34  ;;  %v19460_v34 = vld [vmem:[#allocation6 + $0xe8c] ss:$16 sps:$4 sm:$0xff]  }
 0x361   :  { %4952 = vmatpush1.bf16.msra.mxu0 %v19419_v17  ;;  %v19455_v17 = vld [vmem:[#allocation6 + $0xe80] ss:$16 sps:$4 sm:$0xff]  }
 0x362   :  { %5098 = vmatpush1.bf16.msra.mxu1 %v19422_v47  ;;  %4953 = vmatprep.subr.bf16.mxu0 %v19427_v55  ;;  %v19458_v47 = vld [vmem:[#allocation6 + $0xe88] ss:$16 sps:$4 sm:$0xff]   ;;  %v19463_v55 = vld [vmem:[#allocation6 + $0xea4] ss:$16 sps:$4 sm:$0xff]  }
 0x363   :  { %5099 = vmatprep.subr.bf16.mxu1 %v19430_v18  ;;  %v19466_v18 = vld [vmem:[#allocation6 + $0xeac] ss:$16 sps:$4 sm:$0xff]  }
 0x365   :  { %4954 = vmatpush1.bf16.msra.mxu0 %v19425_v5  ;;  %v19464_v5 = vld [vmem:[#allocation6 + $0xea8] ss:$16 sps:$4 sm:$0xff]  }
 0x366   :  { %5100 = vmatpush1.bf16.msra.mxu1 %v19428_v12  ;;  %4996 = vmatprep.subr.bf16.mxu0 %v19433_v48  ;;  %v19469_v12 = vld [vmem:[#allocation6 + $0xec4] ss:$16 sps:$4 sm:$0xff]   ;;  %v19472_v48 = vld [vmem:[#allocation6 + $0xecc] ss:$16 sps:$4 sm:$0xff]  }
 0x367   :  { %5142 = vmatprep.subr.bf16.mxu1 %v19436_v45  ;;  %v19467_v45 = vld [vmem:[#allocation6 + $0xec0] ss:$16 sps:$4 sm:$0xff]  }
 0x368   :  { %4956 = vmatmul.mubr.bf16.vlgmr.msra.gmra.mrb[16].mxu0 %v21486_v32 }
 0x369   :  { %5102 = vmatmul.mubr.bf16.vlgmr.msra.gmra.mrb[16].mxu1 %v21486_v32  ;;  %4965 = vmatprep.mubr.bf16.mxu0 %v21496_v30  ;;  %v19449_v32 = vld [vmem:[#allocation6 + $0xe60] ss:$16 sps:$4 sm:$0xff]  }
 0x36a   :  { %4997 = vmatpush1.bf16.msra.mxu0 %v19431_v6  ;;  %5111 = vmatprep.mubr.bf16.mxu1 %v21496_v30  ;;  %v19452_v30 = vld [vmem:[#allocation6 + $0xe68] ss:$16 sps:$4 sm:$0xff]  }
 0x36b   :  { %5143 = vmatpush1.bf16.msra.mxu1 %v19434_v20  ;;  %4998 = vmatprep.subr.bf16.mxu0 %v19439_v4  ;;  %v19470_v6 = vld [vmem:[#allocation6 + $0xec8] ss:$16 sps:$4 sm:$0xff]   ;;  %v19475_v20 = vld [vmem:[#allocation6 + $0xee4] ss:$16 sps:$4 sm:$0xff]   ;;  %v19478_v4 = vld [vmem:[#allocation6 + $0xeec] ss:$16 sps:$4 sm:$0xff]  }
 0x36c   :  { %5144 = vmatprep.subr.bf16.mxu1 %v19442_v13  ;;  %v19484_v13 = vld [vmem:[#allocation6 + $0xf0c] ss:$16 sps:$4 sm:$0xff]  }
 0x36e   :  { %4999 = vmatpush1.bf16.msra.mxu0 %v19437_v19  ;;  %v19479_v19 = vld [vmem:[#allocation6 + $0xf00] ss:$16 sps:$4 sm:$0xff]  }
 0x36f   :  { %5145 = vmatpush1.bf16.msra.mxu1 %v19440_v25  ;;  %5000 = vmatprep.subr.bf16.mxu0 %v19445_v10  ;;  %v19482_v25 = vld [vmem:[#allocation6 + $0xf08] ss:$16 sps:$4 sm:$0xff]   ;;  %v19487_v10 = vld [vmem:[#allocation6 + $0xf24] ss:$16 sps:$4 sm:$0xff]  }
 0x370   :  { %4966 = vmatmul.mubr.bf16.gmra.mrb[20].mxu0 %v21504_v0  ;;  %5146 = vmatprep.subr.bf16.mxu1 %v19448_v14  ;;  %v19490_v14 = vld [vmem:[#allocation6 + $0xf2c] ss:$16 sps:$4 sm:$0xff]  }
 0x371   :  { %5112 = vmatmul.mubr.bf16.gmra.mrb[20].mxu1 %v21504_v0  ;;  %4975 = vmatprep.mubr.bf16.mxu0 %v21508_v52  ;;  %v4264_v0 = vsel %vm4197_vm1, %v21493_v26, %v21458_v15  ;;  %v19473_v15 = vld [vmem:[#allocation6 + $0xee0] ss:$16 sps:$4 sm:$0xff]   ;;  %v19476_v26 = vld [vmem:[#allocation6 + $0xee8] ss:$16 sps:$4 sm:$0xff]  }
 0x372   :  { %5001 = vmatpush1.bf16.msra.mxu0 %v19443_v51  ;;  %5121 = vmatprep.mubr.bf16.mxu1 %v21508_v52  ;;  %v19461_v52 = vld [vmem:[#allocation6 + $0xea0] ss:$16 sps:$4 sm:$0xff]   ;;  %v19488_v51 = vld [vmem:[#allocation6 + $0xf28] ss:$16 sps:$4 sm:$0xff]  }
 0x373   :  { %5147 = vmatpush1.bf16.msra.mxu1 %v19446_v41  ;;  %5002 = vmatprep.subr.bf16.mxu0 %v19451_v35  ;;  %v19493_v41 = vld [vmem:[#allocation6 + $0xf44] ss:$16 sps:$4 sm:$0xff]   ;;  %v19491_v35 = vld [vmem:[#allocation6 + $0xf40] ss:$16 sps:$4 sm:$0xff]  }
 0x374   :  { %5148 = vmatprep.subr.bf16.mxu1 %v19454_v54  ;;  %v19494_v54 = vld [vmem:[#allocation6 + $0xf48] ss:$16 sps:$4 sm:$0xff]  }
 0x376   :  { %5003 = vmatpush1.bf16.msra.mxu0 %v19449_v32  ;;  %v19499_v32 = vld [vmem:[#allocation6 + $0xf64] ss:$16 sps:$4 sm:$0xff]  }
 0x377   :  { %5149 = vmatpush1.bf16.msra.mxu1 %v19452_v30  ;;  %5004 = vmatprep.subr.bf16.mxu0 %v19457_v1  ;;  %v19502_v30 = vld [vmem:[#allocation6 + $0xf6c] ss:$16 sps:$4 sm:$0xff]   ;;  %v19497_v1 = vld [vmem:[#allocation6 + $0xf60] ss:$16 sps:$4 sm:$0xff]  }
 0x378   :  { %4976 = vmatmul.mubr.bf16.gmra.mrb[24].mxu0 %v21513_v62  ;;  %5150 = vmatprep.subr.bf16.mxu1 %v19460_v34  ;;  %v19500_v34 = vld [vmem:[#allocation6 + $0xf68] ss:$16 sps:$4 sm:$0xff]  }
 0x379   :  { %5122 = vmatmul.mubr.bf16.gmra.mrb[24].mxu1 %v21513_v62  ;;  %4985 = vmatprep.mubr.bf16.mxu0 %v4264_v0  ;;  %v19481_v62 = vld [vmem:[#allocation6 + $0xf04] ss:$16 sps:$4 sm:$0xff]  }
 0x37a   :  { %5005 = vmatpush1.bf16.msra.mxu0 %v19455_v17  ;;  %5131 = vmatprep.mubr.bf16.mxu1 %v4264_v0  ;;  %v19505_v17 = vld [vmem:[#allocation6 + $0xf84] ss:$16 sps:$4 sm:$0xff]  }
 0x37b   :  { %5151 = vmatpush1.bf16.msra.mxu1 %v19458_v47  ;;  %5006 = vmatprep.subr.bf16.mxu0 %v19463_v55  ;;  %v19508_v47 = vld [vmem:[#allocation6 + $0xf8c] ss:$16 sps:$4 sm:$0xff]   ;;  %v19503_v55 = vld [vmem:[#allocation6 + $0xf80] ss:$16 sps:$4 sm:$0xff]   ;;  %v19511_v0 = vld [vmem:[#allocation6 + $0xfa4] ss:$16 sps:$4 sm:$0xff]  }
 0x37c   :  { %5152 = vmatprep.subr.bf16.mxu1 %v19466_v18  ;;  %v19506_v18 = vld [vmem:[#allocation6 + $0xf88] ss:$16 sps:$4 sm:$0xff]  }
 0x37e   :  { %5007 = vmatpush1.bf16.msra.mxu0 %v19461_v52  ;;  %v19514_v52 = vld [vmem:[#allocation6 + $0xfac] ss:$16 sps:$4 sm:$0xff]  }
 0x37f   :  { %5153 = vmatpush1.bf16.msra.mxu1 %v19464_v5  ;;  %5008 = vmatprep.subr.bf16.mxu0 %v19469_v12  ;;  %v19509_v5 = vld [vmem:[#allocation6 + $0xfa0] ss:$16 sps:$4 sm:$0xff]   ;;  %v19512_v12 = vld [vmem:[#allocation6 + $0xfa8] ss:$16 sps:$4 sm:$0xff]  }
 0x380   :  { %4986 = vmatmul.mubr.bf16.gmra.mrb[28].mxu0 %v21517_v40  ;;  %5154 = vmatprep.subr.bf16.mxu1 %v19472_v48  ;;  %v19517_v48 = vld [vmem:[#allocation6 + $0xfc4] ss:$16 sps:$4 sm:$0xff]  }
 0x381   :  { %5132 = vmatmul.mubr.bf16.gmra.mrb[28].mxu1 %v21517_v40  ;;  %5028 = vmatprep.mubr.bf16.mxu0 %v21540_v22  ;;  %v19485_v40 = vld [vmem:[#allocation6 + $0xf20] ss:$16 sps:$4 sm:$0xff]  }
 0x382   :  { %5009 = vmatpush1.bf16.msra.mxu0 %v19467_v45  ;;  %5174 = vmatprep.mubr.bf16.mxu1 %v21540_v22  ;;  %v19496_v22 = vld [vmem:[#allocation6 + $0xf4c] ss:$16 sps:$4 sm:$0xff]  }
 0x383   :  { %5155 = vmatpush1.bf16.msra.mxu1 %v19470_v6  ;;  %5010 = vmatprep.subr.bf16.mxu0 %v19475_v20  ;;  %v19520_v45 = vld [vmem:[#allocation6 + $0xfcc] ss:$16 sps:$4 sm:$0xff]   ;;  %v19515_v6 = vld [vmem:[#allocation6 + $0xfc0] ss:$16 sps:$4 sm:$0xff]   ;;  %v19518_v20 = vld [vmem:[#allocation6 + $0xfc8] ss:$16 sps:$4 sm:$0xff]  }
 0x384   :  { %5156 = vmatprep.subr.bf16.mxu1 %v19478_v4  ;;  %v19523_v4 = vld [vmem:[#allocation6 + $0xfe4] ss:$16 sps:$4 sm:$0xff]  }
 0x386   :  { %5011 = vmatpush1.bf16.msra.mxu0 %v19473_v15  ;;  %v19526_v15 = vld [vmem:[#allocation6 + $0xfec] ss:$16 sps:$4 sm:$0xff]  }
 0x387   :  { %5157 = vmatpush1.bf16.msra.mxu1 %v19476_v26  ;;  %5012 = vmatprep.subr.bf16.mxu0 %v19481_v62  ;;  %v19521_v26 = vld [vmem:[#allocation6 + $0xfe0] ss:$16 sps:$4 sm:$0xff]   ;;  %v19524_v62 = vld [vmem:[#allocation6 + $0xfe8] ss:$16 sps:$4 sm:$0xff]  }
 0x388   :  { %5158 = vmatprep.subr.bf16.mxu1 %v19484_v13  ;;  %v19529_v13 = vld [vmem:[#allocation6 + $0x1004] ss:$16 sps:$4 sm:$0xff]  }
 0x38a   :  { %5013 = vmatpush1.bf16.msra.mxu0 %v19479_v19  ;;  %v19532_v19 = vld [vmem:[#allocation6 + $0x100c] ss:$16 sps:$4 sm:$0xff]  }
 0x38b   :  { %5159 = vmatpush1.bf16.msra.mxu1 %v19482_v25  ;;  %5014 = vmatprep.subr.bf16.mxu0 %v19487_v10  ;;  %v19527_v25 = vld [vmem:[#allocation6 + $0x1000] ss:$16 sps:$4 sm:$0xff]   ;;  %v19530_v10 = vld [vmem:[#allocation6 + $0x1008] ss:$16 sps:$4 sm:$0xff]  }
 0x38c   :  { %5160 = vmatprep.subr.bf16.mxu1 %v19490_v14  ;;  %v19535_v14 = vld [vmem:[#allocation6 + $0x1024] ss:$16 sps:$4 sm:$0xff]  }
 0x38e   :  { %5015 = vmatpush1.bf16.msra.mxu0 %v19485_v40  ;;  %v19538_v40 = vld [vmem:[#allocation6 + $0x102c] ss:$16 sps:$4 sm:$0xff]  }
 0x38f   :  { %5161 = vmatpush1.bf16.msra.mxu1 %v19488_v51  ;;  %5016 = vmatprep.subr.bf16.mxu0 %v19493_v41  ;;  %v19533_v51 = vld [vmem:[#allocation6 + $0x1020] ss:$16 sps:$4 sm:$0xff]   ;;  %v19536_v41 = vld [vmem:[#allocation6 + $0x1028] ss:$16 sps:$4 sm:$0xff]  }
 0x390   :  { %5162 = vmatprep.subr.bf16.mxu1 %v19496_v22  ;;  %v19541_v22 = vld [vmem:[#allocation6 + $0x1044] ss:$16 sps:$4 sm:$0xff]  }
 0x392   :  { %5017 = vmatpush1.bf16.msra.mxu0 %v19491_v35  ;;  %v19544_v35 = vld [vmem:[#allocation6 + $0x104c] ss:$16 sps:$4 sm:$0xff]  }
 0x393   :  { %5163 = vmatpush1.bf16.msra.mxu1 %v19494_v54  ;;  %5018 = vmatprep.subr.bf16.mxu0 %v19499_v32  ;;  %v19539_v54 = vld [vmem:[#allocation6 + $0x1040] ss:$16 sps:$4 sm:$0xff]   ;;  %v19542_v32 = vld [vmem:[#allocation6 + $0x1048] ss:$16 sps:$4 sm:$0xff]  }
 0x394   :  { %5164 = vmatprep.subr.bf16.mxu1 %v19502_v30  ;;  %v19547_v30 = vld [vmem:[#allocation6 + $0x1064] ss:$16 sps:$4 sm:$0xff]  }
 0x396   :  { %5019 = vmatpush1.bf16.msra.mxu0 %v19497_v1  ;;  %v19548_v1 = vld [vmem:[#allocation6 + $0x1068] ss:$16 sps:$4 sm:$0xff]  }
 0x397   :  { %5165 = vmatpush1.bf16.msra.mxu1 %v19500_v34  ;;  %5020 = vmatprep.subr.bf16.mxu0 %v19505_v17  ;;  %v19553_v34 = vld [vmem:[#allocation6 + $0x1084] ss:$16 sps:$4 sm:$0xff]   ;;  %v19556_v17 = vld [vmem:[#allocation6 + $0x108c] ss:$16 sps:$4 sm:$0xff]  }
 0x398   :  { %5166 = vmatprep.subr.bf16.mxu1 %v19508_v47  ;;  %v19551_v47 = vld [vmem:[#allocation6 + $0x1080] ss:$16 sps:$4 sm:$0xff]  }
 0x39a   :  { %5021 = vmatpush1.bf16.msra.mxu0 %v19503_v55  ;;  %v19554_v55 = vld [vmem:[#allocation6 + $0x1088] ss:$16 sps:$4 sm:$0xff]  }
 0x39b   :  { %5167 = vmatpush1.bf16.msra.mxu1 %v19506_v18  ;;  %5022 = vmatprep.subr.bf16.mxu0 %v19511_v0  ;;  %v19559_v18 = vld [vmem:[#allocation6 + $0x10a4] ss:$16 sps:$4 sm:$0xff]   ;;  %v19560_v0 = vld [vmem:[#allocation6 + $0x10a8] ss:$16 sps:$4 sm:$0xff]  }
 0x39c   :  { %5168 = vmatprep.subr.bf16.mxu1 %v19514_v52  ;;  %v19565_v52 = vld [vmem:[#allocation6 + $0x10c4] ss:$16 sps:$4 sm:$0xff]  }
 0x39e   :  { %5023 = vmatpush1.bf16.msra.mxu0 %v19509_v5  ;;  %v19568_v5 = vld [vmem:[#allocation6 + $0x10cc] ss:$16 sps:$4 sm:$0xff]  }
 0x39f   :  { %5169 = vmatpush1.bf16.msra.mxu1 %v19512_v12  ;;  %5024 = vmatprep.subr.bf16.mxu0 %v19517_v48  ;;  %v5381_v12 = vrot.slane %v21323_v27, 2  ;;  %v19563_v48 = vld [vmem:[#allocation6 + $0x10c0] ss:$16 sps:$4 sm:$0xff]  }
 0x3a0   :  { %5170 = vmatprep.subr.bf16.mxu1 %v19520_v45  ;;  %v5380_v45 = vrot.slane %v21295_v61, 2  ;;  %v19572_v61 = vld [vmem:[#allocation6 + $0x10e8] ss:$16 sps:$4 sm:$0xff]   ;;  %v19635_v27 = vld [vmem:[#allocation6 + $0x1240] ss:$16 sps:$4 sm:$0xff]  }
 0x3a2   :  { %5025 = vmatpush1.bf16.msra.mxu0 %v19515_v6  ;;  %v19571_v6 = vld [vmem:[#allocation6 + $0x10e4] ss:$16 sps:$4 sm:$0xff]  }
 0x3a3   :  { %5171 = vmatpush1.bf16.msra.mxu1 %v19518_v20  ;;  %5026 = vmatprep.subr.bf16.mxu0 %v19523_v4  ;;  %v19574_v20 = vld [vmem:[#allocation6 + $0x10ec] ss:$16 sps:$4 sm:$0xff]   ;;  %v19569_v4 = vld [vmem:[#allocation6 + $0x10e0] ss:$16 sps:$4 sm:$0xff]  }
 0x3a4   :  { %5172 = vmatprep.subr.bf16.mxu1 %v19526_v15  ;;  %v19577_v15 = vld [vmem:[#allocation6 + $0x1104] ss:$16 sps:$4 sm:$0xff]  }
 0x3a6   :  { %5027 = vmatpush1.bf16.msra.mxu0 %v19521_v26  ;;  %v19580_v26 = vld [vmem:[#allocation6 + $0x110c] ss:$16 sps:$4 sm:$0xff]  }
 0x3a7   :  { %5173 = vmatpush1.bf16.msra.mxu1 %v19524_v62  ;;  %6066 = vmatprep.subr.bf16.mxu0 %v19529_v13  ;;  %v19575_v62 = vld [vmem:[#allocation6 + $0x1100] ss:$16 sps:$4 sm:$0xff]   ;;  %v19578_v13 = vld [vmem:[#allocation6 + $0x1108] ss:$16 sps:$4 sm:$0xff]  }
 0x3a8   :  { %6212 = vmatprep.subr.bf16.mxu1 %v19532_v19  ;;  %v19583_v19 = vld [vmem:[#allocation6 + $0x1124] ss:$16 sps:$4 sm:$0xff]  }
 0x3a9   :  { %5029 = vmatmul.mubr.bf16.vlgmr.msra.gmra.mrb[16].mxu0 %v21545_v28 }
 0x3aa   :  { %5175 = vmatmul.mubr.bf16.vlgmr.msra.gmra.mrb[16].mxu1 %v21545_v28  ;;  %5038 = vmatprep.mubr.bf16.mxu0 %v21554_v53  ;;  %v19550_v28 = vld [vmem:[#allocation6 + $0x106c] ss:$16 sps:$4 sm:$0xff]  }
 0x3ab   :  { %5184 = vmatprep.mubr.bf16.mxu1 %v21554_v53  ;;  %6067 = vmatpush1.bf16.msra.mxu0 %v19527_v25  ;;  %v19545_v53 = vld [vmem:[#allocation6 + $0x1060] ss:$16 sps:$4 sm:$0xff]   ;;  %v19586_v25 = vld [vmem:[#allocation6 + $0x112c] ss:$16 sps:$4 sm:$0xff]  }
 0x3ac   :  { %6213 = vmatpush1.bf16.msra.mxu1 %v19530_v10  ;;  %6068 = vmatprep.subr.bf16.mxu0 %v19535_v14  ;;  %v19584_v10 = vld [vmem:[#allocation6 + $0x1128] ss:$16 sps:$4 sm:$0xff]   ;;  %v19589_v14 = vld [vmem:[#allocation6 + $0x1144] ss:$16 sps:$4 sm:$0xff]  }
 0x3ad   :  { %6214 = vmatprep.subr.bf16.mxu1 %v19538_v40  ;;  %v19592_v40 = vld [vmem:[#allocation6 + $0x114c] ss:$16 sps:$4 sm:$0xff]  }
 0x3af   :  { %6069 = vmatpush1.bf16.msra.mxu0 %v19533_v51  ;;  %v19587_v51 = vld [vmem:[#allocation6 + $0x1140] ss:$16 sps:$4 sm:$0xff]  }
 0x3b0   :  { %6215 = vmatpush1.bf16.msra.mxu1 %v19536_v41  ;;  %6070 = vmatprep.subr.bf16.mxu0 %v19541_v22  ;;  %v19590_v41 = vld [vmem:[#allocation6 + $0x1148] ss:$16 sps:$4 sm:$0xff]   ;;  %v19595_v22 = vld [vmem:[#allocation6 + $0x1164] ss:$16 sps:$4 sm:$0xff]  }
 0x3b1   :  { %5039 = vmatmul.mubr.bf16.gmra.mrb[20].mxu0 %v21557_v8  ;;  %6216 = vmatprep.subr.bf16.mxu1 %v19544_v35  ;;  %v19598_v35 = vld [vmem:[#allocation6 + $0x116c] ss:$16 sps:$4 sm:$0xff]  }
 0x3b2   :  { %5185 = vmatmul.mubr.bf16.gmra.mrb[20].mxu1 %v21557_v8  ;;  %5048 = vmatprep.mubr.bf16.mxu0 %v21563_v43  ;;  %v19562_v8 = vld [vmem:[#allocation6 + $0x10ac] ss:$16 sps:$4 sm:$0xff]  }
 0x3b3   :  { %5194 = vmatprep.mubr.bf16.mxu1 %v21563_v43  ;;  %6071 = vmatpush1.bf16.msra.mxu0 %v19539_v54  ;;  %v19557_v43 = vld [vmem:[#allocation6 + $0x10a0] ss:$16 sps:$4 sm:$0xff]  }
 0x3b4   :  { %6217 = vmatpush1.bf16.msra.mxu1 %v19542_v32  ;;  %6072 = vmatprep.subr.bf16.mxu0 %v19547_v30  ;;  %v19593_v54 = vld [vmem:[#allocation6 + $0x1160] ss:$16 sps:$4 sm:$0xff]   ;;  %v19596_v32 = vld [vmem:[#allocation6 + $0x1168] ss:$16 sps:$4 sm:$0xff]   ;;  %v19601_v30 = vld [vmem:[#allocation6 + $0x1184] ss:$16 sps:$4 sm:$0xff]  }
 0x3b5   :  { %6218 = vmatprep.subr.bf16.mxu1 %v19550_v28  ;;  %v19604_v28 = vld [vmem:[#allocation6 + $0x118c] ss:$16 sps:$4 sm:$0xff]  }
 0x3b7   :  { %6073 = vmatpush1.bf16.msra.mxu0 %v19545_v53  ;;  %v19599_v53 = vld [vmem:[#allocation6 + $0x1180] ss:$16 sps:$4 sm:$0xff]  }
 0x3b8   :  { %6219 = vmatpush1.bf16.msra.mxu1 %v19548_v1  ;;  %6074 = vmatprep.subr.bf16.mxu0 %v19553_v34  ;;  %v19602_v1 = vld [vmem:[#allocation6 + $0x1188] ss:$16 sps:$4 sm:$0xff]   ;;  %v19607_v34 = vld [vmem:[#allocation6 + $0x11a4] ss:$16 sps:$4 sm:$0xff]  }
 0x3b9   :  { %5049 = vmatmul.mubr.bf16.gmra.mrb[24].mxu0 %v21566_v9  ;;  %6220 = vmatprep.subr.bf16.mxu1 %v19556_v17  ;;  %v19610_v17 = vld [vmem:[#allocation6 + $0x11ac] ss:$16 sps:$4 sm:$0xff]  }
 0x3ba   :  { %5195 = vmatmul.mubr.bf16.gmra.mrb[24].mxu1 %v21566_v9  ;;  %5058 = vmatprep.mubr.bf16.mxu0 %v21570_v24  ;;  %v19566_v9 = vld [vmem:[#allocation6 + $0x10c8] ss:$16 sps:$4 sm:$0xff]  }
 0x3bb   :  { %5204 = vmatprep.mubr.bf16.mxu1 %v21570_v24  ;;  %6075 = vmatpush1.bf16.msra.mxu0 %v19551_v47  ;;  %v5382_v24 = vsel %vm5376_vm2, %v5380_v45, %v5381_v12  ;;  %v19605_v47 = vld [vmem:[#allocation6 + $0x11a0] ss:$16 sps:$4 sm:$0xff]   ;;  %v19620_v45 = vld [vmem:[#allocation6 + $0x11e8] ss:$16 sps:$4 sm:$0xff]  }
 0x3bc   :  { %6221 = vmatpush1.bf16.msra.mxu1 %v19554_v55  ;;  %6076 = vmatprep.subr.bf16.mxu0 %v19559_v18  ;;  %v19608_v55 = vld [vmem:[#allocation6 + $0x11a8] ss:$16 sps:$4 sm:$0xff]   ;;  %v19613_v18 = vld [vmem:[#allocation6 + $0x11c4] ss:$16 sps:$4 sm:$0xff]  }
 0x3bd   :  { %6222 = vmatprep.subr.bf16.mxu1 %v19562_v8  ;;  %v19616_v8 = vld [vmem:[#allocation6 + $0x11cc] ss:$16 sps:$4 sm:$0xff]  }
 0x3bf   :  { %6077 = vmatpush1.bf16.msra.mxu0 %v19557_v43  ;;  %v19611_v43 = vld [vmem:[#allocation6 + $0x11c0] ss:$16 sps:$4 sm:$0xff]  }
 0x3c0   :  { %6223 = vmatpush1.bf16.msra.mxu1 %v19560_v0  ;;  %6078 = vmatprep.subr.bf16.mxu0 %v19565_v52  ;;  %v19614_v0 = vld [vmem:[#allocation6 + $0x11c8] ss:$16 sps:$4 sm:$0xff]   ;;  %v19619_v52 = vld [vmem:[#allocation6 + $0x11e4] ss:$16 sps:$4 sm:$0xff]  }
 0x3c1   :  { %5059 = vmatmul.mubr.bf16.gmra.mrb[28].mxu0 %v21574_v46  ;;  %6224 = vmatprep.subr.bf16.mxu1 %v19568_v5  ;;  %v19622_v5 = vld [vmem:[#allocation6 + $0x11ec] ss:$16 sps:$4 sm:$0xff]  }
 0x3c2   :  { %5205 = vmatmul.mubr.bf16.gmra.mrb[28].mxu1 %v21574_v46  ;;  %6098 = vmatprep.mubr.bf16.mxu0 %v5382_v24  ;;  %v19581_v46 = vld [vmem:[#allocation6 + $0x1120] ss:$16 sps:$4 sm:$0xff]  }
 0x3c3   :  { %6079 = vmatpush1.bf16.msra.mxu0 %v19563_v48  ;;  %6244 = vmatprep.mubr.bf16.mxu1 %v5382_v24  ;;  %v19617_v48 = vld [vmem:[#allocation6 + $0x11e0] ss:$16 sps:$4 sm:$0xff]   ;;  %v19628_v24 = vld [vmem:[#allocation6 + $0x120c] ss:$16 sps:$4 sm:$0xff]  }
 0x3c4   :  { %6225 = vmatpush1.bf16.msra.mxu1 %v19566_v9  ;;  %6080 = vmatprep.subr.bf16.mxu0 %v19571_v6  ;;  %v19625_v9 = vld [vmem:[#allocation6 + $0x1204] ss:$16 sps:$4 sm:$0xff]   ;;  %v5378_v6 = vrot.slane %v21318_v23, 2  ;;  %v19634_v23 = vld [vmem:[#allocation6 + $0x122c] ss:$16 sps:$4 sm:$0xff]  }
 0x3c5   :  { %6226 = vmatprep.subr.bf16.mxu1 %v19574_v20  ;;  %v5391_v20 = vrot.slane %v21351_v21, 2  ;;  %v19629_v21 = vld [vmem:[#allocation6 + $0x1220] ss:$16 sps:$4 sm:$0xff]  }
 0x3c7   :  { %6081 = vmatpush1.bf16.msra.mxu0 %v19569_v4  ;;  %v5377_v4 = vrot.slane %v21290_v59, 2  ;;  %v19632_v59 = vld [vmem:[#allocation6 + $0x1228] ss:$16 sps:$4 sm:$0xff]  }
 0x3c8   :  { %6227 = vmatpush1.bf16.msra.mxu1 %v19572_v61  ;;  %6082 = vmatprep.subr.bf16.mxu0 %v19577_v15  ;;  %v19623_v61 = vld [vmem:[#allocation6 + $0x1200] ss:$16 sps:$4 sm:$0xff]  }
 0x3c9   :  { %6228 = vmatprep.subr.bf16.mxu1 %v19580_v26  ;;  %v5379_v15 = vsel %vm5376_vm2, %v5377_v4, %v5378_v6  ;;  %v19626_v26 = vld [vmem:[#allocation6 + $0x1208] ss:$16 sps:$4 sm:$0xff]   ;;  %v19682_v4 = vld [vmem:[#allocation6 + $0x132c] ss:$16 sps:$4 sm:$0xff]  }
 0x3cb   :  { %6083 = vmatpush1.bf16.msra.mxu0 %v19575_v62  ;;  %v19631_v62 = vld [vmem:[#allocation6 + $0x1224] ss:$16 sps:$4 sm:$0xff]  }
 0x3cc   :  { %6229 = vmatpush1.bf16.msra.mxu1 %v19578_v13  ;;  %6084 = vmatprep.subr.bf16.mxu0 %v19583_v19  ;;  %v5392_v13 = vsel %vm5376_vm2, %v5381_v12, %v5391_v20  ;;  %v5389_v19 = vrot.slane %v21344_v11, 2  ;;  %v19641_v11 = vld [vmem:[#allocation6 + $0x1260] ss:$16 sps:$4 sm:$0xff]  }
 0x3cd   :  { %6230 = vmatprep.subr.bf16.mxu1 %v19586_v25  ;;  %v19637_v25 = vld [vmem:[#allocation6 + $0x1244] ss:$16 sps:$4 sm:$0xff]  }
 0x3ce   :  { %v5390_v12 = vsel %vm5376_vm2, %v5378_v6, %v5389_v19  ;;  %v19671_v6 = vld [vmem:[#allocation6 + $0x1300] ss:$16 sps:$4 sm:$0xff]  }
 0x3cf   :  { %6085 = vmatpush1.bf16.msra.mxu0 %v19581_v46  ;;  %v19640_v46 = vld [vmem:[#allocation6 + $0x124c] ss:$16 sps:$4 sm:$0xff]  }
 0x3d0   :  { %6231 = vmatpush1.bf16.msra.mxu1 %v19584_v10  ;;  %6086 = vmatprep.subr.bf16.mxu0 %v19589_v14  ;;  %v5399_v10 = vrot.slane %v21383_v37, 2  ;;  %v19638_v14 = vld [vmem:[#allocation6 + $0x1248] ss:$16 sps:$4 sm:$0xff]  }
 0x3d1   :  { %6232 = vmatprep.subr.bf16.mxu1 %v19592_v40  ;;  %v19643_v40 = vld [vmem:[#allocation6 + $0x1264] ss:$16 sps:$4 sm:$0xff]   ;;  %v19644_v37 = vld [vmem:[#allocation6 + $0x1268] ss:$16 sps:$4 sm:$0xff]  }
 0x3d3   :  { %6087 = vmatpush1.bf16.msra.mxu0 %v19587_v51  ;;  %v5400_v51 = vsel %vm5376_vm2, %v5391_v20, %v5399_v10  ;;  %v19679_v20 = vld [vmem:[#allocation6 + $0x1324] ss:$16 sps:$4 sm:$0xff]  }
 0x3d4   :  { %6233 = vmatpush1.bf16.msra.mxu1 %v19590_v41  ;;  %6088 = vmatprep.subr.bf16.mxu0 %v19595_v22  ;;  %v19646_v41 = vld [vmem:[#allocation6 + $0x126c] ss:$16 sps:$4 sm:$0xff]   ;;  %v19649_v22 = vld [vmem:[#allocation6 + $0x1284] ss:$16 sps:$4 sm:$0xff]  }
 0x3d5   :  { %6234 = vmatprep.subr.bf16.mxu1 %v19598_v35  ;;  %v19652_v35 = vld [vmem:[#allocation6 + $0x128c] ss:$16 sps:$4 sm:$0xff]  }
 0x3d7   :  { %6089 = vmatpush1.bf16.msra.mxu0 %v19593_v54  ;;  %v19647_v54 = vld [vmem:[#allocation6 + $0x1280] ss:$16 sps:$4 sm:$0xff]  }
 0x3d8   :  { %6235 = vmatpush1.bf16.msra.mxu1 %v19596_v32  ;;  %6090 = vmatprep.subr.bf16.mxu0 %v19601_v30  ;;  %v22256_v32 = vrot.slane %v21380_v31, 2  ;;  %v19661_v31 = vld [vmem:[#allocation6 + $0x12c4] ss:$16 sps:$4 sm:$0xff]  }
 0x3d9   :  { %6236 = vmatprep.subr.bf16.mxu1 %v19604_v28  ;;  %v19650_v28 = vld [vmem:[#allocation6 + $0x1288] ss:$16 sps:$4 sm:$0xff]  }
 0x3da   :  { %v5398_v30 = vsel %vm5376_vm2, %v5389_v19, %v22256_v32  ;;  %v19692_v19 = vld [vmem:[#allocation6 + $0x1368] ss:$16 sps:$4 sm:$0xff]   ;;  %v19713_v32 = vld [vmem:[#allocation6 + $0x13e0] ss:$16 sps:$4 sm:$0xff]  }
 0x3db   :  { %6091 = vmatpush1.bf16.msra.mxu0 %v19599_v53  ;;  %v19655_v53 = vld [vmem:[#allocation6 + $0x12a4] ss:$16 sps:$4 sm:$0xff]  }
 0x3dc   :  { %6237 = vmatpush1.bf16.msra.mxu1 %v19602_v1  ;;  %6092 = vmatprep.subr.bf16.mxu0 %v19607_v34  ;;  %v5407_v1 = vsel %vm5376_vm2, %v5399_v10, %v21560_v63  ;;  %v19658_v34 = vld [vmem:[#allocation6 + $0x12ac] ss:$16 sps:$4 sm:$0xff]   ;;  %v19662_v63 = vld [vmem:[#allocation6 + $0x12c8] ss:$16 sps:$4 sm:$0xff]   ;;  %v19695_v10 = vld [vmem:[#allocation6 + $0x1380] ss:$16 sps:$4 sm:$0xff]  }
 0x3dd   :  { %6238 = vmatprep.subr.bf16.mxu1 %v19610_v17  ;;  %v19653_v17 = vld [vmem:[#allocation6 + $0x12a0] ss:$16 sps:$4 sm:$0xff]  }
 0x3df   :  { %6093 = vmatpush1.bf16.msra.mxu0 %v19605_v47  ;;  %v19656_v47 = vld [vmem:[#allocation6 + $0x12a8] ss:$16 sps:$4 sm:$0xff]  }
 0x3e0   :  { %6239 = vmatpush1.bf16.msra.mxu1 %v19608_v55  ;;  %6094 = vmatprep.subr.bf16.mxu0 %v19613_v18  ;;  %v19664_v55 = vld [vmem:[#allocation6 + $0x12cc] ss:$16 sps:$4 sm:$0xff]   ;;  %v5386_v18 = vrot.slane %v21359_v36, 2  ;;  %v19665_v36 = vld [vmem:[#allocation6 + $0x12e0] ss:$16 sps:$4 sm:$0xff]  }
 0x3e1   :  { %6240 = vmatprep.subr.bf16.mxu1 %v19616_v8  ;;  %v5387_v8 = vrot.slane %v21392_v58, 2 }
 0x3e3   :  { %6095 = vmatpush1.bf16.msra.mxu0 %v19611_v43  ;;  %v19659_v43 = vld [vmem:[#allocation6 + $0x12c0] ss:$16 sps:$4 sm:$0xff]  }
 0x3e4   :  { %6241 = vmatpush1.bf16.msra.mxu1 %v19614_v0  ;;  %6096 = vmatprep.subr.bf16.mxu0 %v19619_v52  ;;  %v19667_v0 = vld [vmem:[#allocation6 + $0x12e4] ss:$16 sps:$4 sm:$0xff]   ;;  %v5388_v52 = vsel %vm5376_vm2, %v5386_v18, %v5387_v8  ;;  %v19727_v18 = vld [vmem:[#allocation9 + $0x424] ss:$16 sps:$4 sm:$0xff]  }
 0x3e5   :  { %6242 = vmatprep.subr.bf16.mxu1 %v19622_v5  ;;  %v19670_v5 = vld [vmem:[#allocation6 + $0x12ec] ss:$16 sps:$4 sm:$0xff]  }
 0x3e7   :  { %6097 = vmatpush1.bf16.msra.mxu0 %v19617_v48  ;;  %v19668_v48 = vld [vmem:[#allocation6 + $0x12e8] ss:$16 sps:$4 sm:$0xff]  }
 0x3e8   :  { %6243 = vmatpush1.bf16.msra.mxu1 %v19620_v45  ;;  %6139 = vmatprep.subr.bf16.mxu0 %v19625_v9  ;;  %v19673_v45 = vld [vmem:[#allocation6 + $0x1304] ss:$16 sps:$4 sm:$0xff]   ;;  %v19676_v9 = vld [vmem:[#allocation6 + $0x130c] ss:$16 sps:$4 sm:$0xff]  }
 0x3e9   :  { %6285 = vmatprep.subr.bf16.mxu1 %v19628_v24  ;;  %v19674_v24 = vld [vmem:[#allocation6 + $0x1308] ss:$16 sps:$4 sm:$0xff]  }
 0x3ea   :  { %6099 = vmatmul.mubr.bf16.vlgmr.msra.gmra.mrb[16].mxu0 %v5379_v15 }
 0x3eb   :  { %6245 = vmatmul.mubr.bf16.vlgmr.msra.gmra.mrb[16].mxu1 %v5379_v15  ;;  %6108 = vmatprep.mubr.bf16.mxu0 %v5392_v13  ;;  %v19685_v15 = vld [vmem:[#allocation6 + $0x1344] ss:$16 sps:$4 sm:$0xff]  }
 0x3ec   :  { %6140 = vmatpush1.bf16.msra.mxu0 %v19623_v61  ;;  %6254 = vmatprep.mubr.bf16.mxu1 %v5392_v13  ;;  %v19680_v61 = vld [vmem:[#allocation6 + $0x1328] ss:$16 sps:$4 sm:$0xff]  }
 0x3ed   :  { %6286 = vmatpush1.bf16.msra.mxu1 %v19626_v26  ;;  %6141 = vmatprep.subr.bf16.mxu0 %v19631_v62  ;;  %v19688_v26 = vld [vmem:[#allocation6 + $0x134c] ss:$16 sps:$4 sm:$0xff]   ;;  %v19683_v62 = vld [vmem:[#allocation6 + $0x1340] ss:$16 sps:$4 sm:$0xff]   ;;  %v19686_v13 = vld [vmem:[#allocation6 + $0x1348] ss:$16 sps:$4 sm:$0xff]  }
 0x3ee   :  { %6287 = vmatprep.subr.bf16.mxu1 %v19634_v23  ;;  %v19691_v23 = vld [vmem:[#allocation6 + $0x1364] ss:$16 sps:$4 sm:$0xff]  }
 0x3f0   :  { %6142 = vmatpush1.bf16.msra.mxu0 %v19629_v21  ;;  %v19694_v21 = vld [vmem:[#allocation6 + $0x136c] ss:$16 sps:$4 sm:$0xff]  }
 0x3f1   :  { %6288 = vmatpush1.bf16.msra.mxu1 %v19632_v59  ;;  %6143 = vmatprep.subr.bf16.mxu0 %v19637_v25  ;;  %v19689_v59 = vld [vmem:[#allocation6 + $0x1360] ss:$16 sps:$4 sm:$0xff]   ;;  %v19697_v25 = vld [vmem:[#allocation6 + $0x1384] ss:$16 sps:$4 sm:$0xff]  }
 0x3f2   :  { %6109 = vmatmul.mubr.bf16.gmra.mrb[20].mxu0 %v5390_v12  ;;  %6289 = vmatprep.subr.bf16.mxu1 %v19640_v46  ;;  %v19700_v46 = vld [vmem:[#allocation6 + $0x138c] ss:$16 sps:$4 sm:$0xff]  }
 0x3f3   :  { %6255 = vmatmul.mubr.bf16.gmra.mrb[20].mxu1 %v5390_v12  ;;  %6118 = vmatprep.mubr.bf16.mxu0 %v5400_v51  ;;  %v19703_v12 = vld [vmem:[#allocation6 + $0x13a4] ss:$16 sps:$4 sm:$0xff]  }
 0x3f4   :  { %6144 = vmatpush1.bf16.msra.mxu0 %v19635_v27  ;;  %6264 = vmatprep.mubr.bf16.mxu1 %v5400_v51  ;;  %v19698_v27 = vld [vmem:[#allocation6 + $0x1388] ss:$16 sps:$4 sm:$0xff]  }
 0x3f5   :  { %6290 = vmatpush1.bf16.msra.mxu1 %v19638_v14  ;;  %6145 = vmatprep.subr.bf16.mxu0 %v19643_v40  ;;  %v19706_v14 = vld [vmem:[#allocation6 + $0x13ac] ss:$16 sps:$4 sm:$0xff]   ;;  %v19701_v40 = vld [vmem:[#allocation6 + $0x13a0] ss:$16 sps:$4 sm:$0xff]   ;;  %v19704_v51 = vld [vmem:[#allocation6 + $0x13a8] ss:$16 sps:$4 sm:$0xff]  }
 0x3f6   :  { %6291 = vmatprep.subr.bf16.mxu1 %v19646_v41  ;;  %v19709_v41 = vld [vmem:[#allocation6 + $0x13c4] ss:$16 sps:$4 sm:$0xff]  }
 0x3f8   :  { %6146 = vmatpush1.bf16.msra.mxu0 %v19641_v11  ;;  %v19712_v11 = vld [vmem:[#allocation6 + $0x13cc] ss:$16 sps:$4 sm:$0xff]  }
 0x3f9   :  { %6292 = vmatpush1.bf16.msra.mxu1 %v19644_v37  ;;  %6147 = vmatprep.subr.bf16.mxu0 %v19649_v22  ;;  %v19707_v37 = vld [vmem:[#allocation6 + $0x13c0] ss:$16 sps:$4 sm:$0xff]   ;;  %v19710_v22 = vld [vmem:[#allocation6 + $0x13c8] ss:$16 sps:$4 sm:$0xff]  }
 0x3fa   :  { %6119 = vmatmul.mubr.bf16.gmra.mrb[24].mxu0 %v5398_v30  ;;  %6293 = vmatprep.subr.bf16.mxu1 %v19652_v35  ;;  %v19715_v35 = vld [vmem:[#allocation6 + $0x13e4] ss:$16 sps:$4 sm:$0xff]  }
 0x3fb   :  { %6265 = vmatmul.mubr.bf16.gmra.mrb[24].mxu1 %v5398_v30  ;;  %6128 = vmatprep.mubr.bf16.mxu0 %v5407_v1  ;;  %v19716_v30 = vld [vmem:[#allocation6 + $0x13e8] ss:$16 sps:$4 sm:$0xff]  }
 0x3fc   :  { %6148 = vmatpush1.bf16.msra.mxu0 %v19647_v54  ;;  %6274 = vmatprep.mubr.bf16.mxu1 %v5407_v1  ;;  %v19718_v54 = vld [vmem:[#allocation6 + $0x13ec] ss:$16 sps:$4 sm:$0xff]   ;;  %v5384_v1 = vrot.slane %v21386_v38, 2  ;;  %v19725_v38 = vld [vmem:[#allocation9 + $0x420] ss:$16 sps:$4 sm:$0xff]  }
 0x3fd   :  { %6294 = vmatpush1.bf16.msra.mxu1 %v19650_v28  ;;  %6149 = vmatprep.subr.bf16.mxu0 %v19655_v53  ;;  %v19721_v28 = vld [vmem:[#allocation9 + $0x404] ss:$16 sps:$4 sm:$0xff]   ;;  %v5383_v53 = vrot.slane %v21355_v29, 2  ;;  %v19730_v29 = vld [vmem:[#allocation9 + $0x42c] ss:$16 sps:$4 sm:$0xff]  }
 0x3fe   :  { %6295 = vmatprep.subr.bf16.mxu1 %v19658_v34  ;;  %v19724_v34 = vld [vmem:[#allocation9 + $0x40c] ss:$16 sps:$4 sm:$0xff]  }
 0x400   :  { %6150 = vmatpush1.bf16.msra.mxu0 %v19653_v17  ;;  %v5395_v17 = vrot.slane %v21415_v50, 2  ;;  %v5393_v50 = vrot.slane %v21412_v39, 2  ;;  %v19742_v39 = vld [vmem:[#allocation9 + $0x46c] ss:$16 sps:$4 sm:$0xff]  }
 0x401   :  { %6296 = vmatpush1.bf16.msra.mxu1 %v19656_v47  ;;  %6151 = vmatprep.subr.bf16.mxu0 %v19661_v31  ;;  %v19719_v47 = vld [vmem:[#allocation9 + $0x400] ss:$16 sps:$4 sm:$0xff]   ;;  %v5385_v31 = vsel %vm5376_vm2, %v5383_v53, %v5384_v1  ;;  %v19793_v53 = vld [vmem:[#allocation9 + $0x584] ss:$16 sps:$4 sm:$0xff]  }
 0x402   :  { %6129 = vmatmul.mubr.bf16.gmra.mrb[28].mxu0 %v21583_v33  ;;  %6297 = vmatprep.subr.bf16.mxu1 %v19664_v55  ;;  %v19722_v55 = vld [vmem:[#allocation9 + $0x408] ss:$16 sps:$4 sm:$0xff]   ;;  %v5394_v58 = vsel %vm5376_vm2, %v5384_v1, %v5393_v50  ;;  %v19796_v1 = vld [vmem:[#allocation9 + $0x58c] ss:$16 sps:$4 sm:$0xff]  }
 0x403   :  { %6275 = vmatmul.mubr.bf16.gmra.mrb[28].mxu1 %v21583_v33  ;;  %6171 = vmatprep.mubr.bf16.mxu0 %v5388_v52  ;;  %v19677_v33 = vld [vmem:[#allocation6 + $0x1320] ss:$16 sps:$4 sm:$0xff]  }
 0x404   :  { %6152 = vmatpush1.bf16.msra.mxu0 %v19659_v43  ;;  %6317 = vmatprep.mubr.bf16.mxu1 %v5388_v52  ;;  %v5396_v43 = vsel %vm5376_vm2, %v5387_v8, %v5395_v17  ;;  %v19736_v52 = vld [vmem:[#allocation9 + $0x44c] ss:$16 sps:$4 sm:$0xff]   ;;  %v19734_v8 = vld [vmem:[#allocation9 + $0x448] ss:$16 sps:$4 sm:$0xff]  }
 0x405   :  { %6298 = vmatpush1.bf16.msra.mxu1 %v19662_v63  ;;  %6153 = vmatprep.subr.bf16.mxu0 %v19667_v0  ;;  %v19728_v63 = vld [vmem:[#allocation9 + $0x428] ss:$16 sps:$4 sm:$0xff]   ;;  %v19733_v0 = vld [vmem:[#allocation9 + $0x444] ss:$16 sps:$4 sm:$0xff]  }
 0x406   :  { %6299 = vmatprep.subr.bf16.mxu1 %v19670_v5  ;;  %v19731_v5 = vld [vmem:[#allocation9 + $0x440] ss:$16 sps:$4 sm:$0xff]  }
 0x408   :  { %6154 = vmatpush1.bf16.msra.mxu0 %v19665_v36  ;;  %v19739_v36 = vld [vmem:[#allocation9 + $0x464] ss:$16 sps:$4 sm:$0xff]  }
 0x409   :  { %6300 = vmatpush1.bf16.msra.mxu1 %v19668_v48  ;;  %6155 = vmatprep.subr.bf16.mxu0 %v19673_v45  ;;  %v22257_v48 = vrot.slane %v21439_v57, 2 }
 0x40a   :  { %6301 = vmatprep.subr.bf16.mxu1 %v19676_v9  ;;  %v19737_v9 = vld [vmem:[#allocation9 + $0x460] ss:$16 sps:$4 sm:$0xff]  }
 0x40b   :  { %v5404_v45 = vsel %vm5376_vm2, %v5395_v17, %v22257_v48  ;;  %v19794_v17 = vld [vmem:[#allocation9 + $0x588] ss:$16 sps:$4 sm:$0xff]  }
 0x40c   :  { %6156 = vmatpush1.bf16.msra.mxu0 %v19671_v6  ;;  %v19740_v6 = vld [vmem:[#allocation9 + $0x468] ss:$16 sps:$4 sm:$0xff]  }
 0x40d   :  { %6302 = vmatpush1.bf16.msra.mxu1 %v19674_v24  ;;  %6157 = vmatprep.subr.bf16.mxu0 %v19679_v20  ;;  %v19745_v24 = vld [vmem:[#allocation9 + $0x484] ss:$16 sps:$4 sm:$0xff]   ;;  %v19748_v20 = vld [vmem:[#allocation9 + $0x48c] ss:$16 sps:$4 sm:$0xff]  }
 0x40e   :  { %6303 = vmatprep.subr.bf16.mxu1 %v19682_v4  ;;  %v19743_v4 = vld [vmem:[#allocation9 + $0x480] ss:$16 sps:$4 sm:$0xff]  }
 0x410   :  { %6158 = vmatpush1.bf16.msra.mxu0 %v19677_v33  ;;  %v22258_v33 = vrot.slane %v21437_v16, 2  ;;  %v19757_v16 = vld [vmem:[#allocation9 + $0x4c4] ss:$16 sps:$4 sm:$0xff]  }
 0x411   :  { %6304 = vmatpush1.bf16.msra.mxu1 %v19680_v61  ;;  %6159 = vmatprep.subr.bf16.mxu0 %v19685_v15  ;;  %v19746_v61 = vld [vmem:[#allocation9 + $0x488] ss:$16 sps:$4 sm:$0xff]   ;;  %v19751_v15 = vld [vmem:[#allocation9 + $0x4a4] ss:$16 sps:$4 sm:$0xff]  }
 0x412   :  { %6305 = vmatprep.subr.bf16.mxu1 %v19688_v26  ;;  %v5402_v57 = vsel %vm5376_vm2, %v5393_v50, %v22258_v33  ;;  %v19754_v26 = vld [vmem:[#allocation9 + $0x4ac] ss:$16 sps:$4 sm:$0xff]   ;;  %v19806_v50 = vld [vmem:[#allocation9 + $0x5c8] ss:$16 sps:$4 sm:$0xff]  }
 0x414   :  { %6160 = vmatpush1.bf16.msra.mxu0 %v19683_v62  ;;  %v19749_v62 = vld [vmem:[#allocation9 + $0x4a0] ss:$16 sps:$4 sm:$0xff]  }
 0x415   :  { %6306 = vmatpush1.bf16.msra.mxu1 %v19686_v13  ;;  %6161 = vmatprep.subr.bf16.mxu0 %v19691_v23  ;;  %v19752_v13 = vld [vmem:[#allocation9 + $0x4a8] ss:$16 sps:$4 sm:$0xff]   ;;  %v19760_v23 = vld [vmem:[#allocation9 + $0x4cc] ss:$16 sps:$4 sm:$0xff]  }
 0x416   :  { %6307 = vmatprep.subr.bf16.mxu1 %v19694_v21  ;;  %v19755_v21 = vld [vmem:[#allocation9 + $0x4c0] ss:$16 sps:$4 sm:$0xff]  }
 0x418   :  { %6162 = vmatpush1.bf16.msra.mxu0 %v19689_v59  ;;  %v19758_v59 = vld [vmem:[#allocation9 + $0x4c8] ss:$16 sps:$4 sm:$0xff]  }
 0x419   :  { %6308 = vmatpush1.bf16.msra.mxu1 %v19692_v19  ;;  %6163 = vmatprep.subr.bf16.mxu0 %v19697_v25  ;;  %v19763_v19 = vld [vmem:[#allocation9 + $0x4e4] ss:$16 sps:$4 sm:$0xff]   ;;  %v19766_v25 = vld [vmem:[#allocation9 + $0x4ec] ss:$16 sps:$4 sm:$0xff]  }
 0x41a   :  { %6309 = vmatprep.subr.bf16.mxu1 %v19700_v46  ;;  %v19764_v46 = vld [vmem:[#allocation9 + $0x4e8] ss:$16 sps:$4 sm:$0xff]  }
 0x41c   :  { %6164 = vmatpush1.bf16.msra.mxu0 %v19695_v10  ;;  %v19769_v10 = vld [vmem:[#allocation9 + $0x504] ss:$16 sps:$4 sm:$0xff]  }
 0x41d   :  { %6310 = vmatpush1.bf16.msra.mxu1 %v19698_v27  ;;  %6165 = vmatprep.subr.bf16.mxu0 %v19703_v12  ;;  %v19772_v27 = vld [vmem:[#allocation9 + $0x50c] ss:$16 sps:$4 sm:$0xff]   ;;  %v19767_v12 = vld [vmem:[#allocation9 + $0x500] ss:$16 sps:$4 sm:$0xff]  }
 0x41e   :  { %6311 = vmatprep.subr.bf16.mxu1 %v19706_v14  ;;  %v19770_v14 = vld [vmem:[#allocation9 + $0x508] ss:$16 sps:$4 sm:$0xff]  }
 0x420   :  { %6166 = vmatpush1.bf16.msra.mxu0 %v19701_v40  ;;  %v19775_v40 = vld [vmem:[#allocation9 + $0x524] ss:$16 sps:$4 sm:$0xff]  }
 0x421   :  { %6312 = vmatpush1.bf16.msra.mxu1 %v19704_v51  ;;  %6167 = vmatprep.subr.bf16.mxu0 %v19709_v41  ;;  %v19778_v51 = vld [vmem:[#allocation9 + $0x52c] ss:$16 sps:$4 sm:$0xff]   ;;  %v19773_v41 = vld [vmem:[#allocation9 + $0x520] ss:$16 sps:$4 sm:$0xff]  }
 0x422   :  { %6313 = vmatprep.subr.bf16.mxu1 %v19712_v11  ;;  %v19781_v11 = vld [vmem:[#allocation9 + $0x544] ss:$16 sps:$4 sm:$0xff]  }
 0x424   :  { %6168 = vmatpush1.bf16.msra.mxu0 %v19707_v37  ;;  %v19784_v37 = vld [vmem:[#allocation9 + $0x54c] ss:$16 sps:$4 sm:$0xff]  }
 0x425   :  { %6314 = vmatpush1.bf16.msra.mxu1 %v19710_v22  ;;  %6169 = vmatprep.subr.bf16.mxu0 %v19715_v35  ;;  %v19779_v22 = vld [vmem:[#allocation9 + $0x540] ss:$16 sps:$4 sm:$0xff]   ;;  %v19782_v35 = vld [vmem:[#allocation9 + $0x548] ss:$16 sps:$4 sm:$0xff]  }
 0x426   :  { %6315 = vmatprep.subr.bf16.mxu1 %v19718_v54  ;;  %v19785_v54 = vld [vmem:[#allocation9 + $0x560] ss:$16 sps:$4 sm:$0xff]  }
 0x428   :  { %6170 = vmatpush1.bf16.msra.mxu0 %v19713_v32  ;;  %v19787_v32 = vld [vmem:[#allocation9 + $0x564] ss:$16 sps:$4 sm:$0xff]  }
 0x429   :  { %6316 = vmatpush1.bf16.msra.mxu1 %v19716_v30  ;;  %7533 = vmatprep.subr.bf16.mxu0 %v19721_v28  ;;  %v19788_v30 = vld [vmem:[#allocation9 + $0x568] ss:$16 sps:$4 sm:$0xff]   ;;  %v19790_v28 = vld [vmem:[#allocation9 + $0x56c] ss:$16 sps:$4 sm:$0xff]  }
 0x42a   :  { %7679 = vmatprep.subr.bf16.mxu1 %v19724_v34  ;;  %v19791_v34 = vld [vmem:[#allocation9 + $0x580] ss:$16 sps:$4 sm:$0xff]  }
 0x42b   :  { %6172 = vmatmul.mubr.bf16.vlgmr.msra.gmra.mrb[16].mxu0 %v5385_v31 }
 0x42c   :  { %6318 = vmatmul.mubr.bf16.vlgmr.msra.gmra.mrb[16].mxu1 %v5385_v31  ;;  %6181 = vmatprep.mubr.bf16.mxu0 %v5396_v43  ;;  %v19799_v31 = vld [vmem:[#allocation9 + $0x5a4] ss:$16 sps:$4 sm:$0xff]  }
 0x42d   :  { %6327 = vmatprep.mubr.bf16.mxu1 %v5396_v43  ;;  %7534 = vmatpush1.bf16.msra.mxu0 %v19719_v47  ;;  %v19797_v47 = vld [vmem:[#allocation9 + $0x5a0] ss:$16 sps:$4 sm:$0xff]   ;;  %v19805_v43 = vld [vmem:[#allocation9 + $0x5c4] ss:$16 sps:$4 sm:$0xff]  }
 0x42e   :  { %7680 = vmatpush1.bf16.msra.mxu1 %v19722_v55  ;;  %7535 = vmatprep.subr.bf16.mxu0 %v19727_v18  ;;  %v19800_v55 = vld [vmem:[#allocation9 + $0x5a8] ss:$16 sps:$4 sm:$0xff]   ;;  %v19802_v18 = vld [vmem:[#allocation9 + $0x5ac] ss:$16 sps:$4 sm:$0xff]  }
 0x42f   :  { %7681 = vmatprep.subr.bf16.mxu1 %v19730_v29  ;;  %v19808_v29 = vld [vmem:[#allocation9 + $0x5cc] ss:$16 sps:$4 sm:$0xff]  }
 0x431   :  { %7536 = vmatpush1.bf16.msra.mxu0 %v19725_v38  ;;  %v19803_v38 = vld [vmem:[#allocation9 + $0x5c0] ss:$16 sps:$4 sm:$0xff]  }
 0x432   :  { %7682 = vmatpush1.bf16.msra.mxu1 %v19728_v63  ;;  %7537 = vmatprep.subr.bf16.mxu0 %v19733_v0  ;;  %v19809_v63 = vld [vmem:[#allocation9 + $0x5e0] ss:$16 sps:$4 sm:$0xff]   ;;  %v19811_v0 = vld [vmem:[#allocation9 + $0x5e4] ss:$16 sps:$4 sm:$0xff]  }
 0x433   :  { %6182 = vmatmul.mubr.bf16.gmra.mrb[20].mxu0 %v5394_v58  ;;  %7683 = vmatprep.subr.bf16.mxu1 %v19736_v52  ;;  %v19812_v52 = vld [vmem:[#allocation9 + $0x5e8] ss:$16 sps:$4 sm:$0xff]  }
 0x434   :  { %6328 = vmatmul.mubr.bf16.gmra.mrb[20].mxu1 %v5394_v58  ;;  %6191 = vmatprep.mubr.bf16.mxu0 %v5404_v45  ;;  %v19817_v58 = vld [vmem:[#allocation9 + $0x604] ss:$16 sps:$4 sm:$0xff]  }
 0x435   :  { %6337 = vmatprep.mubr.bf16.mxu1 %v5404_v45  ;;  %7538 = vmatpush1.bf16.msra.mxu0 %v19731_v5  ;;  %v19814_v5 = vld [vmem:[#allocation9 + $0x5ec] ss:$16 sps:$4 sm:$0xff]  }
 0x436   :  { %7684 = vmatpush1.bf16.msra.mxu1 %v19734_v8  ;;  %7539 = vmatprep.subr.bf16.mxu0 %v19739_v36  ;;  %v19820_v8 = vld [vmem:[#allocation9 + $0x60c] ss:$16 sps:$4 sm:$0xff]  }
 0x437   :  { %7685 = vmatprep.subr.bf16.mxu1 %v19742_v39  ;;  %v620_v36 = vld [vmem:[#allocation7] sm:$0xf] }
 0x438   :  { %v21793_v48 = vrot.slane %v620_v36, %v21275_v42  ;;  %v21796_v45 = vrot.slane %v620_v36, %v21293_v60  ;;  %v21799_v39 = vrot.slane %v620_v36, %v21278_v44 }
 0x439   :  { %7540 = vmatpush1.bf16.msra.mxu0 %v19737_v9  ;;  %v21802_v9 = vrot.slane %v620_v36, %v21300_v3 }
 0x43a   :  { %7686 = vmatpush1.bf16.msra.mxu1 %v19740_v6  ;;  %7541 = vmatprep.subr.bf16.mxu0 %v19745_v24 }
 0x43b   :  { %6192 = vmatmul.mubr.bf16.gmra.mrb[24].mxu0 %v5402_v57  ;;  %7687 = vmatprep.subr.bf16.mxu1 %v19748_v20 }
 0x43c   :  { %6338 = vmatmul.mubr.bf16.gmra.mrb[24].mxu1 %v5402_v57  ;;  %6201 = vmatprep.mubr.bf16.mxu0 %v21600_v56 }
 0x43d   :  { %6347 = vmatprep.mubr.bf16.mxu1 %v21600_v56  ;;  %7542 = vmatpush1.bf16.msra.mxu0 %v19743_v4  ;;  %v19761_v56 = vld [vmem:[#allocation9 + $0x4e0] ss:$16 sps:$4 sm:$0xff]  }
 0x43e   :  { %7688 = vmatpush1.bf16.msra.mxu1 %v19746_v61  ;;  %7543 = vmatprep.subr.bf16.mxu0 %v19751_v15 }
 0x43f   :  { %7689 = vmatprep.subr.bf16.mxu1 %v19754_v26 }
 0x441   :  { %7544 = vmatpush1.bf16.msra.mxu0 %v19749_v62 }
 0x442   :  { %7690 = vmatpush1.bf16.msra.mxu1 %v19752_v13  ;;  %7545 = vmatprep.subr.bf16.mxu0 %v19757_v16 }
 0x443   :  { %6202 = vmatmul.mubr.bf16.gmra.mrb[28].mxu0 %v21606_v2  ;;  %7691 = vmatprep.subr.bf16.mxu1 %v19760_v23 }
 0x444   :  { %6348 = vmatmul.mubr.bf16.gmra.mrb[28].mxu1 %v21606_v2  ;;  %v19776_v2 = vld [vmem:[#allocation9 + $0x528] ss:$16 sps:$4 sm:$0xff]  }
 0x445   :  { %7546 = vmatpush1.bf16.msra.mxu0 %v19755_v21 }
 0x446   :  { %7692 = vmatpush1.bf16.msra.mxu1 %v19758_v59  ;;  %7547 = vmatprep.subr.bf16.mxu0 %v19763_v19 }
 0x447   :  { %7693 = vmatprep.subr.bf16.mxu1 %v19766_v25 }
 0x449   :  { %7548 = vmatpush1.bf16.msra.mxu0 %v19761_v56 }
 0x44a   :  { %7694 = vmatpush1.bf16.msra.mxu1 %v19764_v46  ;;  %7549 = vmatprep.subr.bf16.mxu0 %v19769_v10 }
 0x44b   :  { %7695 = vmatprep.subr.bf16.mxu1 %v19772_v27 }
 0x44d   :  { %7550 = vmatpush1.bf16.msra.mxu0 %v19767_v12 }
 0x44e   :  { %7696 = vmatpush1.bf16.msra.mxu1 %v19770_v14  ;;  %7551 = vmatprep.subr.bf16.mxu0 %v19775_v40 }
 0x44f   :  { %7697 = vmatprep.subr.bf16.mxu1 %v19778_v51 }
 0x451   :  { %7552 = vmatpush1.bf16.msra.mxu0 %v19773_v41 }
 0x452   :  { %7698 = vmatpush1.bf16.msra.mxu1 %v19776_v2  ;;  %7553 = vmatprep.subr.bf16.mxu0 %v19781_v11 }
 0x453   :  { %7699 = vmatprep.subr.bf16.mxu1 %v19784_v37 }
 0x455   :  { %7554 = vmatpush1.bf16.msra.mxu0 %v19779_v22 }
 0x456   :  { %7700 = vmatpush1.bf16.msra.mxu1 %v19782_v35  ;;  %7555 = vmatprep.subr.bf16.mxu0 %v19787_v32 }
 0x457   :  { %7701 = vmatprep.subr.bf16.mxu1 %v19790_v28 }
 0x459   :  { %7556 = vmatpush1.bf16.msra.mxu0 %v19785_v54 }
 0x45a   :  { %7702 = vmatpush1.bf16.msra.mxu1 %v19788_v30  ;;  %7557 = vmatprep.subr.bf16.mxu0 %v19793_v53 }
 0x45b   :  { %7703 = vmatprep.subr.bf16.mxu1 %v19796_v1 }
 0x45d   :  { %7558 = vmatpush1.bf16.msra.mxu0 %v19791_v34 }
 0x45e   :  { %7704 = vmatpush1.bf16.msra.mxu1 %v19794_v17  ;;  %7559 = vmatprep.subr.bf16.mxu0 %v19799_v31 }
 0x45f   :  { %7705 = vmatprep.subr.bf16.mxu1 %v19802_v18 }
 0x461   :  { %7560 = vmatpush1.bf16.msra.mxu0 %v19797_v47 }
 0x462   :  { %7706 = vmatpush1.bf16.msra.mxu1 %v19800_v55  ;;  %7561 = vmatprep.subr.bf16.mxu0 %v19805_v43 }
 0x463   :  { %7707 = vmatprep.subr.bf16.mxu1 %v19808_v29 }
 0x465   :  { %7562 = vmatpush1.bf16.msra.mxu0 %v19803_v38 }
 0x466   :  { %7708 = vmatpush1.bf16.msra.mxu1 %v19806_v50  ;;  %7563 = vmatprep.subr.bf16.mxu0 %v19811_v0 }
 0x467   :  { %7709 = vmatprep.subr.bf16.mxu1 %v19814_v5 }
 0x469   :  { %7564 = vmatpush1.bf16.msra.mxu0 %v19809_v63 }
 0x46a   :  { %7710 = vmatpush1.bf16.msra.mxu1 %v19812_v52  ;;  %7606 = vmatprep.subr.bf16.mxu0 %v19817_v58 }
 0x46b   :  { %7752 = vmatprep.subr.bf16.mxu1 %v19820_v8 }
 0x4fe   :  { %v6173_v6 = vpop.f32.mrb[16].mxu0 }
 0x4ff   :  { %v6411_v24 = vadd.f32 %v21793_v48, %v6173_v6  ;;  %v6319_v20 = vpop.f32.mrb[16].mxu1  ;;  %v6175_v4 = vpop.f32.mrb[17].mxu0 }
 0x500   :  { %v6413_v33 = vadd.f32 %v21796_v45, %v6319_v20  ;;  %v6412_v57 = vadd.f32 %v21799_v39, %v6175_v4  ;;  %v6321_v61 = vpop.f32.mrb[17].mxu1  ;;  %v6177_v15 = vpop.f32.mrb[18].mxu0 }
 0x501   :  { %v6414_v26 = vadd.f32 %v21802_v9, %v6321_v61  ;;  %v6415_v62 = vadd.f32 %v21793_v48, %v6177_v15  ;;  %v6323_v13 = vpop.f32.mrb[18].mxu1  ;;  %v6179_v16 = vpop.f32.mrb[19].mxu0  ;;  %v6443_v19 = vmax.f32 %v6411_v24, 0.0 }
 0x502   :  { %v6417_v23 = vadd.f32 %v21796_v45, %v6323_v13  ;;  %v6416_v21 = vadd.f32 %v21799_v39, %v6179_v16  ;;  %v6325_v59 = vpop.f32.mrb[19].mxu1  ;;  %v6445_v46 = vmax.f32 %v6413_v33, 0.0  ;;  %v6444_v10 = vmax.f32 %v6412_v57, 0.0 }
 0x503   :  { %v6447_v25 = vmax.f32 %v6415_v62, 0.0  ;;  %v6418_v56 = vadd.f32 %v21802_v9, %v6325_v59  ;;  %v6446_v14 = vmax.f32 %v6414_v26, 0.0 }
 0x504   :  { %v6449_v27 = vmax.f32 %v6417_v23, 0.0  ;;  %v6448_v12 = vmax.f32 %v6416_v21, 0.0 }
 0x505   :  { %v21812_v40 = vpack.c.bf16 %v6447_v25, %v6443_v19  ;;  %v6450_v51 = vmax.f32 %v6418_v56, 0.0 }
 0x506   :  { %v21814_v41 = vpack.c.bf16 %v6449_v27, %v6445_v46  ;;  %v21816_v2 = vpack.c.bf16 %v6448_v12, %v6444_v10  ;;  %v6183_v11 = vpop.f32.mrb[20].mxu0 }
 0x507   :  { %v21818_v37 = vpack.c.bf16 %v6450_v51, %v6446_v14  ;;  %v6419_v22 = vadd.f32 %v21793_v48, %v6183_v11  ;;  %v6329_v35 = vpop.f32.mrb[20].mxu1  ;;  %v6185_v54 = vpop.f32.mrb[21].mxu0  ;;  %v6752_v31 = vshll.u32 %v21812_v40, 16  ;;  %v6750_v13 = vshrl.u32 %v21812_v40, 16 }
 0x508   :  { %v6421_v32 = vadd.f32 %v21796_v45, %v6329_v35  ;;  %v6420_v30 = vadd.f32 %v21799_v39, %v6185_v54  ;;  %v6331_v28 = vpop.f32.mrb[21].mxu1  ;;  %v6187_v53 = vpop.f32.mrb[22].mxu0  ;;  %v6764_v29 = vshll.u32 %v21816_v2, 16  ;;  %v6762_v25 = vshrl.u32 %v21816_v2, 16 }
 0x509   :  { %v6422_v1 = vadd.f32 %v21802_v9, %v6331_v28  ;;  %v6423_v34 = vadd.f32 %v21793_v48, %v6187_v53  ;;  %v6333_v17 = vpop.f32.mrb[22].mxu1  ;;  %v6189_v47 = vpop.f32.mrb[23].mxu0  ;;  %v6451_v38 = vmax.f32 %v6419_v22, 0.0  ;;  %v6754_v24 = vrot.slane %v6752_v31, 1 }
 0x50a   :  { %v6425_v55 = vadd.f32 %v21796_v45, %v6333_v17  ;;  %v6424_v18 = vadd.f32 %v21799_v39, %v6189_v47  ;;  %v6335_v43 = vpop.f32.mrb[23].mxu1  ;;  %v6453_v0 = vmax.f32 %v6421_v32, 0.0  ;;  %v6452_v52 = vmax.f32 %v6420_v30, 0.0 }
 0x50b   :  { %v6455_v50 = vmax.f32 %v6423_v34, 0.0  ;;  %v6426_v63 = vadd.f32 %v21802_v9, %v6335_v43  ;;  %v6454_v8 = vmax.f32 %v6422_v1, 0.0  ;;  %v6766_v57 = vrot.slane %v6764_v29, 1  ;;  %v19815_v1 = vld [vmem:[#allocation9 + $0x600] ss:$16 sps:$4 sm:$0xff]  }
 0x50c   :  { %v6457_v5 = vmax.f32 %v6425_v55, 0.0  ;;  %v6456_v58 = vmax.f32 %v6424_v18, 0.0  ;;  %v6755_v14 = vor.u32 %v6754_v24, %v6750_v13  ;;  %v19818_v55 = vld [vmem:[#allocation9 + $0x608] ss:$16 sps:$4 sm:$0xff]  }
 0x50d   :  { %v21830_v36 = vpack.c.bf16 %v6455_v50, %v6451_v38  ;;  %v6458_v6 = vmax.f32 %v6426_v63, 0.0  ;;  %v6767_v35 = vor.u32 %v6766_v57, %v6762_v25  ;;  %v19823_v50 = vld [vmem:[#allocation9 + $0x624] ss:$16 sps:$4 sm:$0xff]   ;;  %v19826_v63 = vld [vmem:[#allocation9 + $0x62c] ss:$16 sps:$4 sm:$0xff]  }
 0x50e   :  { %v21832_v20 = vpack.c.bf16 %v6457_v5, %v6453_v0  ;;  %v21834_v4 = vpack.c.bf16 %v6456_v58, %v6452_v52  ;;  %v6193_v33 = vpop.f32.mrb[24].mxu0  ;;  %v19821_v57 = vld [vmem:[#allocation9 + $0x620] ss:$16 sps:$4 sm:$0xff]  }
 0x50f   :  { %v21836_v61 = vpack.c.bf16 %v6458_v6, %v6454_v8  ;;  %v6427_v15 = vadd.f32 %v21793_v48, %v6193_v33  ;;  %v6339_v26 = vpop.f32.mrb[24].mxu1  ;;  %v6195_v62 = vpop.f32.mrb[25].mxu0  ;;  %v6757_v16 = vshll.u32 %v21830_v36, 16 }
 0x510   :  { %v6429_v23 = vadd.f32 %v21796_v45, %v6339_v26  ;;  %v6428_v21 = vadd.f32 %v21799_v39, %v6195_v62  ;;  %v6341_v59 = vpop.f32.mrb[25].mxu1  ;;  %v6197_v19 = vpop.f32.mrb[26].mxu0  ;;  %v6769_v56 = vshll.u32 %v21834_v4, 16 }
 0x511   :  { %v6430_v46 = vadd.f32 %v21802_v9, %v6341_v59  ;;  %v6431_v10 = vadd.f32 %v21793_v48, %v6197_v19  ;;  %v6343_v27 = vpop.f32.mrb[26].mxu1  ;;  %v6199_v12 = vpop.f32.mrb[27].mxu0  ;;  %v6759_v54 = vrot.slane %v6757_v16, 1  ;;  %v6459_v32 = vmax.f32 %v6427_v15, 0.0 }
 0x512   :  { %v6433_v51 = vadd.f32 %v21796_v45, %v6343_v27  ;;  %v6432_v11 = vadd.f32 %v21799_v39, %v6199_v12  ;;  %v6345_v22 = vpop.f32.mrb[27].mxu1  ;;  %v6771_v53 = vrot.slane %v6769_v56, 1  ;;  %v6461_v34 = vmax.f32 %v6429_v23, 0.0  ;;  %v19829_v27 = vld [vmem:[#allocation9 + $0x644] ss:$16 sps:$4 sm:$0xff]  }
 0x513   :  { %v6463_v30 = vmax.f32 %v6431_v10, 0.0  ;;  %v6434_v28 = vadd.f32 %v21802_v9, %v6345_v22  ;;  %v6460_v17 = vmax.f32 %v6428_v21, 0.0  ;;  %v6462_v18 = vmax.f32 %v6430_v46, 0.0  ;;  %v19824_v21 = vld [vmem:[#allocation9 + $0x628] ss:$16 sps:$4 sm:$0xff]  }
 0x514   :  { %v6465_v47 = vmax.f32 %v6433_v51, 0.0  ;;  %v6464_v31 = vmax.f32 %v6432_v11, 0.0  ;;  %v6772_v38 = vsel %vm895_vm0, %v6767_v35, %v6771_v53  ;;  %v6760_v58 = vsel %vm895_vm0, %v6755_v14, %v6759_v54  ;;  %v19832_v12 = vld [vmem:[#allocation9 + $0x64c] ss:$16 sps:$4 sm:$0xff]  }
 0x515   :  { %v21850_v43 = vpack.c.bf16 %v6463_v30, %v6459_v32  ;;  %v6466_v29 = vmax.f32 %v6434_v28, 0.0  ;;  %7565 = vmatprep.mubr.bf16.mxu0 %v6772_v38  ;;  %7711 = vmatprep.mubr.bf16.mxu1 %v6772_v38  ;;  %v6797_v15 = vshrl.u32 %v21830_v36, 16  ;;  %v6805_v59 = vshrl.u32 %v21834_v4, 16  ;;  %v19838_v38 = vld [vmem:[#allocation9 + $0x66c] ss:$16 sps:$4 sm:$0xff]  }
 0x516   :  { %v21853_v0 = vpack.c.bf16 %v6465_v47, %v6461_v34  ;;  %v21855_v52 = vpack.c.bf16 %v6464_v31, %v6460_v17  ;;  %v6203_v5 = vpop.f32.mrb[28].mxu0  ;;  %7566 = vmatmul.mubr.bf16.vlgmr.msra.gmra.mrb[32].mxu0 %v6760_v58  ;;  %7712 = vmatmul.mubr.bf16.vlgmr.msra.gmra.mrb[32].mxu1 %v6760_v58 }
 0x517   :  { %v21858_v8 = vpack.c.bf16 %v6466_v29, %v6462_v18  ;;  %v6435_v6 = vadd.f32 %v21793_v48, %v6203_v5  ;;  %v6349_v24 = vpop.f32.mrb[28].mxu1  ;;  %v6205_v33 = vpop.f32.mrb[29].mxu0  ;;  %v6801_v26 = vshll.u32 %v21850_v43, 16  ;;  %7607 = vmatpush1.bf16.msra.mxu0 %v19815_v1  ;;  %7753 = vmatpush1.bf16.msra.mxu1 %v19818_v55  ;;  %v6799_v14 = vor.u32 %v6797_v15, %v6759_v54  ;;  %v19830_v54 = vld [vmem:[#allocation9 + $0x648] ss:$16 sps:$4 sm:$0xff]  }
 0x518   :  { %v6437_v62 = vadd.f32 %v21796_v45, %v6349_v24  ;;  %v6436_v13 = vadd.f32 %v21799_v39, %v6205_v33  ;;  %v6351_v16 = vpop.f32.mrb[29].mxu1  ;;  %v6207_v23 = vpop.f32.mrb[30].mxu0  ;;  %v6809_v19 = vshll.u32 %v21855_v52, 16  ;;  %7608 = vmatprep.subr.bf16.mxu0 %v19823_v50  ;;  %7754 = vmatprep.subr.bf16.mxu1 %v19826_v63  ;;  %v6807_v35 = vor.u32 %v6805_v59, %v6771_v53  ;;  %v19835_v29 = vld [vmem:[#allocation9 + $0x664] ss:$16 sps:$4 sm:$0xff]  }
 0x519   :  { %v6438_v25 = vadd.f32 %v21802_v9, %v6351_v16  ;;  %v6439_v56 = vadd.f32 %v21793_v48, %v6207_v23  ;;  %v6353_v46 = vpop.f32.mrb[30].mxu1  ;;  %v6209_v10 = vpop.f32.mrb[31].mxu0  ;;  %v6803_v32 = vrot.slane %v6801_v26, 1  ;;  %v6467_v30 = vmax.f32 %v6435_v6, 0.0  ;;  %v19827_v48 = vld [vmem:[#allocation9 + $0x640] ss:$16 sps:$4 sm:$0xff]  }
 0x51a   :  { %v6441_v51 = vadd.f32 %v21796_v45, %v6353_v46  ;;  %v6440_v11 = vadd.f32 %v21799_v39, %v6209_v10  ;;  %v6355_v22 = vpop.f32.mrb[31].mxu1  ;;  %v6811_v34 = vrot.slane %v6809_v19, 1  ;;  %v6469_v17 = vmax.f32 %v6437_v62, 0.0  ;;  %v19833_v6 = vld [vmem:[#allocation9 + $0x660] ss:$16 sps:$4 sm:$0xff]  }
 0x51b   :  { %v6471_v28 = vmax.f32 %v6439_v56, 0.0  ;;  %v6442_v1 = vadd.f32 %v21802_v9, %v6355_v22  ;;  %v6468_v47 = vmax.f32 %v6436_v13, 0.0  ;;  %7609 = vmatpush1.bf16.msra.mxu0 %v19821_v57  ;;  %7755 = vmatpush1.bf16.msra.mxu1 %v19824_v21  ;;  %v6470_v18 = vmax.f32 %v6438_v25, 0.0  ;;  %v19836_v24 = vld [vmem:[#allocation9 + $0x668] ss:$16 sps:$4 sm:$0xff]  }
 0x51c   :  { %v6473_v31 = vmax.f32 %v6441_v51, 0.0  ;;  %v6472_v55 = vmax.f32 %v6440_v11, 0.0  ;;  %v6812_v53 = vsel %vm895_vm0, %v6807_v35, %v6811_v34  ;;  %7610 = vmatprep.subr.bf16.mxu0 %v19829_v27  ;;  %7756 = vmatprep.subr.bf16.mxu1 %v19832_v12  ;;  %v6804_v63 = vsel %vm895_vm0, %v6799_v14, %v6803_v32  ;;  %v19841_v15 = vld [vmem:[#allocation9 + $0x684] ss:$16 sps:$4 sm:$0xff]   ;;  %v19844_v16 = vld [vmem:[#allocation9 + $0x68c] ss:$16 sps:$4 sm:$0xff]  }
 0x51d   :  { %v21872_v45 = vpack.c.bf16 %v6471_v28, %v6467_v30  ;;  %v6474_v39 = vmax.f32 %v6442_v1, 0.0  ;;  %7575 = vmatprep.mubr.bf16.mxu0 %v6812_v53  ;;  %7721 = vmatprep.mubr.bf16.mxu1 %v6812_v53  ;;  %v6837_v33 = vshrl.u32 %v21855_v52, 16  ;;  %v6829_v26 = vshrl.u32 %v21850_v43, 16  ;;  %v19839_v19 = vld [vmem:[#allocation9 + $0x680] ss:$16 sps:$4 sm:$0xff]  }
 0x51e   :  { %v21875_v9 = vpack.c.bf16 %v6473_v31, %v6469_v17  ;;  %v21877_v50 = vpack.c.bf16 %v6472_v55, %v6468_v47  ;;  %7576 = vmatmul.mubr.bf16.gmra.mrb[36].mxu0 %v6804_v63  ;;  %7722 = vmatmul.mubr.bf16.gmra.mrb[36].mxu1 %v6804_v63  ;;  %v19842_v25 = vld [vmem:[#allocation9 + $0x688] ss:$16 sps:$4 sm:$0xff]   ;;  %v19847_v12 = vld [vmem:[#allocation9 + $0x6a4] ss:$16 sps:$4 sm:$0xff]   ;;  %v19850_v14 = vld [vmem:[#allocation9 + $0x6ac] ss:$16 sps:$4 sm:$0xff]  }
 0x51f   :  { %v21880_v5 = vpack.c.bf16 %v6474_v39, %v6470_v18  ;;  %v6833_v58 = vshll.u32 %v21872_v45, 16  ;;  %7611 = vmatpush1.bf16.msra.mxu0 %v19827_v48  ;;  %7757 = vmatpush1.bf16.msra.mxu1 %v19830_v54  ;;  %v6839_v62 = vor.u32 %v6837_v33, %v6811_v34  ;;  %v6831_v56 = vor.u32 %v6829_v26, %v6803_v32  ;;  %v19845_v11 = vld [vmem:[#allocation9 + $0x6a0] ss:$16 sps:$4 sm:$0xff]   ;;  %v19848_v22 = vld [vmem:[#allocation9 + $0x6a8] ss:$16 sps:$4 sm:$0xff]  }
 0x520   :  { %v6841_v57 = vshll.u32 %v21877_v50, 16  ;;  %7612 = vmatprep.subr.bf16.mxu0 %v19835_v29  ;;  %7758 = vmatprep.subr.bf16.mxu1 %v19838_v38  ;;  %v6865_v21 = vshrl.u32 %v21877_v50, 16  ;;  %v6788_v51 = vshll.u32 %v21818_v37, 16  ;;  %v6861_v35 = vshrl.u32 %v21872_v45, 16  ;;  %v19853_v30 = vld [vmem:[#allocation9 + $0x6c4] ss:$16 sps:$4 sm:$0xff]  }
 0x521   :  { %v6835_v23 = vrot.slane %v6833_v58, 1  ;;  %v6793_v32 = vshll.u32 %v21836_v61, 16  ;;  %v19856_v28 = vld [vmem:[#allocation9 + $0x6cc] ss:$16 sps:$4 sm:$0xff]   ;;  %v19851_v48 = vld [vmem:[#allocation9 + $0x6c0] ss:$16 sps:$4 sm:$0xff]  }
 0x522   :  { %v6843_v13 = vrot.slane %v6841_v57, 1  ;;  %v6790_v34 = vrot.slane %v6788_v51, 1  ;;  %v19854_v17 = vld [vmem:[#allocation9 + $0x6c8] ss:$16 sps:$4 sm:$0xff]   ;;  %v6786_v47 = vshrl.u32 %v21818_v37, 16 }
 0x523   :  { %7613 = vmatpush1.bf16.msra.mxu0 %v19833_v6  ;;  %7759 = vmatpush1.bf16.msra.mxu1 %v19836_v24  ;;  %v6836_v10 = vsel %vm895_vm0, %v6831_v56, %v6835_v23  ;;  %v6863_v1 = vor.u32 %v6861_v35, %v6835_v23  ;;  %v21895_v31 = vrot.slane %v6793_v32, 1  ;;  %v19859_v18 = vld [vmem:[#allocation9 + $0x6e4] ss:$16 sps:$4 sm:$0xff]   ;;  %v19862_v39 = vld [vmem:[#allocation9 + $0x6ec] ss:$16 sps:$4 sm:$0xff]  }
 0x524   :  { %v6844_v59 = vsel %vm895_vm0, %v6839_v62, %v6843_v13  ;;  %v6867_v46 = vor.u32 %v6865_v21, %v6843_v13  ;;  %7614 = vmatprep.subr.bf16.mxu0 %v19841_v15  ;;  %7760 = vmatprep.subr.bf16.mxu1 %v19844_v16  ;;  %v6791_v54 = vor.u32 %v6790_v34, %v6786_v47  ;;  %v19857_v29 = vld [vmem:[#allocation9 + $0x6e0] ss:$16 sps:$4 sm:$0xff]   ;;  %v19860_v38 = vld [vmem:[#allocation9 + $0x6e8] ss:$16 sps:$4 sm:$0xff]   ;;  %v19865_v63 = vld [vmem:[#allocation9 + $0x704] ss:$16 sps:$4 sm:$0xff]  }
 0x525   :  { %7585 = vmatprep.mubr.bf16.mxu0 %v6844_v59  ;;  %7731 = vmatprep.mubr.bf16.mxu1 %v6844_v59  ;;  %v6864_v55 = vsel %vm895_vm0, %v6863_v1, %v21401_v7  ;;  %v19868_v58 = vld [vmem:[#allocation9 + $0x70c] ss:$16 sps:$4 sm:$0xff]   ;;  %v19863_v6 = vld [vmem:[#allocation9 + $0x700] ss:$16 sps:$4 sm:$0xff]   ;;  %v19866_v24 = vld [vmem:[#allocation9 + $0x708] ss:$16 sps:$4 sm:$0xff]  }
 0x526   :  { %v6868_v27 = vsel %vm895_vm0, %v6867_v46, %v21401_v7  ;;  %7586 = vmatmul.mubr.bf16.gmra.mrb[40].mxu0 %v6836_v10  ;;  %7732 = vmatmul.mubr.bf16.gmra.mrb[40].mxu1 %v6836_v10  ;;  %v6796_v53 = vsel %vm895_vm0, %v6791_v54, %v21895_v31  ;;  %v19871_v33 = vld [vmem:[#allocation9 + $0x724] ss:$16 sps:$4 sm:$0xff]   ;;  %v19874_v57 = vld [vmem:[#allocation9 + $0x72c] ss:$16 sps:$4 sm:$0xff]   ;;  %v19869_v15 = vld [vmem:[#allocation9 + $0x720] ss:$16 sps:$4 sm:$0xff]  }
 0x527   :  { %7615 = vmatpush1.bf16.msra.mxu0 %v19839_v19  ;;  %7761 = vmatpush1.bf16.msra.mxu1 %v19842_v25  ;;  %v19872_v26 = vld [vmem:[#allocation9 + $0x728] ss:$16 sps:$4 sm:$0xff]   ;;  %v19877_v62 = vld [vmem:[#allocation9 + $0x744] ss:$16 sps:$4 sm:$0xff]   ;;  %v19880_v13 = vld [vmem:[#allocation9 + $0x74c] ss:$16 sps:$4 sm:$0xff]  }
 0x528   :  { %7595 = vmatprep.mubr.bf16.mxu0 %v6868_v27  ;;  %7741 = vmatprep.mubr.bf16.mxu1 %v6868_v27  ;;  %v19875_v16 = vld [vmem:[#allocation9 + $0x740] ss:$16 sps:$4 sm:$0xff]   ;;  %v19878_v23 = vld [vmem:[#allocation9 + $0x748] ss:$16 sps:$4 sm:$0xff]   ;;  %v19883_v21 = vld [vmem:[#allocation9 + $0x764] ss:$16 sps:$4 sm:$0xff]  }
 0x529   :  { %7616 = vmatprep.subr.bf16.mxu0 %v19847_v12  ;;  %7762 = vmatprep.subr.bf16.mxu1 %v19850_v14  ;;  %v19886_v59 = vld [vmem:[#allocation9 + $0x76c] ss:$16 sps:$4 sm:$0xff]   ;;  %v19881_v19 = vld [vmem:[#allocation9 + $0x760] ss:$16 sps:$4 sm:$0xff]   ;;  %v19884_v25 = vld [vmem:[#allocation9 + $0x768] ss:$16 sps:$4 sm:$0xff]  }
 0x52a   :  { %v19889_v56 = vld [vmem:[#allocation9 + $0x784] ss:$16 sps:$4 sm:$0xff]   ;;  %v19892_v46 = vld [vmem:[#allocation9 + $0x78c] ss:$16 sps:$4 sm:$0xff]   ;;  %v19887_v10 = vld [vmem:[#allocation9 + $0x780] ss:$16 sps:$4 sm:$0xff]  }
 0x52b   :  { %7617 = vmatpush1.bf16.msra.mxu0 %v19845_v11  ;;  %7763 = vmatpush1.bf16.msra.mxu1 %v19848_v22  ;;  %v19890_v27 = vld [vmem:[#allocation9 + $0x788] ss:$16 sps:$4 sm:$0xff]   ;;  %v19895_v12 = vld [vmem:[#allocation9 + $0x7a4] ss:$16 sps:$4 sm:$0xff]   ;;  %v19898_v14 = vld [vmem:[#allocation9 + $0x7ac] ss:$16 sps:$4 sm:$0xff]  }
 0x52c   :  { %7618 = vmatprep.subr.bf16.mxu0 %v19853_v30  ;;  %7764 = vmatprep.subr.bf16.mxu1 %v19856_v28  ;;  %v19893_v51 = vld [vmem:[#allocation9 + $0x7a0] ss:$16 sps:$4 sm:$0xff]   ;;  %v19896_v11 = vld [vmem:[#allocation9 + $0x7a8] ss:$16 sps:$4 sm:$0xff]   ;;  %v19901_v22 = vld [vmem:[#allocation9 + $0x7c4] ss:$16 sps:$4 sm:$0xff]  }
 0x52d   :  { %v19904_v35 = vld [vmem:[#allocation9 + $0x7cc] ss:$16 sps:$4 sm:$0xff]   ;;  %v19899_v32 = vld [vmem:[#allocation9 + $0x7c0] ss:$16 sps:$4 sm:$0xff]   ;;  %v19902_v30 = vld [vmem:[#allocation9 + $0x7c8] ss:$16 sps:$4 sm:$0xff]  }
 0x52e   :  { %7596 = vmatmul.mubr.bf16.gmra.mrb[44].mxu0 %v6864_v55  ;;  %7742 = vmatmul.mubr.bf16.gmra.mrb[44].mxu1 %v6864_v55  ;;  %v6776_v28 = vshll.u32 %v21814_v41, 16  ;;  %v19907_v1 = vld [vmem:[#allocation9 + $0x7e4] ss:$16 sps:$4 sm:$0xff]   ;;  %v19910_v34 = vld [vmem:[#allocation9 + $0x7ec] ss:$16 sps:$4 sm:$0xff]  }
 0x52f   :  { %7619 = vmatpush1.bf16.msra.mxu0 %v19851_v48  ;;  %7765 = vmatpush1.bf16.msra.mxu1 %v19854_v17  ;;  %v6781_v48 = vshll.u32 %v21832_v20, 16  ;;  %v6825_v17 = vshll.u32 %v21858_v8, 16  ;;  %v19905_v47 = vld [vmem:[#allocation9 + $0x7e0] ss:$16 sps:$4 sm:$0xff]   ;;  %v19908_v55 = vld [vmem:[#allocation9 + $0x7e8] ss:$16 sps:$4 sm:$0xff]  }
 0x530   :  { %7638 = vmatprep.mubr.bf16.mxu0 %v6796_v53  ;;  %7784 = vmatprep.mubr.bf16.mxu1 %v6796_v53  ;;  %v6778_v54 = vrot.slane %v6776_v28, 1  ;;  %v6774_v53 = vshrl.u32 %v21814_v41, 16  ;;  %v19932_v28 = vld [vmem:[#allocation9 + $0x68] ss:$16 sps:$4 sm:$0xff]  }
 0x531   :  { %7620 = vmatprep.subr.bf16.mxu0 %v19859_v18  ;;  %7766 = vmatprep.subr.bf16.mxu1 %v19862_v39  ;;  %v19913_v18 = vld [vmem:[#allocation9 + $0x4] ss:$16 sps:$4 sm:$0xff]   ;;  %v19916_v39 = vld [vmem:[#allocation9 + $0xc] ss:$16 sps:$4 sm:$0xff]  }
 0x533   :  { %7621 = vmatpush1.bf16.msra.mxu0 %v19857_v29  ;;  %7767 = vmatpush1.bf16.msra.mxu1 %v19860_v38  ;;  %v6783_v29 = vrot.slane %v6781_v48, 1  ;;  %v6821_v38 = vshrl.u32 %v21836_v61, 16 }
 0x534   :  { %7622 = vmatprep.subr.bf16.mxu0 %v19865_v63  ;;  %7768 = vmatprep.subr.bf16.mxu1 %v19868_v58  ;;  %v6827_v63 = vrot.slane %v6825_v17, 1  ;;  %v6779_v58 = vor.u32 %v6778_v54, %v6774_v53  ;;  %v19937_v17 = vld [vmem:[#allocation9 + $0x84] ss:$16 sps:$4 sm:$0xff]  }
 0x537   :  { %7623 = vmatpush1.bf16.msra.mxu0 %v19863_v6  ;;  %7769 = vmatpush1.bf16.msra.mxu1 %v19866_v24  ;;  %v19911_v6 = vld [vmem:[#allocation9] ss:$16 sps:$4 sm:$0xff]   ;;  %v19914_v24 = vld [vmem:[#allocation9 + $0x8] ss:$16 sps:$4 sm:$0xff]  }
 0x538   :  { %7624 = vmatprep.subr.bf16.mxu0 %v19871_v33  ;;  %7770 = vmatprep.subr.bf16.mxu1 %v19874_v57  ;;  %v6823_v33 = vor.u32 %v6821_v38, %v21895_v31  ;;  %v6784_v57 = vsel %vm895_vm0, %v6779_v58, %v6783_v29  ;;  %v6813_v31 = vshrl.u32 %v21832_v20, 16  ;;  %v19946_v38 = vld [vmem:[#allocation9 + $0xac] ss:$16 sps:$4 sm:$0xff]   ;;  %v6869_v58 = vshrl.u32 %v21875_v9, 16 }
 0x53b   :  { %7625 = vmatpush1.bf16.msra.mxu0 %v19869_v15  ;;  %7771 = vmatpush1.bf16.msra.mxu1 %v19872_v26  ;;  %v19919_v15 = vld [vmem:[#allocation9 + $0x24] ss:$16 sps:$4 sm:$0xff]   ;;  %v19922_v26 = vld [vmem:[#allocation9 + $0x2c] ss:$16 sps:$4 sm:$0xff]  }
 0x53c   :  { %7626 = vmatprep.subr.bf16.mxu0 %v19877_v62  ;;  %7772 = vmatprep.subr.bf16.mxu1 %v19880_v13  ;;  %v6817_v62 = vshll.u32 %v21853_v0, 16  ;;  %v6828_v13 = vsel %vm895_vm0, %v6823_v33, %v6827_v63 }
 0x53f   :  { %7627 = vmatpush1.bf16.msra.mxu0 %v19875_v16  ;;  %7773 = vmatpush1.bf16.msra.mxu1 %v19878_v23  ;;  %v6857_v16 = vshll.u32 %v21880_v5, 16  ;;  %v19917_v23 = vld [vmem:[#allocation9 + $0x20] ss:$16 sps:$4 sm:$0xff]  }
 0x540   :  { %7628 = vmatprep.subr.bf16.mxu0 %v19883_v21  ;;  %7774 = vmatprep.subr.bf16.mxu1 %v19886_v59  ;;  %v19920_v21 = vld [vmem:[#allocation9 + $0x28] ss:$16 sps:$4 sm:$0xff]   ;;  %v6819_v59 = vrot.slane %v6817_v62, 1 }
 0x541   :  { %v19950_v62 = vld [vmem:[#allocation9 + $0xc8] ss:$16 sps:$4 sm:$0xff]  }
 0x543   :  { %7629 = vmatpush1.bf16.msra.mxu0 %v19881_v19  ;;  %7775 = vmatpush1.bf16.msra.mxu1 %v19884_v25  ;;  %v19925_v19 = vld [vmem:[#allocation9 + $0x44] ss:$16 sps:$4 sm:$0xff]   ;;  %v19928_v25 = vld [vmem:[#allocation9 + $0x4c] ss:$16 sps:$4 sm:$0xff]  }
 0x544   :  { %7630 = vmatprep.subr.bf16.mxu0 %v19889_v56  ;;  %7776 = vmatprep.subr.bf16.mxu1 %v19892_v46  ;;  %v6853_v56 = vshrl.u32 %v21858_v8, 16  ;;  %v6859_v46 = vrot.slane %v6857_v16, 1  ;;  %v19955_v16 = vld [vmem:[#allocation9 + $0xe4] ss:$16 sps:$4 sm:$0xff]  }
 0x547   :  { %7631 = vmatpush1.bf16.msra.mxu0 %v19887_v10  ;;  %7777 = vmatpush1.bf16.msra.mxu1 %v19890_v27  ;;  %v6815_v10 = vor.u32 %v6813_v31, %v6783_v29  ;;  %v19923_v27 = vld [vmem:[#allocation9 + $0x40] ss:$16 sps:$4 sm:$0xff]   ;;  %v19943_v29 = vld [vmem:[#allocation9 + $0xa4] ss:$16 sps:$4 sm:$0xff]   ;;  %v19956_v31 = vld [vmem:[#allocation9 + $0xe8] ss:$16 sps:$4 sm:$0xff]  }
 0x548   :  { %7632 = vmatprep.subr.bf16.mxu0 %v19895_v12  ;;  %7778 = vmatprep.subr.bf16.mxu1 %v19898_v14  ;;  %v19926_v12 = vld [vmem:[#allocation9 + $0x48] ss:$16 sps:$4 sm:$0xff]   ;;  %v6855_v14 = vor.u32 %v6853_v56, %v6827_v63  ;;  %v19967_v56 = vld [vmem:[#allocation9 + $0x124] ss:$16 sps:$4 sm:$0xff]  }
 0x54b   :  { %7633 = vmatpush1.bf16.msra.mxu0 %v19893_v51  ;;  %7779 = vmatpush1.bf16.msra.mxu1 %v19896_v11  ;;  %v6820_v51 = vsel %vm895_vm0, %v6815_v10, %v6819_v59  ;;  %v19931_v11 = vld [vmem:[#allocation9 + $0x64] ss:$16 sps:$4 sm:$0xff]   ;;  %v19965_v10 = vld [vmem:[#allocation9 + $0x120] ss:$16 sps:$4 sm:$0xff]  }
 0x54c   :  { %7634 = vmatprep.subr.bf16.mxu0 %v19901_v22  ;;  %7780 = vmatprep.subr.bf16.mxu1 %v19904_v35  ;;  %v19934_v22 = vld [vmem:[#allocation9 + $0x6c] ss:$16 sps:$4 sm:$0xff]   ;;  %v6849_v35 = vshll.u32 %v21875_v9, 16 }
 0x54e   :  { %v6851_v48 = vrot.slane %v6849_v35, 1  ;;  %v19982_v35 = vld [vmem:[#allocation9 + $0x16c] ss:$16 sps:$4 sm:$0xff]  }
 0x54f   :  { %7635 = vmatpush1.bf16.msra.mxu0 %v19899_v32  ;;  %7781 = vmatpush1.bf16.msra.mxu1 %v19902_v30  ;;  %v6860_v32 = vsel %vm895_vm0, %v6855_v14, %v6859_v46  ;;  %v19929_v30 = vld [vmem:[#allocation9 + $0x60] ss:$16 sps:$4 sm:$0xff]   ;;  %v19976_v14 = vld [vmem:[#allocation9 + $0x14c] ss:$16 sps:$4 sm:$0xff]  }
 0x550   :  { %7636 = vmatprep.subr.bf16.mxu0 %v19907_v1  ;;  %7782 = vmatprep.subr.bf16.mxu1 %v19910_v34  ;;  %v6873_v1 = vshrl.u32 %v21880_v5, 16  ;;  %v6845_v34 = vshrl.u32 %v21853_v0, 16  ;;  %v6871_v33 = vor.u32 %v6869_v58, %v6851_v48  ;;  %v20001_v58 = vld [vmem:[#allocation9 + $0x1e0] ss:$16 sps:$4 sm:$0xff]  }
 0x552   :  { %v6847_v54 = vor.u32 %v6845_v34, %v6819_v59  ;;  %v19961_v59 = vld [vmem:[#allocation9 + $0x104] ss:$16 sps:$4 sm:$0xff]   ;;  %v19983_v34 = vld [vmem:[#allocation9 + $0x180] ss:$16 sps:$4 sm:$0xff]  }
 0x553   :  { %7637 = vmatpush1.bf16.msra.mxu0 %v19905_v47  ;;  %7783 = vmatpush1.bf16.msra.mxu1 %v19908_v55  ;;  %v19940_v47 = vld [vmem:[#allocation9 + $0x8c] ss:$16 sps:$4 sm:$0xff]   ;;  %v6875_v55 = vor.u32 %v6873_v1, %v6859_v46 }
 0x554   :  { %8465 = vmatprep.subr.bf16.mxu0 %v19913_v18  ;;  %8611 = vmatprep.subr.bf16.mxu1 %v19916_v39  ;;  %v19935_v18 = vld [vmem:[#allocation9 + $0x80] ss:$16 sps:$4 sm:$0xff]   ;;  %v19938_v39 = vld [vmem:[#allocation9 + $0x88] ss:$16 sps:$4 sm:$0xff]   ;;  %v6852_v53 = vsel %vm895_vm0, %v6847_v54, %v6851_v48  ;;  %v19970_v46 = vld [vmem:[#allocation9 + $0x12c] ss:$16 sps:$4 sm:$0xff]  }
 0x555   :  { %v6876_v63 = vsel %vm895_vm0, %v6875_v55, %v21401_v7  ;;  %v19988_v1 = vld [vmem:[#allocation9 + $0x18c] ss:$16 sps:$4 sm:$0xff]   ;;  %v19986_v48 = vld [vmem:[#allocation9 + $0x188] ss:$16 sps:$4 sm:$0xff]   ;;  %v19989_v55 = vld [vmem:[#allocation9 + $0x1a0] ss:$16 sps:$4 sm:$0xff]  }
 0x556   :  { %7639 = vmatmul.mubr.bf16.vlgmr.msra.gmra.mrb[32].mxu0 %v6784_v57  ;;  %7785 = vmatmul.mubr.bf16.vlgmr.msra.gmra.mrb[32].mxu1 %v6784_v57  ;;  %v19949_v57 = vld [vmem:[#allocation9 + $0xc4] ss:$16 sps:$4 sm:$0xff]   ;;  %v19992_v54 = vld [vmem:[#allocation9 + $0x1a8] ss:$16 sps:$4 sm:$0xff]  }
 0x557   :  { %7648 = vmatprep.mubr.bf16.mxu0 %v6828_v13  ;;  %7794 = vmatprep.mubr.bf16.mxu1 %v6828_v13  ;;  %v6872_v13 = vsel %vm895_vm0, %v6871_v33, %v21401_v7  ;;  %v19959_v7 = vld [vmem:[#allocation9 + $0x100] ss:$16 sps:$4 sm:$0xff]   ;;  %v20012_v33 = vld [vmem:[#allocation9 + $0x20c] ss:$16 sps:$4 sm:$0xff]  }
 0x558   :  { %8466 = vmatpush1.bf16.msra.mxu0 %v19911_v6  ;;  %8612 = vmatpush1.bf16.msra.mxu1 %v19914_v24  ;;  %v19941_v6 = vld [vmem:[#allocation9 + $0xa0] ss:$16 sps:$4 sm:$0xff]   ;;  %v19944_v24 = vld [vmem:[#allocation9 + $0xa8] ss:$16 sps:$4 sm:$0xff]  }
 0x559   :  { %8467 = vmatprep.subr.bf16.mxu0 %v19919_v15  ;;  %8613 = vmatprep.subr.bf16.mxu1 %v19922_v26  ;;  %v19952_v15 = vld [vmem:[#allocation9 + $0xcc] ss:$16 sps:$4 sm:$0xff]   ;;  %v19947_v26 = vld [vmem:[#allocation9 + $0xc0] ss:$16 sps:$4 sm:$0xff]  }
 0x55c   :  { %8468 = vmatpush1.bf16.msra.mxu0 %v19917_v23  ;;  %8614 = vmatpush1.bf16.msra.mxu1 %v19920_v21  ;;  %v19958_v23 = vld [vmem:[#allocation9 + $0xec] ss:$16 sps:$4 sm:$0xff]   ;;  %v19953_v21 = vld [vmem:[#allocation9 + $0xe0] ss:$16 sps:$4 sm:$0xff]  }
 0x55d   :  { %8469 = vmatprep.subr.bf16.mxu0 %v19925_v19  ;;  %8615 = vmatprep.subr.bf16.mxu1 %v19928_v25  ;;  %v19964_v19 = vld [vmem:[#allocation9 + $0x10c] ss:$16 sps:$4 sm:$0xff]   ;;  %v19962_v25 = vld [vmem:[#allocation9 + $0x108] ss:$16 sps:$4 sm:$0xff]  }
 0x55e   :  { %7649 = vmatmul.mubr.bf16.gmra.mrb[36].mxu0 %v6820_v51  ;;  %7795 = vmatmul.mubr.bf16.gmra.mrb[36].mxu1 %v6820_v51  ;;  %v19971_v51 = vld [vmem:[#allocation9 + $0x140] ss:$16 sps:$4 sm:$0xff]  }
 0x55f   :  { %7658 = vmatprep.mubr.bf16.mxu0 %v6860_v32  ;;  %7804 = vmatprep.mubr.bf16.mxu1 %v6860_v32  ;;  %v19977_v32 = vld [vmem:[#allocation9 + $0x160] ss:$16 sps:$4 sm:$0xff]  }
 0x560   :  { %8470 = vmatpush1.bf16.msra.mxu0 %v19923_v27  ;;  %8616 = vmatpush1.bf16.msra.mxu1 %v19926_v12  ;;  %v19968_v27 = vld [vmem:[#allocation9 + $0x128] ss:$16 sps:$4 sm:$0xff]   ;;  %v19973_v12 = vld [vmem:[#allocation9 + $0x144] ss:$16 sps:$4 sm:$0xff]  }
 0x561   :  { %8471 = vmatprep.subr.bf16.mxu0 %v19931_v11  ;;  %8617 = vmatprep.subr.bf16.mxu1 %v19934_v22  ;;  %v19974_v11 = vld [vmem:[#allocation9 + $0x148] ss:$16 sps:$4 sm:$0xff]   ;;  %v19979_v22 = vld [vmem:[#allocation9 + $0x164] ss:$16 sps:$4 sm:$0xff]  }
 0x564   :  { %8472 = vmatpush1.bf16.msra.mxu0 %v19929_v30  ;;  %8618 = vmatpush1.bf16.msra.mxu1 %v19932_v28  ;;  %v19980_v30 = vld [vmem:[#allocation9 + $0x168] ss:$16 sps:$4 sm:$0xff]   ;;  %v19985_v28 = vld [vmem:[#allocation9 + $0x184] ss:$16 sps:$4 sm:$0xff]  }
 0x565   :  { %8473 = vmatprep.subr.bf16.mxu0 %v19937_v17  ;;  %8619 = vmatprep.subr.bf16.mxu1 %v19940_v47  ;;  %v19991_v17 = vld [vmem:[#allocation9 + $0x1a4] ss:$16 sps:$4 sm:$0xff]   ;;  %v19994_v47 = vld [vmem:[#allocation9 + $0x1ac] ss:$16 sps:$4 sm:$0xff]  }
 0x566   :  { %7659 = vmatmul.mubr.bf16.gmra.mrb[40].mxu0 %v6852_v53  ;;  %7805 = vmatmul.mubr.bf16.gmra.mrb[40].mxu1 %v6852_v53  ;;  %v19995_v53 = vld [vmem:[#allocation9 + $0x1c0] ss:$16 sps:$4 sm:$0xff]  }
 0x567   :  { %7668 = vmatprep.mubr.bf16.mxu0 %v6876_v63  ;;  %7814 = vmatprep.mubr.bf16.mxu1 %v6876_v63  ;;  %v20006_v63 = vld [vmem:[#allocation9 + $0x1ec] ss:$16 sps:$4 sm:$0xff]  }
 0x568   :  { %8474 = vmatpush1.bf16.msra.mxu0 %v19935_v18  ;;  %8620 = vmatpush1.bf16.msra.mxu1 %v19938_v39  ;;  %v19997_v18 = vld [vmem:[#allocation9 + $0x1c4] ss:$16 sps:$4 sm:$0xff]   ;;  %v20000_v39 = vld [vmem:[#allocation9 + $0x1cc] ss:$16 sps:$4 sm:$0xff]  }
 0x569   :  { %8475 = vmatprep.subr.bf16.mxu0 %v19943_v29  ;;  %8621 = vmatprep.subr.bf16.mxu1 %v19946_v38  ;;  %v19998_v29 = vld [vmem:[#allocation9 + $0x1c8] ss:$16 sps:$4 sm:$0xff]   ;;  %v20003_v38 = vld [vmem:[#allocation9 + $0x1e4] ss:$16 sps:$4 sm:$0xff]  }
 0x56c   :  { %8476 = vmatpush1.bf16.msra.mxu0 %v19941_v6  ;;  %8622 = vmatpush1.bf16.msra.mxu1 %v19944_v24  ;;  %v20004_v6 = vld [vmem:[#allocation9 + $0x1e8] ss:$16 sps:$4 sm:$0xff]   ;;  %v20009_v24 = vld [vmem:[#allocation9 + $0x204] ss:$16 sps:$4 sm:$0xff]  }
 0x56d   :  { %8477 = vmatprep.subr.bf16.mxu0 %v19949_v57  ;;  %8623 = vmatprep.subr.bf16.mxu1 %v19952_v15  ;;  %v20007_v57 = vld [vmem:[#allocation9 + $0x200] ss:$16 sps:$4 sm:$0xff]   ;;  %v20010_v15 = vld [vmem:[#allocation9 + $0x208] ss:$16 sps:$4 sm:$0xff]  }
 0x56e   :  { %7669 = vmatmul.mubr.bf16.gmra.mrb[44].mxu0 %v6872_v13  ;;  %7815 = vmatmul.mubr.bf16.gmra.mrb[44].mxu1 %v6872_v13  ;;  %v20013_v13 = vld [vmem:[#allocation9 + $0x220] ss:$16 sps:$4 sm:$0xff]  }
 0x56f   :  { %8497 = vmatprep.mubr.bf16.mxu0 %v21816_v2  ;;  %8643 = vmatprep.mubr.bf16.mxu1 %v21816_v2 }
 0x570   :  { %8478 = vmatpush1.bf16.msra.mxu0 %v19947_v26  ;;  %8624 = vmatpush1.bf16.msra.mxu1 %v19950_v62  ;;  %v20015_v26 = vld [vmem:[#allocation9 + $0x224] ss:$16 sps:$4 sm:$0xff]   ;;  %v20018_v62 = vld [vmem:[#allocation9 + $0x22c] ss:$16 sps:$4 sm:$0xff]  }
 0x571   :  { %8479 = vmatprep.subr.bf16.mxu0 %v19955_v16  ;;  %8625 = vmatprep.subr.bf16.mxu1 %v19958_v23  ;;  %v20016_v16 = vld [vmem:[#allocation9 + $0x228] ss:$16 sps:$4 sm:$0xff]   ;;  %v20021_v23 = vld [vmem:[#allocation9 + $0x244] ss:$16 sps:$4 sm:$0xff]  }
 0x574   :  { %8480 = vmatpush1.bf16.msra.mxu0 %v19953_v21  ;;  %8626 = vmatpush1.bf16.msra.mxu1 %v19956_v31  ;;  %v20024_v21 = vld [vmem:[#allocation9 + $0x24c] ss:$16 sps:$4 sm:$0xff]   ;;  %v20019_v31 = vld [vmem:[#allocation9 + $0x240] ss:$16 sps:$4 sm:$0xff]  }
 0x575   :  { %8481 = vmatprep.subr.bf16.mxu0 %v19961_v59  ;;  %8627 = vmatprep.subr.bf16.mxu1 %v19964_v19  ;;  %v20022_v59 = vld [vmem:[#allocation9 + $0x248] ss:$16 sps:$4 sm:$0xff]   ;;  %v20027_v19 = vld [vmem:[#allocation9 + $0x264] ss:$16 sps:$4 sm:$0xff]  }
 0x578   :  { %8482 = vmatpush1.bf16.msra.mxu0 %v19959_v7  ;;  %8628 = vmatpush1.bf16.msra.mxu1 %v19962_v25  ;;  %v20030_v7 = vld [vmem:[#allocation9 + $0x26c] ss:$16 sps:$4 sm:$0xff]   ;;  %v20025_v25 = vld [vmem:[#allocation9 + $0x260] ss:$16 sps:$4 sm:$0xff]  }
 0x579   :  { %8483 = vmatprep.subr.bf16.mxu0 %v19967_v56  ;;  %8629 = vmatprep.subr.bf16.mxu1 %v19970_v46  ;;  %v20028_v56 = vld [vmem:[#allocation9 + $0x268] ss:$16 sps:$4 sm:$0xff]   ;;  %v20033_v46 = vld [vmem:[#allocation9 + $0x284] ss:$16 sps:$4 sm:$0xff]  }
 0x57c   :  { %8484 = vmatpush1.bf16.msra.mxu0 %v19965_v10  ;;  %8630 = vmatpush1.bf16.msra.mxu1 %v19968_v27  ;;  %v20036_v10 = vld [vmem:[#allocation9 + $0x28c] ss:$16 sps:$4 sm:$0xff]   ;;  %v20031_v27 = vld [vmem:[#allocation9 + $0x280] ss:$16 sps:$4 sm:$0xff]  }
 0x57d   :  { %8485 = vmatprep.subr.bf16.mxu0 %v19973_v12  ;;  %8631 = vmatprep.subr.bf16.mxu1 %v19976_v14  ;;  %v20034_v12 = vld [vmem:[#allocation9 + $0x288] ss:$16 sps:$4 sm:$0xff]   ;;  %v20039_v14 = vld [vmem:[#allocation9 + $0x2a4] ss:$16 sps:$4 sm:$0xff]  }
 0x580   :  { %8486 = vmatpush1.bf16.msra.mxu0 %v19971_v51  ;;  %8632 = vmatpush1.bf16.msra.mxu1 %v19974_v11  ;;  %v20042_v51 = vld [vmem:[#allocation9 + $0x2ac] ss:$16 sps:$4 sm:$0xff]   ;;  %v20037_v11 = vld [vmem:[#allocation9 + $0x2a0] ss:$16 sps:$4 sm:$0xff]  }
 0x581   :  { %8487 = vmatprep.subr.bf16.mxu0 %v19979_v22  ;;  %8633 = vmatprep.subr.bf16.mxu1 %v19982_v35  ;;  %v20040_v22 = vld [vmem:[#allocation9 + $0x2a8] ss:$16 sps:$4 sm:$0xff]   ;;  %v20045_v35 = vld [vmem:[#allocation9 + $0x2c4] ss:$16 sps:$4 sm:$0xff]  }
 0x584   :  { %8488 = vmatpush1.bf16.msra.mxu0 %v19977_v32  ;;  %8634 = vmatpush1.bf16.msra.mxu1 %v19980_v30  ;;  %v20048_v32 = vld [vmem:[#allocation9 + $0x2cc] ss:$16 sps:$4 sm:$0xff]   ;;  %v20043_v30 = vld [vmem:[#allocation9 + $0x2c0] ss:$16 sps:$4 sm:$0xff]  }
 0x585   :  { %8489 = vmatprep.subr.bf16.mxu0 %v19985_v28  ;;  %8635 = vmatprep.subr.bf16.mxu1 %v19988_v1  ;;  %v20046_v28 = vld [vmem:[#allocation9 + $0x2c8] ss:$16 sps:$4 sm:$0xff]   ;;  %v20051_v1 = vld [vmem:[#allocation9 + $0x2e4] ss:$16 sps:$4 sm:$0xff]  }
 0x588   :  { %8490 = vmatpush1.bf16.msra.mxu0 %v19983_v34  ;;  %8636 = vmatpush1.bf16.msra.mxu1 %v19986_v48  ;;  %v20054_v34 = vld [vmem:[#allocation9 + $0x2ec] ss:$16 sps:$4 sm:$0xff]   ;;  %v20049_v48 = vld [vmem:[#allocation9 + $0x2e0] ss:$16 sps:$4 sm:$0xff]  }
 0x589   :  { %8491 = vmatprep.subr.bf16.mxu0 %v19991_v17  ;;  %8637 = vmatprep.subr.bf16.mxu1 %v19994_v47  ;;  %v20052_v17 = vld [vmem:[#allocation9 + $0x2e8] ss:$16 sps:$4 sm:$0xff]   ;;  %v20057_v47 = vld [vmem:[#allocation9 + $0x304] ss:$16 sps:$4 sm:$0xff]  }
 0x58c   :  { %8492 = vmatpush1.bf16.msra.mxu0 %v19989_v55  ;;  %8638 = vmatpush1.bf16.msra.mxu1 %v19992_v54  ;;  %v20060_v55 = vld [vmem:[#allocation9 + $0x30c] ss:$16 sps:$4 sm:$0xff]   ;;  %v20055_v54 = vld [vmem:[#allocation9 + $0x300] ss:$16 sps:$4 sm:$0xff]  }
 0x58d   :  { %8493 = vmatprep.subr.bf16.mxu0 %v19997_v18  ;;  %8639 = vmatprep.subr.bf16.mxu1 %v20000_v39  ;;  %v20058_v18 = vld [vmem:[#allocation9 + $0x308] ss:$16 sps:$4 sm:$0xff]   ;;  %v20063_v39 = vld [vmem:[#allocation9 + $0x324] ss:$16 sps:$4 sm:$0xff]  }
 0x590   :  { %8494 = vmatpush1.bf16.msra.mxu0 %v19995_v53  ;;  %8640 = vmatpush1.bf16.msra.mxu1 %v19998_v29  ;;  %v20066_v53 = vld [vmem:[#allocation9 + $0x32c] ss:$16 sps:$4 sm:$0xff]   ;;  %v20061_v29 = vld [vmem:[#allocation9 + $0x320] ss:$16 sps:$4 sm:$0xff]  }
 0x591   :  { %8495 = vmatprep.subr.bf16.mxu0 %v20003_v38  ;;  %8641 = vmatprep.subr.bf16.mxu1 %v20006_v63  ;;  %v20064_v38 = vld [vmem:[#allocation9 + $0x328] ss:$16 sps:$4 sm:$0xff]   ;;  %v20069_v63 = vld [vmem:[#allocation9 + $0x344] ss:$16 sps:$4 sm:$0xff]  }
 0x594   :  { %8496 = vmatpush1.bf16.msra.mxu0 %v20001_v58  ;;  %8642 = vmatpush1.bf16.msra.mxu1 %v20004_v6  ;;  %v20072_v58 = vld [vmem:[#allocation9 + $0x34c] ss:$16 sps:$4 sm:$0xff]   ;;  %v20067_v6 = vld [vmem:[#allocation9 + $0x340] ss:$16 sps:$4 sm:$0xff]  }
 0x595   :  { %8538 = vmatprep.subr.bf16.mxu0 %v20009_v24  ;;  %8684 = vmatprep.subr.bf16.mxu1 %v20012_v33  ;;  %v20070_v24 = vld [vmem:[#allocation9 + $0x348] ss:$16 sps:$4 sm:$0xff]   ;;  %v20075_v33 = vld [vmem:[#allocation9 + $0x364] ss:$16 sps:$4 sm:$0xff]  }
 0x597   :  { %8498 = vmatmul.mubr.bf16.vlgmr.msra.gmra.mrb[32].mxu0 %v21812_v40  ;;  %8644 = vmatmul.mubr.bf16.vlgmr.msra.gmra.mrb[32].mxu1 %v21812_v40 }
 0x598   :  { %8507 = vmatprep.mubr.bf16.mxu0 %v21834_v4  ;;  %8539 = vmatpush1.bf16.msra.mxu0 %v20007_v57  ;;  %v20078_v57 = vld [vmem:[#allocation9 + $0x36c] ss:$16 sps:$4 sm:$0xff]  }
 0x599   :  { %8653 = vmatprep.mubr.bf16.mxu1 %v21834_v4  ;;  %8685 = vmatpush1.bf16.msra.mxu1 %v20010_v15  ;;  %v20073_v15 = vld [vmem:[#allocation9 + $0x360] ss:$16 sps:$4 sm:$0xff]  }
 0x59a   :  { %8540 = vmatprep.subr.bf16.mxu0 %v20015_v26  ;;  %8686 = vmatprep.subr.bf16.mxu1 %v20018_v62  ;;  %v20076_v26 = vld [vmem:[#allocation9 + $0x368] ss:$16 sps:$4 sm:$0xff]   ;;  %v20081_v62 = vld [vmem:[#allocation9 + $0x384] ss:$16 sps:$4 sm:$0xff]  }
 0x59c   :  { %8541 = vmatpush1.bf16.msra.mxu0 %v20013_v13  ;;  %v20084_v13 = vld [vmem:[#allocation9 + $0x38c] ss:$16 sps:$4 sm:$0xff]  }
 0x59d   :  { %8687 = vmatpush1.bf16.msra.mxu1 %v20016_v16  ;;  %8542 = vmatprep.subr.bf16.mxu0 %v20021_v23  ;;  %v20079_v16 = vld [vmem:[#allocation9 + $0x380] ss:$16 sps:$4 sm:$0xff]   ;;  %v20082_v23 = vld [vmem:[#allocation9 + $0x388] ss:$16 sps:$4 sm:$0xff]  }
 0x59e   :  { %8688 = vmatprep.subr.bf16.mxu1 %v20024_v21  ;;  %v20087_v21 = vld [vmem:[#allocation9 + $0x3a4] ss:$16 sps:$4 sm:$0xff]  }
 0x59f   :  { %8508 = vmatmul.mubr.bf16.gmra.mrb[36].mxu0 %v21830_v36  ;;  %8654 = vmatmul.mubr.bf16.gmra.mrb[36].mxu1 %v21830_v36 }
 0x5a0   :  { %8517 = vmatprep.mubr.bf16.mxu0 %v21855_v52  ;;  %8543 = vmatpush1.bf16.msra.mxu0 %v20019_v31  ;;  %v20090_v31 = vld [vmem:[#allocation9 + $0x3ac] ss:$16 sps:$4 sm:$0xff]  }
 0x5a1   :  { %8663 = vmatprep.mubr.bf16.mxu1 %v21855_v52  ;;  %8689 = vmatpush1.bf16.msra.mxu1 %v20022_v59  ;;  %v20085_v59 = vld [vmem:[#allocation9 + $0x3a0] ss:$16 sps:$4 sm:$0xff]  }
 0x5a2   :  { %8544 = vmatprep.subr.bf16.mxu0 %v20027_v19  ;;  %8690 = vmatprep.subr.bf16.mxu1 %v20030_v7  ;;  %v20088_v19 = vld [vmem:[#allocation9 + $0x3a8] ss:$16 sps:$4 sm:$0xff]   ;;  %v20093_v7 = vld [vmem:[#allocation9 + $0x3c4] ss:$16 sps:$4 sm:$0xff]  }
 0x5a4   :  { %8545 = vmatpush1.bf16.msra.mxu0 %v20025_v25  ;;  %v20096_v25 = vld [vmem:[#allocation9 + $0x3cc] ss:$16 sps:$4 sm:$0xff]  }
 0x5a5   :  { %8691 = vmatpush1.bf16.msra.mxu1 %v20028_v56  ;;  %8546 = vmatprep.subr.bf16.mxu0 %v20033_v46  ;;  %v20091_v56 = vld [vmem:[#allocation9 + $0x3c0] ss:$16 sps:$4 sm:$0xff]   ;;  %v20094_v46 = vld [vmem:[#allocation9 + $0x3c8] ss:$16 sps:$4 sm:$0xff]  }
 0x5a6   :  { %8692 = vmatprep.subr.bf16.mxu1 %v20036_v10  ;;  %v20099_v10 = vld [vmem:[#allocation9 + $0x3e4] ss:$16 sps:$4 sm:$0xff]  }
 0x5a7   :  { %8518 = vmatmul.mubr.bf16.gmra.mrb[40].mxu0 %v21850_v43  ;;  %8664 = vmatmul.mubr.bf16.gmra.mrb[40].mxu1 %v21850_v43 }
 0x5a8   :  { %8527 = vmatprep.mubr.bf16.mxu0 %v21877_v50  ;;  %8547 = vmatpush1.bf16.msra.mxu0 %v20031_v27  ;;  %v20102_v27 = vld [vmem:[#allocation9 + $0x3ec] ss:$16 sps:$4 sm:$0xff]  }
 0x5a9   :  { %8673 = vmatprep.mubr.bf16.mxu1 %v21877_v50  ;;  %8693 = vmatpush1.bf16.msra.mxu1 %v20034_v12  ;;  %v20097_v12 = vld [vmem:[#allocation9 + $0x3e0] ss:$16 sps:$4 sm:$0xff]  }
 0x5aa   :  { %8548 = vmatprep.subr.bf16.mxu0 %v20039_v14  ;;  %8694 = vmatprep.subr.bf16.mxu1 %v20042_v51  ;;  %v20100_v14 = vld [vmem:[#allocation9 + $0x3e8] ss:$16 sps:$4 sm:$0xff]   ;;  %v20105_v51 = vld [vmem:[#allocation9 + $0x804] ss:$16 sps:$4 sm:$0xff]  }
 0x5ac   :  { %8549 = vmatpush1.bf16.msra.mxu0 %v20037_v11  ;;  %v20108_v11 = vld [vmem:[#allocation9 + $0x80c] ss:$16 sps:$4 sm:$0xff]  }
 0x5ad   :  { %8695 = vmatpush1.bf16.msra.mxu1 %v20040_v22  ;;  %8550 = vmatprep.subr.bf16.mxu0 %v20045_v35  ;;  %v20103_v22 = vld [vmem:[#allocation9 + $0x800] ss:$16 sps:$4 sm:$0xff]   ;;  %v20106_v35 = vld [vmem:[#allocation9 + $0x808] ss:$16 sps:$4 sm:$0xff]  }
 0x5ae   :  { %8696 = vmatprep.subr.bf16.mxu1 %v20048_v32  ;;  %v20111_v32 = vld [vmem:[#allocation9 + $0x824] ss:$16 sps:$4 sm:$0xff]  }
 0x5af   :  { %8528 = vmatmul.mubr.bf16.gmra.mrb[44].mxu0 %v21872_v45  ;;  %8674 = vmatmul.mubr.bf16.gmra.mrb[44].mxu1 %v21872_v45 }
 0x5b0   :  { %8551 = vmatpush1.bf16.msra.mxu0 %v20043_v30  ;;  %8570 = vmatprep.mubr.bf16.mxu0 %v21818_v37  ;;  %v20114_v30 = vld [vmem:[#allocation9 + $0x82c] ss:$16 sps:$4 sm:$0xff]  }
 0x5b1   :  { %8697 = vmatpush1.bf16.msra.mxu1 %v20046_v28  ;;  %8716 = vmatprep.mubr.bf16.mxu1 %v21818_v37  ;;  %v20109_v28 = vld [vmem:[#allocation9 + $0x820] ss:$16 sps:$4 sm:$0xff]  }
 0x5b2   :  { %8552 = vmatprep.subr.bf16.mxu0 %v20051_v1  ;;  %8698 = vmatprep.subr.bf16.mxu1 %v20054_v34  ;;  %v20112_v1 = vld [vmem:[#allocation9 + $0x828] ss:$16 sps:$4 sm:$0xff]   ;;  %v20117_v34 = vld [vmem:[#allocation9 + $0x844] ss:$16 sps:$4 sm:$0xff]  }
 0x5b4   :  { %8553 = vmatpush1.bf16.msra.mxu0 %v20049_v48  ;;  %v20120_v48 = vld [vmem:[#allocation9 + $0x84c] ss:$16 sps:$4 sm:$0xff]  }
 0x5b5   :  { %8699 = vmatpush1.bf16.msra.mxu1 %v20052_v17  ;;  %8554 = vmatprep.subr.bf16.mxu0 %v20057_v47  ;;  %v20115_v17 = vld [vmem:[#allocation9 + $0x840] ss:$16 sps:$4 sm:$0xff]   ;;  %v20118_v47 = vld [vmem:[#allocation9 + $0x848] ss:$16 sps:$4 sm:$0xff]  }
 0x5b6   :  { %8700 = vmatprep.subr.bf16.mxu1 %v20060_v55  ;;  %v20123_v55 = vld [vmem:[#allocation9 + $0x864] ss:$16 sps:$4 sm:$0xff]  }
 0x5b8   :  { %8555 = vmatpush1.bf16.msra.mxu0 %v20055_v54  ;;  %v20126_v54 = vld [vmem:[#allocation9 + $0x86c] ss:$16 sps:$4 sm:$0xff]  }
 0x5b9   :  { %8701 = vmatpush1.bf16.msra.mxu1 %v20058_v18  ;;  %8556 = vmatprep.subr.bf16.mxu0 %v20063_v39  ;;  %v20121_v18 = vld [vmem:[#allocation9 + $0x860] ss:$16 sps:$4 sm:$0xff]   ;;  %v20124_v39 = vld [vmem:[#allocation9 + $0x868] ss:$16 sps:$4 sm:$0xff]  }
 0x5ba   :  { %8702 = vmatprep.subr.bf16.mxu1 %v20066_v53  ;;  %v20129_v53 = vld [vmem:[#allocation9 + $0x884] ss:$16 sps:$4 sm:$0xff]  }
 0x5bc   :  { %8557 = vmatpush1.bf16.msra.mxu0 %v20061_v29  ;;  %v20132_v29 = vld [vmem:[#allocation9 + $0x88c] ss:$16 sps:$4 sm:$0xff]  }
 0x5bd   :  { %8703 = vmatpush1.bf16.msra.mxu1 %v20064_v38  ;;  %8558 = vmatprep.subr.bf16.mxu0 %v20069_v63  ;;  %v20127_v38 = vld [vmem:[#allocation9 + $0x880] ss:$16 sps:$4 sm:$0xff]   ;;  %v20130_v63 = vld [vmem:[#allocation9 + $0x888] ss:$16 sps:$4 sm:$0xff]  }
 0x5be   :  { %8704 = vmatprep.subr.bf16.mxu1 %v20072_v58  ;;  %v20135_v58 = vld [vmem:[#allocation9 + $0x8a4] ss:$16 sps:$4 sm:$0xff]  }
 0x5c0   :  { %8559 = vmatpush1.bf16.msra.mxu0 %v20067_v6  ;;  %v20138_v6 = vld [vmem:[#allocation9 + $0x8ac] ss:$16 sps:$4 sm:$0xff]  }
 0x5c1   :  { %8705 = vmatpush1.bf16.msra.mxu1 %v20070_v24  ;;  %8560 = vmatprep.subr.bf16.mxu0 %v20075_v33  ;;  %v20133_v24 = vld [vmem:[#allocation9 + $0x8a0] ss:$16 sps:$4 sm:$0xff]   ;;  %v20136_v33 = vld [vmem:[#allocation9 + $0x8a8] ss:$16 sps:$4 sm:$0xff]  }
 0x5c2   :  { %8706 = vmatprep.subr.bf16.mxu1 %v20078_v57  ;;  %v20141_v57 = vld [vmem:[#allocation9 + $0x8c4] ss:$16 sps:$4 sm:$0xff]  }
 0x5c4   :  { %8561 = vmatpush1.bf16.msra.mxu0 %v20073_v15  ;;  %v20144_v15 = vld [vmem:[#allocation9 + $0x8cc] ss:$16 sps:$4 sm:$0xff]  }
 0x5c5   :  { %8707 = vmatpush1.bf16.msra.mxu1 %v20076_v26  ;;  %8562 = vmatprep.subr.bf16.mxu0 %v20081_v62  ;;  %v8906_v26 = vrot.slane %v21834_v4, 1  ;;  %v20139_v62 = vld [vmem:[#allocation9 + $0x8c0] ss:$16 sps:$4 sm:$0xff]  }
 0x5c6   :  { %8708 = vmatprep.subr.bf16.mxu1 %v20084_v13  ;;  %v8905_v13 = vrot.slane %v21816_v2, 1  ;;  %v20148_v2 = vld [vmem:[#allocation9 + $0x8e8] ss:$16 sps:$4 sm:$0xff]   ;;  %v20211_v4 = vld [vmem:[#allocation9 + $0xa40] ss:$16 sps:$4 sm:$0xff]  }
 0x5c8   :  { %8563 = vmatpush1.bf16.msra.mxu0 %v20079_v16  ;;  %v20142_v16 = vld [vmem:[#allocation9 + $0x8c8] ss:$16 sps:$4 sm:$0xff]  }
 0x5c9   :  { %8709 = vmatpush1.bf16.msra.mxu1 %v20082_v23  ;;  %8564 = vmatprep.subr.bf16.mxu0 %v20087_v21  ;;  %v20147_v23 = vld [vmem:[#allocation9 + $0x8e4] ss:$16 sps:$4 sm:$0xff]   ;;  %v8907_v21 = vsel %vm3054_vm3, %v8905_v13, %v8906_v26  ;;  %v8902_v13 = vrot.slane %v21812_v40, 1  ;;  %v20208_v40 = vld [vmem:[#allocation9 + $0xa28] ss:$16 sps:$4 sm:$0xff]  }
 0x5ca   :  { %8710 = vmatprep.subr.bf16.mxu1 %v20090_v31  ;;  %v20150_v31 = vld [vmem:[#allocation9 + $0x8ec] ss:$16 sps:$4 sm:$0xff]  }
 0x5cc   :  { %8565 = vmatpush1.bf16.msra.mxu0 %v20085_v59  ;;  %v20145_v59 = vld [vmem:[#allocation9 + $0x8e0] ss:$16 sps:$4 sm:$0xff]  }
 0x5cd   :  { %8711 = vmatpush1.bf16.msra.mxu1 %v20088_v19  ;;  %8566 = vmatprep.subr.bf16.mxu0 %v20093_v7  ;;  %v20153_v19 = vld [vmem:[#allocation9 + $0x904] ss:$16 sps:$4 sm:$0xff]   ;;  %v20156_v7 = vld [vmem:[#allocation9 + $0x90c] ss:$16 sps:$4 sm:$0xff]  }
 0x5ce   :  { %8712 = vmatprep.subr.bf16.mxu1 %v20096_v25  ;;  %v20151_v25 = vld [vmem:[#allocation9 + $0x900] ss:$16 sps:$4 sm:$0xff]  }
 0x5d0   :  { %8567 = vmatpush1.bf16.msra.mxu0 %v20091_v56  ;;  %v20154_v56 = vld [vmem:[#allocation9 + $0x908] ss:$16 sps:$4 sm:$0xff]  }
 0x5d1   :  { %8713 = vmatpush1.bf16.msra.mxu1 %v20094_v46  ;;  %8568 = vmatprep.subr.bf16.mxu0 %v20099_v10  ;;  %v20159_v46 = vld [vmem:[#allocation9 + $0x924] ss:$16 sps:$4 sm:$0xff]   ;;  %v20162_v10 = vld [vmem:[#allocation9 + $0x92c] ss:$16 sps:$4 sm:$0xff]  }
 0x5d2   :  { %8714 = vmatprep.subr.bf16.mxu1 %v20102_v27  ;;  %v20157_v27 = vld [vmem:[#allocation9 + $0x920] ss:$16 sps:$4 sm:$0xff]  }
 0x5d4   :  { %8569 = vmatpush1.bf16.msra.mxu0 %v20097_v12  ;;  %v20160_v12 = vld [vmem:[#allocation9 + $0x928] ss:$16 sps:$4 sm:$0xff]  }
 0x5d5   :  { %8715 = vmatpush1.bf16.msra.mxu1 %v20100_v14  ;;  %9590 = vmatprep.subr.bf16.mxu0 %v20105_v51  ;;  %v20165_v14 = vld [vmem:[#allocation9 + $0x944] ss:$16 sps:$4 sm:$0xff]   ;;  %v20168_v51 = vld [vmem:[#allocation9 + $0x94c] ss:$16 sps:$4 sm:$0xff]  }
 0x5d6   :  { %9736 = vmatprep.subr.bf16.mxu1 %v20108_v11  ;;  %v20163_v11 = vld [vmem:[#allocation9 + $0x940] ss:$16 sps:$4 sm:$0xff]  }
 0x5d7   :  { %8571 = vmatmul.mubr.bf16.vlgmr.msra.gmra.mrb[32].mxu0 %v21814_v41 }
 0x5d8   :  { %8717 = vmatmul.mubr.bf16.vlgmr.msra.gmra.mrb[32].mxu1 %v21814_v41  ;;  %8580 = vmatprep.mubr.bf16.mxu0 %v21836_v61 }
 0x5d9   :  { %8726 = vmatprep.mubr.bf16.mxu1 %v21836_v61  ;;  %9591 = vmatpush1.bf16.msra.mxu0 %v20103_v22  ;;  %v20166_v22 = vld [vmem:[#allocation9 + $0x948] ss:$16 sps:$4 sm:$0xff]  }
 0x5da   :  { %9737 = vmatpush1.bf16.msra.mxu1 %v20106_v35  ;;  %9592 = vmatprep.subr.bf16.mxu0 %v20111_v32  ;;  %v20171_v35 = vld [vmem:[#allocation9 + $0x964] ss:$16 sps:$4 sm:$0xff]   ;;  %v20174_v32 = vld [vmem:[#allocation9 + $0x96c] ss:$16 sps:$4 sm:$0xff]  }
 0x5db   :  { %9738 = vmatprep.subr.bf16.mxu1 %v20114_v30  ;;  %v20169_v30 = vld [vmem:[#allocation9 + $0x960] ss:$16 sps:$4 sm:$0xff]  }
 0x5dd   :  { %9593 = vmatpush1.bf16.msra.mxu0 %v20109_v28  ;;  %v20172_v28 = vld [vmem:[#allocation9 + $0x968] ss:$16 sps:$4 sm:$0xff]  }
 0x5de   :  { %9739 = vmatpush1.bf16.msra.mxu1 %v20112_v1  ;;  %9594 = vmatprep.subr.bf16.mxu0 %v20117_v34  ;;  %v20177_v1 = vld [vmem:[#allocation9 + $0x984] ss:$16 sps:$4 sm:$0xff]   ;;  %v20180_v34 = vld [vmem:[#allocation9 + $0x98c] ss:$16 sps:$4 sm:$0xff]  }
 0x5df   :  { %8581 = vmatmul.mubr.bf16.gmra.mrb[36].mxu0 %v21832_v20  ;;  %9740 = vmatprep.subr.bf16.mxu1 %v20120_v48  ;;  %v20175_v48 = vld [vmem:[#allocation9 + $0x980] ss:$16 sps:$4 sm:$0xff]  }
 0x5e0   :  { %8727 = vmatmul.mubr.bf16.gmra.mrb[36].mxu1 %v21832_v20  ;;  %8590 = vmatprep.mubr.bf16.mxu0 %v21858_v8 }
 0x5e1   :  { %8736 = vmatprep.mubr.bf16.mxu1 %v21858_v8  ;;  %9595 = vmatpush1.bf16.msra.mxu0 %v20115_v17  ;;  %v20178_v17 = vld [vmem:[#allocation9 + $0x988] ss:$16 sps:$4 sm:$0xff]  }
 0x5e2   :  { %9741 = vmatpush1.bf16.msra.mxu1 %v20118_v47  ;;  %9596 = vmatprep.subr.bf16.mxu0 %v20123_v55  ;;  %v20183_v47 = vld [vmem:[#allocation9 + $0x9a4] ss:$16 sps:$4 sm:$0xff]   ;;  %v20186_v55 = vld [vmem:[#allocation9 + $0x9ac] ss:$16 sps:$4 sm:$0xff]  }
 0x5e3   :  { %9742 = vmatprep.subr.bf16.mxu1 %v20126_v54  ;;  %v20181_v54 = vld [vmem:[#allocation9 + $0x9a0] ss:$16 sps:$4 sm:$0xff]  }
 0x5e5   :  { %9597 = vmatpush1.bf16.msra.mxu0 %v20121_v18  ;;  %v20184_v18 = vld [vmem:[#allocation9 + $0x9a8] ss:$16 sps:$4 sm:$0xff]  }
 0x5e6   :  { %9743 = vmatpush1.bf16.msra.mxu1 %v20124_v39  ;;  %9598 = vmatprep.subr.bf16.mxu0 %v20129_v53  ;;  %v20189_v39 = vld [vmem:[#allocation9 + $0x9c4] ss:$16 sps:$4 sm:$0xff]   ;;  %v20192_v53 = vld [vmem:[#allocation9 + $0x9cc] ss:$16 sps:$4 sm:$0xff]  }
 0x5e7   :  { %8591 = vmatmul.mubr.bf16.gmra.mrb[40].mxu0 %v21853_v0  ;;  %9744 = vmatprep.subr.bf16.mxu1 %v20132_v29  ;;  %v20187_v29 = vld [vmem:[#allocation9 + $0x9c0] ss:$16 sps:$4 sm:$0xff]  }
 0x5e8   :  { %8737 = vmatmul.mubr.bf16.gmra.mrb[40].mxu1 %v21853_v0  ;;  %8600 = vmatprep.mubr.bf16.mxu0 %v21880_v5 }
 0x5e9   :  { %8746 = vmatprep.mubr.bf16.mxu1 %v21880_v5  ;;  %9599 = vmatpush1.bf16.msra.mxu0 %v20127_v38  ;;  %v20190_v38 = vld [vmem:[#allocation9 + $0x9c8] ss:$16 sps:$4 sm:$0xff]  }
 0x5ea   :  { %9745 = vmatpush1.bf16.msra.mxu1 %v20130_v63  ;;  %9600 = vmatprep.subr.bf16.mxu0 %v20135_v58  ;;  %v20195_v63 = vld [vmem:[#allocation9 + $0x9e4] ss:$16 sps:$4 sm:$0xff]   ;;  %v20198_v58 = vld [vmem:[#allocation9 + $0x9ec] ss:$16 sps:$4 sm:$0xff]  }
 0x5eb   :  { %9746 = vmatprep.subr.bf16.mxu1 %v20138_v6  ;;  %v20193_v6 = vld [vmem:[#allocation9 + $0x9e0] ss:$16 sps:$4 sm:$0xff]  }
 0x5ed   :  { %9601 = vmatpush1.bf16.msra.mxu0 %v20133_v24  ;;  %v20196_v24 = vld [vmem:[#allocation9 + $0x9e8] ss:$16 sps:$4 sm:$0xff]  }
 0x5ee   :  { %9747 = vmatpush1.bf16.msra.mxu1 %v20136_v33  ;;  %9602 = vmatprep.subr.bf16.mxu0 %v20141_v57  ;;  %v20201_v33 = vld [vmem:[#allocation9 + $0xa04] ss:$16 sps:$4 sm:$0xff]   ;;  %v8903_v57 = vrot.slane %v21830_v36, 1  ;;  %v20210_v36 = vld [vmem:[#allocation9 + $0xa2c] ss:$16 sps:$4 sm:$0xff]  }
 0x5ef   :  { %8601 = vmatmul.mubr.bf16.gmra.mrb[44].mxu0 %v21875_v9  ;;  %9748 = vmatprep.subr.bf16.mxu1 %v20144_v15  ;;  %v20204_v15 = vld [vmem:[#allocation9 + $0xa0c] ss:$16 sps:$4 sm:$0xff]  }
 0x5f0   :  { %8747 = vmatmul.mubr.bf16.gmra.mrb[44].mxu1 %v21875_v9  ;;  %9622 = vmatprep.mubr.bf16.mxu0 %v8907_v21 }
 0x5f1   :  { %9603 = vmatpush1.bf16.msra.mxu0 %v20139_v62  ;;  %9768 = vmatprep.mubr.bf16.mxu1 %v8907_v21  ;;  %v8916_v62 = vrot.slane %v21855_v52, 1  ;;  %v20202_v21 = vld [vmem:[#allocation9 + $0xa08] ss:$16 sps:$4 sm:$0xff]   ;;  %v20205_v52 = vld [vmem:[#allocation9 + $0xa20] ss:$16 sps:$4 sm:$0xff]  }
 0x5f2   :  { %9749 = vmatpush1.bf16.msra.mxu1 %v20142_v16  ;;  %9604 = vmatprep.subr.bf16.mxu0 %v20147_v23  ;;  %v20199_v16 = vld [vmem:[#allocation9 + $0xa00] ss:$16 sps:$4 sm:$0xff]   ;;  %v8904_v23 = vsel %vm3054_vm3, %v8902_v13, %v8903_v57  ;;  %v20261_v13 = vld [vmem:[#allocation9 + $0xb44] ss:$16 sps:$4 sm:$0xff]  }
 0x5f3   :  { %9750 = vmatprep.subr.bf16.mxu1 %v20150_v31  ;;  %v20207_v31 = vld [vmem:[#allocation9 + $0xa24] ss:$16 sps:$4 sm:$0xff]  }
 0x5f5   :  { %9605 = vmatpush1.bf16.msra.mxu0 %v20145_v59  ;;  %v8917_v59 = vsel %vm3054_vm3, %v8906_v26, %v8916_v62 }
 0x5f6   :  { %9751 = vmatpush1.bf16.msra.mxu1 %v20148_v2  ;;  %9606 = vmatprep.subr.bf16.mxu0 %v20153_v19  ;;  %v8914_v2 = vrot.slane %v21850_v43, 1  ;;  %v20213_v19 = vld [vmem:[#allocation9 + $0xa44] ss:$16 sps:$4 sm:$0xff]   ;;  %v20217_v43 = vld [vmem:[#allocation9 + $0xa60] ss:$16 sps:$4 sm:$0xff]  }
 0x5f7   :  { %9752 = vmatprep.subr.bf16.mxu1 %v20156_v7  ;;  %v20216_v7 = vld [vmem:[#allocation9 + $0xa4c] ss:$16 sps:$4 sm:$0xff]  }
 0x5f8   :  { %v8915_v26 = vsel %vm3054_vm3, %v8903_v57, %v8914_v2  ;;  %v20258_v57 = vld [vmem:[#allocation9 + $0xb2c] ss:$16 sps:$4 sm:$0xff]  }
 0x5f9   :  { %9607 = vmatpush1.bf16.msra.mxu0 %v20151_v25  ;;  %v8924_v25 = vrot.slane %v21877_v50, 1  ;;  %v20220_v50 = vld [vmem:[#allocation9 + $0xa68] ss:$16 sps:$4 sm:$0xff]  }
 0x5fa   :  { %9753 = vmatpush1.bf16.msra.mxu1 %v20154_v56  ;;  %9608 = vmatprep.subr.bf16.mxu0 %v20159_v46  ;;  %v20214_v56 = vld [vmem:[#allocation9 + $0xa48] ss:$16 sps:$4 sm:$0xff]   ;;  %v20219_v46 = vld [vmem:[#allocation9 + $0xa64] ss:$16 sps:$4 sm:$0xff]  }
 0x5fb   :  { %9754 = vmatprep.subr.bf16.mxu1 %v20162_v10  ;;  %v8925_v10 = vsel %vm3054_vm3, %v8916_v62, %v8924_v25  ;;  %v20256_v62 = vld [vmem:[#allocation9 + $0xb28] ss:$16 sps:$4 sm:$0xff]  }
 0x5fd   :  { %9609 = vmatpush1.bf16.msra.mxu0 %v20157_v27  ;;  %v20222_v27 = vld [vmem:[#allocation9 + $0xa6c] ss:$16 sps:$4 sm:$0xff]  }
 0x5fe   :  { %9755 = vmatpush1.bf16.msra.mxu1 %v20160_v12  ;;  %9610 = vmatprep.subr.bf16.mxu0 %v20165_v14  ;;  %v8922_v12 = vrot.slane %v21872_v45, 1  ;;  %v20225_v14 = vld [vmem:[#allocation9 + $0xa84] ss:$16 sps:$4 sm:$0xff]   ;;  %v20229_v45 = vld [vmem:[#allocation9 + $0xaa0] ss:$16 sps:$4 sm:$0xff]  }
 0x5ff   :  { %9756 = vmatprep.subr.bf16.mxu1 %v20168_v51  ;;  %v20228_v51 = vld [vmem:[#allocation9 + $0xa8c] ss:$16 sps:$4 sm:$0xff]  }
 0x601   :  { %9611 = vmatpush1.bf16.msra.mxu0 %v20163_v11  ;;  %v20223_v11 = vld [vmem:[#allocation9 + $0xa80] ss:$16 sps:$4 sm:$0xff]  }
 0x602   :  { %9757 = vmatpush1.bf16.msra.mxu1 %v20166_v22  ;;  %9612 = vmatprep.subr.bf16.mxu0 %v20171_v35  ;;  %v8923_v22 = vsel %vm3054_vm3, %v8914_v2, %v8922_v12  ;;  %v20226_v35 = vld [vmem:[#allocation9 + $0xa88] ss:$16 sps:$4 sm:$0xff]   ;;  %v20276_v2 = vld [vmem:[#allocation9 + $0xb8c] ss:$16 sps:$4 sm:$0xff]  }
 0x603   :  { %9758 = vmatprep.subr.bf16.mxu1 %v20174_v32  ;;  %v20231_v32 = vld [vmem:[#allocation9 + $0xaa4] ss:$16 sps:$4 sm:$0xff]  }
 0x605   :  { %9613 = vmatpush1.bf16.msra.mxu0 %v20169_v30  ;;  %v8931_v30 = vsel %vm3054_vm3, %v8924_v25, %v21683_v49  ;;  %v20279_v25 = vld [vmem:[#allocation9 + $0xba4] ss:$16 sps:$4 sm:$0xff]  }
 0x606   :  { %9759 = vmatpush1.bf16.msra.mxu1 %v20172_v28  ;;  %9614 = vmatprep.subr.bf16.mxu0 %v20177_v1  ;;  %v20234_v28 = vld [vmem:[#allocation9 + $0xaac] ss:$16 sps:$4 sm:$0xff]   ;;  %v20232_v1 = vld [vmem:[#allocation9 + $0xaa8] ss:$16 sps:$4 sm:$0xff]  }
 0x607   :  { %9760 = vmatprep.subr.bf16.mxu1 %v20180_v34  ;;  %v20237_v34 = vld [vmem:[#allocation9 + $0xac4] ss:$16 sps:$4 sm:$0xff]  }
 0x609   :  { %9615 = vmatpush1.bf16.msra.mxu0 %v20175_v48  ;;  %v20240_v48 = vld [vmem:[#allocation9 + $0xacc] ss:$16 sps:$4 sm:$0xff]  }
 0x60a   :  { %9761 = vmatpush1.bf16.msra.mxu1 %v20178_v17  ;;  %9616 = vmatprep.subr.bf16.mxu0 %v20183_v47  ;;  %v8912_v17 = vrot.slane %v21836_v61, 1  ;;  %v20235_v47 = vld [vmem:[#allocation9 + $0xac0] ss:$16 sps:$4 sm:$0xff]  }
 0x60b   :  { %9762 = vmatprep.subr.bf16.mxu1 %v20186_v55  ;;  %v8911_v55 = vrot.slane %v21818_v37, 1  ;;  %v20244_v37 = vld [vmem:[#allocation9 + $0xae8] ss:$16 sps:$4 sm:$0xff]  }
 0x60d   :  { %9617 = vmatpush1.bf16.msra.mxu0 %v20181_v54  ;;  %v8930_v54 = vsel %vm3054_vm3, %v8922_v12, %v21683_v49  ;;  %v20294_v12 = vld [vmem:[#allocation9 + $0xbec] ss:$16 sps:$4 sm:$0xff]  }
 0x60e   :  { %9763 = vmatpush1.bf16.msra.mxu1 %v20184_v18  ;;  %9618 = vmatprep.subr.bf16.mxu0 %v20189_v39  ;;  %v20238_v18 = vld [vmem:[#allocation9 + $0xac8] ss:$16 sps:$4 sm:$0xff]   ;;  %v20243_v39 = vld [vmem:[#allocation9 + $0xae4] ss:$16 sps:$4 sm:$0xff]  }
 0x60f   :  { %9764 = vmatprep.subr.bf16.mxu1 %v20192_v53  ;;  %v8913_v53 = vsel %vm3054_vm3, %v8911_v55, %v8912_v17 }
 0x611   :  { %9619 = vmatpush1.bf16.msra.mxu0 %v20187_v29  ;;  %v20246_v29 = vld [vmem:[#allocation9 + $0xaec] ss:$16 sps:$4 sm:$0xff]  }
 0x612   :  { %9765 = vmatpush1.bf16.msra.mxu1 %v20190_v38  ;;  %9620 = vmatprep.subr.bf16.mxu0 %v20195_v63  ;;  %v20241_v38 = vld [vmem:[#allocation9 + $0xae0] ss:$16 sps:$4 sm:$0xff]   ;;  %v20249_v63 = vld [vmem:[#allocation9 + $0xb04] ss:$16 sps:$4 sm:$0xff]  }
 0x613   :  { %9766 = vmatprep.subr.bf16.mxu1 %v20198_v58  ;;  %v20252_v58 = vld [vmem:[#allocation9 + $0xb0c] ss:$16 sps:$4 sm:$0xff]  }
 0x615   :  { %9621 = vmatpush1.bf16.msra.mxu0 %v20193_v6  ;;  %v20247_v6 = vld [vmem:[#allocation9 + $0xb00] ss:$16 sps:$4 sm:$0xff]  }
 0x616   :  { %9767 = vmatpush1.bf16.msra.mxu1 %v20196_v24  ;;  %9663 = vmatprep.subr.bf16.mxu0 %v20201_v33  ;;  %v20250_v24 = vld [vmem:[#allocation9 + $0xb08] ss:$16 sps:$4 sm:$0xff]   ;;  %v20255_v33 = vld [vmem:[#allocation9 + $0xb24] ss:$16 sps:$4 sm:$0xff]  }
 0x617   :  { %9809 = vmatprep.subr.bf16.mxu1 %v20204_v15  ;;  %v20253_v15 = vld [vmem:[#allocation9 + $0xb20] ss:$16 sps:$4 sm:$0xff]  }
 0x618   :  { %9623 = vmatmul.mubr.bf16.vlgmr.msra.gmra.mrb[32].mxu0 %v8904_v23 }
 0x619   :  { %9769 = vmatmul.mubr.bf16.vlgmr.msra.gmra.mrb[32].mxu1 %v8904_v23  ;;  %9632 = vmatprep.mubr.bf16.mxu0 %v8917_v59  ;;  %v20259_v23 = vld [vmem:[#allocation9 + $0xb40] ss:$16 sps:$4 sm:$0xff]  }
 0x61a   :  { %9664 = vmatpush1.bf16.msra.mxu0 %v20199_v16  ;;  %9778 = vmatprep.mubr.bf16.mxu1 %v8917_v59  ;;  %v20264_v16 = vld [vmem:[#allocation9 + $0xb4c] ss:$16 sps:$4 sm:$0xff]  }
 0x61b   :  { %9810 = vmatpush1.bf16.msra.mxu1 %v20202_v21  ;;  %9665 = vmatprep.subr.bf16.mxu0 %v20207_v31  ;;  %v20262_v21 = vld [vmem:[#allocation9 + $0xb48] ss:$16 sps:$4 sm:$0xff]   ;;  %v20267_v31 = vld [vmem:[#allocation9 + $0xb64] ss:$16 sps:$4 sm:$0xff]   ;;  %v20270_v59 = vld [vmem:[#allocation9 + $0xb6c] ss:$16 sps:$4 sm:$0xff]  }
 0x61c   :  { %9811 = vmatprep.subr.bf16.mxu1 %v20210_v36  ;;  %v20265_v36 = vld [vmem:[#allocation9 + $0xb60] ss:$16 sps:$4 sm:$0xff]  }
 0x61e   :  { %9666 = vmatpush1.bf16.msra.mxu0 %v20205_v52  ;;  %v20268_v52 = vld [vmem:[#allocation9 + $0xb68] ss:$16 sps:$4 sm:$0xff]  }
 0x61f   :  { %9812 = vmatpush1.bf16.msra.mxu1 %v20208_v40  ;;  %9667 = vmatprep.subr.bf16.mxu0 %v20213_v19  ;;  %v20273_v40 = vld [vmem:[#allocation9 + $0xb84] ss:$16 sps:$4 sm:$0xff]   ;;  %v20271_v19 = vld [vmem:[#allocation9 + $0xb80] ss:$16 sps:$4 sm:$0xff]  }
 0x620   :  { %9633 = vmatmul.mubr.bf16.gmra.mrb[36].mxu0 %v8915_v26  ;;  %9813 = vmatprep.subr.bf16.mxu1 %v20216_v7  ;;  %v20274_v7 = vld [vmem:[#allocation9 + $0xb88] ss:$16 sps:$4 sm:$0xff]  }
 0x621   :  { %9779 = vmatmul.mubr.bf16.gmra.mrb[36].mxu1 %v8915_v26  ;;  %9642 = vmatprep.mubr.bf16.mxu0 %v8925_v10  ;;  %v20277_v26 = vld [vmem:[#allocation9 + $0xba0] ss:$16 sps:$4 sm:$0xff]  }
 0x622   :  { %9668 = vmatpush1.bf16.msra.mxu0 %v20211_v4  ;;  %9788 = vmatprep.mubr.bf16.mxu1 %v8925_v10  ;;  %v20282_v4 = vld [vmem:[#allocation9 + $0xbac] ss:$16 sps:$4 sm:$0xff]  }
 0x623   :  { %9814 = vmatpush1.bf16.msra.mxu1 %v20214_v56  ;;  %9669 = vmatprep.subr.bf16.mxu0 %v20219_v46  ;;  %v20280_v56 = vld [vmem:[#allocation9 + $0xba8] ss:$16 sps:$4 sm:$0xff]   ;;  %v20285_v46 = vld [vmem:[#allocation9 + $0xbc4] ss:$16 sps:$4 sm:$0xff]   ;;  %v20288_v10 = vld [vmem:[#allocation9 + $0xbcc] ss:$16 sps:$4 sm:$0xff]  }
 0x624   :  { %9815 = vmatprep.subr.bf16.mxu1 %v20222_v27  ;;  %v20283_v27 = vld [vmem:[#allocation9 + $0xbc0] ss:$16 sps:$4 sm:$0xff]  }
 0x626   :  { %9670 = vmatpush1.bf16.msra.mxu0 %v20217_v43  ;;  %v20286_v43 = vld [vmem:[#allocation9 + $0xbc8] ss:$16 sps:$4 sm:$0xff]  }
 0x627   :  { %9816 = vmatpush1.bf16.msra.mxu1 %v20220_v50  ;;  %9671 = vmatprep.subr.bf16.mxu0 %v20225_v14  ;;  %v20291_v50 = vld [vmem:[#allocation9 + $0xbe4] ss:$16 sps:$4 sm:$0xff]   ;;  %v20289_v14 = vld [vmem:[#allocation9 + $0xbe0] ss:$16 sps:$4 sm:$0xff]  }
 0x628   :  { %9643 = vmatmul.mubr.bf16.gmra.mrb[40].mxu0 %v8923_v22  ;;  %9817 = vmatprep.subr.bf16.mxu1 %v20228_v51  ;;  %v20292_v51 = vld [vmem:[#allocation9 + $0xbe8] ss:$16 sps:$4 sm:$0xff]  }
 0x629   :  { %9789 = vmatmul.mubr.bf16.gmra.mrb[40].mxu1 %v8923_v22  ;;  %9652 = vmatprep.mubr.bf16.mxu0 %v8931_v30  ;;  %v8920_v22 = vrot.slane %v21858_v8, 1 }
 0x62a   :  { %9672 = vmatpush1.bf16.msra.mxu0 %v20223_v11  ;;  %9798 = vmatprep.mubr.bf16.mxu1 %v8931_v30  ;;  %v8909_v11 = vrot.slane %v21832_v20, 1  ;;  %v8928_v20 = vrot.slane %v21880_v5, 1  ;;  %v22259_v5 = vmov 0  }
 0x62b   :  { %9818 = vmatpush1.bf16.msra.mxu1 %v20226_v35  ;;  %9673 = vmatprep.subr.bf16.mxu0 %v20231_v32  ;;  %v8908_v35 = vrot.slane %v21814_v41, 1  ;;  %v8921_v30 = vsel %vm3054_vm3, %v8912_v17, %v8920_v22 }
 0x62c   :  { %9819 = vmatprep.subr.bf16.mxu1 %v20234_v28  ;;  %v8918_v28 = vrot.slane %v21853_v0, 1  ;;  %v8929_v41 = vsel %vm3054_vm3, %v8920_v22, %v8928_v20 }
 0x62d   :  { %v8910_v32 = vsel %vm3054_vm3, %v8908_v35, %v8909_v11 }
 0x62e   :  { %9674 = vmatpush1.bf16.msra.mxu0 %v20229_v45  ;;  %v8919_v8 = vsel %vm3054_vm3, %v8909_v11, %v8918_v28  ;;  %v8926_v45 = vrot.slane %v21875_v9, 1 }
 0x62f   :  { %9820 = vmatpush1.bf16.msra.mxu1 %v20232_v1  ;;  %9675 = vmatprep.subr.bf16.mxu0 %v20237_v34  ;;  %v8933_v1 = vsel %vm3054_vm3, %v8928_v20, %v21683_v49  ;;  %v6475_v34 = vld [vmem:[#allocation10] sm:$0xf] }
 0x630   :  { %9653 = vmatmul.mubr.bf16.gmra.mrb[44].mxu0 %v8930_v54  ;;  %9821 = vmatprep.subr.bf16.mxu1 %v20240_v48  ;;  %v8927_v61 = vsel %vm3054_vm3, %v8918_v28, %v8926_v45  ;;  %v8932_v0 = vsel %vm3054_vm3, %v8926_v45, %v21683_v49  ;;  %v22003_v9 = vrot.slane %v6475_v34, %v21275_v42 }
 0x631   :  { %9799 = vmatmul.mubr.bf16.gmra.mrb[44].mxu1 %v8930_v54  ;;  %9695 = vmatprep.mubr.bf16.mxu0 %v8913_v53  ;;  %v22006_v48 = vrot.slane %v6475_v34, %v21293_v60  ;;  %v22009_v17 = vrot.slane %v6475_v34, %v21278_v44 }
 0x632   :  { %9676 = vmatpush1.bf16.msra.mxu0 %v20235_v47  ;;  %9841 = vmatprep.mubr.bf16.mxu1 %v8913_v53  ;;  %v22012_v47 = vrot.slane %v6475_v34, %v21300_v3 }
 0x633   :  { %9822 = vmatpush1.bf16.msra.mxu1 %v20238_v18  ;;  %9677 = vmatprep.subr.bf16.mxu0 %v20243_v39 }
 0x634   :  { %9823 = vmatprep.subr.bf16.mxu1 %v20246_v29 }
 0x636   :  { %9678 = vmatpush1.bf16.msra.mxu0 %v20241_v38 }
 0x637   :  { %9824 = vmatpush1.bf16.msra.mxu1 %v20244_v37  ;;  %9679 = vmatprep.subr.bf16.mxu0 %v20249_v63 }
 0x638   :  { %9825 = vmatprep.subr.bf16.mxu1 %v20252_v58 }
 0x63a   :  { %9680 = vmatpush1.bf16.msra.mxu0 %v20247_v6 }
 0x63b   :  { %9826 = vmatpush1.bf16.msra.mxu1 %v20250_v24  ;;  %9681 = vmatprep.subr.bf16.mxu0 %v20255_v33 }
 0x63c   :  { %9827 = vmatprep.subr.bf16.mxu1 %v20258_v57 }
 0x63e   :  { %9682 = vmatpush1.bf16.msra.mxu0 %v20253_v15 }
 0x63f   :  { %9828 = vmatpush1.bf16.msra.mxu1 %v20256_v62  ;;  %9683 = vmatprep.subr.bf16.mxu0 %v20261_v13 }
 0x640   :  { %9829 = vmatprep.subr.bf16.mxu1 %v20264_v16 }
 0x642   :  { %9684 = vmatpush1.bf16.msra.mxu0 %v20259_v23 }
 0x643   :  { %9830 = vmatpush1.bf16.msra.mxu1 %v20262_v21  ;;  %9685 = vmatprep.subr.bf16.mxu0 %v20267_v31 }
 0x644   :  { %9831 = vmatprep.subr.bf16.mxu1 %v20270_v59 }
 0x646   :  { %9686 = vmatpush1.bf16.msra.mxu0 %v20265_v36 }
 0x647   :  { %9832 = vmatpush1.bf16.msra.mxu1 %v20268_v52  ;;  %9687 = vmatprep.subr.bf16.mxu0 %v20273_v40 }
 0x648   :  { %9833 = vmatprep.subr.bf16.mxu1 %v20276_v2 }
 0x64a   :  { %9688 = vmatpush1.bf16.msra.mxu0 %v20271_v19 }
 0x64b   :  { %9834 = vmatpush1.bf16.msra.mxu1 %v20274_v7  ;;  %9689 = vmatprep.subr.bf16.mxu0 %v20279_v25 }
 0x64c   :  { %9835 = vmatprep.subr.bf16.mxu1 %v20282_v4 }
 0x64e   :  { %9690 = vmatpush1.bf16.msra.mxu0 %v20277_v26 }
 0x64f   :  { %9836 = vmatpush1.bf16.msra.mxu1 %v20280_v56  ;;  %9691 = vmatprep.subr.bf16.mxu0 %v20285_v46 }
 0x650   :  { %9837 = vmatprep.subr.bf16.mxu1 %v20288_v10 }
 0x652   :  { %9692 = vmatpush1.bf16.msra.mxu0 %v20283_v27 }
 0x653   :  { %9838 = vmatpush1.bf16.msra.mxu1 %v20286_v43  ;;  %9693 = vmatprep.subr.bf16.mxu0 %v20291_v50 }
 0x654   :  { %9839 = vmatprep.subr.bf16.mxu1 %v20294_v12 }
 0x656   :  { %9694 = vmatpush1.bf16.msra.mxu0 %v20289_v14 }
 0x657   :  { %9840 = vmatpush1.bf16.msra.mxu1 %v20292_v51 }
 0x659   :  { %9696 = vmatmul.mubr.bf16.vlgmr.msra.gmra.mrb[32].mxu0 %v8910_v32 }
 0x65a   :  { %9842 = vmatmul.mubr.bf16.vlgmr.msra.gmra.mrb[32].mxu1 %v8910_v32  ;;  %9705 = vmatprep.mubr.bf16.mxu0 %v8921_v30 }
 0x65b   :  { %9851 = vmatprep.mubr.bf16.mxu1 %v8921_v30 }
 0x661   :  { %9706 = vmatmul.mubr.bf16.gmra.mrb[36].mxu0 %v8919_v8 }
 0x662   :  { %9852 = vmatmul.mubr.bf16.gmra.mrb[36].mxu1 %v8919_v8  ;;  %9715 = vmatprep.mubr.bf16.mxu0 %v8929_v41 }
 0x663   :  { %9861 = vmatprep.mubr.bf16.mxu1 %v8929_v41 }
 0x669   :  { %9716 = vmatmul.mubr.bf16.gmra.mrb[40].mxu0 %v8927_v61 }
 0x66a   :  { %9862 = vmatmul.mubr.bf16.gmra.mrb[40].mxu1 %v8927_v61  ;;  %9725 = vmatprep.mubr.bf16.mxu0 %v8933_v1 }
 0x66b   :  { %9871 = vmatprep.mubr.bf16.mxu1 %v8933_v1 }
 0x671   :  { %9726 = vmatmul.mubr.bf16.gmra.mrb[44].mxu0 %v8932_v0 }
 0x672   :  { %9872 = vmatmul.mubr.bf16.gmra.mrb[44].mxu1 %v8932_v0  ;;  %10065 = vmatprep.mubr.bf16.mxu0 %v22259_v5 }
 0x673   :  { %10106 = vmatprep.mubr.bf16.mxu1 %v22259_v5 }
 0x72c   :  { %v9697_v49 = vpop.f32.mrb[32].mxu0 }
 0x72d   :  { %v9935_v55 = vadd.f32 %v22003_v9, %v9697_v49  ;;  %v9843_v54 = vpop.f32.mrb[32].mxu1  ;;  %v9699_v18 = vpop.f32.mrb[33].mxu0 }
 0x72e   :  { %v9937_v39 = vadd.f32 %v22006_v48, %v9843_v54  ;;  %v9936_v53 = vadd.f32 %v22009_v17, %v9699_v18  ;;  %v9845_v29 = vpop.f32.mrb[33].mxu1  ;;  %v9701_v38 = vpop.f32.mrb[34].mxu0 }
 0x72f   :  { %v9938_v37 = vadd.f32 %v22012_v47, %v9845_v29  ;;  %v9939_v63 = vadd.f32 %v22003_v9, %v9701_v38  ;;  %v9847_v58 = vpop.f32.mrb[34].mxu1  ;;  %v9703_v6 = vpop.f32.mrb[35].mxu0  ;;  %v9967_v15 = vmax.f32 %v9935_v55, 0.0 }
 0x730   :  { %v9941_v24 = vadd.f32 %v22006_v48, %v9847_v58  ;;  %v9940_v33 = vadd.f32 %v22009_v17, %v9703_v6  ;;  %v9849_v57 = vpop.f32.mrb[35].mxu1  ;;  %v9969_v16 = vmax.f32 %v9937_v39, 0.0  ;;  %v9968_v23 = vmax.f32 %v9936_v53, 0.0 }
 0x731   :  { %v9971_v62 = vmax.f32 %v9939_v63, 0.0  ;;  %v9942_v13 = vadd.f32 %v22012_v47, %v9849_v57  ;;  %v9970_v59 = vmax.f32 %v9938_v37, 0.0 }
 0x732   :  { %v9973_v21 = vmax.f32 %v9941_v24, 0.0  ;;  %v9972_v31 = vmax.f32 %v9940_v33, 0.0 }
 0x733   :  { %v22022_v36 = vpack.c.bf16 %v9971_v62, %v9967_v15  ;;  %v9974_v52 = vmax.f32 %v9942_v13, 0.0 }
 0x734   :  { %v22024_v40 = vpack.c.bf16 %v9973_v21, %v9969_v16  ;;  %v22026_v2 = vpack.c.bf16 %v9972_v31, %v9968_v23  ;;  %v9707_v19 = vpop.f32.mrb[36].mxu0 }
 0x735   :  { %v22028_v7 = vpack.c.bf16 %v9974_v52, %v9970_v59  ;;  %v9943_v25 = vadd.f32 %v22003_v9, %v9707_v19  ;;  %v9853_v4 = vpop.f32.mrb[36].mxu1  ;;  %v9709_v26 = vpop.f32.mrb[37].mxu0 }
 0x736   :  { %v9945_v56 = vadd.f32 %v22006_v48, %v9853_v4  ;;  %v9944_v46 = vadd.f32 %v22009_v17, %v9709_v26  ;;  %v9855_v10 = vpop.f32.mrb[37].mxu1  ;;  %v9711_v27 = vpop.f32.mrb[38].mxu0  ;;  %10033 = vmatprep.subr.bf16.mxu0 %v22026_v2 }
 0x737   :  { %v9946_v43 = vadd.f32 %v22012_v47, %v9855_v10  ;;  %v9947_v50 = vadd.f32 %v22003_v9, %v9711_v27  ;;  %v9857_v12 = vpop.f32.mrb[38].mxu1  ;;  %10074 = vmatprep.subr.bf16.mxu1 %v22028_v7  ;;  %v9713_v14 = vpop.f32.mrb[39].mxu0  ;;  %10034 = vmatpush1.bf16.msra.mxu0 %v22022_v36  ;;  %v9975_v35 = vmax.f32 %v9943_v25, 0.0  ;;  %v22261_v27 = vld [vmem:[#allocation28_spill] sm:$0xff] }
 0x738   :  { %v9949_v51 = vadd.f32 %v22006_v48, %v9857_v12  ;;  %v9948_v11 = vadd.f32 %v22009_v17, %v9713_v14  ;;  %v9859_v22 = vpop.f32.mrb[39].mxu1  ;;  %10075 = vmatpush1.bf16.msra.mxu1 %v22024_v40  ;;  %v9977_v28 = vmax.f32 %v9945_v56, 0.0  ;;  %v9976_v20 = vmax.f32 %v9944_v46, 0.0 }
 0x739   :  { %v9979_v32 = vmax.f32 %v9947_v50, 0.0  ;;  %v9950_v30 = vadd.f32 %v22012_v47, %v9859_v22  ;;  %v9978_v45 = vmax.f32 %v9946_v43, 0.0  ;;  %v22260_v46 = vlaneseq }
 0x73a   :  { %v9981_v8 = vmax.f32 %v9949_v51, 0.0  ;;  %v9980_v41 = vmax.f32 %v9948_v11, 0.0  ;;  %v10019_v43 = vmul.u32 8, %v22261_v27 }
 0x73b   :  { %v22042_v61 = vpack.c.bf16 %v9979_v32, %v9975_v35  ;;  %v9982_v1 = vmax.f32 %v9950_v30, 0.0  ;;  %v22067_v10 = vand.u32 127, %v22260_v46  ;;  %v10232_v46 = vld [vmem:[#allocation12 + $0xc0] sm:$0xff] }
 0x73c   :  { %v22044_v0 = vpack.c.bf16 %v9981_v8, %v9977_v28  ;;  %v22046_v34 = vpack.c.bf16 %v9980_v41, %v9976_v20  ;;  %v9717_v49 = vpop.f32.mrb[40].mxu0 }
 0x73d   :  { %v22048_v55 = vpack.c.bf16 %v9982_v1, %v9978_v45  ;;  %v9951_v54 = vadd.f32 %v22003_v9, %v9717_v49  ;;  %v9863_v18 = vpop.f32.mrb[40].mxu1  ;;  %v9719_v39 = vpop.f32.mrb[41].mxu0  ;;  %vm10020_vm4 = vcmp.eq.s32.totalorder %v22067_v10, %v10019_v43 }
 0x73e   :  { %v9953_v53 = vadd.f32 %v22006_v48, %v9863_v18  ;;  %v9952_v29 = vadd.f32 %v22009_v17, %v9719_v39  ;;  %v9865_v38 = vpop.f32.mrb[41].mxu1  ;;  %v9721_v37 = vpop.f32.mrb[42].mxu0  ;;  %10035 = vmatprep.subr.bf16.mxu0 %v22046_v34 }
 0x73f   :  { %v9954_v63 = vadd.f32 %v22012_v47, %v9865_v38  ;;  %v9955_v58 = vadd.f32 %v22003_v9, %v9721_v37  ;;  %v9867_v6 = vpop.f32.mrb[42].mxu1  ;;  %10076 = vmatprep.subr.bf16.mxu1 %v22048_v55  ;;  %v9723_v24 = vpop.f32.mrb[43].mxu0  ;;  %10036 = vmatpush1.bf16.msra.mxu0 %v22042_v61  ;;  %v9983_v62 = vmax.f32 %v9951_v54, 0.0 }
 0x740   :  { %v9957_v33 = vadd.f32 %v22006_v48, %v9867_v6  ;;  %v9956_v57 = vadd.f32 %v22009_v17, %v9723_v24  ;;  %v9869_v15 = vpop.f32.mrb[43].mxu1  ;;  %10077 = vmatpush1.bf16.msra.mxu1 %v22044_v0  ;;  %v9985_v23 = vmax.f32 %v9953_v53, 0.0  ;;  %v9984_v21 = vmax.f32 %v9952_v29, 0.0 }
 0x741   :  { %v9987_v13 = vmax.f32 %v9955_v58, 0.0  ;;  %v9958_v16 = vadd.f32 %v22012_v47, %v9869_v15  ;;  %v9986_v52 = vmax.f32 %v9954_v63, 0.0  ;;  %v21010_v58 = vmov 0.0   ;;  %v10217_v15 = vld [vmem:[#allocation12 + $0x48] sm:$0xff] }
 0x742   :  { %v9989_v31 = vmax.f32 %v9957_v33, 0.0  ;;  %v9988_v59 = vmax.f32 %v9956_v57, 0.0  ;;  %v10220_v57 = vld [vmem:[#allocation12 + $0x60] sm:$0xff] }
 0x743   :  { %v22062_v19 = vpack.c.bf16 %v9987_v13, %v9983_v62  ;;  %v9990_v25 = vmax.f32 %v9958_v16, 0.0  ;;  %v10221_v62 = vld [vmem:[#allocation12 + $0x68] sm:$0xff] }
 0x744   :  { %v22064_v4 = vpack.c.bf16 %v9989_v31, %v9985_v23  ;;  %v10008_v26 = vpack.c.bf16 %v9988_v59, %v9984_v21  ;;  %v9727_v56 = vpop.f32.mrb[44].mxu0  ;;  %v17320_v21 = vcombine.high %v10217_v15, %v10221_v62  ;;  %v10224_v31 = vld [vmem:[#allocation12 + $0x80] sm:$0xff] }
 0x745   :  { %v10010_v50 = vpack.c.bf16 %v9990_v25, %v9986_v52  ;;  %v9959_v12 = vadd.f32 %v22003_v9, %v9727_v56  ;;  %v9873_v14 = vpop.f32.mrb[44].mxu1  ;;  %v9729_v51 = vpop.f32.mrb[45].mxu0  ;;  %v10228_v59 = vld [vmem:[#allocation12 + $0xa0] sm:$0xff]  ;;  %v10225_v52 = vld [vmem:[#allocation12 + $0x88] sm:$0xff] }
 0x746   :  { %v9961_v11 = vadd.f32 %v22006_v48, %v9873_v14  ;;  %v9960_v22 = vadd.f32 %v22009_v17, %v9729_v51  ;;  %v9875_v35 = vpop.f32.mrb[45].mxu1  ;;  %v9731_v32 = vpop.f32.mrb[46].mxu0  ;;  %10037 = vmatprep.subr.bf16.mxu0 %v10008_v26 }
 0x747   :  { %v9962_v30 = vadd.f32 %v22012_v47, %v9875_v35  ;;  %v9963_v28 = vadd.f32 %v22003_v9, %v9731_v32  ;;  %v9877_v20 = vpop.f32.mrb[46].mxu1  ;;  %10078 = vmatprep.subr.bf16.mxu1 %v10010_v50  ;;  %v9733_v8 = vpop.f32.mrb[47].mxu0  ;;  %10038 = vmatpush1.bf16.msra.mxu0 %v22062_v19  ;;  %v9991_v49 = vmax.f32 %v9959_v12, 0.0  ;;  %v17325_v12 = vcombine.low %v10224_v31, %v10228_v59  ;;  %v10244_v35 = vld [vmem:[#allocation12 + $0x120] sm:$0xff]  ;;  %v10241_v32 = vld [vmem:[#allocation12 + $0x108] sm:$0xff] }
 0x748   :  { %v9965_v41 = vadd.f32 %v22006_v48, %v9877_v20  ;;  %v9964_v45 = vadd.f32 %v22009_v17, %v9733_v8  ;;  %v9879_v1 = vpop.f32.mrb[47].mxu1  ;;  %10079 = vmatpush1.bf16.msra.mxu1 %v22064_v4  ;;  %v9993_v39 = vmax.f32 %v9961_v11, 0.0  ;;  %v9992_v9 = vmax.f32 %v9960_v22, 0.0  ;;  %v10240_v22 = vld [vmem:[#allocation12 + $0x100] sm:$0xff] }
 0x749   :  { %v9995_v54 = vmax.f32 %v9963_v28, 0.0  ;;  %v9966_v18 = vadd.f32 %v22012_v47, %v9879_v1  ;;  %v9994_v38 = vmax.f32 %v9962_v30, 0.0  ;;  %v17303_v48 = vsel %vm10020_vm4, 1.0, %v21010_v58  ;;  %v10245_v30 = vld [vmem:[#allocation12 + $0x128] sm:$0xff]  ;;  %v10252_v1 = vld [vmem:[#allocation12 + $0x160] sm:$0xff] }
 0x74a   :  { %v9997_v53 = vmax.f32 %v9965_v41, 0.0  ;;  %v9996_v29 = vmax.f32 %v9964_v45, 0.0  ;;  %v10023_v33 = vpack.c.bf16 %v17303_v48, %v17303_v48  ;;  %v10024_v47 = vadd.s32 1, %v10019_v43  ;;  %v10233_v43 = vld [vmem:[#allocation12 + $0xc8] sm:$0xff]  ;;  %v10248_v45 = vld [vmem:[#allocation12 + $0x140] sm:$0xff] }
 0x74b   :  { %v10011_v37 = vpack.c.bf16 %v9995_v54, %v9991_v49  ;;  %v9998_v63 = vmax.f32 %v9966_v18, 0.0  ;;  %v17342_v8 = vcombine.high %v10240_v22, %v10244_v35  ;;  %v17344_v41 = vcombine.high %v10241_v32, %v10245_v30  ;;  %v10249_v49 = vld [vmem:[#allocation12 + $0x148] sm:$0xff] }
 0x74c   :  { %v10013_v6 = vpack.c.bf16 %v9997_v53, %v9993_v39  ;;  %v10012_v17 = vpack.c.bf16 %v9996_v29, %v9992_v9  ;;  %vm10025_vm6 = vcmp.eq.s32.totalorder %v22067_v10, %v10024_v47  ;;  %v10236_v10 = vld [vmem:[#allocation12 + $0xe0] sm:$0xff]  ;;  %v10253_v54 = vld [vmem:[#allocation12 + $0x168] sm:$0xff]  ;;  %v17341_v18 = vcombine.low %v10240_v22, %v10244_v35 }
 0x74d   :  { %v10014_v24 = vpack.c.bf16 %v9998_v63, %v9994_v38  ;;  %v17334_v51 = vcombine.high %v10232_v46, %v10236_v10  ;;  %v17333_v28 = vcombine.low %v10232_v46, %v10236_v10  ;;  %v17343_v39 = vcombine.low %v10241_v32, %v10245_v30  ;;  %v10256_v29 = vld [vmem:[#allocation12 + $0x180] sm:$0xff]  ;;  %v10261_v63 = vld [vmem:[#allocation12 + $0x1a8] sm:$0xff] }
 0x74e   :  { %10039 = vmatprep.subr.bf16.mxu0 %v10012_v17  ;;  %v17350_v9 = vcombine.high %v10248_v45, %v10252_v1  ;;  %v17352_v53 = vcombine.high %v10249_v49, %v10253_v54  ;;  %v10260_v38 = vld [vmem:[#allocation12 + $0x1a0] sm:$0xff]  ;;  %v17351_v48 = vcombine.low %v10249_v49, %v10253_v54  ;;  %v10265_v47 = vld [vmem:[#allocation12 + $0x1c8] sm:$0xff] }
 0x74f   :  { %10080 = vmatprep.subr.bf16.mxu1 %v10014_v24  ;;  %10040 = vmatpush1.bf16.msra.mxu0 %v10011_v37  ;;  %v10293_v46 = vld [vmem:[#allocation12 + $0x2a8] sm:$0xff] }
 0x750   :  { %10081 = vmatpush1.bf16.msra.mxu1 %v10013_v6  ;;  %10118 = vmatprep.subr.bf16.mxu0 %v22026_v2  ;;  %v10212_v2 = vld [vmem:[#allocation12 + $0x20] sm:$0xff]  ;;  %v10301_v22 = vld [vmem:[#allocation12 + $0x2e8] sm:$0xff] }
 0x751   :  { %10159 = vmatprep.subr.bf16.mxu1 %v22028_v7  ;;  %v10213_v7 = vld [vmem:[#allocation12 + $0x28] sm:$0xff] }
 0x752   :  { %17305 = vmatmul.mubr.msk.bf16.vlgmr.msra.gmra.mrb[48].mxu0 %vm10029_vm5, %v10023_v33 }
 0x753   :  { %17306 = vmatmul.mubr.msk.bf16.vlgmr.msra.gmra.mrb[48].mxu1 %vm10029_vm5, %v10023_v33  ;;  %10119 = vmatpush1.bf16.msra.mxu0 %v22022_v36  ;;  %v10208_v36 = vld [vmem:[#allocation12] sm:$0xff] }
 0x754   :  { %10160 = vmatpush1.bf16.msra.mxu1 %v22024_v40  ;;  %10120 = vmatprep.subr.bf16.mxu0 %v22046_v34  ;;  %v10209_v40 = vld [vmem:[#allocation12 + $0x8] sm:$0xff]  ;;  %v17304_v34 = vsel %vm10025_vm6, 1.0, %v21010_v58  ;;  %v17309_v13 = vcombine.low %v10208_v36, %v10212_v2  ;;  %v17349_v58 = vcombine.low %v10248_v45, %v10252_v1  ;;  %v10268_v33 = vld [vmem:[#allocation12 + $0x1e0] sm:$0xff] }
 0x755   :  { %10161 = vmatprep.subr.bf16.mxu1 %v22048_v55  ;;  %10150 = vmatprep.mubr.bf16.mxu0 %v22259_v5  ;;  %v17310_v55 = vcombine.high %v10208_v36, %v10212_v2  ;;  %v17311_v16 = vcombine.low %v10209_v40, %v10213_v7  ;;  %v10269_v36 = vld [vmem:[#allocation12 + $0x1e8] sm:$0xff]  ;;  %v17357_v2 = vcombine.low %v10256_v29, %v10260_v38 }
 0x756   :  { %10191 = vmatprep.mubr.bf16.mxu1 %v22259_v5  ;;  %v17312_v5 = vcombine.high %v10209_v40, %v10213_v7  ;;  %v10309_v45 = vld [vmem:[#allocation12 + $0x328] sm:$0xff] }
 0x757   :  { %10121 = vmatpush1.bf16.msra.mxu0 %v22042_v61  ;;  %v10216_v61 = vld [vmem:[#allocation12 + $0x40] sm:$0xff] }
 0x758   :  { %10162 = vmatpush1.bf16.msra.mxu1 %v22044_v0  ;;  %10122 = vmatprep.subr.bf16.mxu0 %v10008_v26  ;;  %v10028_v0 = vpack.c.bf16 %v17304_v34, %v17304_v34  ;;  %v17318_v23 = vcombine.high %v10216_v61, %v10220_v57  ;;  %v17317_v25 = vcombine.low %v10216_v61, %v10220_v57  ;;  %v10273_v61 = vld [vmem:[#allocation12 + $0x208] sm:$0xff] }
 0x759   :  { %10163 = vmatprep.subr.bf16.mxu1 %v10010_v50  ;;  %v17326_v26 = vcombine.high %v10224_v31, %v10228_v59  ;;  %v10237_v50 = vld [vmem:[#allocation12 + $0xe8] sm:$0xff]  ;;  %v17368_v34 = vcombine.high %v10265_v47, %v10269_v36 }
 0x75a   :  { %v17336_v11 = vcombine.high %v10233_v43, %v10237_v50  ;;  %v17335_v20 = vcombine.low %v10233_v43, %v10237_v50  ;;  %v10277_v57 = vld [vmem:[#allocation12 + $0x228] sm:$0xff] }
 0x75b   :  { %10123 = vmatpush1.bf16.msra.mxu0 %v22062_v19  ;;  %v10229_v19 = vld [vmem:[#allocation12 + $0xa8] sm:$0xff] }
 0x75c   :  { %10164 = vmatpush1.bf16.msra.mxu1 %v22064_v4  ;;  %10124 = vmatprep.subr.bf16.mxu0 %v10012_v17  ;;  %v17319_v4 = vcombine.low %v10217_v15, %v10221_v62  ;;  %v17328_v56 = vcombine.high %v10225_v52, %v10229_v19  ;;  %v17327_v14 = vcombine.low %v10225_v52, %v10229_v19  ;;  %v10285_v31 = vld [vmem:[#allocation12 + $0x268] sm:$0xff] }
 0x75d   :  { %10165 = vmatprep.subr.bf16.mxu1 %v10014_v24  ;;  %v10264_v24 = vld [vmem:[#allocation12 + $0x1c0] sm:$0xff]  ;;  %v17367_v15 = vcombine.low %v10265_v47, %v10269_v36  ;;  %v17375_v52 = vcombine.low %v10273_v61, %v10277_v57 }
 0x75e   :  { %v17366_v7 = vcombine.high %v10264_v24, %v10268_v33 }
 0x75f   :  { %10125 = vmatpush1.bf16.msra.mxu0 %v10011_v37  ;;  %v10257_v37 = vld [vmem:[#allocation12 + $0x188] sm:$0xff] }
 0x760   :  { %10166 = vmatpush1.bf16.msra.mxu1 %v10013_v6  ;;  %13322 = vmatprep.subr.bf16.mxu0 %v17310_v55  ;;  %v17358_v6 = vcombine.high %v10256_v29, %v10260_v38  ;;  %v17360_v17 = vcombine.high %v10257_v37, %v10261_v63  ;;  %v17359_v40 = vcombine.low %v10257_v37, %v10261_v63  ;;  %v10272_v55 = vld [vmem:[#allocation12 + $0x200] sm:$0xff]  ;;  %v10317_v29 = vld [vmem:[#allocation12 + $0x368] sm:$0xff] }
 0x761   :  { %13486 = vmatprep.subr.bf16.mxu1 %v17312_v5  ;;  %v10276_v5 = vld [vmem:[#allocation12 + $0x220] sm:$0xff] }
 0x762   :  { %17307 = vmatmul.mubr.msk.bf16.vlgmr.msra.gmra.mrb[52].mxu0 %vm10029_vm5, %v10028_v0  ;;  %v17374_v62 = vcombine.high %v10272_v55, %v10276_v5  ;;  %v17373_v59 = vcombine.low %v10272_v55, %v10276_v5  ;;  %v10332_v55 = vld [vmem:[#allocation12 + $0x3e0] sm:$0xff]  ;;  %v10329_v5 = vld [vmem:[#allocation12 + $0x3c8] sm:$0xff] }
 0x763   :  { %17308 = vmatmul.mubr.msk.bf16.vlgmr.msra.gmra.mrb[52].mxu1 %vm10029_vm5, %v10028_v0  ;;  %13323 = vmatpush1.bf16.msra.mxu0 %v17309_v13  ;;  %v17365_v0 = vcombine.low %v10264_v24, %v10268_v33  ;;  %v17376_v13 = vcombine.high %v10273_v61, %v10277_v57  ;;  %v10325_v24 = vld [vmem:[#allocation12 + $0x3a8] sm:$0xff] }
 0x764   :  { %13487 = vmatpush1.bf16.msra.mxu1 %v17311_v16  ;;  %13324 = vmatprep.subr.bf16.mxu0 %v17318_v23  ;;  %v10280_v16 = vld [vmem:[#allocation12 + $0x240] sm:$0xff] }
 0x765   :  { %13488 = vmatprep.subr.bf16.mxu1 %v17320_v21  ;;  %v10284_v23 = vld [vmem:[#allocation12 + $0x260] sm:$0xff]  ;;  %v10281_v21 = vld [vmem:[#allocation12 + $0x248] sm:$0xff] }
 0x766   :  { %v17382_v19 = vcombine.high %v10280_v16, %v10284_v23  ;;  %v17381_v10 = vcombine.low %v10280_v16, %v10284_v23  ;;  %v17383_v43 = vcombine.low %v10281_v21, %v10285_v31  ;;  %v10340_v16 = vld [vmem:[#allocation12 + $0x420] sm:$0xff]  ;;  %v10337_v23 = vld [vmem:[#allocation12 + $0x408] sm:$0xff] }
 0x767   :  { %13325 = vmatpush1.bf16.msra.mxu0 %v17317_v25  ;;  %v17384_v25 = vcombine.high %v10281_v21, %v10285_v31 }
 0x768   :  { %13489 = vmatpush1.bf16.msra.mxu1 %v17319_v4  ;;  %13326 = vmatprep.subr.bf16.mxu0 %v17326_v26  ;;  %v10288_v4 = vld [vmem:[#allocation12 + $0x280] sm:$0xff] }
 0x769   :  { %13490 = vmatprep.subr.bf16.mxu1 %v17328_v56  ;;  %v10292_v26 = vld [vmem:[#allocation12 + $0x2a0] sm:$0xff]  ;;  %v10289_v56 = vld [vmem:[#allocation12 + $0x288] sm:$0xff] }
 0x76a   :  { %v17390_v50 = vcombine.high %v10288_v4, %v10292_v26  ;;  %v17389_v35 = vcombine.low %v10288_v4, %v10292_v26  ;;  %v17391_v32 = vcombine.low %v10289_v56, %v10293_v46  ;;  %v10348_v26 = vld [vmem:[#allocation12 + $0x460] sm:$0xff] }
 0x76b   :  { %13327 = vmatpush1.bf16.msra.mxu0 %v17325_v12  ;;  %v17392_v12 = vcombine.high %v10289_v56, %v10293_v46  ;;  %v10345_v56 = vld [vmem:[#allocation12 + $0x448] sm:$0xff] }
 0x76c   :  { %13491 = vmatpush1.bf16.msra.mxu1 %v17327_v14  ;;  %13328 = vmatprep.subr.bf16.mxu0 %v17334_v51  ;;  %v10296_v14 = vld [vmem:[#allocation12 + $0x2c0] sm:$0xff]  ;;  %v10349_v46 = vld [vmem:[#allocation12 + $0x468] sm:$0xff] }
 0x76d   :  { %13492 = vmatprep.subr.bf16.mxu1 %v17336_v11  ;;  %v10300_v51 = vld [vmem:[#allocation12 + $0x2e0] sm:$0xff]  ;;  %v10297_v11 = vld [vmem:[#allocation12 + $0x2c8] sm:$0xff] }
 0x76e   :  { %v17398_v30 = vcombine.high %v10296_v14, %v10300_v51  ;;  %v17397_v1 = vcombine.low %v10296_v14, %v10300_v51  ;;  %v17399_v49 = vcombine.low %v10297_v11, %v10301_v22 }
 0x76f   :  { %13329 = vmatpush1.bf16.msra.mxu0 %v17333_v28  ;;  %v17400_v28 = vcombine.high %v10297_v11, %v10301_v22 }
 0x770   :  { %13493 = vmatpush1.bf16.msra.mxu1 %v17335_v20  ;;  %13330 = vmatprep.subr.bf16.mxu0 %v17342_v8  ;;  %v10304_v20 = vld [vmem:[#allocation12 + $0x300] sm:$0xff] }
 0x771   :  { %13494 = vmatprep.subr.bf16.mxu1 %v17344_v41  ;;  %v10308_v8 = vld [vmem:[#allocation12 + $0x320] sm:$0xff]  ;;  %v10305_v41 = vld [vmem:[#allocation12 + $0x308] sm:$0xff] }
 0x772   :  { %v17406_v54 = vcombine.high %v10304_v20, %v10308_v8  ;;  %v17405_v38 = vcombine.low %v10304_v20, %v10308_v8  ;;  %v17407_v37 = vcombine.low %v10305_v41, %v10309_v45  ;;  %v10353_v20 = vld [vmem:[#allocation12 + $0x488] sm:$0xff] }
 0x773   :  { %13331 = vmatpush1.bf16.msra.mxu0 %v17341_v18  ;;  %v17408_v18 = vcombine.high %v10305_v41, %v10309_v45  ;;  %v10357_v8 = vld [vmem:[#allocation12 + $0x4a8] sm:$0xff] }
 0x774   :  { %13495 = vmatpush1.bf16.msra.mxu1 %v17343_v39  ;;  %13332 = vmatprep.subr.bf16.mxu0 %v17350_v9  ;;  %v10312_v39 = vld [vmem:[#allocation12 + $0x340] sm:$0xff] }
 0x775   :  { %13496 = vmatprep.subr.bf16.mxu1 %v17352_v53  ;;  %v10316_v9 = vld [vmem:[#allocation12 + $0x360] sm:$0xff]  ;;  %v10313_v53 = vld [vmem:[#allocation12 + $0x348] sm:$0xff] }
 0x776   :  { %v17414_v63 = vcombine.high %v10312_v39, %v10316_v9  ;;  %v17413_v33 = vcombine.low %v10312_v39, %v10316_v9  ;;  %v17415_v47 = vcombine.low %v10313_v53, %v10317_v29  ;;  %v10360_v39 = vld [vmem:[#allocation12 + $0x4c0] sm:$0xff] }
 0x777   :  { %13333 = vmatpush1.bf16.msra.mxu0 %v17349_v58  ;;  %v17416_v58 = vcombine.high %v10313_v53, %v10317_v29  ;;  %v10364_v9 = vld [vmem:[#allocation12 + $0x4e0] sm:$0xff]  ;;  %v10361_v53 = vld [vmem:[#allocation12 + $0x4c8] sm:$0xff] }
 0x778   :  { %13497 = vmatpush1.bf16.msra.mxu1 %v17351_v48  ;;  %13334 = vmatprep.subr.bf16.mxu0 %v17358_v6  ;;  %v10320_v48 = vld [vmem:[#allocation12 + $0x380] sm:$0xff]  ;;  %v10365_v29 = vld [vmem:[#allocation12 + $0x4e8] sm:$0xff] }
 0x779   :  { %13498 = vmatprep.subr.bf16.mxu1 %v17360_v17  ;;  %v10324_v6 = vld [vmem:[#allocation12 + $0x3a0] sm:$0xff]  ;;  %v10321_v17 = vld [vmem:[#allocation12 + $0x388] sm:$0xff] }
 0x77a   :  { %v17422_v36 = vcombine.high %v10320_v48, %v10324_v6 }
 0x77b   :  { %13335 = vmatpush1.bf16.msra.mxu0 %v17357_v2  ;;  %v17424_v2 = vcombine.high %v10321_v17, %v10325_v24 }
 0x77c   :  { %13499 = vmatpush1.bf16.msra.mxu1 %v17359_v40  ;;  %13336 = vmatprep.subr.bf16.mxu0 %v17366_v7  ;;  %v17421_v40 = vcombine.low %v10320_v48, %v10324_v6  ;;  %v17423_v7 = vcombine.low %v10321_v17, %v10325_v24  ;;  %v10368_v48 = vld [vmem:[#allocation12 + $0x500] sm:$0xff]  ;;  %v10369_v17 = vld [vmem:[#allocation12 + $0x508] sm:$0xff] }
 0x77d   :  { %13500 = vmatprep.subr.bf16.mxu1 %v17368_v34  ;;  %v10328_v34 = vld [vmem:[#allocation12 + $0x3c0] sm:$0xff]  ;;  %v10373_v24 = vld [vmem:[#allocation12 + $0x528] sm:$0xff] }
 0x77e   :  { %v17429_v61 = vcombine.low %v10328_v34, %v10332_v55  ;;  %v17430_v57 = vcombine.high %v10328_v34, %v10332_v55  ;;  %v10372_v6 = vld [vmem:[#allocation12 + $0x520] sm:$0xff]  ;;  %v10377_v34 = vld [vmem:[#allocation12 + $0x548] sm:$0xff] }
 0x77f   :  { %13337 = vmatpush1.bf16.msra.mxu0 %v17365_v0  ;;  %v10333_v0 = vld [vmem:[#allocation12 + $0x3e8] sm:$0xff] }
 0x780   :  { %13501 = vmatpush1.bf16.msra.mxu1 %v17367_v15  ;;  %13338 = vmatprep.subr.bf16.mxu0 %v17374_v62  ;;  %v17431_v15 = vcombine.low %v10329_v5, %v10333_v0  ;;  %v17432_v62 = vcombine.high %v10329_v5, %v10333_v0  ;;  %v10381_v55 = vld [vmem:[#allocation12 + $0x568] sm:$0xff]  ;;  %v17471_v0 = vcombine.low %v10369_v17, %v10373_v24 }
 0x781   :  { %13502 = vmatprep.subr.bf16.mxu1 %v17376_v13  ;;  %v10336_v13 = vld [vmem:[#allocation12 + $0x400] sm:$0xff] }
 0x782   :  { %v17437_v21 = vcombine.low %v10336_v13, %v10340_v16  ;;  %v17438_v31 = vcombine.high %v10336_v13, %v10340_v16  ;;  %v17480_v13 = vcombine.high %v10377_v34, %v10381_v55  ;;  %v10384_v16 = vld [vmem:[#allocation12 + $0x580] sm:$0xff] }
 0x783   :  { %13339 = vmatpush1.bf16.msra.mxu0 %v17373_v59  ;;  %v10341_v59 = vld [vmem:[#allocation12 + $0x428] sm:$0xff] }
 0x784   :  { %13503 = vmatpush1.bf16.msra.mxu1 %v17375_v52  ;;  %13340 = vmatprep.subr.bf16.mxu0 %v17382_v19  ;;  %v17439_v52 = vcombine.low %v10337_v23, %v10341_v59  ;;  %v17440_v19 = vcombine.high %v10337_v23, %v10341_v59  ;;  %v10389_v59 = vld [vmem:[#allocation12 + $0x5a8] sm:$0xff] }
 0x785   :  { %13504 = vmatprep.subr.bf16.mxu1 %v17384_v25  ;;  %v10344_v25 = vld [vmem:[#allocation12 + $0x440] sm:$0xff] }
 0x786   :  { %v17446_v22 = vcombine.high %v10344_v25, %v10348_v26 }
 0x787   :  { %13341 = vmatpush1.bf16.msra.mxu0 %v17381_v10 }
 0x788   :  { %13505 = vmatpush1.bf16.msra.mxu1 %v17383_v43  ;;  %13342 = vmatprep.subr.bf16.mxu0 %v17390_v50 }
 0x789   :  { %13506 = vmatprep.subr.bf16.mxu1 %v17392_v12 }
 0x78b   :  { %13343 = vmatpush1.bf16.msra.mxu0 %v17389_v35  ;;  %v17448_v35 = vcombine.high %v10345_v56, %v10349_v46 }
 0x78c   :  { %13507 = vmatpush1.bf16.msra.mxu1 %v17391_v32  ;;  %13344 = vmatprep.subr.bf16.mxu0 %v17398_v30  ;;  %v10352_v32 = vld [vmem:[#allocation12 + $0x480] sm:$0xff] }
 0x78d   :  { %13508 = vmatprep.subr.bf16.mxu1 %v17400_v28  ;;  %v10356_v28 = vld [vmem:[#allocation12 + $0x4a0] sm:$0xff] }
 0x78f   :  { %13345 = vmatpush1.bf16.msra.mxu0 %v17397_v1  ;;  %v17445_v1 = vcombine.low %v10344_v25, %v10348_v26  ;;  %v10392_v26 = vld [vmem:[#allocation12 + $0x5c0] sm:$0xff] }
 0x790   :  { %13509 = vmatpush1.bf16.msra.mxu1 %v17399_v49  ;;  %13346 = vmatprep.subr.bf16.mxu0 %v17406_v54  ;;  %v17447_v49 = vcombine.low %v10345_v56, %v10349_v46  ;;  %v17454_v54 = vcombine.high %v10352_v32, %v10356_v28  ;;  %v10396_v56 = vld [vmem:[#allocation12 + $0x5e0] sm:$0xff]  ;;  %v10393_v46 = vld [vmem:[#allocation12 + $0x5c8] sm:$0xff] }
 0x791   :  { %13510 = vmatprep.subr.bf16.mxu1 %v17408_v18  ;;  %v17456_v18 = vcombine.high %v10353_v20, %v10357_v8 }
 0x793   :  { %13347 = vmatpush1.bf16.msra.mxu0 %v17405_v38  ;;  %v17453_v38 = vcombine.low %v10352_v32, %v10356_v28  ;;  %v10404_v32 = vld [vmem:[#allocation12 + $0x620] sm:$0xff]  ;;  %v10405_v28 = vld [vmem:[#allocation12 + $0x628] sm:$0xff] }
 0x794   :  { %13511 = vmatpush1.bf16.msra.mxu1 %v17407_v37  ;;  %13348 = vmatprep.subr.bf16.mxu0 %v17414_v63  ;;  %v17455_v37 = vcombine.low %v10353_v20, %v10357_v8  ;;  %v17462_v63 = vcombine.high %v10360_v39, %v10364_v9  ;;  %v17493_v20 = vcombine.low %v10392_v26, %v10396_v56 }
 0x795   :  { %13512 = vmatprep.subr.bf16.mxu1 %v17416_v58  ;;  %v17464_v58 = vcombine.high %v10361_v53, %v10365_v29 }
 0x797   :  { %13349 = vmatpush1.bf16.msra.mxu0 %v17413_v33  ;;  %v17461_v33 = vcombine.low %v10360_v39, %v10364_v9  ;;  %v10413_v39 = vld [vmem:[#allocation12 + $0x668] sm:$0xff] }
 0x798   :  { %13513 = vmatpush1.bf16.msra.mxu1 %v17415_v47  ;;  %13350 = vmatprep.subr.bf16.mxu0 %v17422_v36  ;;  %v17463_v47 = vcombine.low %v10361_v53, %v10365_v29  ;;  %v17470_v36 = vcombine.high %v10368_v48, %v10372_v6 }
 0x799   :  { %13514 = vmatprep.subr.bf16.mxu1 %v17424_v2  ;;  %v17472_v2 = vcombine.high %v10369_v17, %v10373_v24 }
 0x79b   :  { %13351 = vmatpush1.bf16.msra.mxu0 %v17421_v40  ;;  %v10376_v40 = vld [vmem:[#allocation12 + $0x540] sm:$0xff] }
 0x79c   :  { %13515 = vmatpush1.bf16.msra.mxu1 %v17423_v7  ;;  %13352 = vmatprep.subr.bf16.mxu0 %v17430_v57  ;;  %v10380_v7 = vld [vmem:[#allocation12 + $0x560] sm:$0xff]  ;;  %v17469_v57 = vcombine.low %v10368_v48, %v10372_v6  ;;  %v10421_v48 = vld [vmem:[#allocation12 + $0x6a8] sm:$0xff] }
 0x79d   :  { %13516 = vmatprep.subr.bf16.mxu1 %v17432_v62  ;;  %v17478_v62 = vcombine.high %v10376_v40, %v10380_v7 }
 0x79f   :  { %13353 = vmatpush1.bf16.msra.mxu0 %v17429_v61 }
 0x7a0   :  { %13517 = vmatpush1.bf16.msra.mxu1 %v17431_v15  ;;  %13363 = vmatprep.subr.bf16.mxu0 %v17438_v31  ;;  %v10385_v31 = vld [vmem:[#allocation12 + $0x588] sm:$0xff] }
 0x7a1   :  { %13527 = vmatprep.subr.bf16.mxu1 %v17440_v19  ;;  %v17479_v19 = vcombine.low %v10377_v34, %v10381_v55 }
 0x825   :  { %v10067_v4 = vpop.f32.mrb[48].mxu0 }
 0x826   :  { %v10069_v10 = vpop.f32.mrb[49].mxu0  ;;  %v22098_v43 = vpop.f32.mrb[48].mxu1  ;;  %v22102_v51 = vpack.c.bf16 %v10067_v4, %v10067_v4  ;;  %v17488_v4 = vcombine.high %v10385_v31, %v10389_v59 }
 0x827   :  { %v22100_v50 = vpack.c.bf16 %v10069_v10, %v10069_v10  ;;  %v10071_v12 = vpop.f32.mrb[50].mxu0  ;;  %v10110_v14 = vpop.f32.mrb[49].mxu1  ;;  %v10397_v10 = vld [vmem:[#allocation12 + $0x5e8] sm:$0xff] }
 0x828   :  { %v10072_v11 = vpop.f32.mrb[51].mxu0  ;;  %v10112_v30 = vpop.f32.mrb[50].mxu1  ;;  %v22106_v41 = vpack.c.bf16 %v10110_v14, %v10110_v14  ;;  %v17487_v14 = vcombine.low %v10385_v31, %v10389_v59  ;;  %v17495_v8 = vcombine.low %v10393_v46, %v10397_v10  ;;  %v10440_v59 = vld [vmem:[#allocation12 + $0x740] sm:$0xff] }
 0x829   :  { %13354 = vmatprep.mubr.bf16.mxu0 %v22100_v50  ;;  %13518 = vmatprep.mubr.bf16.mxu1 %v22100_v50  ;;  %v10113_v45 = vpop.f32.mrb[51].mxu1  ;;  %v17494_v11 = vcombine.high %v10392_v26, %v10396_v56  ;;  %v10401_v30 = vld [vmem:[#allocation12 + $0x608] sm:$0xff] }
 0x82a   :  { %13355 = vmatmul.mubr.bf16.vlgmr.msra.gmra.mrb[56].mxu0 %v22102_v51  ;;  %13519 = vmatmul.mubr.bf16.vlgmr.msra.gmra.mrb[56].mxu1 %v22102_v51  ;;  %v17503_v53 = vcombine.low %v10401_v30, %v10405_v28 }
 0x82b   :  { %13364 = vmatpush1.bf16.msra.mxu0 %v17437_v21  ;;  %13528 = vmatpush1.bf16.msra.mxu1 %v17439_v52  ;;  %v10388_v21 = vld [vmem:[#allocation12 + $0x5a0] sm:$0xff]  ;;  %v17477_v52 = vcombine.low %v10376_v40, %v10380_v7  ;;  %v10429_v40 = vld [vmem:[#allocation12 + $0x6e8] sm:$0xff] }
 0x82c   :  { %13365 = vmatprep.subr.bf16.mxu0 %v17446_v22  ;;  %13529 = vmatprep.subr.bf16.mxu1 %v17448_v35  ;;  %v17486_v25 = vcombine.high %v10384_v16, %v10388_v21  ;;  %v17485_v12 = vcombine.low %v10384_v16, %v10388_v21  ;;  %v17496_v22 = vcombine.high %v10393_v46, %v10397_v10  ;;  %v10400_v35 = vld [vmem:[#allocation12 + $0x600] sm:$0xff] }
 0x82d   :  { %13395 = vmatprep.mubr.bf16.mxu0 %v22106_v41  ;;  %13559 = vmatprep.mubr.bf16.mxu1 %v22106_v41  ;;  %v17502_v45 = vcombine.high %v10400_v35, %v10404_v32  ;;  %v17501_v9 = vcombine.low %v10400_v35, %v10404_v32  ;;  %v10448_v10 = vld [vmem:[#allocation12 + $0x780] sm:$0xff] }
 0x82f   :  { %13366 = vmatpush1.bf16.msra.mxu0 %v17445_v1  ;;  %13530 = vmatpush1.bf16.msra.mxu1 %v17447_v49  ;;  %v17504_v1 = vcombine.high %v10401_v30, %v10405_v28  ;;  %v10408_v49 = vld [vmem:[#allocation12 + $0x640] sm:$0xff] }
 0x830   :  { %13367 = vmatprep.subr.bf16.mxu0 %v17454_v54  ;;  %13531 = vmatprep.subr.bf16.mxu1 %v17456_v18  ;;  %v10412_v54 = vld [vmem:[#allocation12 + $0x660] sm:$0xff]  ;;  %v10409_v18 = vld [vmem:[#allocation12 + $0x648] sm:$0xff] }
 0x831   :  { %v17510_v29 = vcombine.high %v10408_v49, %v10412_v54  ;;  %v17509_v6 = vcombine.low %v10408_v49, %v10412_v54  ;;  %v17511_v17 = vcombine.low %v10409_v18, %v10413_v39  ;;  %v10461_v49 = vld [vmem:[#allocation12 + $0x7e8] sm:$0xff] }
 0x833   :  { %13368 = vmatpush1.bf16.msra.mxu0 %v17453_v38  ;;  %13532 = vmatpush1.bf16.msra.mxu1 %v17455_v37  ;;  %v17512_v38 = vcombine.high %v10409_v18, %v10413_v39  ;;  %v10416_v37 = vld [vmem:[#allocation12 + $0x680] sm:$0xff] }
 0x834   :  { %13369 = vmatprep.subr.bf16.mxu0 %v17462_v63  ;;  %13533 = vmatprep.subr.bf16.mxu1 %v17464_v58  ;;  %v10420_v63 = vld [vmem:[#allocation12 + $0x6a0] sm:$0xff]  ;;  %v10417_v58 = vld [vmem:[#allocation12 + $0x688] sm:$0xff] }
 0x835   :  { %v22112_v5 = vpop.f32.mrb[52].mxu0  ;;  %v17518_v24 = vcombine.high %v10416_v37, %v10420_v63  ;;  %v17517_v7 = vcombine.low %v10416_v37, %v10420_v63  ;;  %v17519_v34 = vcombine.low %v10417_v58, %v10421_v48  ;;  %v10468_v37 = vld [vmem:[#allocation12 + $0x820] sm:$0xff]  ;;  %v10465_v63 = vld [vmem:[#allocation12 + $0x808] sm:$0xff] }
 0x836   :  { %v22114_v61 = vpop.f32.mrb[53].mxu0  ;;  %v22116_v32 = vpop.f32.mrb[52].mxu1 }
 0x837   :  { %13370 = vmatpush1.bf16.msra.mxu0 %v17461_v33  ;;  %13534 = vmatpush1.bf16.msra.mxu1 %v17463_v47  ;;  %v10156_v15 = vpop.f32.mrb[54].mxu0  ;;  %v17520_v33 = vcombine.high %v10417_v58, %v10421_v48  ;;  %v10424_v47 = vld [vmem:[#allocation12 + $0x6c0] sm:$0xff]  ;;  %v10469_v58 = vld [vmem:[#allocation12 + $0x828] sm:$0xff] }
 0x838   :  { %13371 = vmatprep.subr.bf16.mxu0 %v17470_v36  ;;  %13535 = vmatprep.subr.bf16.mxu1 %v17472_v2  ;;  %v10157_v23 = vpop.f32.mrb[55].mxu0  ;;  %v10428_v36 = vld [vmem:[#allocation12 + $0x6e0] sm:$0xff]  ;;  %v10425_v2 = vld [vmem:[#allocation12 + $0x6c8] sm:$0xff] }
 0x839   :  { %v17526_v55 = vcombine.high %v10424_v47, %v10428_v36  ;;  %v10436_v15 = vld [vmem:[#allocation12 + $0x720] sm:$0xff]  ;;  %v17525_v16 = vcombine.low %v10424_v47, %v10428_v36  ;;  %v17527_v23 = vcombine.low %v10425_v2, %v10429_v40  ;;  %v10473_v36 = vld [vmem:[#allocation12 + $0x848] sm:$0xff] }
 0x83a   :  { %v10476_v47 = vld [vmem:[#allocation12 + $0x860] sm:$0xff] }
 0x83b   :  { %13372 = vmatpush1.bf16.msra.mxu0 %v17469_v57  ;;  %13536 = vmatpush1.bf16.msra.mxu1 %v17471_v0  ;;  %v17528_v57 = vcombine.high %v10425_v2, %v10429_v40  ;;  %v10432_v0 = vld [vmem:[#allocation12 + $0x700] sm:$0xff]  ;;  %v10477_v2 = vld [vmem:[#allocation12 + $0x868] sm:$0xff]  ;;  %v22122_v40 = vpack.c.bf16 %v22098_v43, %v22098_v43 }
 0x83c   :  { %13373 = vmatprep.subr.bf16.mxu0 %v17478_v62  ;;  %13537 = vmatprep.subr.bf16.mxu1 %v17480_v13  ;;  %v10433_v62 = vld [vmem:[#allocation12 + $0x708] sm:$0xff]  ;;  %v17534_v21 = vcombine.high %v10432_v0, %v10436_v15 }
 0x83d   :  { %v10437_v13 = vld [vmem:[#allocation12 + $0x728] sm:$0xff] }
 0x83e   :  { %v17536_v31 = vcombine.high %v10433_v62, %v10437_v13  ;;  %v17535_v26 = vcombine.low %v10433_v62, %v10437_v13  ;;  %v10481_v62 = vld [vmem:[#allocation12 + $0x888] sm:$0xff] }
 0x83f   :  { %13374 = vmatpush1.bf16.msra.mxu0 %v17477_v52  ;;  %13538 = vmatpush1.bf16.msra.mxu1 %v17479_v19  ;;  %v10444_v52 = vld [vmem:[#allocation12 + $0x760] sm:$0xff]  ;;  %v10441_v19 = vld [vmem:[#allocation12 + $0x748] sm:$0xff] }
 0x840   :  { %13375 = vmatprep.subr.bf16.mxu0 %v17486_v25  ;;  %13539 = vmatprep.subr.bf16.mxu1 %v17488_v4  ;;  %v10445_v25 = vld [vmem:[#allocation12 + $0x768] sm:$0xff]  ;;  %v17533_v4 = vcombine.low %v10432_v0, %v10436_v15  ;;  %v17542_v56 = vcombine.high %v10440_v59, %v10444_v52  ;;  %v10480_v0 = vld [vmem:[#allocation12 + $0x880] sm:$0xff] }
 0x841   :  { %v17544_v46 = vcombine.high %v10441_v19, %v10445_v25  ;;  %v17543_v35 = vcombine.low %v10441_v19, %v10445_v25  ;;  %v10484_v15 = vld [vmem:[#allocation12 + $0x8a0] sm:$0xff]  ;;  %v10485_v13 = vld [vmem:[#allocation12 + $0x8a8] sm:$0xff] }
 0x842   :  { %v10489_v19 = vld [vmem:[#allocation12 + $0x8c8] sm:$0xff] }
 0x843   :  { %13376 = vmatpush1.bf16.msra.mxu0 %v17485_v12  ;;  %13540 = vmatpush1.bf16.msra.mxu1 %v17487_v14  ;;  %v10452_v12 = vld [vmem:[#allocation12 + $0x7a0] sm:$0xff]  ;;  %v10449_v14 = vld [vmem:[#allocation12 + $0x788] sm:$0xff] }
 0x844   :  { %13377 = vmatprep.subr.bf16.mxu0 %v17494_v11  ;;  %13541 = vmatprep.subr.bf16.mxu1 %v17496_v22  ;;  %v10453_v11 = vld [vmem:[#allocation12 + $0x7a8] sm:$0xff]  ;;  %v17541_v22 = vcombine.low %v10440_v59, %v10444_v52  ;;  %v17550_v30 = vcombine.high %v10448_v10, %v10452_v12  ;;  %v17549_v39 = vcombine.low %v10448_v10, %v10452_v12  ;;  %v10488_v59 = vld [vmem:[#allocation12 + $0x8c0] sm:$0xff] }
 0x845   :  { %v17552_v28 = vcombine.high %v10449_v14, %v10453_v11  ;;  %v10492_v52 = vld [vmem:[#allocation12 + $0x8e0] sm:$0xff]  ;;  %v10493_v25 = vld [vmem:[#allocation12 + $0x8e8] sm:$0xff] }
 0x846   :  { %v10500_v10 = vld [vmem:[#allocation12 + $0x920] sm:$0xff]  ;;  %v10497_v12 = vld [vmem:[#allocation12 + $0x908] sm:$0xff] }
 0x847   :  { %13378 = vmatpush1.bf16.msra.mxu0 %v17493_v20  ;;  %13542 = vmatpush1.bf16.msra.mxu1 %v17495_v8  ;;  %v10456_v20 = vld [vmem:[#allocation12 + $0x7c0] sm:$0xff]  ;;  %v22118_v8 = vpop.f32.mrb[53].mxu1 }
 0x848   :  { %13379 = vmatprep.subr.bf16.mxu0 %v17502_v45  ;;  %13543 = vmatprep.subr.bf16.mxu1 %v17504_v1  ;;  %v10460_v45 = vld [vmem:[#allocation12 + $0x7e0] sm:$0xff]  ;;  %v10457_v1 = vld [vmem:[#allocation12 + $0x7c8] sm:$0xff]  ;;  %v10197_v54 = vpop.f32.mrb[54].mxu1 }
 0x849   :  { %v10198_v18 = vpop.f32.mrb[55].mxu1  ;;  %v17557_v48 = vcombine.low %v10456_v20, %v10460_v45 }
 0x84b   :  { %13380 = vmatpush1.bf16.msra.mxu0 %v17501_v9  ;;  %13544 = vmatpush1.bf16.msra.mxu1 %v17503_v53  ;;  %v17551_v9 = vcombine.low %v10449_v14, %v10453_v11  ;;  %v17558_v53 = vcombine.high %v10456_v20, %v10460_v45  ;;  %v10501_v14 = vld [vmem:[#allocation12 + $0x928] sm:$0xff]  ;;  %v17589_v11 = vcombine.low %v10488_v59, %v10492_v52  ;;  %v10508_v20 = vld [vmem:[#allocation12 + $0x960] sm:$0xff] }
 0x84c   :  { %13381 = vmatprep.subr.bf16.mxu0 %v17510_v29  ;;  %13545 = vmatprep.subr.bf16.mxu1 %v17512_v38  ;;  %v17560_v29 = vcombine.high %v10457_v1, %v10461_v49  ;;  %v10464_v38 = vld [vmem:[#allocation12 + $0x800] sm:$0xff]  ;;  %v10505_v45 = vld [vmem:[#allocation12 + $0x948] sm:$0xff]  ;;  %v17599_v54 = vcombine.low %v10497_v12, %v10501_v14 }
 0x84f   :  { %13382 = vmatpush1.bf16.msra.mxu0 %v17509_v6  ;;  %13546 = vmatpush1.bf16.msra.mxu1 %v17511_v17  ;;  %v17559_v6 = vcombine.low %v10457_v1, %v10461_v49  ;;  %v17566_v17 = vcombine.high %v10464_v38, %v10468_v37  ;;  %v10509_v1 = vld [vmem:[#allocation12 + $0x968] sm:$0xff] }
 0x850   :  { %13383 = vmatprep.subr.bf16.mxu0 %v17518_v24  ;;  %13547 = vmatprep.subr.bf16.mxu1 %v17520_v33  ;;  %v17568_v24 = vcombine.high %v10465_v63, %v10469_v58  ;;  %v10472_v33 = vld [vmem:[#allocation12 + $0x840] sm:$0xff] }
 0x851   :  { %v17573_v43 = vcombine.low %v10472_v33, %v10476_v47 }
 0x853   :  { %13384 = vmatpush1.bf16.msra.mxu0 %v17517_v7  ;;  %13548 = vmatpush1.bf16.msra.mxu1 %v17519_v34  ;;  %v17565_v7 = vcombine.low %v10464_v38, %v10468_v37  ;;  %v17567_v34 = vcombine.low %v10465_v63, %v10469_v58  ;;  %v10517_v38 = vld [vmem:[#allocation12 + $0x9a8] sm:$0xff]  ;;  %v17607_v63 = vcombine.low %v10505_v45, %v10509_v1 }
 0x854   :  { %13385 = vmatprep.subr.bf16.mxu0 %v17526_v55  ;;  %13549 = vmatprep.subr.bf16.mxu1 %v17528_v57  ;;  %v17574_v55 = vcombine.high %v10472_v33, %v10476_v47  ;;  %v17576_v57 = vcombine.high %v10473_v36, %v10477_v2  ;;  %v10525_v33 = vld [vmem:[#allocation12 + $0x9e8] sm:$0xff] }
 0x857   :  { %13386 = vmatpush1.bf16.msra.mxu0 %v17525_v16  ;;  %13550 = vmatpush1.bf16.msra.mxu1 %v17527_v23  ;;  %v22126_v16 = vpack.c.bf16 %v22114_v61, %v22114_v61  ;;  %v17575_v23 = vcombine.low %v10473_v36, %v10477_v2  ;;  %v17581_v61 = vcombine.low %v10480_v0, %v10484_v15 }
 0x858   :  { %13387 = vmatprep.subr.bf16.mxu0 %v17534_v21  ;;  %13551 = vmatprep.subr.bf16.mxu1 %v17536_v31  ;;  %v17582_v21 = vcombine.high %v10480_v0, %v10484_v15  ;;  %v17584_v31 = vcombine.high %v10481_v62, %v10485_v13  ;;  %v10533_v0 = vld [vmem:[#allocation12 + $0xa28] sm:$0xff] }
 0x85b   :  { %13388 = vmatpush1.bf16.msra.mxu0 %v17533_v4  ;;  %13552 = vmatpush1.bf16.msra.mxu1 %v17535_v26  ;;  %v17583_v4 = vcombine.low %v10481_v62, %v10485_v13  ;;  %v17590_v26 = vcombine.high %v10488_v59, %v10492_v52  ;;  %v10541_v59 = vld [vmem:[#allocation12 + $0xa68] sm:$0xff] }
 0x85c   :  { %13389 = vmatprep.subr.bf16.mxu0 %v17542_v56  ;;  %13553 = vmatprep.subr.bf16.mxu1 %v17544_v46  ;;  %v17592_v56 = vcombine.high %v10489_v19, %v10493_v25  ;;  %v10496_v46 = vld [vmem:[#allocation12 + $0x900] sm:$0xff] }
 0x85d   :  { %v17597_v49 = vcombine.low %v10496_v46, %v10500_v10 }
 0x85f   :  { %13390 = vmatpush1.bf16.msra.mxu0 %v17541_v22  ;;  %13554 = vmatpush1.bf16.msra.mxu1 %v17543_v35  ;;  %v17591_v22 = vcombine.low %v10489_v19, %v10493_v25  ;;  %v17598_v35 = vcombine.high %v10496_v46, %v10500_v10  ;;  %v10549_v46 = vld [vmem:[#allocation12 + $0xaa8] sm:$0xff] }
 0x860   :  { %13391 = vmatprep.subr.bf16.mxu0 %v17550_v30  ;;  %13555 = vmatprep.subr.bf16.mxu1 %v17552_v28  ;;  %v17600_v30 = vcombine.high %v10497_v12, %v10501_v14  ;;  %v10504_v28 = vld [vmem:[#allocation12 + $0x940] sm:$0xff] }
 0x861   :  { %v17606_v18 = vcombine.high %v10504_v28, %v10508_v20  ;;  %v17605_v37 = vcombine.low %v10504_v28, %v10508_v20  ;;  %v10557_v28 = vld [vmem:[#allocation12 + $0xae8] sm:$0xff] }
 0x863   :  { %13392 = vmatpush1.bf16.msra.mxu0 %v17549_v39  ;;  %13556 = vmatpush1.bf16.msra.mxu1 %v17551_v9  ;;  %v17608_v39 = vcombine.high %v10505_v45, %v10509_v1  ;;  %v10512_v9 = vld [vmem:[#allocation12 + $0x980] sm:$0xff] }
 0x864   :  { %13393 = vmatprep.subr.bf16.mxu0 %v17558_v53  ;;  %13557 = vmatprep.subr.bf16.mxu1 %v17560_v29  ;;  %v10516_v53 = vld [vmem:[#allocation12 + $0x9a0] sm:$0xff]  ;;  %v10513_v29 = vld [vmem:[#allocation12 + $0x988] sm:$0xff] }
 0x865   :  { %v17614_v58 = vcombine.high %v10512_v9, %v10516_v53  ;;  %v17613_v47 = vcombine.low %v10512_v9, %v10516_v53  ;;  %v17615_v36 = vcombine.low %v10513_v29, %v10517_v38  ;;  %v10565_v9 = vld [vmem:[#allocation12 + $0xb28] sm:$0xff] }
 0x867   :  { %13394 = vmatpush1.bf16.msra.mxu0 %v17557_v48  ;;  %13558 = vmatpush1.bf16.msra.mxu1 %v17559_v6  ;;  %v17616_v48 = vcombine.high %v10513_v29, %v10517_v38  ;;  %v10520_v6 = vld [vmem:[#allocation12 + $0x9c0] sm:$0xff] }
 0x868   :  { %13404 = vmatprep.subr.bf16.mxu0 %v17566_v17  ;;  %13568 = vmatprep.subr.bf16.mxu1 %v17568_v24  ;;  %v10524_v17 = vld [vmem:[#allocation12 + $0x9e0] sm:$0xff]  ;;  %v10521_v24 = vld [vmem:[#allocation12 + $0x9c8] sm:$0xff] }
 0x869   :  { %v17622_v2 = vcombine.high %v10520_v6, %v10524_v17  ;;  %v17621_v15 = vcombine.low %v10520_v6, %v10524_v17  ;;  %v17623_v62 = vcombine.low %v10521_v24, %v10525_v33  ;;  %v10573_v6 = vld [vmem:[#allocation12 + $0xb68] sm:$0xff] }
 0x86a   :  { %13396 = vmatmul.mubr.bf16.vlgmr.msra.gmra.mrb[56].mxu0 %v22122_v40  ;;  %13560 = vmatmul.mubr.bf16.vlgmr.msra.gmra.mrb[56].mxu1 %v22122_v40 }
 0x86b   :  { %13405 = vmatpush1.bf16.msra.mxu0 %v17565_v7  ;;  %13569 = vmatpush1.bf16.msra.mxu1 %v17567_v34  ;;  %v17624_v7 = vcombine.high %v10521_v24, %v10525_v33  ;;  %v10528_v34 = vld [vmem:[#allocation12 + $0xa00] sm:$0xff] }
 0x86c   :  { %13406 = vmatprep.subr.bf16.mxu0 %v17574_v55  ;;  %13570 = vmatprep.subr.bf16.mxu1 %v17576_v57  ;;  %v10532_v55 = vld [vmem:[#allocation12 + $0xa20] sm:$0xff]  ;;  %v10529_v57 = vld [vmem:[#allocation12 + $0xa08] sm:$0xff] }
 0x86d   :  { %13436 = vmatprep.mubr.bf16.mxu0 %v22126_v16  ;;  %13600 = vmatprep.mubr.bf16.mxu1 %v22126_v16  ;;  %v17630_v13 = vcombine.high %v10528_v34, %v10532_v55  ;;  %v17629_v52 = vcombine.low %v10528_v34, %v10532_v55  ;;  %v17631_v19 = vcombine.low %v10529_v57, %v10533_v0  ;;  %v10581_v34 = vld [vmem:[#allocation12 + $0xba8] sm:$0xff] }
 0x86f   :  { %13407 = vmatpush1.bf16.msra.mxu0 %v17573_v43  ;;  %13571 = vmatpush1.bf16.msra.mxu1 %v17575_v23  ;;  %v17632_v43 = vcombine.high %v10529_v57, %v10533_v0  ;;  %v10536_v23 = vld [vmem:[#allocation12 + $0xa40] sm:$0xff] }
 0x870   :  { %13408 = vmatprep.subr.bf16.mxu0 %v17582_v21  ;;  %13572 = vmatprep.subr.bf16.mxu1 %v17584_v31  ;;  %v10540_v21 = vld [vmem:[#allocation12 + $0xa60] sm:$0xff]  ;;  %v10537_v31 = vld [vmem:[#allocation12 + $0xa48] sm:$0xff] }
 0x871   :  { %v17638_v25 = vcombine.high %v10536_v23, %v10540_v21  ;;  %v17637_v10 = vcombine.low %v10536_v23, %v10540_v21  ;;  %v17639_v12 = vcombine.low %v10537_v31, %v10541_v59  ;;  %v10589_v23 = vld [vmem:[#allocation12 + $0xbe8] sm:$0xff] }
 0x873   :  { %13409 = vmatpush1.bf16.msra.mxu0 %v17581_v61  ;;  %13573 = vmatpush1.bf16.msra.mxu1 %v17583_v4  ;;  %v17640_v61 = vcombine.high %v10537_v31, %v10541_v59  ;;  %v10544_v4 = vld [vmem:[#allocation12 + $0xa80] sm:$0xff] }
 0x874   :  { %13410 = vmatprep.subr.bf16.mxu0 %v17590_v26  ;;  %13574 = vmatprep.subr.bf16.mxu1 %v17592_v56  ;;  %v10548_v26 = vld [vmem:[#allocation12 + $0xaa0] sm:$0xff]  ;;  %v10545_v56 = vld [vmem:[#allocation12 + $0xa88] sm:$0xff] }
 0x875   :  { %v17646_v14 = vcombine.high %v10544_v4, %v10548_v26  ;;  %v17645_v20 = vcombine.low %v10544_v4, %v10548_v26  ;;  %v17647_v45 = vcombine.low %v10545_v56, %v10549_v46  ;;  %v10597_v4 = vld [vmem:[#allocation12 + $0xc28] sm:$0xff] }
 0x877   :  { %13411 = vmatpush1.bf16.msra.mxu0 %v17589_v11  ;;  %13575 = vmatpush1.bf16.msra.mxu1 %v17591_v22  ;;  %v17648_v11 = vcombine.high %v10545_v56, %v10549_v46  ;;  %v10552_v22 = vld [vmem:[#allocation12 + $0xac0] sm:$0xff] }
 0x878   :  { %13412 = vmatprep.subr.bf16.mxu0 %v17598_v35  ;;  %13576 = vmatprep.subr.bf16.mxu1 %v17600_v30  ;;  %v10556_v35 = vld [vmem:[#allocation12 + $0xae0] sm:$0xff]  ;;  %v10553_v30 = vld [vmem:[#allocation12 + $0xac8] sm:$0xff] }
 0x879   :  { %v17654_v1 = vcombine.high %v10552_v22, %v10556_v35  ;;  %v17653_v53 = vcombine.low %v10552_v22, %v10556_v35  ;;  %v17655_v29 = vcombine.low %v10553_v30, %v10557_v28  ;;  %v10605_v22 = vld [vmem:[#allocation12 + $0xc68] sm:$0xff]  ;;  %v22134_v35 = vpack.c.bf16 %v22112_v5, %v22112_v5 }
 0x87b   :  { %13413 = vmatpush1.bf16.msra.mxu0 %v17597_v49  ;;  %13577 = vmatpush1.bf16.msra.mxu1 %v17599_v54  ;;  %v17656_v49 = vcombine.high %v10553_v30, %v10557_v28  ;;  %v10560_v54 = vld [vmem:[#allocation12 + $0xb00] sm:$0xff] }
 0x87c   :  { %13414 = vmatprep.subr.bf16.mxu0 %v17606_v18  ;;  %13578 = vmatprep.subr.bf16.mxu1 %v17608_v39  ;;  %v10564_v18 = vld [vmem:[#allocation12 + $0xb20] sm:$0xff]  ;;  %v10561_v39 = vld [vmem:[#allocation12 + $0xb08] sm:$0xff] }
 0x87d   :  { %v17662_v38 = vcombine.high %v10560_v54, %v10564_v18  ;;  %v17661_v17 = vcombine.low %v10560_v54, %v10564_v18  ;;  %v17663_v24 = vcombine.low %v10561_v39, %v10565_v9  ;;  %v10609_v54 = vld [vmem:[#allocation12 + $0xc88] sm:$0xff] }
 0x87e   :  { %v10613_v18 = vld [vmem:[#allocation12 + $0xca8] sm:$0xff] }
 0x87f   :  { %13415 = vmatpush1.bf16.msra.mxu0 %v17605_v37  ;;  %13579 = vmatpush1.bf16.msra.mxu1 %v17607_v63  ;;  %v17664_v37 = vcombine.high %v10561_v39, %v10565_v9  ;;  %v10568_v63 = vld [vmem:[#allocation12 + $0xb40] sm:$0xff]  ;;  %v22138_v39 = vpack.c.bf16 %v22118_v8, %v22118_v8 }
 0x880   :  { %13416 = vmatprep.subr.bf16.mxu0 %v17614_v58  ;;  %13580 = vmatprep.subr.bf16.mxu1 %v17616_v48  ;;  %v10572_v58 = vld [vmem:[#allocation12 + $0xb60] sm:$0xff]  ;;  %v10569_v48 = vld [vmem:[#allocation12 + $0xb48] sm:$0xff] }
 0x881   :  { %v17670_v33 = vcombine.high %v10568_v63, %v10572_v58  ;;  %v17669_v55 = vcombine.low %v10568_v63, %v10572_v58  ;;  %v17671_v57 = vcombine.low %v10569_v48, %v10573_v6  ;;  %v10617_v63 = vld [vmem:[#allocation12 + $0xcc8] sm:$0xff] }
 0x882   :  { %v10621_v58 = vld [vmem:[#allocation12 + $0xce8] sm:$0xff] }
 0x883   :  { %13417 = vmatpush1.bf16.msra.mxu0 %v17613_v47  ;;  %13581 = vmatpush1.bf16.msra.mxu1 %v17615_v36  ;;  %v17672_v47 = vcombine.high %v10569_v48, %v10573_v6  ;;  %v10576_v36 = vld [vmem:[#allocation12 + $0xb80] sm:$0xff]  ;;  %v17711_v48 = vcombine.low %v10609_v54, %v10613_v18 }
 0x884   :  { %13418 = vmatprep.subr.bf16.mxu0 %v17622_v2  ;;  %13582 = vmatprep.subr.bf16.mxu1 %v17624_v7  ;;  %v10580_v2 = vld [vmem:[#allocation12 + $0xba0] sm:$0xff]  ;;  %v10577_v7 = vld [vmem:[#allocation12 + $0xb88] sm:$0xff] }
 0x885   :  { %v17678_v0 = vcombine.high %v10576_v36, %v10580_v2  ;;  %v17677_v21 = vcombine.low %v10576_v36, %v10580_v2  ;;  %v17679_v31 = vcombine.low %v10577_v7, %v10581_v34  ;;  %v10629_v36 = vld [vmem:[#allocation12 + $0xd28] sm:$0xff] }
 0x887   :  { %13419 = vmatpush1.bf16.msra.mxu0 %v17621_v15  ;;  %13583 = vmatpush1.bf16.msra.mxu1 %v17623_v62  ;;  %v17680_v15 = vcombine.high %v10577_v7, %v10581_v34  ;;  %v10584_v62 = vld [vmem:[#allocation12 + $0xbc0] sm:$0xff]  ;;  %v17719_v7 = vcombine.low %v10617_v63, %v10621_v58 }
 0x888   :  { %13420 = vmatprep.subr.bf16.mxu0 %v17630_v13  ;;  %13584 = vmatprep.subr.bf16.mxu1 %v17632_v43  ;;  %v10588_v13 = vld [vmem:[#allocation12 + $0xbe0] sm:$0xff]  ;;  %v10585_v43 = vld [vmem:[#allocation12 + $0xbc8] sm:$0xff] }
 0x889   :  { %v17686_v59 = vcombine.high %v10584_v62, %v10588_v13  ;;  %v17685_v26 = vcombine.low %v10584_v62, %v10588_v13  ;;  %v17687_v56 = vcombine.low %v10585_v43, %v10589_v23  ;;  %v10637_v62 = vld [vmem:[#allocation12 + $0xd68] sm:$0xff] }
 0x88b   :  { %13421 = vmatpush1.bf16.msra.mxu0 %v17629_v52  ;;  %13585 = vmatpush1.bf16.msra.mxu1 %v17631_v19  ;;  %v17688_v52 = vcombine.high %v10585_v43, %v10589_v23  ;;  %v10592_v19 = vld [vmem:[#allocation12 + $0xc00] sm:$0xff] }
 0x88c   :  { %13422 = vmatprep.subr.bf16.mxu0 %v17638_v25  ;;  %13586 = vmatprep.subr.bf16.mxu1 %v17640_v61  ;;  %v10596_v25 = vld [vmem:[#allocation12 + $0xc20] sm:$0xff]  ;;  %v10593_v61 = vld [vmem:[#allocation12 + $0xc08] sm:$0xff] }
 0x88d   :  { %v17694_v46 = vcombine.high %v10592_v19, %v10596_v25  ;;  %v17693_v30 = vcombine.low %v10592_v19, %v10596_v25  ;;  %v17695_v28 = vcombine.low %v10593_v61, %v10597_v4  ;;  %v10645_v19 = vld [vmem:[#allocation12 + $0xda8] sm:$0xff] }
 0x88f   :  { %13423 = vmatpush1.bf16.msra.mxu0 %v17637_v10  ;;  %13587 = vmatpush1.bf16.msra.mxu1 %v17639_v12  ;;  %v17696_v10 = vcombine.high %v10593_v61, %v10597_v4  ;;  %v10600_v12 = vld [vmem:[#allocation12 + $0xc40] sm:$0xff] }
 0x890   :  { %13424 = vmatprep.subr.bf16.mxu0 %v17646_v14  ;;  %13588 = vmatprep.subr.bf16.mxu1 %v17648_v11  ;;  %v10604_v14 = vld [vmem:[#allocation12 + $0xc60] sm:$0xff]  ;;  %v10601_v11 = vld [vmem:[#allocation12 + $0xc48] sm:$0xff] }
 0x891   :  { %v17701_v5 = vcombine.low %v10600_v12, %v10604_v14  ;;  %v17703_v9 = vcombine.low %v10601_v11, %v10605_v22 }
 0x893   :  { %13425 = vmatpush1.bf16.msra.mxu0 %v17645_v20  ;;  %13589 = vmatpush1.bf16.msra.mxu1 %v17647_v45  ;;  %v17702_v20 = vcombine.high %v10600_v12, %v10604_v14  ;;  %v17704_v45 = vcombine.high %v10601_v11, %v10605_v22  ;;  %v10653_v12 = vld [vmem:[#allocation12 + $0xde8] sm:$0xff] }
 0x894   :  { %13426 = vmatprep.subr.bf16.mxu0 %v17654_v1  ;;  %13590 = vmatprep.subr.bf16.mxu1 %v17656_v49  ;;  %v10608_v1 = vld [vmem:[#allocation12 + $0xc80] sm:$0xff] }
 0x895   :  { %v10612_v49 = vld [vmem:[#allocation12 + $0xca0] sm:$0xff] }
 0x896   :  { %v17709_v8 = vcombine.low %v10608_v1, %v10612_v49 }
 0x897   :  { %13427 = vmatpush1.bf16.msra.mxu0 %v17653_v53  ;;  %13591 = vmatpush1.bf16.msra.mxu1 %v17655_v29  ;;  %v17710_v53 = vcombine.high %v10608_v1, %v10612_v49  ;;  %v17712_v29 = vcombine.high %v10609_v54, %v10613_v18  ;;  %v10661_v1 = vld [vmem:[#allocation12 + $0xe28] sm:$0xff] }
 0x898   :  { %13428 = vmatprep.subr.bf16.mxu0 %v17662_v38  ;;  %13592 = vmatprep.subr.bf16.mxu1 %v17664_v37  ;;  %v10616_v38 = vld [vmem:[#allocation12 + $0xcc0] sm:$0xff] }
 0x899   :  { %v10620_v37 = vld [vmem:[#allocation12 + $0xce0] sm:$0xff] }
 0x89a   :  { %v17718_v6 = vcombine.high %v10616_v38, %v10620_v37  ;;  %v17717_v2 = vcombine.low %v10616_v38, %v10620_v37  ;;  %v10669_v38 = vld [vmem:[#allocation12 + $0xe68] sm:$0xff] }
 0x89b   :  { %13429 = vmatpush1.bf16.msra.mxu0 %v17661_v17  ;;  %13593 = vmatpush1.bf16.msra.mxu1 %v17663_v24  ;;  %v17720_v17 = vcombine.high %v10617_v63, %v10621_v58  ;;  %v10624_v24 = vld [vmem:[#allocation12 + $0xd00] sm:$0xff] }
 0x89c   :  { %13430 = vmatprep.subr.bf16.mxu0 %v17670_v33  ;;  %13594 = vmatprep.subr.bf16.mxu1 %v17672_v47  ;;  %v10628_v33 = vld [vmem:[#allocation12 + $0xd20] sm:$0xff]  ;;  %v10625_v47 = vld [vmem:[#allocation12 + $0xd08] sm:$0xff] }
 0x89d   :  { %v17726_v34 = vcombine.high %v10624_v24, %v10628_v33  ;;  %v17725_v13 = vcombine.low %v10624_v24, %v10628_v33  ;;  %v17727_v43 = vcombine.low %v10625_v47, %v10629_v36  ;;  %v10677_v24 = vld [vmem:[#allocation12 + $0xea8] sm:$0xff] }
 0x89f   :  { %13431 = vmatpush1.bf16.msra.mxu0 %v17669_v55  ;;  %13595 = vmatpush1.bf16.msra.mxu1 %v17671_v57  ;;  %v17728_v55 = vcombine.high %v10625_v47, %v10629_v36  ;;  %v10632_v57 = vld [vmem:[#allocation12 + $0xd40] sm:$0xff] }
 0x8a0   :  { %13432 = vmatprep.subr.bf16.mxu0 %v17678_v0  ;;  %13596 = vmatprep.subr.bf16.mxu1 %v17680_v15  ;;  %v10636_v0 = vld [vmem:[#allocation12 + $0xd60] sm:$0xff]  ;;  %v10633_v15 = vld [vmem:[#allocation12 + $0xd48] sm:$0xff] }
 0x8a1   :  { %v17734_v23 = vcombine.high %v10632_v57, %v10636_v0  ;;  %v17733_v25 = vcombine.low %v10632_v57, %v10636_v0  ;;  %v17735_v61 = vcombine.low %v10633_v15, %v10637_v62  ;;  %v10685_v57 = vld [vmem:[#allocation12 + $0xee8] sm:$0xff] }
 0x8a3   :  { %13433 = vmatpush1.bf16.msra.mxu0 %v17677_v21  ;;  %13597 = vmatpush1.bf16.msra.mxu1 %v17679_v31  ;;  %v17736_v21 = vcombine.high %v10633_v15, %v10637_v62  ;;  %v10640_v31 = vld [vmem:[#allocation12 + $0xd80] sm:$0xff] }
 0x8a4   :  { %13434 = vmatprep.subr.bf16.mxu0 %v17686_v59  ;;  %13598 = vmatprep.subr.bf16.mxu1 %v17688_v52  ;;  %v10644_v59 = vld [vmem:[#allocation12 + $0xda0] sm:$0xff]  ;;  %v10641_v52 = vld [vmem:[#allocation12 + $0xd88] sm:$0xff] }
 0x8a5   :  { %v17742_v4 = vcombine.high %v10640_v31, %v10644_v59  ;;  %v17741_v14 = vcombine.low %v10640_v31, %v10644_v59  ;;  %v17743_v11 = vcombine.low %v10641_v52, %v10645_v19  ;;  %v10693_v31 = vld [vmem:[#allocation12 + $0xf28] sm:$0xff] }
 0x8a7   :  { %13435 = vmatpush1.bf16.msra.mxu0 %v17685_v26  ;;  %13599 = vmatpush1.bf16.msra.mxu1 %v17687_v56  ;;  %v17744_v26 = vcombine.high %v10641_v52, %v10645_v19  ;;  %v10648_v56 = vld [vmem:[#allocation12 + $0xdc0] sm:$0xff] }
 0x8a8   :  { %13445 = vmatprep.subr.bf16.mxu0 %v17694_v46  ;;  %13609 = vmatprep.subr.bf16.mxu1 %v17696_v10  ;;  %v10652_v46 = vld [vmem:[#allocation12 + $0xde0] sm:$0xff]  ;;  %v10649_v10 = vld [vmem:[#allocation12 + $0xdc8] sm:$0xff] }
 0x8a9   :  { %v17750_v22 = vcombine.high %v10648_v56, %v10652_v46  ;;  %v17749_v49 = vcombine.low %v10648_v56, %v10652_v46  ;;  %v17751_v54 = vcombine.low %v10649_v10, %v10653_v12  ;;  %v10701_v56 = vld [vmem:[#allocation12 + $0xf68] sm:$0xff] }
 0x8aa   :  { %13437 = vmatmul.mubr.bf16.vlgmr.msra.gmra.mrb[56].mxu0 %v22134_v35  ;;  %13601 = vmatmul.mubr.bf16.vlgmr.msra.gmra.mrb[56].mxu1 %v22134_v35 }
 0x8ab   :  { %13446 = vmatpush1.bf16.msra.mxu0 %v17693_v30  ;;  %13610 = vmatpush1.bf16.msra.mxu1 %v17695_v28  ;;  %v17752_v30 = vcombine.high %v10649_v10, %v10653_v12  ;;  %v10656_v28 = vld [vmem:[#allocation12 + $0xe00] sm:$0xff] }
 0x8ac   :  { %13447 = vmatprep.subr.bf16.mxu0 %v17702_v20  ;;  %13611 = vmatprep.subr.bf16.mxu1 %v17704_v45  ;;  %v10660_v20 = vld [vmem:[#allocation12 + $0xe20] sm:$0xff]  ;;  %v10657_v45 = vld [vmem:[#allocation12 + $0xe08] sm:$0xff] }
 0x8ad   :  { %13477 = vmatprep.mubr.bf16.mxu0 %v22138_v39  ;;  %13641 = vmatprep.mubr.bf16.mxu1 %v22138_v39  ;;  %v17758_v18 = vcombine.high %v10656_v28, %v10660_v20  ;;  %v17757_v37 = vcombine.low %v10656_v28, %v10660_v20  ;;  %v17759_v63 = vcombine.low %v10657_v45, %v10661_v1  ;;  %v10709_v28 = vld [vmem:[#allocation12 + $0xfa8] sm:$0xff] }
 0x8af   :  { %13448 = vmatpush1.bf16.msra.mxu0 %v17701_v5  ;;  %13612 = vmatpush1.bf16.msra.mxu1 %v17703_v9  ;;  %v17760_v5 = vcombine.high %v10657_v45, %v10661_v1  ;;  %v10664_v9 = vld [vmem:[#allocation12 + $0xe40] sm:$0xff] }
 0x8b0   :  { %13449 = vmatprep.subr.bf16.mxu0 %v17710_v53  ;;  %13613 = vmatprep.subr.bf16.mxu1 %v17712_v29  ;;  %v10668_v53 = vld [vmem:[#allocation12 + $0xe60] sm:$0xff]  ;;  %v10665_v29 = vld [vmem:[#allocation12 + $0xe48] sm:$0xff] }
 0x8b1   :  { %v17766_v58 = vcombine.high %v10664_v9, %v10668_v53  ;;  %v17765_v33 = vcombine.low %v10664_v9, %v10668_v53  ;;  %v17767_v47 = vcombine.low %v10665_v29, %v10669_v38  ;;  %v10717_v9 = vld [vmem:[#allocation12 + $0xfe8] sm:$0xff] }
 0x8b3   :  { %13450 = vmatpush1.bf16.msra.mxu0 %v17709_v8  ;;  %13614 = vmatpush1.bf16.msra.mxu1 %v17711_v48  ;;  %v17768_v8 = vcombine.high %v10665_v29, %v10669_v38  ;;  %v10672_v48 = vld [vmem:[#allocation12 + $0xe80] sm:$0xff] }
 0x8b4   :  { %13451 = vmatprep.subr.bf16.mxu0 %v17718_v6  ;;  %13615 = vmatprep.subr.bf16.mxu1 %v17720_v17  ;;  %v10676_v6 = vld [vmem:[#allocation12 + $0xea0] sm:$0xff]  ;;  %v10673_v17 = vld [vmem:[#allocation12 + $0xe88] sm:$0xff] }
 0x8b5   :  { %v17774_v36 = vcombine.high %v10672_v48, %v10676_v6  ;;  %v17773_v0 = vcombine.low %v10672_v48, %v10676_v6  ;;  %v17775_v15 = vcombine.low %v10673_v17, %v10677_v24  ;;  %v10215_v48 = vld [vmem:[#allocation12 + $0x38] sm:$0xff] }
 0x8b7   :  { %13452 = vmatpush1.bf16.msra.mxu0 %v17717_v2  ;;  %13616 = vmatpush1.bf16.msra.mxu1 %v17719_v7  ;;  %v17776_v2 = vcombine.high %v10673_v17, %v10677_v24  ;;  %v10680_v7 = vld [vmem:[#allocation12 + $0xec0] sm:$0xff] }
 0x8b8   :  { %13453 = vmatprep.subr.bf16.mxu0 %v17726_v34  ;;  %13617 = vmatprep.subr.bf16.mxu1 %v17728_v55  ;;  %v10684_v34 = vld [vmem:[#allocation12 + $0xee0] sm:$0xff]  ;;  %v10681_v55 = vld [vmem:[#allocation12 + $0xec8] sm:$0xff] }
 0x8b9   :  { %v17782_v62 = vcombine.high %v10680_v7, %v10684_v34  ;;  %v17781_v59 = vcombine.low %v10680_v7, %v10684_v34  ;;  %v17783_v52 = vcombine.low %v10681_v55, %v10685_v57  ;;  %v10223_v7 = vld [vmem:[#allocation12 + $0x78] sm:$0xff] }
 0x8bb   :  { %13454 = vmatpush1.bf16.msra.mxu0 %v17725_v13  ;;  %13618 = vmatpush1.bf16.msra.mxu1 %v17727_v43  ;;  %v17784_v13 = vcombine.high %v10681_v55, %v10685_v57  ;;  %v10688_v43 = vld [vmem:[#allocation12 + $0xf00] sm:$0xff]  ;;  %v22146_v55 = vpack.c.bf16 %v22116_v32, %v22116_v32 }
 0x8bc   :  { %13455 = vmatprep.subr.bf16.mxu0 %v17734_v23  ;;  %13619 = vmatprep.subr.bf16.mxu1 %v17736_v21  ;;  %v10692_v23 = vld [vmem:[#allocation12 + $0xf20] sm:$0xff]  ;;  %v10689_v21 = vld [vmem:[#allocation12 + $0xf08] sm:$0xff] }
 0x8bd   :  { %v17790_v19 = vcombine.high %v10688_v43, %v10692_v23  ;;  %v17789_v46 = vcombine.low %v10688_v43, %v10692_v23  ;;  %v17791_v10 = vcombine.low %v10689_v21, %v10693_v31  ;;  %v10227_v43 = vld [vmem:[#allocation12 + $0x98] sm:$0xff] }
 0x8be   :  { %v10231_v23 = vld [vmem:[#allocation12 + $0xb8] sm:$0xff] }
 0x8bf   :  { %13456 = vmatpush1.bf16.msra.mxu0 %v17733_v25  ;;  %13620 = vmatpush1.bf16.msra.mxu1 %v17735_v61  ;;  %v17792_v25 = vcombine.high %v10689_v21, %v10693_v31  ;;  %v10696_v61 = vld [vmem:[#allocation12 + $0xf40] sm:$0xff] }
 0x8c0   :  { %13457 = vmatprep.subr.bf16.mxu0 %v17742_v4  ;;  %13621 = vmatprep.subr.bf16.mxu1 %v17744_v26  ;;  %v10700_v4 = vld [vmem:[#allocation12 + $0xf60] sm:$0xff]  ;;  %v10697_v26 = vld [vmem:[#allocation12 + $0xf48] sm:$0xff] }
 0x8c1   :  { %v17798_v12 = vcombine.high %v10696_v61, %v10700_v4  ;;  %v17797_v20 = vcombine.low %v10696_v61, %v10700_v4  ;;  %v17799_v45 = vcombine.low %v10697_v26, %v10701_v56  ;;  %v10239_v61 = vld [vmem:[#allocation12 + $0xf8] sm:$0xff] }
 0x8c3   :  { %13458 = vmatpush1.bf16.msra.mxu0 %v17741_v14  ;;  %13622 = vmatpush1.bf16.msra.mxu1 %v17743_v11  ;;  %v17800_v14 = vcombine.high %v10697_v26, %v10701_v56  ;;  %v10704_v11 = vld [vmem:[#allocation12 + $0xf80] sm:$0xff]  ;;  %v17331_v26 = vcombine.low %v10227_v43, %v10231_v23 }
 0x8c4   :  { %13459 = vmatprep.subr.bf16.mxu0 %v17750_v22  ;;  %13623 = vmatprep.subr.bf16.mxu1 %v17752_v30  ;;  %v10708_v22 = vld [vmem:[#allocation12 + $0xfa0] sm:$0xff]  ;;  %v10705_v30 = vld [vmem:[#allocation12 + $0xf88] sm:$0xff] }
 0x8c5   :  { %v17806_v1 = vcombine.high %v10704_v11, %v10708_v22  ;;  %v17805_v53 = vcombine.low %v10704_v11, %v10708_v22  ;;  %v17807_v29 = vcombine.low %v10705_v30, %v10709_v28 }
 0x8c7   :  { %13460 = vmatpush1.bf16.msra.mxu0 %v17749_v49  ;;  %13624 = vmatpush1.bf16.msra.mxu1 %v17751_v54  ;;  %v17808_v49 = vcombine.high %v10705_v30, %v10709_v28  ;;  %v10712_v54 = vld [vmem:[#allocation12 + $0xfc0] sm:$0xff] }
 0x8c8   :  { %13461 = vmatprep.subr.bf16.mxu0 %v17758_v18  ;;  %13625 = vmatprep.subr.bf16.mxu1 %v17760_v5  ;;  %v10716_v18 = vld [vmem:[#allocation12 + $0xfe0] sm:$0xff]  ;;  %v10713_v5 = vld [vmem:[#allocation12 + $0xfc8] sm:$0xff] }
 0x8c9   :  { %v17814_v38 = vcombine.high %v10712_v54, %v10716_v18  ;;  %v17813_v6 = vcombine.low %v10712_v54, %v10716_v18  ;;  %v17815_v17 = vcombine.low %v10713_v5, %v10717_v9 }
 0x8cb   :  { %13462 = vmatpush1.bf16.msra.mxu0 %v17757_v37  ;;  %13626 = vmatpush1.bf16.msra.mxu1 %v17759_v63  ;;  %v17816_v37 = vcombine.high %v10713_v5, %v10717_v9  ;;  %v10210_v63 = vld [vmem:[#allocation12 + $0x10] sm:$0xff] }
 0x8cc   :  { %13463 = vmatprep.subr.bf16.mxu0 %v17766_v58  ;;  %13627 = vmatprep.subr.bf16.mxu1 %v17768_v8  ;;  %v10214_v58 = vld [vmem:[#allocation12 + $0x30] sm:$0xff]  ;;  %v10211_v8 = vld [vmem:[#allocation12 + $0x18] sm:$0xff] }
 0x8cd   :  { %v17314_v24 = vcombine.high %v10210_v63, %v10214_v58  ;;  %v17313_v34 = vcombine.low %v10210_v63, %v10214_v58  ;;  %v17315_v57 = vcombine.low %v10211_v8, %v10215_v48 }
 0x8cf   :  { %13464 = vmatpush1.bf16.msra.mxu0 %v17765_v33  ;;  %13628 = vmatpush1.bf16.msra.mxu1 %v17767_v47  ;;  %v17316_v33 = vcombine.high %v10211_v8, %v10215_v48  ;;  %v10218_v47 = vld [vmem:[#allocation12 + $0x50] sm:$0xff] }
 0x8d0   :  { %13465 = vmatprep.subr.bf16.mxu0 %v17774_v36  ;;  %13629 = vmatprep.subr.bf16.mxu1 %v17776_v2  ;;  %v10222_v36 = vld [vmem:[#allocation12 + $0x70] sm:$0xff]  ;;  %v10219_v2 = vld [vmem:[#allocation12 + $0x58] sm:$0xff] }
 0x8d1   :  { %v17321_v21 = vcombine.low %v10218_v47, %v10222_v36  ;;  %v17323_v32 = vcombine.low %v10219_v2, %v10223_v7 }
 0x8d3   :  { %13466 = vmatpush1.bf16.msra.mxu0 %v17773_v0  ;;  %13630 = vmatpush1.bf16.msra.mxu1 %v17775_v15  ;;  %v17322_v0 = vcombine.high %v10218_v47, %v10222_v36  ;;  %v17324_v15 = vcombine.high %v10219_v2, %v10223_v7 }
 0x8d4   :  { %13467 = vmatprep.subr.bf16.mxu0 %v17782_v62  ;;  %13631 = vmatprep.subr.bf16.mxu1 %v17784_v13  ;;  %v10226_v62 = vld [vmem:[#allocation12 + $0x90] sm:$0xff] }
 0x8d5   :  { %v10230_v13 = vld [vmem:[#allocation12 + $0xb0] sm:$0xff] }
 0x8d6   :  { %v17330_v31 = vcombine.high %v10226_v62, %v10230_v13  ;;  %v17329_v4 = vcombine.low %v10226_v62, %v10230_v13 }
 0x8d7   :  { %13468 = vmatpush1.bf16.msra.mxu0 %v17781_v59  ;;  %13632 = vmatpush1.bf16.msra.mxu1 %v17783_v52  ;;  %v17332_v59 = vcombine.high %v10227_v43, %v10231_v23  ;;  %v10234_v52 = vld [vmem:[#allocation12 + $0xd0] sm:$0xff] }
 0x8d8   :  { %13469 = vmatprep.subr.bf16.mxu0 %v17790_v19  ;;  %13633 = vmatprep.subr.bf16.mxu1 %v17792_v25  ;;  %v10238_v19 = vld [vmem:[#allocation12 + $0xf0] sm:$0xff]  ;;  %v10235_v25 = vld [vmem:[#allocation12 + $0xd8] sm:$0xff] }
 0x8d9   :  { %v17338_v56 = vcombine.high %v10234_v52, %v10238_v19  ;;  %v17337_v11 = vcombine.low %v10234_v52, %v10238_v19  ;;  %v17339_v22 = vcombine.low %v10235_v25, %v10239_v61 }
 0x8db   :  { %13470 = vmatpush1.bf16.msra.mxu0 %v17789_v46  ;;  %13634 = vmatpush1.bf16.msra.mxu1 %v17791_v10  ;;  %v17340_v46 = vcombine.high %v10235_v25, %v10239_v61  ;;  %v10242_v10 = vld [vmem:[#allocation12 + $0x110] sm:$0xff] }
 0x8dc   :  { %13471 = vmatprep.subr.bf16.mxu0 %v17798_v12  ;;  %13635 = vmatprep.subr.bf16.mxu1 %v17800_v14  ;;  %v10246_v12 = vld [vmem:[#allocation12 + $0x130] sm:$0xff]  ;;  %v10247_v14 = vld [vmem:[#allocation12 + $0x138] sm:$0xff] }
 0x8dd   :  { %v17346_v30 = vcombine.high %v10242_v10, %v10246_v12  ;;  %v17345_v54 = vcombine.low %v10242_v10, %v10246_v12 }
 0x8df   :  { %13472 = vmatpush1.bf16.msra.mxu0 %v17797_v20  ;;  %13636 = vmatpush1.bf16.msra.mxu1 %v17799_v45  ;;  %v10250_v20 = vld [vmem:[#allocation12 + $0x150] sm:$0xff] }
 0x8e0   :  { %13473 = vmatprep.subr.bf16.mxu0 %v17806_v1  ;;  %13637 = vmatprep.subr.bf16.mxu1 %v17808_v49  ;;  %v10254_v45 = vld [vmem:[#allocation12 + $0x170] sm:$0xff]  ;;  %v10251_v1 = vld [vmem:[#allocation12 + $0x158] sm:$0xff] }
 0x8e1   :  { %v10255_v49 = vld [vmem:[#allocation12 + $0x178] sm:$0xff]  ;;  %v17354_v5 = vcombine.high %v10250_v20, %v10254_v45  ;;  %v17353_v63 = vcombine.low %v10250_v20, %v10254_v45 }
 0x8e2   :  { %v17356_v9 = vcombine.high %v10251_v1, %v10255_v49  ;;  %v17355_v58 = vcombine.low %v10251_v1, %v10255_v49 }
 0x8e3   :  { %13474 = vmatpush1.bf16.msra.mxu0 %v17805_v53  ;;  %13638 = vmatpush1.bf16.msra.mxu1 %v17807_v29  ;;  %v10258_v53 = vld [vmem:[#allocation12 + $0x190] sm:$0xff] }
 0x8e4   :  { %13475 = vmatprep.subr.bf16.mxu0 %v17814_v38  ;;  %13639 = vmatprep.subr.bf16.mxu1 %v17816_v37  ;;  %v10262_v29 = vld [vmem:[#allocation12 + $0x1b0] sm:$0xff]  ;;  %v10259_v38 = vld [vmem:[#allocation12 + $0x198] sm:$0xff] }
 0x8e5   :  { %v10263_v37 = vld [vmem:[#allocation12 + $0x1b8] sm:$0xff]  ;;  %v17362_v8 = vcombine.high %v10258_v53, %v10262_v29  ;;  %v17361_v47 = vcombine.low %v10258_v53, %v10262_v29 }
 0x8e6   :  { %v17364_v48 = vcombine.high %v10259_v38, %v10263_v37  ;;  %v17363_v36 = vcombine.low %v10259_v38, %v10263_v37 }
 0x8e7   :  { %13476 = vmatpush1.bf16.msra.mxu0 %v17813_v6  ;;  %13640 = vmatpush1.bf16.msra.mxu1 %v17815_v17  ;;  %v10266_v6 = vld [vmem:[#allocation12 + $0x1d0] sm:$0xff] }
 0x8e8   :  { %13650 = vmatprep.subr.bf16.mxu0 %v17314_v24  ;;  %13814 = vmatprep.subr.bf16.mxu1 %v17316_v33  ;;  %v10270_v17 = vld [vmem:[#allocation12 + $0x1f0] sm:$0xff]  ;;  %v10267_v24 = vld [vmem:[#allocation12 + $0x1d8] sm:$0xff] }
 0x8e9   :  { %v10271_v33 = vld [vmem:[#allocation12 + $0x1f8] sm:$0xff]  ;;  %v17370_v2 = vcombine.high %v10266_v6, %v10270_v17  ;;  %v17369_v62 = vcombine.low %v10266_v6, %v10270_v17 }
 0x8ea   :  { %13478 = vmatmul.mubr.bf16.vlgmr.msra.gmra.mrb[56].mxu0 %v22146_v55  ;;  %13642 = vmatmul.mubr.bf16.vlgmr.msra.gmra.mrb[56].mxu1 %v22146_v55  ;;  %v17372_v7 = vcombine.high %v10267_v24, %v10271_v33  ;;  %v17371_v13 = vcombine.low %v10267_v24, %v10271_v33 }
 0x8eb   :  { %13651 = vmatpush1.bf16.msra.mxu0 %v17313_v34  ;;  %13682 = vmatprep.mubr.bf16.mxu0 %v22100_v50  ;;  %v10274_v34 = vld [vmem:[#allocation12 + $0x210] sm:$0xff] }
 0x8ec   :  { %13815 = vmatpush1.bf16.msra.mxu1 %v17315_v57  ;;  %13846 = vmatprep.mubr.bf16.mxu1 %v22100_v50  ;;  %v10243_v50 = vld [vmem:[#allocation12 + $0x118] sm:$0xff]  ;;  %v10278_v57 = vld [vmem:[#allocation12 + $0x230] sm:$0xff] }
 0x8ed   :  { %13652 = vmatprep.subr.bf16.mxu0 %v17322_v0  ;;  %13816 = vmatprep.subr.bf16.mxu1 %v17324_v15  ;;  %v17348_v28 = vcombine.high %v10243_v50, %v10247_v14  ;;  %v17347_v18 = vcombine.low %v10243_v50, %v10247_v14  ;;  %v10275_v0 = vld [vmem:[#allocation12 + $0x218] sm:$0xff]  ;;  %v17378_v43 = vcombine.high %v10274_v34, %v10278_v57 }
 0x8ee   :  { %v10279_v15 = vld [vmem:[#allocation12 + $0x238] sm:$0xff]  ;;  %v17377_v52 = vcombine.low %v10274_v34, %v10278_v57 }
 0x8ef   :  { %13653 = vmatpush1.bf16.msra.mxu0 %v17321_v21  ;;  %v17380_v23 = vcombine.high %v10275_v0, %v10279_v15  ;;  %v10282_v21 = vld [vmem:[#allocation12 + $0x250] sm:$0xff]  ;;  %v17379_v19 = vcombine.low %v10275_v0, %v10279_v15 }
 0x8f0   :  { %13817 = vmatpush1.bf16.msra.mxu1 %v17323_v32  ;;  %13654 = vmatprep.subr.bf16.mxu0 %v17330_v31  ;;  %v10286_v32 = vld [vmem:[#allocation12 + $0x270] sm:$0xff]  ;;  %v10283_v31 = vld [vmem:[#allocation12 + $0x258] sm:$0xff] }
 0x8f1   :  { %13818 = vmatprep.subr.bf16.mxu1 %v17332_v59  ;;  %v10287_v59 = vld [vmem:[#allocation12 + $0x278] sm:$0xff]  ;;  %v17386_v25 = vcombine.high %v10282_v21, %v10286_v32  ;;  %v17385_v10 = vcombine.low %v10282_v21, %v10286_v32 }
 0x8f2   :  { %v17388_v61 = vcombine.high %v10283_v31, %v10287_v59  ;;  %v17387_v12 = vcombine.low %v10283_v31, %v10287_v59 }
 0x8f3   :  { %13655 = vmatpush1.bf16.msra.mxu0 %v17329_v4  ;;  %v10290_v4 = vld [vmem:[#allocation12 + $0x290] sm:$0xff] }
 0x8f4   :  { %13819 = vmatpush1.bf16.msra.mxu1 %v17331_v26  ;;  %13656 = vmatprep.subr.bf16.mxu0 %v17338_v56  ;;  %v10294_v26 = vld [vmem:[#allocation12 + $0x2b0] sm:$0xff]  ;;  %v10291_v56 = vld [vmem:[#allocation12 + $0x298] sm:$0xff] }
 0x8f5   :  { %13820 = vmatprep.subr.bf16.mxu1 %v17340_v46  ;;  %v10295_v46 = vld [vmem:[#allocation12 + $0x2b8] sm:$0xff]  ;;  %v17394_v50 = vcombine.high %v10290_v4, %v10294_v26  ;;  %v17393_v20 = vcombine.low %v10290_v4, %v10294_v26 }
 0x8f6   :  { %v17396_v14 = vcombine.high %v10291_v56, %v10295_v46  ;;  %v17395_v45 = vcombine.low %v10291_v56, %v10295_v46 }
 0x8f7   :  { %13657 = vmatpush1.bf16.msra.mxu0 %v17337_v11  ;;  %v10298_v11 = vld [vmem:[#allocation12 + $0x2d0] sm:$0xff] }
 0x8f8   :  { %13821 = vmatpush1.bf16.msra.mxu1 %v17339_v22  ;;  %13658 = vmatprep.subr.bf16.mxu0 %v17346_v30  ;;  %v10302_v22 = vld [vmem:[#allocation12 + $0x2f0] sm:$0xff]  ;;  %v10299_v30 = vld [vmem:[#allocation12 + $0x2d8] sm:$0xff] }
 0x8f9   :  { %13822 = vmatprep.subr.bf16.mxu1 %v17348_v28  ;;  %v10303_v28 = vld [vmem:[#allocation12 + $0x2f8] sm:$0xff]  ;;  %v17402_v1 = vcombine.high %v10298_v11, %v10302_v22  ;;  %v17401_v53 = vcombine.low %v10298_v11, %v10302_v22 }
 0x8fa   :  { %v17404_v49 = vcombine.high %v10299_v30, %v10303_v28  ;;  %v17403_v29 = vcombine.low %v10299_v30, %v10303_v28  ;;  %v10351_v11 = vld [vmem:[#allocation12 + $0x478] sm:$0xff]  ;;  %v10354_v28 = vld [vmem:[#allocation12 + $0x490] sm:$0xff] }
 0x8fb   :  { %13659 = vmatpush1.bf16.msra.mxu0 %v17345_v54  ;;  %v10306_v54 = vld [vmem:[#allocation12 + $0x310] sm:$0xff] }
 0x8fc   :  { %13823 = vmatpush1.bf16.msra.mxu1 %v17347_v18  ;;  %13660 = vmatprep.subr.bf16.mxu0 %v17354_v5  ;;  %v10310_v18 = vld [vmem:[#allocation12 + $0x330] sm:$0xff]  ;;  %v10307_v5 = vld [vmem:[#allocation12 + $0x318] sm:$0xff] }
 0x8fd   :  { %13824 = vmatprep.subr.bf16.mxu1 %v17356_v9  ;;  %v10311_v9 = vld [vmem:[#allocation12 + $0x338] sm:$0xff]  ;;  %v17410_v38 = vcombine.high %v10306_v54, %v10310_v18  ;;  %v17409_v6 = vcombine.low %v10306_v54, %v10310_v18 }
 0x8fe   :  { %v17412_v37 = vcombine.high %v10307_v5, %v10311_v9  ;;  %v17411_v17 = vcombine.low %v10307_v5, %v10311_v9 }
 0x8ff   :  { %13661 = vmatpush1.bf16.msra.mxu0 %v17353_v63  ;;  %v10314_v63 = vld [vmem:[#allocation12 + $0x350] sm:$0xff] }
 0x900   :  { %13825 = vmatpush1.bf16.msra.mxu1 %v17355_v58  ;;  %13662 = vmatprep.subr.bf16.mxu0 %v17362_v8  ;;  %v10318_v58 = vld [vmem:[#allocation12 + $0x370] sm:$0xff]  ;;  %v10315_v8 = vld [vmem:[#allocation12 + $0x358] sm:$0xff] }
 0x901   :  { %13826 = vmatprep.subr.bf16.mxu1 %v17364_v48  ;;  %v10319_v48 = vld [vmem:[#allocation12 + $0x378] sm:$0xff]  ;;  %v17418_v24 = vcombine.high %v10314_v63, %v10318_v58  ;;  %v17417_v34 = vcombine.low %v10314_v63, %v10318_v58 }
 0x902   :  { %v17420_v33 = vcombine.high %v10315_v8, %v10319_v48  ;;  %v17419_v57 = vcombine.low %v10315_v8, %v10319_v48  ;;  %v10370_v48 = vld [vmem:[#allocation12 + $0x510] sm:$0xff] }
 0x903   :  { %13663 = vmatpush1.bf16.msra.mxu0 %v17361_v47  ;;  %v10322_v47 = vld [vmem:[#allocation12 + $0x390] sm:$0xff] }
 0x904   :  { %13827 = vmatpush1.bf16.msra.mxu1 %v17363_v36  ;;  %13664 = vmatprep.subr.bf16.mxu0 %v17370_v2  ;;  %v10326_v36 = vld [vmem:[#allocation12 + $0x3b0] sm:$0xff]  ;;  %v10323_v2 = vld [vmem:[#allocation12 + $0x398] sm:$0xff] }
 0x905   :  { %13828 = vmatprep.subr.bf16.mxu1 %v17372_v7  ;;  %v10327_v7 = vld [vmem:[#allocation12 + $0x3b8] sm:$0xff]  ;;  %v17426_v0 = vcombine.high %v10322_v47, %v10326_v36  ;;  %v17425_v21 = vcombine.low %v10322_v47, %v10326_v36 }
 0x906   :  { %v17428_v15 = vcombine.high %v10323_v2, %v10327_v7  ;;  %v17427_v32 = vcombine.low %v10323_v2, %v10327_v7  ;;  %v10378_v2 = vld [vmem:[#allocation12 + $0x550] sm:$0xff] }
 0x907   :  { %13665 = vmatpush1.bf16.msra.mxu0 %v17369_v62  ;;  %v10330_v62 = vld [vmem:[#allocation12 + $0x3d0] sm:$0xff] }
 0x908   :  { %13829 = vmatpush1.bf16.msra.mxu1 %v17371_v13  ;;  %13666 = vmatprep.subr.bf16.mxu0 %v17378_v43  ;;  %v10334_v13 = vld [vmem:[#allocation12 + $0x3f0] sm:$0xff]  ;;  %v10331_v43 = vld [vmem:[#allocation12 + $0x3d8] sm:$0xff] }
 0x909   :  { %13830 = vmatprep.subr.bf16.mxu1 %v17380_v23  ;;  %v10335_v23 = vld [vmem:[#allocation12 + $0x3f8] sm:$0xff]  ;;  %v17434_v31 = vcombine.high %v10330_v62, %v10334_v13  ;;  %v17433_v4 = vcombine.low %v10330_v62, %v10334_v13  ;;  %v10382_v7 = vld [vmem:[#allocation12 + $0x570] sm:$0xff] }
 0x90a   :  { %v17436_v59 = vcombine.high %v10331_v43, %v10335_v23  ;;  %v17435_v26 = vcombine.low %v10331_v43, %v10335_v23  ;;  %v17482_v62 = vcombine.high %v10378_v2, %v10382_v7  ;;  %v10386_v43 = vld [vmem:[#allocation12 + $0x590] sm:$0xff] }
 0x90b   :  { %13667 = vmatpush1.bf16.msra.mxu0 %v17377_v52  ;;  %v10338_v52 = vld [vmem:[#allocation12 + $0x410] sm:$0xff] }
 0x90c   :  { %13831 = vmatpush1.bf16.msra.mxu1 %v17379_v19  ;;  %13668 = vmatprep.subr.bf16.mxu0 %v17386_v25  ;;  %v10342_v19 = vld [vmem:[#allocation12 + $0x430] sm:$0xff]  ;;  %v10339_v25 = vld [vmem:[#allocation12 + $0x418] sm:$0xff] }
 0x90d   :  { %13832 = vmatprep.subr.bf16.mxu1 %v17388_v61  ;;  %v10343_v61 = vld [vmem:[#allocation12 + $0x438] sm:$0xff]  ;;  %v17442_v56 = vcombine.high %v10338_v52, %v10342_v19  ;;  %v10390_v23 = vld [vmem:[#allocation12 + $0x5b0] sm:$0xff] }
 0x90e   :  { %v17444_v46 = vcombine.high %v10339_v25, %v10343_v61  ;;  %v17443_v22 = vcombine.low %v10339_v25, %v10343_v61  ;;  %v10394_v25 = vld [vmem:[#allocation12 + $0x5d0] sm:$0xff] }
 0x90f   :  { %13669 = vmatpush1.bf16.msra.mxu0 %v17385_v10  ;;  %v10346_v10 = vld [vmem:[#allocation12 + $0x450] sm:$0xff] }
 0x910   :  { %13833 = vmatpush1.bf16.msra.mxu1 %v17387_v12  ;;  %13670 = vmatprep.subr.bf16.mxu0 %v17394_v50  ;;  %v10350_v12 = vld [vmem:[#allocation12 + $0x470] sm:$0xff]  ;;  %v17441_v50 = vcombine.low %v10338_v52, %v10342_v19  ;;  %v17490_v52 = vcombine.high %v10386_v43, %v10390_v23 }
 0x911   :  { %13834 = vmatprep.subr.bf16.mxu1 %v17396_v14  ;;  %v10347_v14 = vld [vmem:[#allocation12 + $0x458] sm:$0xff]  ;;  %v17450_v30 = vcombine.high %v10346_v10, %v10350_v12  ;;  %v17449_v54 = vcombine.low %v10346_v10, %v10350_v12  ;;  %v10398_v61 = vld [vmem:[#allocation12 + $0x5f0] sm:$0xff] }
 0x912   :  { %v17451_v18 = vcombine.low %v10347_v14, %v10351_v11  ;;  %v17498_v10 = vcombine.high %v10394_v25, %v10398_v61 }
 0x913   :  { %13671 = vmatpush1.bf16.msra.mxu0 %v17393_v20  ;;  %v10358_v20 = vld [vmem:[#allocation12 + $0x4b0] sm:$0xff] }
 0x914   :  { %13835 = vmatpush1.bf16.msra.mxu1 %v17395_v45  ;;  %13672 = vmatprep.subr.bf16.mxu0 %v17402_v1  ;;  %v17452_v45 = vcombine.high %v10347_v14, %v10351_v11  ;;  %v10355_v1 = vld [vmem:[#allocation12 + $0x498] sm:$0xff]  ;;  %v17458_v5 = vcombine.high %v10354_v28, %v10358_v20  ;;  %v17457_v63 = vcombine.low %v10354_v28, %v10358_v20  ;;  %v10406_v14 = vld [vmem:[#allocation12 + $0x630] sm:$0xff] }
 0x915   :  { %13836 = vmatprep.subr.bf16.mxu1 %v17404_v49  ;;  %v10359_v49 = vld [vmem:[#allocation12 + $0x4b8] sm:$0xff] }
 0x916   :  { %v17460_v9 = vcombine.high %v10355_v1, %v10359_v49  ;;  %v10403_v11 = vld [vmem:[#allocation12 + $0x618] sm:$0xff] }
 0x917   :  { %13673 = vmatpush1.bf16.msra.mxu0 %v17401_v53  ;;  %v10362_v53 = vld [vmem:[#allocation12 + $0x4d0] sm:$0xff] }
 0x918   :  { %13837 = vmatpush1.bf16.msra.mxu1 %v17403_v29  ;;  %13674 = vmatprep.subr.bf16.mxu0 %v17410_v38  ;;  %v10366_v29 = vld [vmem:[#allocation12 + $0x4f0] sm:$0xff]  ;;  %v10363_v38 = vld [vmem:[#allocation12 + $0x4d8] sm:$0xff] }
 0x919   :  { %13838 = vmatprep.subr.bf16.mxu1 %v17412_v37  ;;  %v10367_v37 = vld [vmem:[#allocation12 + $0x4f8] sm:$0xff]  ;;  %v17466_v58 = vcombine.high %v10362_v53, %v10366_v29 }
 0x91a   :  { %v17468_v8 = vcombine.high %v10363_v38, %v10367_v37 }
 0x91b   :  { %13675 = vmatpush1.bf16.msra.mxu0 %v17409_v6  ;;  %v10374_v6 = vld [vmem:[#allocation12 + $0x530] sm:$0xff] }
 0x91c   :  { %13839 = vmatpush1.bf16.msra.mxu1 %v17411_v17  ;;  %13676 = vmatprep.subr.bf16.mxu0 %v17418_v24  ;;  %v10371_v17 = vld [vmem:[#allocation12 + $0x518] sm:$0xff]  ;;  %v17474_v47 = vcombine.high %v10370_v48, %v10374_v6 }
 0x91d   :  { %13840 = vmatprep.subr.bf16.mxu1 %v17420_v33  ;;  %v10375_v24 = vld [vmem:[#allocation12 + $0x538] sm:$0xff]  ;;  %v17467_v33 = vcombine.low %v10363_v38, %v10367_v37  ;;  %v10418_v38 = vld [vmem:[#allocation12 + $0x690] sm:$0xff] }
 0x91e   :  { %v17476_v36 = vcombine.high %v10371_v17, %v10375_v24  ;;  %v10422_v37 = vld [vmem:[#allocation12 + $0x6b0] sm:$0xff] }
 0x91f   :  { %13677 = vmatpush1.bf16.msra.mxu0 %v17417_v34  ;;  %v10379_v34 = vld [vmem:[#allocation12 + $0x558] sm:$0xff] }
 0x920   :  { %13841 = vmatpush1.bf16.msra.mxu1 %v17419_v57  ;;  %13678 = vmatprep.subr.bf16.mxu0 %v17426_v0  ;;  %v10383_v57 = vld [vmem:[#allocation12 + $0x578] sm:$0xff]  ;;  %v17473_v0 = vcombine.low %v10370_v48, %v10374_v6  ;;  %v17522_v48 = vcombine.high %v10418_v38, %v10422_v37 }
 0x921   :  { %13842 = vmatprep.subr.bf16.mxu1 %v17428_v15  ;;  %v17475_v15 = vcombine.low %v10371_v17, %v10375_v24  ;;  %v17484_v13 = vcombine.high %v10379_v34, %v10383_v57  ;;  %v10426_v17 = vld [vmem:[#allocation12 + $0x6d0] sm:$0xff] }
 0x922   :  { %v10430_v24 = vld [vmem:[#allocation12 + $0x6f0] sm:$0xff] }
 0x923   :  { %13679 = vmatpush1.bf16.msra.mxu0 %v17425_v21  ;;  %v10387_v21 = vld [vmem:[#allocation12 + $0x598] sm:$0xff] }
 0x924   :  { %13843 = vmatpush1.bf16.msra.mxu1 %v17427_v32  ;;  %13680 = vmatprep.subr.bf16.mxu0 %v17434_v31  ;;  %v10391_v32 = vld [vmem:[#allocation12 + $0x5b8] sm:$0xff]  ;;  %v17481_v31 = vcombine.low %v10378_v2, %v10382_v7  ;;  %v17530_v2 = vcombine.high %v10426_v17, %v10430_v24 }
 0x925   :  { %13844 = vmatprep.subr.bf16.mxu1 %v17436_v59  ;;  %v17483_v59 = vcombine.low %v10379_v34, %v10383_v57  ;;  %v17492_v19 = vcombine.high %v10387_v21, %v10391_v32  ;;  %v10434_v34 = vld [vmem:[#allocation12 + $0x710] sm:$0xff] }
 0x926   :  { %v10438_v57 = vld [vmem:[#allocation12 + $0x730] sm:$0xff] }
 0x927   :  { %13681 = vmatpush1.bf16.msra.mxu0 %v17433_v4  ;;  %v10395_v4 = vld [vmem:[#allocation12 + $0x5d8] sm:$0xff] }
 0x928   :  { %13845 = vmatpush1.bf16.msra.mxu1 %v17435_v26  ;;  %13691 = vmatprep.subr.bf16.mxu0 %v17442_v56  ;;  %v10399_v26 = vld [vmem:[#allocation12 + $0x5f8] sm:$0xff]  ;;  %v17489_v56 = vcombine.low %v10386_v43, %v10390_v23  ;;  %v17538_v43 = vcombine.high %v10434_v34, %v10438_v57 }
 0x929   :  { %13855 = vmatprep.subr.bf16.mxu1 %v17444_v46  ;;  %v17491_v46 = vcombine.low %v10387_v21, %v10391_v32  ;;  %v17500_v12 = vcombine.high %v10395_v4, %v10399_v26  ;;  %v17499_v28 = vcombine.low %v10395_v4, %v10399_v26  ;;  %v10442_v21 = vld [vmem:[#allocation12 + $0x750] sm:$0xff] }
 0x92a   :  { %13683 = vmatmul.mubr.bf16.vlgmr.msra.gmra.mrb[60].mxu0 %v22102_v51  ;;  %v10446_v32 = vld [vmem:[#allocation12 + $0x770] sm:$0xff] }
 0x92b   :  { %13847 = vmatmul.mubr.bf16.vlgmr.msra.gmra.mrb[60].mxu1 %v22102_v51  ;;  %13692 = vmatpush1.bf16.msra.mxu0 %v17441_v50  ;;  %v17459_v51 = vcombine.low %v10355_v1, %v10359_v49  ;;  %v10402_v50 = vld [vmem:[#allocation12 + $0x610] sm:$0xff] }
 0x92c   :  { %13723 = vmatprep.mubr.bf16.mxu0 %v22106_v41  ;;  %13856 = vmatpush1.bf16.msra.mxu1 %v17443_v22  ;;  %v10407_v22 = vld [vmem:[#allocation12 + $0x638] sm:$0xff]  ;;  %v17506_v20 = vcombine.high %v10402_v50, %v10406_v14  ;;  %v10410_v1 = vld [vmem:[#allocation12 + $0x650] sm:$0xff] }
 0x92d   :  { %13887 = vmatprep.mubr.bf16.mxu1 %v22106_v41  ;;  %13693 = vmatprep.subr.bf16.mxu0 %v17450_v30  ;;  %v17465_v41 = vcombine.low %v10362_v53, %v10366_v29  ;;  %v17497_v30 = vcombine.low %v10394_v25, %v10398_v61  ;;  %v10414_v49 = vld [vmem:[#allocation12 + $0x670] sm:$0xff]  ;;  %v17546_v25 = vcombine.high %v10442_v21, %v10446_v32 }
 0x92e   :  { %13857 = vmatprep.subr.bf16.mxu1 %v17452_v45  ;;  %v17508_v45 = vcombine.high %v10403_v11, %v10407_v22  ;;  %v17514_v53 = vcombine.high %v10410_v1, %v10414_v49  ;;  %v10450_v4 = vld [vmem:[#allocation12 + $0x790] sm:$0xff] }
 0x92f   :  { %13694 = vmatpush1.bf16.msra.mxu0 %v17449_v54  ;;  %v10411_v54 = vld [vmem:[#allocation12 + $0x658] sm:$0xff]  ;;  %v10454_v26 = vld [vmem:[#allocation12 + $0x7b0] sm:$0xff] }
 0x930   :  { %13858 = vmatpush1.bf16.msra.mxu1 %v17451_v18  ;;  %13695 = vmatprep.subr.bf16.mxu0 %v17458_v5  ;;  %v10415_v18 = vld [vmem:[#allocation12 + $0x678] sm:$0xff]  ;;  %v17505_v5 = vcombine.low %v10402_v50, %v10406_v14  ;;  %v17554_v50 = vcombine.high %v10450_v4, %v10454_v26 }
 0x931   :  { %13859 = vmatprep.subr.bf16.mxu1 %v17460_v9  ;;  %v17507_v9 = vcombine.low %v10403_v11, %v10407_v22  ;;  %v17516_v29 = vcombine.high %v10411_v54, %v10415_v18  ;;  %v10458_v11 = vld [vmem:[#allocation12 + $0x7d0] sm:$0xff] }
 0x932   :  { %v10462_v22 = vld [vmem:[#allocation12 + $0x7f0] sm:$0xff] }
 0x933   :  { %13696 = vmatpush1.bf16.msra.mxu0 %v17457_v63  ;;  %v10419_v63 = vld [vmem:[#allocation12 + $0x698] sm:$0xff] }
 0x934   :  { %13860 = vmatpush1.bf16.msra.mxu1 %v17459_v51  ;;  %13697 = vmatprep.subr.bf16.mxu0 %v17466_v58  ;;  %v10423_v51 = vld [vmem:[#allocation12 + $0x6b8] sm:$0xff]  ;;  %v17513_v58 = vcombine.low %v10410_v1, %v10414_v49  ;;  %v17562_v1 = vcombine.high %v10458_v11, %v10462_v22 }
 0x935   :  { %13861 = vmatprep.subr.bf16.mxu1 %v17468_v8  ;;  %v17515_v8 = vcombine.low %v10411_v54, %v10415_v18  ;;  %v17524_v6 = vcombine.high %v10419_v63, %v10423_v51  ;;  %v10466_v54 = vld [vmem:[#allocation12 + $0x810] sm:$0xff] }
 0x936   :  { %v10470_v18 = vld [vmem:[#allocation12 + $0x830] sm:$0xff] }
 0x937   :  { %13698 = vmatpush1.bf16.msra.mxu0 %v17465_v41  ;;  %v10427_v41 = vld [vmem:[#allocation12 + $0x6d8] sm:$0xff] }
 0x938   :  { %13862 = vmatpush1.bf16.msra.mxu1 %v17467_v33  ;;  %13699 = vmatprep.subr.bf16.mxu0 %v17474_v47  ;;  %v10431_v33 = vld [vmem:[#allocation12 + $0x6f8] sm:$0xff]  ;;  %v17521_v47 = vcombine.low %v10418_v38, %v10422_v37  ;;  %v17570_v38 = vcombine.high %v10466_v54, %v10470_v18 }
 0x939   :  { %13863 = vmatprep.subr.bf16.mxu1 %v17476_v36  ;;  %v17523_v36 = vcombine.low %v10419_v63, %v10423_v51  ;;  %v17532_v7 = vcombine.high %v10427_v41, %v10431_v33  ;;  %v10474_v63 = vld [vmem:[#allocation12 + $0x850] sm:$0xff] }
 0x93a   :  { %v10478_v51 = vld [vmem:[#allocation12 + $0x870] sm:$0xff] }
 0x93b   :  { %13700 = vmatpush1.bf16.msra.mxu0 %v17473_v0  ;;  %v10435_v0 = vld [vmem:[#allocation12 + $0x718] sm:$0xff] }
 0x93c   :  { %13864 = vmatpush1.bf16.msra.mxu1 %v17475_v15  ;;  %13701 = vmatprep.subr.bf16.mxu0 %v17482_v62  ;;  %v10439_v15 = vld [vmem:[#allocation12 + $0x738] sm:$0xff]  ;;  %v17529_v62 = vcombine.low %v10426_v17, %v10430_v24  ;;  %v17578_v17 = vcombine.high %v10474_v63, %v10478_v51  ;;  %v10482_v24 = vld [vmem:[#allocation12 + $0x890] sm:$0xff] }
 0x93d   :  { %13865 = vmatprep.subr.bf16.mxu1 %v17484_v13  ;;  %v17531_v13 = vcombine.low %v10427_v41, %v10431_v33  ;;  %v17540_v23 = vcombine.high %v10435_v0, %v10439_v15  ;;  %v10486_v41 = vld [vmem:[#allocation12 + $0x8b0] sm:$0xff] }
 0x93f   :  { %13702 = vmatpush1.bf16.msra.mxu0 %v17481_v31  ;;  %v10443_v31 = vld [vmem:[#allocation12 + $0x758] sm:$0xff] }
 0x940   :  { %13866 = vmatpush1.bf16.msra.mxu1 %v17483_v59  ;;  %13703 = vmatprep.subr.bf16.mxu0 %v17490_v52  ;;  %v10447_v59 = vld [vmem:[#allocation12 + $0x778] sm:$0xff]  ;;  %v17537_v52 = vcombine.low %v10434_v34, %v10438_v57  ;;  %v17586_v34 = vcombine.high %v10482_v24, %v10486_v41 }
 0x941   :  { %13867 = vmatprep.subr.bf16.mxu1 %v17492_v19  ;;  %v17539_v19 = vcombine.low %v10435_v0, %v10439_v15  ;;  %v17548_v61 = vcombine.high %v10443_v31, %v10447_v59  ;;  %v10490_v0 = vld [vmem:[#allocation12 + $0x8d0] sm:$0xff] }
 0x942   :  { %v10494_v15 = vld [vmem:[#allocation12 + $0x8f0] sm:$0xff] }
 0x943   :  { %13704 = vmatpush1.bf16.msra.mxu0 %v17489_v56  ;;  %v10451_v56 = vld [vmem:[#allocation12 + $0x798] sm:$0xff] }
 0x944   :  { %13868 = vmatpush1.bf16.msra.mxu1 %v17491_v46  ;;  %13705 = vmatprep.subr.bf16.mxu0 %v17498_v10  ;;  %v10455_v46 = vld [vmem:[#allocation12 + $0x7b8] sm:$0xff]  ;;  %v17545_v10 = vcombine.low %v10442_v21, %v10446_v32  ;;  %v10498_v32 = vld [vmem:[#allocation12 + $0x910] sm:$0xff] }
 0x945   :  { %13869 = vmatprep.subr.bf16.mxu1 %v17500_v12  ;;  %v17547_v12 = vcombine.low %v10443_v31, %v10447_v59  ;;  %v17556_v14 = vcombine.high %v10451_v56, %v10455_v46  ;;  %v10502_v31 = vld [vmem:[#allocation12 + $0x930] sm:$0xff]  ;;  %v10499_v59 = vld [vmem:[#allocation12 + $0x918] sm:$0xff] }
 0x947   :  { %13706 = vmatpush1.bf16.msra.mxu0 %v17497_v30  ;;  %v10459_v30 = vld [vmem:[#allocation12 + $0x7d8] sm:$0xff] }
 0x948   :  { %13870 = vmatpush1.bf16.msra.mxu1 %v17499_v28  ;;  %13707 = vmatprep.subr.bf16.mxu0 %v17506_v20  ;;  %v10463_v28 = vld [vmem:[#allocation12 + $0x7f8] sm:$0xff]  ;;  %v17553_v20 = vcombine.low %v10450_v4, %v10454_v26  ;;  %v10506_v4 = vld [vmem:[#allocation12 + $0x950] sm:$0xff] }
 0x949   :  { %13871 = vmatprep.subr.bf16.mxu1 %v17508_v45  ;;  %v17555_v45 = vcombine.low %v10451_v56, %v10455_v46  ;;  %v17564_v49 = vcombine.high %v10459_v30, %v10463_v28  ;;  %v10510_v26 = vld [vmem:[#allocation12 + $0x970] sm:$0xff]  ;;  %v10507_v56 = vld [vmem:[#allocation12 + $0x958] sm:$0xff] }
 0x94a   :  { %v10511_v46 = vld [vmem:[#allocation12 + $0x978] sm:$0xff] }
 0x94b   :  { %13708 = vmatpush1.bf16.msra.mxu0 %v17505_v5  ;;  %v10467_v5 = vld [vmem:[#allocation12 + $0x818] sm:$0xff] }
 0x94c   :  { %13872 = vmatpush1.bf16.msra.mxu1 %v17507_v9  ;;  %13709 = vmatprep.subr.bf16.mxu0 %v17514_v53  ;;  %v10471_v9 = vld [vmem:[#allocation12 + $0x838] sm:$0xff]  ;;  %v17561_v53 = vcombine.low %v10458_v11, %v10462_v22  ;;  %v10514_v11 = vld [vmem:[#allocation12 + $0x990] sm:$0xff] }
 0x94d   :  { %13873 = vmatprep.subr.bf16.mxu1 %v17516_v29  ;;  %v17563_v29 = vcombine.low %v10459_v30, %v10463_v28  ;;  %v17572_v37 = vcombine.high %v10467_v5, %v10471_v9  ;;  %v10518_v22 = vld [vmem:[#allocation12 + $0x9b0] sm:$0xff]  ;;  %v10515_v30 = vld [vmem:[#allocation12 + $0x998] sm:$0xff] }
 0x94e   :  { %v10519_v28 = vld [vmem:[#allocation12 + $0x9b8] sm:$0xff] }
 0x94f   :  { %13710 = vmatpush1.bf16.msra.mxu0 %v17513_v58  ;;  %v17569_v58 = vcombine.low %v10466_v54, %v10470_v18  ;;  %v10522_v54 = vld [vmem:[#allocation12 + $0x9d0] sm:$0xff] }
 0x950   :  { %13874 = vmatpush1.bf16.msra.mxu1 %v17515_v8  ;;  %13711 = vmatprep.subr.bf16.mxu0 %v17522_v48  ;;  %v10475_v8 = vld [vmem:[#allocation12 + $0x858] sm:$0xff]  ;;  %v10526_v18 = vld [vmem:[#allocation12 + $0x9f0] sm:$0xff] }
 0x951   :  { %13875 = vmatprep.subr.bf16.mxu1 %v17524_v6  ;;  %v10479_v48 = vld [vmem:[#allocation12 + $0x878] sm:$0xff]  ;;  %v17571_v6 = vcombine.low %v10467_v5, %v10471_v9 }
 0x952   :  { %v17580_v33 = vcombine.high %v10475_v8, %v10479_v48  ;;  %v10523_v5 = vld [vmem:[#allocation12 + $0x9d8] sm:$0xff] }
 0x953   :  { %13712 = vmatpush1.bf16.msra.mxu0 %v17521_v47  ;;  %v10483_v47 = vld [vmem:[#allocation12 + $0x898] sm:$0xff] }
 0x954   :  { %13876 = vmatpush1.bf16.msra.mxu1 %v17523_v36  ;;  %13713 = vmatprep.subr.bf16.mxu0 %v17530_v2  ;;  %v10487_v36 = vld [vmem:[#allocation12 + $0x8b8] sm:$0xff]  ;;  %v17577_v2 = vcombine.low %v10474_v63, %v10478_v51  ;;  %v10530_v63 = vld [vmem:[#allocation12 + $0xa10] sm:$0xff] }
 0x955   :  { %13877 = vmatprep.subr.bf16.mxu1 %v17532_v7  ;;  %v17579_v7 = vcombine.low %v10475_v8, %v10479_v48  ;;  %v17588_v57 = vcombine.high %v10483_v47, %v10487_v36  ;;  %v10527_v9 = vld [vmem:[#allocation12 + $0x9f8] sm:$0xff]  ;;  %v10534_v51 = vld [vmem:[#allocation12 + $0xa30] sm:$0xff]  ;;  %v17625_v48 = vcombine.low %v10522_v54, %v10526_v18 }
 0x956   :  { %v10535_v8 = vld [vmem:[#allocation12 + $0xa38] sm:$0xff] }
 0x957   :  { %13714 = vmatpush1.bf16.msra.mxu0 %v17529_v62  ;;  %v10491_v62 = vld [vmem:[#allocation12 + $0x8d8] sm:$0xff] }
 0x958   :  { %13878 = vmatpush1.bf16.msra.mxu1 %v17531_v13  ;;  %13715 = vmatprep.subr.bf16.mxu0 %v17538_v43  ;;  %v10495_v13 = vld [vmem:[#allocation12 + $0x8f8] sm:$0xff]  ;;  %v17585_v43 = vcombine.low %v10482_v24, %v10486_v41  ;;  %v10538_v41 = vld [vmem:[#allocation12 + $0xa50] sm:$0xff] }
 0x959   :  { %13879 = vmatprep.subr.bf16.mxu1 %v17540_v23  ;;  %v17594_v23 = vcombine.high %v10490_v0, %v10494_v15  ;;  %v17596_v21 = vcombine.high %v10491_v62, %v10495_v13 }
 0x95b   :  { %13716 = vmatpush1.bf16.msra.mxu0 %v17537_v52  ;;  %v10503_v52 = vld [vmem:[#allocation12 + $0x938] sm:$0xff] }
 0x95c   :  { %13880 = vmatpush1.bf16.msra.mxu1 %v17539_v19  ;;  %13717 = vmatprep.subr.bf16.mxu0 %v17546_v25  ;;  %v17595_v19 = vcombine.low %v10491_v62, %v10495_v13  ;;  %v17602_v25 = vcombine.high %v10498_v32, %v10502_v31  ;;  %v10547_v62 = vld [vmem:[#allocation12 + $0xa98] sm:$0xff] }
 0x95d   :  { %13881 = vmatprep.subr.bf16.mxu1 %v17548_v61  ;;  %v17604_v61 = vcombine.high %v10499_v59, %v10503_v52  ;;  %v10551_v13 = vld [vmem:[#allocation12 + $0xab8] sm:$0xff] }
 0x95f   :  { %13718 = vmatpush1.bf16.msra.mxu0 %v17545_v10  ;;  %v17601_v10 = vcombine.low %v10498_v32, %v10502_v31  ;;  %v10554_v32 = vld [vmem:[#allocation12 + $0xad0] sm:$0xff] }
 0x960   :  { %13882 = vmatpush1.bf16.msra.mxu1 %v17547_v12  ;;  %13719 = vmatprep.subr.bf16.mxu0 %v17554_v50  ;;  %v17603_v12 = vcombine.low %v10499_v59, %v10503_v52  ;;  %v17610_v50 = vcombine.high %v10506_v4, %v10510_v26  ;;  %v10558_v31 = vld [vmem:[#allocation12 + $0xaf0] sm:$0xff]  ;;  %v10555_v59 = vld [vmem:[#allocation12 + $0xad8] sm:$0xff] }
 0x961   :  { %13883 = vmatprep.subr.bf16.mxu1 %v17556_v14  ;;  %v17612_v14 = vcombine.high %v10507_v56, %v10511_v46  ;;  %v10559_v52 = vld [vmem:[#allocation12 + $0xaf8] sm:$0xff] }
 0x963   :  { %13720 = vmatpush1.bf16.msra.mxu0 %v17553_v20  ;;  %v17609_v20 = vcombine.low %v10506_v4, %v10510_v26  ;;  %v10562_v4 = vld [vmem:[#allocation12 + $0xb10] sm:$0xff] }
 0x964   :  { %13884 = vmatpush1.bf16.msra.mxu1 %v17555_v45  ;;  %13721 = vmatprep.subr.bf16.mxu0 %v17562_v1  ;;  %v17611_v45 = vcombine.low %v10507_v56, %v10511_v46  ;;  %v17618_v1 = vcombine.high %v10514_v11, %v10518_v22  ;;  %v10566_v26 = vld [vmem:[#allocation12 + $0xb30] sm:$0xff]  ;;  %v10563_v56 = vld [vmem:[#allocation12 + $0xb18] sm:$0xff] }
 0x965   :  { %13885 = vmatprep.subr.bf16.mxu1 %v17564_v49  ;;  %v17620_v49 = vcombine.high %v10515_v30, %v10519_v28  ;;  %v10567_v46 = vld [vmem:[#allocation12 + $0xb38] sm:$0xff] }
 0x967   :  { %13722 = vmatpush1.bf16.msra.mxu0 %v17561_v53  ;;  %v17617_v53 = vcombine.low %v10514_v11, %v10518_v22  ;;  %v10570_v11 = vld [vmem:[#allocation12 + $0xb50] sm:$0xff] }
 0x968   :  { %13886 = vmatpush1.bf16.msra.mxu1 %v17563_v29  ;;  %13732 = vmatprep.subr.bf16.mxu0 %v17570_v38  ;;  %v17619_v29 = vcombine.low %v10515_v30, %v10519_v28  ;;  %v17626_v38 = vcombine.high %v10522_v54, %v10526_v18  ;;  %v10574_v22 = vld [vmem:[#allocation12 + $0xb70] sm:$0xff]  ;;  %v10571_v30 = vld [vmem:[#allocation12 + $0xb58] sm:$0xff] }
 0x969   :  { %13896 = vmatprep.subr.bf16.mxu1 %v17572_v37  ;;  %v17628_v37 = vcombine.high %v10523_v5, %v10527_v9  ;;  %v10575_v28 = vld [vmem:[#allocation12 + $0xb78] sm:$0xff]  ;;  %v10578_v54 = vld [vmem:[#allocation12 + $0xb90] sm:$0xff] }
 0x96a   :  { %13724 = vmatmul.mubr.bf16.vlgmr.msra.gmra.mrb[60].mxu0 %v22122_v40  ;;  %v10582_v18 = vld [vmem:[#allocation12 + $0xbb0] sm:$0xff] }
 0x96b   :  { %13888 = vmatmul.mubr.bf16.vlgmr.msra.gmra.mrb[60].mxu1 %v22122_v40  ;;  %13733 = vmatpush1.bf16.msra.mxu0 %v17569_v58  ;;  %v17587_v40 = vcombine.low %v10483_v47, %v10487_v36  ;;  %v10531_v58 = vld [vmem:[#allocation12 + $0xa18] sm:$0xff] }
 0x96c   :  { %13764 = vmatprep.mubr.bf16.mxu0 %v22126_v16  ;;  %13897 = vmatpush1.bf16.msra.mxu1 %v17571_v6  ;;  %v17627_v6 = vcombine.low %v10523_v5, %v10527_v9  ;;  %v17636_v24 = vcombine.high %v10531_v58, %v10535_v8  ;;  %v10539_v47 = vld [vmem:[#allocation12 + $0xa58] sm:$0xff] }
 0x96d   :  { %13928 = vmatprep.mubr.bf16.mxu1 %v22126_v16  ;;  %13734 = vmatprep.subr.bf16.mxu0 %v17578_v17  ;;  %v17593_v16 = vcombine.low %v10490_v0, %v10494_v15  ;;  %v17634_v17 = vcombine.high %v10530_v63, %v10534_v51  ;;  %v10543_v36 = vld [vmem:[#allocation12 + $0xa78] sm:$0xff]  ;;  %v10546_v0 = vld [vmem:[#allocation12 + $0xa90] sm:$0xff] }
 0x96e   :  { %13898 = vmatprep.subr.bf16.mxu1 %v17580_v33  ;;  %v10542_v33 = vld [vmem:[#allocation12 + $0xa70] sm:$0xff]  ;;  %v10579_v5 = vld [vmem:[#allocation12 + $0xb98] sm:$0xff] }
 0x96f   :  { %13735 = vmatpush1.bf16.msra.mxu0 %v17577_v2  ;;  %v17633_v2 = vcombine.low %v10530_v63, %v10534_v51  ;;  %v10550_v15 = vld [vmem:[#allocation12 + $0xab0] sm:$0xff]  ;;  %v10583_v9 = vld [vmem:[#allocation12 + $0xbb8] sm:$0xff] }
 0x970   :  { %13899 = vmatpush1.bf16.msra.mxu1 %v17579_v7  ;;  %13736 = vmatprep.subr.bf16.mxu0 %v17586_v34  ;;  %v17635_v7 = vcombine.low %v10531_v58, %v10535_v8  ;;  %v17642_v34 = vcombine.high %v10538_v41, %v10542_v33  ;;  %v10586_v63 = vld [vmem:[#allocation12 + $0xbd0] sm:$0xff]  ;;  %v10587_v58 = vld [vmem:[#allocation12 + $0xbd8] sm:$0xff] }
 0x971   :  { %13900 = vmatprep.subr.bf16.mxu1 %v17588_v57  ;;  %v17644_v57 = vcombine.high %v10539_v47, %v10543_v36  ;;  %v10590_v51 = vld [vmem:[#allocation12 + $0xbf0] sm:$0xff]  ;;  %v10591_v8 = vld [vmem:[#allocation12 + $0xbf8] sm:$0xff] }
 0x973   :  { %13737 = vmatpush1.bf16.msra.mxu0 %v17585_v43  ;;  %v17641_v43 = vcombine.low %v10538_v41, %v10542_v33  ;;  %v10594_v41 = vld [vmem:[#allocation12 + $0xc10] sm:$0xff] }
 0x974   :  { %13901 = vmatpush1.bf16.msra.mxu1 %v17587_v40  ;;  %13738 = vmatprep.subr.bf16.mxu0 %v17594_v23  ;;  %v17643_v40 = vcombine.low %v10539_v47, %v10543_v36  ;;  %v17650_v23 = vcombine.high %v10546_v0, %v10550_v15  ;;  %v10598_v33 = vld [vmem:[#allocation12 + $0xc30] sm:$0xff]  ;;  %v10595_v47 = vld [vmem:[#allocation12 + $0xc18] sm:$0xff] }
 0x975   :  { %13902 = vmatprep.subr.bf16.mxu1 %v17596_v21  ;;  %v17652_v21 = vcombine.high %v10547_v62, %v10551_v13  ;;  %v10599_v36 = vld [vmem:[#allocation12 + $0xc38] sm:$0xff] }
 0x977   :  { %13739 = vmatpush1.bf16.msra.mxu0 %v17593_v16  ;;  %v17649_v16 = vcombine.low %v10546_v0, %v10550_v15  ;;  %v10602_v0 = vld [vmem:[#allocation12 + $0xc50] sm:$0xff] }
 0x978   :  { %13903 = vmatpush1.bf16.msra.mxu1 %v17595_v19  ;;  %13740 = vmatprep.subr.bf16.mxu0 %v17602_v25  ;;  %v17651_v19 = vcombine.low %v10547_v62, %v10551_v13  ;;  %v17658_v25 = vcombine.high %v10554_v32, %v10558_v31  ;;  %v10606_v15 = vld [vmem:[#allocation12 + $0xc70] sm:$0xff]  ;;  %v17697_v62 = vcombine.low %v10594_v41, %v10598_v33  ;;  %v10603_v13 = vld [vmem:[#allocation12 + $0xc58] sm:$0xff] }
 0x979   :  { %13904 = vmatprep.subr.bf16.mxu1 %v17604_v61  ;;  %v17660_v61 = vcombine.high %v10555_v59, %v10559_v52 }
 0x97b   :  { %13741 = vmatpush1.bf16.msra.mxu0 %v17601_v10  ;;  %v17657_v10 = vcombine.low %v10554_v32, %v10558_v31  ;;  %v10614_v32 = vld [vmem:[#allocation12 + $0xcb0] sm:$0xff] }
 0x97c   :  { %13905 = vmatpush1.bf16.msra.mxu1 %v17603_v12  ;;  %13742 = vmatprep.subr.bf16.mxu0 %v17610_v50  ;;  %v17659_v12 = vcombine.low %v10555_v59, %v10559_v52  ;;  %v17666_v50 = vcombine.high %v10562_v4, %v10566_v26  ;;  %v10611_v59 = vld [vmem:[#allocation12 + $0xc98] sm:$0xff] }
 0x97d   :  { %13906 = vmatprep.subr.bf16.mxu1 %v17612_v14  ;;  %v17668_v14 = vcombine.high %v10563_v56, %v10567_v46  ;;  %v10615_v52 = vld [vmem:[#allocation12 + $0xcb8] sm:$0xff] }
 0x97f   :  { %13743 = vmatpush1.bf16.msra.mxu0 %v17609_v20  ;;  %v17665_v20 = vcombine.low %v10562_v4, %v10566_v26  ;;  %v10618_v4 = vld [vmem:[#allocation12 + $0xcd0] sm:$0xff] }
 0x980   :  { %13907 = vmatpush1.bf16.msra.mxu1 %v17611_v45  ;;  %13744 = vmatprep.subr.bf16.mxu0 %v17618_v1  ;;  %v17667_v45 = vcombine.low %v10563_v56, %v10567_v46  ;;  %v17674_v1 = vcombine.high %v10570_v11, %v10574_v22  ;;  %v10622_v26 = vld [vmem:[#allocation12 + $0xcf0] sm:$0xff]  ;;  %v10619_v56 = vld [vmem:[#allocation12 + $0xcd8] sm:$0xff] }
 0x981   :  { %13908 = vmatprep.subr.bf16.mxu1 %v17620_v49  ;;  %v17676_v49 = vcombine.high %v10571_v30, %v10575_v28  ;;  %v10623_v46 = vld [vmem:[#allocation12 + $0xcf8] sm:$0xff] }
 0x983   :  { %13745 = vmatpush1.bf16.msra.mxu0 %v17617_v53  ;;  %v17673_v53 = vcombine.low %v10570_v11, %v10574_v22  ;;  %v10630_v11 = vld [vmem:[#allocation12 + $0xd30] sm:$0xff]  ;;  %v10627_v22 = vld [vmem:[#allocation12 + $0xd18] sm:$0xff] }
 0x984   :  { %13909 = vmatpush1.bf16.msra.mxu1 %v17619_v29  ;;  %13746 = vmatprep.subr.bf16.mxu0 %v17626_v38  ;;  %v17675_v29 = vcombine.low %v10571_v30, %v10575_v28  ;;  %v17682_v38 = vcombine.high %v10578_v54, %v10582_v18  ;;  %v10631_v30 = vld [vmem:[#allocation12 + $0xd38] sm:$0xff]  ;;  %v17723_v28 = vcombine.low %v10619_v56, %v10623_v46 }
 0x985   :  { %13910 = vmatprep.subr.bf16.mxu1 %v17628_v37  ;;  %v17684_v37 = vcombine.high %v10579_v5, %v10583_v9 }
 0x987   :  { %13747 = vmatpush1.bf16.msra.mxu0 %v17625_v48  ;;  %v17681_v48 = vcombine.low %v10578_v54, %v10582_v18  ;;  %v10635_v54 = vld [vmem:[#allocation12 + $0xd58] sm:$0xff] }
 0x988   :  { %13911 = vmatpush1.bf16.msra.mxu1 %v17627_v6  ;;  %13748 = vmatprep.subr.bf16.mxu0 %v17634_v17  ;;  %v17683_v6 = vcombine.low %v10579_v5, %v10583_v9  ;;  %v17690_v17 = vcombine.high %v10586_v63, %v10590_v51  ;;  %v10639_v18 = vld [vmem:[#allocation12 + $0xd78] sm:$0xff]  ;;  %v17731_v9 = vcombine.low %v10627_v22, %v10631_v30 }
 0x989   :  { %13912 = vmatprep.subr.bf16.mxu1 %v17636_v24  ;;  %v17692_v24 = vcombine.high %v10587_v58, %v10591_v8 }
 0x98b   :  { %13749 = vmatpush1.bf16.msra.mxu0 %v17633_v2  ;;  %v17689_v2 = vcombine.low %v10586_v63, %v10590_v51  ;;  %v10643_v63 = vld [vmem:[#allocation12 + $0xd98] sm:$0xff] }
 0x98c   :  { %13913 = vmatpush1.bf16.msra.mxu1 %v17635_v7  ;;  %13750 = vmatprep.subr.bf16.mxu0 %v17642_v34  ;;  %v17691_v7 = vcombine.low %v10587_v58, %v10591_v8  ;;  %v17698_v34 = vcombine.high %v10594_v41, %v10598_v33  ;;  %v10647_v51 = vld [vmem:[#allocation12 + $0xdb8] sm:$0xff]  ;;  %v17739_v8 = vcombine.low %v10635_v54, %v10639_v18  ;;  %v10650_v41 = vld [vmem:[#allocation12 + $0xdd0] sm:$0xff] }
 0x98d   :  { %13914 = vmatprep.subr.bf16.mxu1 %v17644_v57  ;;  %v17700_v57 = vcombine.high %v10595_v47, %v10599_v36  ;;  %v10654_v33 = vld [vmem:[#allocation12 + $0xdf0] sm:$0xff] }
 0x98f   :  { %13751 = vmatpush1.bf16.msra.mxu0 %v17641_v43  ;;  %v10607_v43 = vld [vmem:[#allocation12 + $0xc78] sm:$0xff] }
 0x990   :  { %13915 = vmatpush1.bf16.msra.mxu1 %v17643_v40  ;;  %13752 = vmatprep.subr.bf16.mxu0 %v17650_v23  ;;  %v17699_v40 = vcombine.low %v10595_v47, %v10599_v36  ;;  %v17706_v23 = vcombine.high %v10602_v0, %v10606_v15  ;;  %v17708_v31 = vcombine.high %v10603_v13, %v10607_v43 }
 0x991   :  { %13916 = vmatprep.subr.bf16.mxu1 %v17652_v21  ;;  %v10610_v21 = vld [vmem:[#allocation12 + $0xc90] sm:$0xff] }
 0x993   :  { %13753 = vmatpush1.bf16.msra.mxu0 %v17649_v16  ;;  %v17705_v16 = vcombine.low %v10602_v0, %v10606_v15 }
 0x994   :  { %13917 = vmatpush1.bf16.msra.mxu1 %v17651_v19  ;;  %13754 = vmatprep.subr.bf16.mxu0 %v17658_v25  ;;  %v17707_v19 = vcombine.low %v10603_v13, %v10607_v43  ;;  %v17714_v25 = vcombine.high %v10610_v21, %v10614_v32  ;;  %v17747_v13 = vcombine.low %v10643_v63, %v10647_v51 }
 0x995   :  { %13918 = vmatprep.subr.bf16.mxu1 %v17660_v61  ;;  %v17716_v61 = vcombine.high %v10611_v59, %v10615_v52  ;;  %v17754_v43 = vcombine.high %v10650_v41, %v10654_v33 }
 0x997   :  { %13755 = vmatpush1.bf16.msra.mxu0 %v17657_v10  ;;  %v17713_v10 = vcombine.low %v10610_v21, %v10614_v32  ;;  %v10662_v21 = vld [vmem:[#allocation12 + $0xe30] sm:$0xff]  ;;  %v10659_v32 = vld [vmem:[#allocation12 + $0xe18] sm:$0xff] }
 0x998   :  { %13919 = vmatpush1.bf16.msra.mxu1 %v17659_v12  ;;  %13756 = vmatprep.subr.bf16.mxu0 %v17666_v50  ;;  %v17722_v12 = vcombine.high %v10618_v4, %v10622_v26  ;;  %v17724_v50 = vcombine.high %v10619_v56, %v10623_v46 }
 0x999   :  { %13920 = vmatprep.subr.bf16.mxu1 %v17668_v14  ;;  %v10626_v14 = vld [vmem:[#allocation12 + $0xd10] sm:$0xff] }
 0x99a   :  { %v17729_v5 = vcombine.low %v10626_v14, %v10630_v11 }
 0x99b   :  { %13757 = vmatpush1.bf16.msra.mxu0 %v17665_v20  ;;  %v17730_v20 = vcombine.high %v10626_v14, %v10630_v11  ;;  %v10675_v14 = vld [vmem:[#allocation12 + $0xe98] sm:$0xff] }
 0x99c   :  { %13921 = vmatpush1.bf16.msra.mxu1 %v17667_v45  ;;  %13758 = vmatprep.subr.bf16.mxu0 %v17674_v1  ;;  %v17732_v45 = vcombine.high %v10627_v22, %v10631_v30  ;;  %v10634_v1 = vld [vmem:[#allocation12 + $0xd50] sm:$0xff]  ;;  %v10679_v11 = vld [vmem:[#allocation12 + $0xeb8] sm:$0xff] }
 0x99d   :  { %13922 = vmatprep.subr.bf16.mxu1 %v17676_v49  ;;  %v10638_v49 = vld [vmem:[#allocation12 + $0xd70] sm:$0xff] }
 0x99e   :  { %v17737_v58 = vcombine.low %v10634_v1, %v10638_v49 }
 0x99f   :  { %13759 = vmatpush1.bf16.msra.mxu0 %v17673_v53  ;;  %v17738_v53 = vcombine.high %v10634_v1, %v10638_v49  ;;  %v10683_v1 = vld [vmem:[#allocation12 + $0xed8] sm:$0xff] }
 0x9a0   :  { %13923 = vmatpush1.bf16.msra.mxu1 %v17675_v29  ;;  %13760 = vmatprep.subr.bf16.mxu0 %v17682_v38  ;;  %v17740_v29 = vcombine.high %v10635_v54, %v10639_v18  ;;  %v10642_v38 = vld [vmem:[#allocation12 + $0xd90] sm:$0xff]  ;;  %v10687_v49 = vld [vmem:[#allocation12 + $0xef8] sm:$0xff]  ;;  %v17779_v18 = vcombine.low %v10675_v14, %v10679_v11 }
 0x9a1   :  { %13924 = vmatprep.subr.bf16.mxu1 %v17684_v37  ;;  %v10646_v37 = vld [vmem:[#allocation12 + $0xdb0] sm:$0xff] }
 0x9a2   :  { %v17745_v0 = vcombine.low %v10642_v38, %v10646_v37 }
 0x9a3   :  { %13761 = vmatpush1.bf16.msra.mxu0 %v17681_v48  ;;  %v17746_v48 = vcombine.high %v10642_v38, %v10646_v37  ;;  %v10691_v38 = vld [vmem:[#allocation12 + $0xf18] sm:$0xff] }
 0x9a4   :  { %13925 = vmatpush1.bf16.msra.mxu1 %v17683_v6  ;;  %13762 = vmatprep.subr.bf16.mxu0 %v17690_v17  ;;  %v10695_v37 = vld [vmem:[#allocation12 + $0xf38] sm:$0xff] }
 0x9a5   :  { %13926 = vmatprep.subr.bf16.mxu1 %v17692_v24  ;;  %v17748_v24 = vcombine.high %v10643_v63, %v10647_v51  ;;  %v17787_v51 = vcombine.low %v10683_v1, %v10687_v49 }
 0x9a7   :  { %13763 = vmatpush1.bf16.msra.mxu0 %v17689_v2  ;;  %v10651_v2 = vld [vmem:[#allocation12 + $0xdd8] sm:$0xff] }
 0x9a8   :  { %13927 = vmatpush1.bf16.msra.mxu1 %v17691_v7  ;;  %13773 = vmatprep.subr.bf16.mxu0 %v17698_v34  ;;  %v10655_v7 = vld [vmem:[#allocation12 + $0xdf8] sm:$0xff] }
 0x9a9   :  { %13937 = vmatprep.subr.bf16.mxu1 %v17700_v57 }
 0x9aa   :  { %13765 = vmatmul.mubr.bf16.vlgmr.msra.gmra.mrb[60].mxu0 %v22134_v35 }
 0x9ab   :  { %13929 = vmatmul.mubr.bf16.vlgmr.msra.gmra.mrb[60].mxu1 %v22134_v35  ;;  %13774 = vmatpush1.bf16.msra.mxu0 %v17697_v62  ;;  %v17715_v35 = vcombine.low %v10611_v59, %v10615_v52  ;;  %v17753_v59 = vcombine.low %v10650_v41, %v10654_v33  ;;  %v17755_v52 = vcombine.low %v10651_v2, %v10655_v7  ;;  %v10699_v41 = vld [vmem:[#allocation12 + $0xf58] sm:$0xff] }
 0x9ac   :  { %13805 = vmatprep.mubr.bf16.mxu0 %v22138_v39  ;;  %13938 = vmatpush1.bf16.msra.mxu1 %v17699_v40  ;;  %v17756_v40 = vcombine.high %v10651_v2, %v10655_v7  ;;  %v10703_v33 = vld [vmem:[#allocation12 + $0xf78] sm:$0xff]  ;;  %v17795_v7 = vcombine.low %v10691_v38, %v10695_v37 }
 0x9ad   :  { %13969 = vmatprep.mubr.bf16.mxu1 %v22138_v39  ;;  %13775 = vmatprep.subr.bf16.mxu0 %v17706_v23  ;;  %v17721_v39 = vcombine.low %v10618_v4, %v10622_v26  ;;  %v10658_v23 = vld [vmem:[#allocation12 + $0xe10] sm:$0xff]  ;;  %v10667_v4 = vld [vmem:[#allocation12 + $0xe58] sm:$0xff] }
 0x9ae   :  { %13939 = vmatprep.subr.bf16.mxu1 %v17708_v31  ;;  %v10663_v31 = vld [vmem:[#allocation12 + $0xe38] sm:$0xff]  ;;  %v17761_v56 = vcombine.low %v10658_v23, %v10662_v21 }
 0x9af   :  { %13776 = vmatpush1.bf16.msra.mxu0 %v17705_v16  ;;  %v17762_v16 = vcombine.high %v10658_v23, %v10662_v21  ;;  %v10671_v26 = vld [vmem:[#allocation12 + $0xe78] sm:$0xff]  ;;  %v17763_v46 = vcombine.low %v10659_v32, %v10663_v31  ;;  %v17803_v23 = vcombine.low %v10699_v41, %v10703_v33 }
 0x9b0   :  { %13940 = vmatpush1.bf16.msra.mxu1 %v17707_v19  ;;  %13777 = vmatprep.subr.bf16.mxu0 %v17714_v25  ;;  %v17764_v19 = vcombine.high %v10659_v32, %v10663_v31  ;;  %v10666_v25 = vld [vmem:[#allocation12 + $0xe50] sm:$0xff]  ;;  %v17771_v30 = vcombine.low %v10667_v4, %v10671_v26 }
 0x9b1   :  { %13941 = vmatprep.subr.bf16.mxu1 %v17716_v61  ;;  %v10670_v61 = vld [vmem:[#allocation12 + $0xe70] sm:$0xff] }
 0x9b2   :  { %v17769_v22 = vcombine.low %v10666_v25, %v10670_v61  ;;  %v10714_v31 = vld [vmem:[#allocation12 + $0xfd0] sm:$0xff] }
 0x9b3   :  { %13778 = vmatpush1.bf16.msra.mxu0 %v17713_v10  ;;  %v17770_v10 = vcombine.high %v10666_v25, %v10670_v61 }
 0x9b4   :  { %13942 = vmatpush1.bf16.msra.mxu1 %v17715_v35  ;;  %13779 = vmatprep.subr.bf16.mxu0 %v17722_v12  ;;  %v17772_v35 = vcombine.high %v10667_v4, %v10671_v26  ;;  %v10674_v12 = vld [vmem:[#allocation12 + $0xe90] sm:$0xff] }
 0x9b5   :  { %13943 = vmatprep.subr.bf16.mxu1 %v17724_v50  ;;  %v10678_v50 = vld [vmem:[#allocation12 + $0xeb0] sm:$0xff] }
 0x9b6   :  { %v17777_v54 = vcombine.low %v10674_v12, %v10678_v50 }
 0x9b7   :  { %13780 = vmatpush1.bf16.msra.mxu0 %v17721_v39  ;;  %v17778_v39 = vcombine.high %v10674_v12, %v10678_v50  ;;  %v20300_v12 = vld [vmem:[#allocation15 + $0xc] ss:$16 sps:$4 sm:$0xff]  }
 0x9b8   :  { %13944 = vmatpush1.bf16.msra.mxu1 %v17723_v28  ;;  %13781 = vmatprep.subr.bf16.mxu0 %v17730_v20  ;;  %v17780_v28 = vcombine.high %v10675_v14, %v10679_v11  ;;  %v10682_v20 = vld [vmem:[#allocation12 + $0xed0] sm:$0xff]  ;;  %v20295_v14 = vld [vmem:[#allocation15] ss:$16 sps:$4 sm:$0xff]  }
 0x9b9   :  { %13945 = vmatprep.subr.bf16.mxu1 %v17732_v45  ;;  %v10686_v45 = vld [vmem:[#allocation12 + $0xef0] sm:$0xff] }
 0x9ba   :  { %v17785_v63 = vcombine.low %v10682_v20, %v10686_v45  ;;  %v20298_v11 = vld [vmem:[#allocation15 + $0x8] ss:$16 sps:$4 sm:$0xff]  }
 0x9bb   :  { %13782 = vmatpush1.bf16.msra.mxu0 %v17729_v5  ;;  %v17786_v5 = vcombine.high %v10682_v20, %v10686_v45  ;;  %v20309_v20 = vld [vmem:[#allocation15 + $0x44] ss:$16 sps:$4 sm:$0xff]   ;;  %v20312_v45 = vld [vmem:[#allocation15 + $0x4c] ss:$16 sps:$4 sm:$0xff]  }
 0x9bc   :  { %13946 = vmatpush1.bf16.msra.mxu1 %v17731_v9  ;;  %13783 = vmatprep.subr.bf16.mxu0 %v17738_v53  ;;  %v17788_v9 = vcombine.high %v10683_v1, %v10687_v49  ;;  %v10690_v53 = vld [vmem:[#allocation12 + $0xf10] sm:$0xff]  ;;  %v20307_v1 = vld [vmem:[#allocation15 + $0x40] ss:$16 sps:$4 sm:$0xff]  }
 0x9bd   :  { %v22164_v6 = vpop.f32.mrb[56].mxu0  ;;  %v22166_v17 = vpop.f32.mrb[56].mxu1  ;;  %13947 = vmatprep.subr.bf16.mxu1 %v17740_v29  ;;  %v10694_v29 = vld [vmem:[#allocation12 + $0xf30] sm:$0xff] }
 0x9be   :  { %v22168_v47 = vpop.f32.mrb[57].mxu0  ;;  %v22170_v36 = vpop.f32.mrb[57].mxu1  ;;  %v17793_v2 = vcombine.low %v10690_v53, %v10694_v29  ;;  %v20310_v49 = vld [vmem:[#allocation15 + $0x48] ss:$16 sps:$4 sm:$0xff]  }
 0x9bf   :  { %v13483_v34 = vpop.f32.mrb[58].mxu0  ;;  %v13647_v57 = vpop.f32.mrb[58].mxu1  ;;  %13784 = vmatpush1.bf16.msra.mxu0 %v17737_v58  ;;  %v17794_v58 = vcombine.high %v10690_v53, %v10694_v29  ;;  %v20324_v53 = vld [vmem:[#allocation15 + $0x8c] ss:$16 sps:$4 sm:$0xff]   ;;  %v20319_v29 = vld [vmem:[#allocation15 + $0x80] ss:$16 sps:$4 sm:$0xff]  }
 0x9c0   :  { %13948 = vmatpush1.bf16.msra.mxu1 %v17739_v8  ;;  %v13484_v15 = vpop.f32.mrb[59].mxu0  ;;  %v13648_v62 = vpop.f32.mrb[59].mxu1  ;;  %13785 = vmatprep.subr.bf16.mxu0 %v17746_v48  ;;  %v17796_v8 = vcombine.high %v10691_v38, %v10695_v37  ;;  %v10698_v48 = vld [vmem:[#allocation12 + $0xf50] sm:$0xff]  ;;  %v17804_v57 = vcombine.high %v10699_v41, %v10703_v33  ;;  %v20327_v37 = vld [vmem:[#allocation15 + $0xa4] ss:$16 sps:$4 sm:$0xff]  }
 0x9c1   :  { %13949 = vmatprep.subr.bf16.mxu1 %v17748_v24  ;;  %v10702_v24 = vld [vmem:[#allocation12 + $0xf70] sm:$0xff]  ;;  %v10707_v62 = vld [vmem:[#allocation12 + $0xf98] sm:$0xff] }
 0x9c2   :  { %v17802_v34 = vcombine.high %v10698_v48, %v10702_v24  ;;  %v10710_v15 = vld [vmem:[#allocation12 + $0xfb0] sm:$0xff]  ;;  %v20339_v33 = vld [vmem:[#allocation15 + $0xe4] ss:$16 sps:$4 sm:$0xff]  }
 0x9c3   :  { %13786 = vmatpush1.bf16.msra.mxu0 %v17745_v0  ;;  %v10706_v0 = vld [vmem:[#allocation12 + $0xf90] sm:$0xff] }
 0x9c4   :  { %13950 = vmatpush1.bf16.msra.mxu1 %v17747_v13  ;;  %13787 = vmatprep.subr.bf16.mxu0 %v17754_v43  ;;  %v10711_v13 = vld [vmem:[#allocation12 + $0xfb8] sm:$0xff]  ;;  %v22172_v43 = vld [vmem:[#allocation13] sm:$0xff]  ;;  %v17810_v21 = vcombine.high %v10706_v0, %v10710_v15  ;;  %v17809_v25 = vcombine.low %v10706_v0, %v10710_v15 }
 0x9c5   :  { %13951 = vmatprep.subr.bf16.mxu1 %v17756_v40  ;;  %v17801_v40 = vcombine.low %v10698_v48, %v10702_v24  ;;  %v17812_v32 = vcombine.high %v10707_v62, %v10711_v13  ;;  %v17811_v61 = vcombine.low %v10707_v62, %v10711_v13  ;;  %v20322_v38 = vld [vmem:[#allocation15 + $0x88] ss:$16 sps:$4 sm:$0xff]   ;;  %v20336_v48 = vld [vmem:[#allocation15 + $0xcc] ss:$16 sps:$4 sm:$0xff]   ;;  %v20331_v24 = vld [vmem:[#allocation15 + $0xc0] ss:$16 sps:$4 sm:$0xff]  }
 0x9c6   :  { %v20334_v41 = vld [vmem:[#allocation15 + $0xc8] ss:$16 sps:$4 sm:$0xff]   ;;  %v20348_v0 = vld [vmem:[#allocation15 + $0x10c] ss:$16 sps:$4 sm:$0xff]   ;;  %v20343_v15 = vld [vmem:[#allocation15 + $0x100] ss:$16 sps:$4 sm:$0xff]  }
 0x9c7   :  { %13788 = vmatpush1.bf16.msra.mxu0 %v17753_v59  ;;  %v10718_v59 = vld [vmem:[#allocation12 + $0xff0] sm:$0xff]  ;;  %v20351_v13 = vld [vmem:[#allocation15 + $0x124] ss:$16 sps:$4 sm:$0xff]  }
 0x9c8   :  { %13952 = vmatpush1.bf16.msra.mxu1 %v17755_v52  ;;  %13789 = vmatprep.subr.bf16.mxu0 %v17762_v16  ;;  %v10729_v52 = vrot.slane %v22172_v43, %v21278_v44  ;;  %v10715_v16 = vld [vmem:[#allocation12 + $0xfd8] sm:$0xff]  ;;  %v17818_v4 = vcombine.high %v10714_v31, %v10718_v59  ;;  %v20346_v62 = vld [vmem:[#allocation15 + $0x108] ss:$16 sps:$4 sm:$0xff]  }
 0x9c9   :  { %13953 = vmatprep.subr.bf16.mxu1 %v17764_v19  ;;  %v10719_v19 = vld [vmem:[#allocation12 + $0xff8] sm:$0xff] }
 0x9ca   :  { %v17820_v26 = vcombine.high %v10715_v16, %v10719_v19 }
 0x9cb   :  { %13790 = vmatpush1.bf16.msra.mxu0 %v17761_v56  ;;  %v18155_v56 = vadd.f32 %v22168_v47, %v10729_v52  ;;  %v20306_v47 = vld [vmem:[#allocation15 + $0x2c] ss:$16 sps:$4 sm:$0xff]   ;;  %v20358_v52 = vld [vmem:[#allocation15 + $0x148] ss:$16 sps:$4 sm:$0xff]  }
 0x9cc   :  { %13954 = vmatpush1.bf16.msra.mxu1 %v17763_v46  ;;  %13791 = vmatprep.subr.bf16.mxu0 %v17770_v10  ;;  %v17817_v46 = vcombine.low %v10714_v31, %v10718_v59  ;;  %v17819_v10 = vcombine.low %v10715_v16, %v10719_v19  ;;  %v20360_v31 = vld [vmem:[#allocation15 + $0x14c] ss:$16 sps:$4 sm:$0xff]   ;;  %v20355_v59 = vld [vmem:[#allocation15 + $0x140] ss:$16 sps:$4 sm:$0xff]   ;;  %v20363_v16 = vld [vmem:[#allocation15 + $0x164] ss:$16 sps:$4 sm:$0xff]  }
 0x9cd   :  { %13955 = vmatprep.subr.bf16.mxu1 %v17772_v35  ;;  %v20297_v35 = vld [vmem:[#allocation15 + $0x4] ss:$16 sps:$4 sm:$0xff]   ;;  %v13979_v50 = vmax.f32 %v18155_v56, 0.0  ;;  %v20366_v19 = vld [vmem:[#allocation15 + $0x16c] ss:$16 sps:$4 sm:$0xff]  }
 0x9ce   :  { %v20367_v56 = vld [vmem:[#allocation15 + $0x180] ss:$16 sps:$4 sm:$0xff]  }
 0x9cf   :  { %13792 = vmatpush1.bf16.msra.mxu0 %v17769_v22  ;;  %v20303_v22 = vld [vmem:[#allocation15 + $0x24] ss:$16 sps:$4 sm:$0xff]  }
 0x9d0   :  { %13956 = vmatpush1.bf16.msra.mxu1 %v17771_v30  ;;  %13793 = vmatprep.subr.bf16.mxu0 %v17778_v39  ;;  %v13987_v30 = vpack.c.bf16 %v13979_v50, %v13979_v50  ;;  %v20301_v39 = vld [vmem:[#allocation15 + $0x20] ss:$16 sps:$4 sm:$0xff]   ;;  %v10725_v50 = vrot.slane %v22172_v43, %v21275_v42 }
 0x9d1   :  { %13957 = vmatprep.subr.bf16.mxu1 %v17780_v28  ;;  %v20304_v28 = vld [vmem:[#allocation15 + $0x28] ss:$16 sps:$4 sm:$0xff]  }
 0x9d3   :  { %13794 = vmatpush1.bf16.msra.mxu0 %v17777_v54  ;;  %v20315_v54 = vld [vmem:[#allocation15 + $0x64] ss:$16 sps:$4 sm:$0xff]  }
 0x9d4   :  { %13958 = vmatpush1.bf16.msra.mxu1 %v17779_v18  ;;  %13795 = vmatprep.subr.bf16.mxu0 %v17786_v5  ;;  %v20318_v18 = vld [vmem:[#allocation15 + $0x6c] ss:$16 sps:$4 sm:$0xff]   ;;  %v20316_v5 = vld [vmem:[#allocation15 + $0x68] ss:$16 sps:$4 sm:$0xff]  }
 0x9d5   :  { %13959 = vmatprep.subr.bf16.mxu1 %v17788_v9  ;;  %v20321_v9 = vld [vmem:[#allocation15 + $0x84] ss:$16 sps:$4 sm:$0xff]  }
 0x9d7   :  { %13796 = vmatpush1.bf16.msra.mxu0 %v17785_v63  ;;  %v20330_v63 = vld [vmem:[#allocation15 + $0xac] ss:$16 sps:$4 sm:$0xff]  }
 0x9d8   :  { %13960 = vmatpush1.bf16.msra.mxu1 %v17787_v51  ;;  %13797 = vmatprep.subr.bf16.mxu0 %v17794_v58  ;;  %v20325_v51 = vld [vmem:[#allocation15 + $0xa0] ss:$16 sps:$4 sm:$0xff]   ;;  %v20328_v58 = vld [vmem:[#allocation15 + $0xa8] ss:$16 sps:$4 sm:$0xff]  }
 0x9d9   :  { %13961 = vmatprep.subr.bf16.mxu1 %v17796_v8  ;;  %v20333_v8 = vld [vmem:[#allocation15 + $0xc4] ss:$16 sps:$4 sm:$0xff]  }
 0x9db   :  { %13798 = vmatpush1.bf16.msra.mxu0 %v17793_v2  ;;  %v20342_v2 = vld [vmem:[#allocation15 + $0xec] ss:$16 sps:$4 sm:$0xff]  }
 0x9dc   :  { %13962 = vmatpush1.bf16.msra.mxu1 %v17795_v7  ;;  %13799 = vmatprep.subr.bf16.mxu0 %v17802_v34  ;;  %v20337_v7 = vld [vmem:[#allocation15 + $0xe0] ss:$16 sps:$4 sm:$0xff]   ;;  %v20340_v34 = vld [vmem:[#allocation15 + $0xe8] ss:$16 sps:$4 sm:$0xff]  }
 0x9dd   :  { %13963 = vmatprep.subr.bf16.mxu1 %v17804_v57  ;;  %v20345_v57 = vld [vmem:[#allocation15 + $0x104] ss:$16 sps:$4 sm:$0xff]  }
 0x9df   :  { %13800 = vmatpush1.bf16.msra.mxu0 %v17801_v40  ;;  %v20354_v40 = vld [vmem:[#allocation15 + $0x12c] ss:$16 sps:$4 sm:$0xff]  }
 0x9e0   :  { %13964 = vmatpush1.bf16.msra.mxu1 %v17803_v23  ;;  %13801 = vmatprep.subr.bf16.mxu0 %v17810_v21  ;;  %v20349_v23 = vld [vmem:[#allocation15 + $0x120] ss:$16 sps:$4 sm:$0xff]   ;;  %v20352_v21 = vld [vmem:[#allocation15 + $0x128] ss:$16 sps:$4 sm:$0xff]  }
 0x9e1   :  { %13965 = vmatprep.subr.bf16.mxu1 %v17812_v32  ;;  %v20357_v32 = vld [vmem:[#allocation15 + $0x144] ss:$16 sps:$4 sm:$0xff]  }
 0x9e3   :  { %13802 = vmatpush1.bf16.msra.mxu0 %v17809_v25  ;;  %v20361_v25 = vld [vmem:[#allocation15 + $0x160] ss:$16 sps:$4 sm:$0xff]  }
 0x9e4   :  { %13966 = vmatpush1.bf16.msra.mxu1 %v17811_v61  ;;  %13803 = vmatprep.subr.bf16.mxu0 %v17818_v4  ;;  %v20364_v61 = vld [vmem:[#allocation15 + $0x168] ss:$16 sps:$4 sm:$0xff]   ;;  %v20369_v4 = vld [vmem:[#allocation15 + $0x184] ss:$16 sps:$4 sm:$0xff]  }
 0x9e5   :  { %13967 = vmatprep.subr.bf16.mxu1 %v17820_v26  ;;  %v20372_v26 = vld [vmem:[#allocation15 + $0x18c] ss:$16 sps:$4 sm:$0xff]  }
 0x9e7   :  { %13804 = vmatpush1.bf16.msra.mxu0 %v17817_v46  ;;  %v20370_v46 = vld [vmem:[#allocation15 + $0x188] ss:$16 sps:$4 sm:$0xff]  }
 0x9e8   :  { %13968 = vmatpush1.bf16.msra.mxu1 %v17819_v10  ;;  %15552 = vmatprep.subr.bf16.mxu0 %v20297_v35  ;;  %v20375_v10 = vld [vmem:[#allocation15 + $0x1a4] ss:$16 sps:$4 sm:$0xff]   ;;  %v20378_v35 = vld [vmem:[#allocation15 + $0x1ac] ss:$16 sps:$4 sm:$0xff]  }
 0x9e9   :  { %15716 = vmatprep.subr.bf16.mxu1 %v20300_v12  ;;  %v20373_v12 = vld [vmem:[#allocation15 + $0x1a0] ss:$16 sps:$4 sm:$0xff]  }
 0x9ea   :  { %13806 = vmatmul.mubr.bf16.vlgmr.msra.gmra.mrb[60].mxu0 %v22146_v55 }
 0x9eb   :  { %13970 = vmatmul.mubr.bf16.vlgmr.msra.gmra.mrb[60].mxu1 %v22146_v55  ;;  %15553 = vmatpush1.bf16.msra.mxu0 %v20295_v14  ;;  %v20313_v55 = vld [vmem:[#allocation15 + $0x60] ss:$16 sps:$4 sm:$0xff]   ;;  %v20376_v14 = vld [vmem:[#allocation15 + $0x1a8] ss:$16 sps:$4 sm:$0xff]  }
 0x9ec   :  { %15584 = vmatprep.mubr.bf16.mxu0 %v13987_v30  ;;  %15717 = vmatpush1.bf16.msra.mxu1 %v20298_v11  ;;  %v20381_v11 = vld [vmem:[#allocation15 + $0x1c4] ss:$16 sps:$4 sm:$0xff]  }
 0x9ed   :  { %15748 = vmatprep.mubr.bf16.mxu1 %v13987_v30  ;;  %15554 = vmatprep.subr.bf16.mxu0 %v20303_v22  ;;  %v20384_v22 = vld [vmem:[#allocation15 + $0x1cc] ss:$16 sps:$4 sm:$0xff]   ;;  %v10737_v30 = vrot.slane %v22172_v43, %v21300_v3 }
 0x9ee   :  { %15718 = vmatprep.subr.bf16.mxu1 %v20306_v47  ;;  %v20379_v47 = vld [vmem:[#allocation15 + $0x1c0] ss:$16 sps:$4 sm:$0xff]  }
 0x9ef   :  { %15555 = vmatpush1.bf16.msra.mxu0 %v20301_v39  ;;  %v18154_v39 = vadd.f32 %v22164_v6, %v10725_v50  ;;  %v20391_v6 = vld [vmem:[#allocation15 + $0x200] ss:$16 sps:$4 sm:$0xff]   ;;  %v20453_v50 = vld [vmem:[#allocation15 + $0x344] ss:$16 sps:$4 sm:$0xff]  }
 0x9f0   :  { %15719 = vmatpush1.bf16.msra.mxu1 %v20304_v28  ;;  %15556 = vmatprep.subr.bf16.mxu0 %v20309_v20  ;;  %v20382_v28 = vld [vmem:[#allocation15 + $0x1c8] ss:$16 sps:$4 sm:$0xff]   ;;  %v20387_v20 = vld [vmem:[#allocation15 + $0x1e4] ss:$16 sps:$4 sm:$0xff]  }
 0x9f1   :  { %15720 = vmatprep.subr.bf16.mxu1 %v20312_v45  ;;  %v20390_v45 = vld [vmem:[#allocation15 + $0x1ec] ss:$16 sps:$4 sm:$0xff]  }
 0x9f3   :  { %15557 = vmatpush1.bf16.msra.mxu0 %v20307_v1  ;;  %v18157_v1 = vadd.f32 %v22170_v36, %v10737_v30  ;;  %v20402_v36 = vld [vmem:[#allocation15 + $0x22c] ss:$16 sps:$4 sm:$0xff]   ;;  %v20459_v30 = vld [vmem:[#allocation15 + $0x364] ss:$16 sps:$4 sm:$0xff]  }
 0x9f4   :  { %15721 = vmatpush1.bf16.msra.mxu1 %v20310_v49  ;;  %15558 = vmatprep.subr.bf16.mxu0 %v20315_v54  ;;  %v20385_v49 = vld [vmem:[#allocation15 + $0x1e0] ss:$16 sps:$4 sm:$0xff]   ;;  %v13978_v54 = vmax.f32 %v18154_v39, 0.0 }
 0x9f5   :  { %15722 = vmatprep.subr.bf16.mxu1 %v20318_v18  ;;  %v20388_v18 = vld [vmem:[#allocation15 + $0x1e8] ss:$16 sps:$4 sm:$0xff]   ;;  %v20457_v39 = vld [vmem:[#allocation15 + $0x360] ss:$16 sps:$4 sm:$0xff]  }
 0x9f7   :  { %15559 = vmatpush1.bf16.msra.mxu0 %v20313_v55  ;;  %v20393_v55 = vld [vmem:[#allocation15 + $0x204] ss:$16 sps:$4 sm:$0xff]  }
 0x9f8   :  { %15723 = vmatpush1.bf16.msra.mxu1 %v20316_v5  ;;  %15560 = vmatprep.subr.bf16.mxu0 %v20321_v9  ;;  %v20396_v5 = vld [vmem:[#allocation15 + $0x20c] ss:$16 sps:$4 sm:$0xff]   ;;  %v13981_v9 = vmax.f32 %v18157_v1, 0.0  ;;  %v20463_v1 = vld [vmem:[#allocation15 + $0x380] ss:$16 sps:$4 sm:$0xff]  }
 0x9f9   :  { %15724 = vmatprep.subr.bf16.mxu1 %v20324_v53  ;;  %v13986_v53 = vpack.c.bf16 %v13978_v54, %v13978_v54  ;;  %v20471_v54 = vld [vmem:[#allocation15 + $0x3a4] ss:$16 sps:$4 sm:$0xff]  }
 0x9fb   :  { %15561 = vmatpush1.bf16.msra.mxu0 %v20319_v29  ;;  %v20394_v29 = vld [vmem:[#allocation15 + $0x208] ss:$16 sps:$4 sm:$0xff]  }
 0x9fc   :  { %15725 = vmatpush1.bf16.msra.mxu1 %v20322_v38  ;;  %15562 = vmatprep.subr.bf16.mxu0 %v20327_v37  ;;  %v20399_v38 = vld [vmem:[#allocation15 + $0x224] ss:$16 sps:$4 sm:$0xff]   ;;  %v13989_v37 = vpack.c.bf16 %v13981_v9, %v13981_v9  ;;  %v20472_v9 = vld [vmem:[#allocation15 + $0x3a8] ss:$16 sps:$4 sm:$0xff]  }
 0x9fd   :  { %15726 = vmatprep.subr.bf16.mxu1 %v20330_v63  ;;  %v20397_v63 = vld [vmem:[#allocation15 + $0x220] ss:$16 sps:$4 sm:$0xff]  }
 0x9ff   :  { %15563 = vmatpush1.bf16.msra.mxu0 %v20325_v51  ;;  %v20400_v51 = vld [vmem:[#allocation15 + $0x228] ss:$16 sps:$4 sm:$0xff]  }
 0xa00   :  { %15727 = vmatpush1.bf16.msra.mxu1 %v20328_v58  ;;  %15564 = vmatprep.subr.bf16.mxu0 %v20333_v8  ;;  %v20405_v58 = vld [vmem:[#allocation15 + $0x244] ss:$16 sps:$4 sm:$0xff]   ;;  %v20408_v8 = vld [vmem:[#allocation15 + $0x24c] ss:$16 sps:$4 sm:$0xff]  }
 0xa01   :  { %15728 = vmatprep.subr.bf16.mxu1 %v20336_v48  ;;  %v20403_v48 = vld [vmem:[#allocation15 + $0x240] ss:$16 sps:$4 sm:$0xff]  }
 0xa03   :  { %15565 = vmatpush1.bf16.msra.mxu0 %v20331_v24  ;;  %v20406_v24 = vld [vmem:[#allocation15 + $0x248] ss:$16 sps:$4 sm:$0xff]  }
 0xa04   :  { %15729 = vmatpush1.bf16.msra.mxu1 %v20334_v41  ;;  %15566 = vmatprep.subr.bf16.mxu0 %v20339_v33  ;;  %v20411_v41 = vld [vmem:[#allocation15 + $0x264] ss:$16 sps:$4 sm:$0xff]   ;;  %v20414_v33 = vld [vmem:[#allocation15 + $0x26c] ss:$16 sps:$4 sm:$0xff]  }
 0xa05   :  { %15730 = vmatprep.subr.bf16.mxu1 %v20342_v2  ;;  %v20409_v2 = vld [vmem:[#allocation15 + $0x260] ss:$16 sps:$4 sm:$0xff]  }
 0xa07   :  { %15567 = vmatpush1.bf16.msra.mxu0 %v20337_v7  ;;  %v20412_v7 = vld [vmem:[#allocation15 + $0x268] ss:$16 sps:$4 sm:$0xff]  }
 0xa08   :  { %15731 = vmatpush1.bf16.msra.mxu1 %v20340_v34  ;;  %15568 = vmatprep.subr.bf16.mxu0 %v20345_v57  ;;  %v20417_v34 = vld [vmem:[#allocation15 + $0x284] ss:$16 sps:$4 sm:$0xff]   ;;  %v20420_v57 = vld [vmem:[#allocation15 + $0x28c] ss:$16 sps:$4 sm:$0xff]  }
 0xa09   :  { %15732 = vmatprep.subr.bf16.mxu1 %v20348_v0  ;;  %v20415_v0 = vld [vmem:[#allocation15 + $0x280] ss:$16 sps:$4 sm:$0xff]  }
 0xa0b   :  { %15569 = vmatpush1.bf16.msra.mxu0 %v20343_v15  ;;  %v20418_v15 = vld [vmem:[#allocation15 + $0x288] ss:$16 sps:$4 sm:$0xff]  }
 0xa0c   :  { %15733 = vmatpush1.bf16.msra.mxu1 %v20346_v62  ;;  %15570 = vmatprep.subr.bf16.mxu0 %v20351_v13  ;;  %v20423_v62 = vld [vmem:[#allocation15 + $0x2a4] ss:$16 sps:$4 sm:$0xff]   ;;  %v20426_v13 = vld [vmem:[#allocation15 + $0x2ac] ss:$16 sps:$4 sm:$0xff]  }
 0xa0d   :  { %15734 = vmatprep.subr.bf16.mxu1 %v20354_v40  ;;  %v20421_v40 = vld [vmem:[#allocation15 + $0x2a0] ss:$16 sps:$4 sm:$0xff]  }
 0xa0f   :  { %15571 = vmatpush1.bf16.msra.mxu0 %v20349_v23  ;;  %v20424_v23 = vld [vmem:[#allocation15 + $0x2a8] ss:$16 sps:$4 sm:$0xff]  }
 0xa10   :  { %15735 = vmatpush1.bf16.msra.mxu1 %v20352_v21  ;;  %15572 = vmatprep.subr.bf16.mxu0 %v20357_v32  ;;  %v20429_v21 = vld [vmem:[#allocation15 + $0x2c4] ss:$16 sps:$4 sm:$0xff]   ;;  %v20432_v32 = vld [vmem:[#allocation15 + $0x2cc] ss:$16 sps:$4 sm:$0xff]  }
 0xa11   :  { %15736 = vmatprep.subr.bf16.mxu1 %v20360_v31  ;;  %v20427_v31 = vld [vmem:[#allocation15 + $0x2c0] ss:$16 sps:$4 sm:$0xff]  }
 0xa13   :  { %15573 = vmatpush1.bf16.msra.mxu0 %v20355_v59  ;;  %v20430_v59 = vld [vmem:[#allocation15 + $0x2c8] ss:$16 sps:$4 sm:$0xff]  }
 0xa14   :  { %15737 = vmatpush1.bf16.msra.mxu1 %v20358_v52  ;;  %15574 = vmatprep.subr.bf16.mxu0 %v20363_v16  ;;  %v20435_v52 = vld [vmem:[#allocation15 + $0x2e4] ss:$16 sps:$4 sm:$0xff]   ;;  %v20438_v16 = vld [vmem:[#allocation15 + $0x2ec] ss:$16 sps:$4 sm:$0xff]  }
 0xa15   :  { %15738 = vmatprep.subr.bf16.mxu1 %v20366_v19  ;;  %v20433_v19 = vld [vmem:[#allocation15 + $0x2e0] ss:$16 sps:$4 sm:$0xff]  }
 0xa17   :  { %15575 = vmatpush1.bf16.msra.mxu0 %v20361_v25  ;;  %v20436_v25 = vld [vmem:[#allocation15 + $0x2e8] ss:$16 sps:$4 sm:$0xff]  }
 0xa18   :  { %15739 = vmatpush1.bf16.msra.mxu1 %v20364_v61  ;;  %15576 = vmatprep.subr.bf16.mxu0 %v20369_v4  ;;  %v20441_v61 = vld [vmem:[#allocation15 + $0x304] ss:$16 sps:$4 sm:$0xff]   ;;  %v20444_v4 = vld [vmem:[#allocation15 + $0x30c] ss:$16 sps:$4 sm:$0xff]  }
 0xa19   :  { %15740 = vmatprep.subr.bf16.mxu1 %v20372_v26  ;;  %v20439_v26 = vld [vmem:[#allocation15 + $0x300] ss:$16 sps:$4 sm:$0xff]  }
 0xa1b   :  { %15577 = vmatpush1.bf16.msra.mxu0 %v20367_v56  ;;  %v20442_v56 = vld [vmem:[#allocation15 + $0x308] ss:$16 sps:$4 sm:$0xff]  }
 0xa1c   :  { %15741 = vmatpush1.bf16.msra.mxu1 %v20370_v46  ;;  %15578 = vmatprep.subr.bf16.mxu0 %v20375_v10  ;;  %v20447_v46 = vld [vmem:[#allocation15 + $0x324] ss:$16 sps:$4 sm:$0xff]   ;;  %v20450_v10 = vld [vmem:[#allocation15 + $0x32c] ss:$16 sps:$4 sm:$0xff]  }
 0xa1d   :  { %15742 = vmatprep.subr.bf16.mxu1 %v20378_v35  ;;  %v20445_v35 = vld [vmem:[#allocation15 + $0x320] ss:$16 sps:$4 sm:$0xff]  }
 0xa1f   :  { %15579 = vmatpush1.bf16.msra.mxu0 %v20373_v12  ;;  %v20448_v12 = vld [vmem:[#allocation15 + $0x328] ss:$16 sps:$4 sm:$0xff]  }
 0xa20   :  { %15743 = vmatpush1.bf16.msra.mxu1 %v20376_v14  ;;  %15580 = vmatprep.subr.bf16.mxu0 %v20381_v11  ;;  %v20456_v14 = vld [vmem:[#allocation15 + $0x34c] ss:$16 sps:$4 sm:$0xff]   ;;  %v20451_v11 = vld [vmem:[#allocation15 + $0x340] ss:$16 sps:$4 sm:$0xff]  }
 0xa21   :  { %15744 = vmatprep.subr.bf16.mxu1 %v20384_v22  ;;  %v20454_v22 = vld [vmem:[#allocation15 + $0x348] ss:$16 sps:$4 sm:$0xff]  }
 0xa23   :  { %15581 = vmatpush1.bf16.msra.mxu0 %v20379_v47  ;;  %v20462_v47 = vld [vmem:[#allocation15 + $0x36c] ss:$16 sps:$4 sm:$0xff]  }
 0xa24   :  { %15745 = vmatpush1.bf16.msra.mxu1 %v20382_v28  ;;  %15582 = vmatprep.subr.bf16.mxu0 %v20387_v20  ;;  %v20460_v28 = vld [vmem:[#allocation15 + $0x368] ss:$16 sps:$4 sm:$0xff]   ;;  %v20465_v20 = vld [vmem:[#allocation15 + $0x384] ss:$16 sps:$4 sm:$0xff]  }
 0xa25   :  { %15746 = vmatprep.subr.bf16.mxu1 %v20390_v45  ;;  %v20468_v45 = vld [vmem:[#allocation15 + $0x38c] ss:$16 sps:$4 sm:$0xff]  }
 0xa27   :  { %15583 = vmatpush1.bf16.msra.mxu0 %v20385_v49  ;;  %v20466_v49 = vld [vmem:[#allocation15 + $0x388] ss:$16 sps:$4 sm:$0xff]  }
 0xa28   :  { %15747 = vmatpush1.bf16.msra.mxu1 %v20388_v18  ;;  %15593 = vmatprep.subr.bf16.mxu0 %v20393_v55  ;;  %v20474_v18 = vld [vmem:[#allocation15 + $0x3ac] ss:$16 sps:$4 sm:$0xff]   ;;  %v20469_v55 = vld [vmem:[#allocation15 + $0x3a0] ss:$16 sps:$4 sm:$0xff]  }
 0xa29   :  { %15757 = vmatprep.subr.bf16.mxu1 %v20396_v5  ;;  %v10733_v5 = vrot.slane %v22172_v43, %v21293_v60 }
 0xa2a   :  { %15585 = vmatmul.mubr.bf16.vlgmr.msra.gmra.mrb[64].mxu0 %v13986_v53 }
 0xa2b   :  { %15749 = vmatmul.mubr.bf16.vlgmr.msra.gmra.mrb[64].mxu1 %v13986_v53  ;;  %15594 = vmatpush1.bf16.msra.mxu0 %v20391_v6  ;;  %v20477_v6 = vld [vmem:[#allocation15 + $0x3c4] ss:$16 sps:$4 sm:$0xff]   ;;  %v20480_v53 = vld [vmem:[#allocation15 + $0x3cc] ss:$16 sps:$4 sm:$0xff]  }
 0xa2c   :  { %15625 = vmatprep.mubr.bf16.mxu0 %v13989_v37  ;;  %15758 = vmatpush1.bf16.msra.mxu1 %v20394_v29  ;;  %v20475_v29 = vld [vmem:[#allocation15 + $0x3c0] ss:$16 sps:$4 sm:$0xff]  }
 0xa2d   :  { %15789 = vmatprep.mubr.bf16.mxu1 %v13989_v37  ;;  %15595 = vmatprep.subr.bf16.mxu0 %v20399_v38  ;;  %v18156_v38 = vadd.f32 %v22166_v17, %v10733_v5  ;;  %v20478_v37 = vld [vmem:[#allocation15 + $0x3c8] ss:$16 sps:$4 sm:$0xff]   ;;  %v20558_v5 = vld [vmem:[#allocation15 + $0x56c] ss:$16 sps:$4 sm:$0xff]  }
 0xa2e   :  { %15759 = vmatprep.subr.bf16.mxu1 %v20402_v36  ;;  %v20483_v36 = vld [vmem:[#allocation15 + $0x3e4] ss:$16 sps:$4 sm:$0xff]   ;;  %v20490_v17 = vld [vmem:[#allocation15 + $0x408] ss:$16 sps:$4 sm:$0xff]  }
 0xa2f   :  { %15596 = vmatpush1.bf16.msra.mxu0 %v20397_v63  ;;  %v20486_v63 = vld [vmem:[#allocation15 + $0x3ec] ss:$16 sps:$4 sm:$0xff]  }
 0xa30   :  { %15760 = vmatpush1.bf16.msra.mxu1 %v20400_v51  ;;  %15597 = vmatprep.subr.bf16.mxu0 %v20405_v58  ;;  %v20481_v51 = vld [vmem:[#allocation15 + $0x3e0] ss:$16 sps:$4 sm:$0xff]   ;;  %v13980_v58 = vmax.f32 %v18156_v38, 0.0 }
 0xa31   :  { %15761 = vmatprep.subr.bf16.mxu1 %v20408_v8  ;;  %v20484_v8 = vld [vmem:[#allocation15 + $0x3e8] ss:$16 sps:$4 sm:$0xff]   ;;  %v20559_v38 = vld [vmem:[#allocation15 + $0x580] ss:$16 sps:$4 sm:$0xff]  }
 0xa33   :  { %15598 = vmatpush1.bf16.msra.mxu0 %v20403_v48  ;;  %v20489_v48 = vld [vmem:[#allocation15 + $0x404] ss:$16 sps:$4 sm:$0xff]  }
 0xa34   :  { %15762 = vmatpush1.bf16.msra.mxu1 %v20406_v24  ;;  %15599 = vmatprep.subr.bf16.mxu0 %v20411_v41  ;;  %v20492_v24 = vld [vmem:[#allocation15 + $0x40c] ss:$16 sps:$4 sm:$0xff]   ;;  %v20487_v41 = vld [vmem:[#allocation15 + $0x400] ss:$16 sps:$4 sm:$0xff]  }
 0xa35   :  { %15763 = vmatprep.subr.bf16.mxu1 %v20414_v33  ;;  %v13988_v33 = vpack.c.bf16 %v13980_v58, %v13980_v58  ;;  %v20568_v58 = vld [vmem:[#allocation15 + $0x5a8] ss:$16 sps:$4 sm:$0xff]  }
 0xa37   :  { %15600 = vmatpush1.bf16.msra.mxu0 %v20409_v2  ;;  %v20495_v2 = vld [vmem:[#allocation15 + $0x424] ss:$16 sps:$4 sm:$0xff]  }
 0xa38   :  { %15764 = vmatpush1.bf16.msra.mxu1 %v20412_v7  ;;  %15601 = vmatprep.subr.bf16.mxu0 %v20417_v34  ;;  %v20498_v7 = vld [vmem:[#allocation15 + $0x42c] ss:$16 sps:$4 sm:$0xff]   ;;  %v20493_v34 = vld [vmem:[#allocation15 + $0x420] ss:$16 sps:$4 sm:$0xff]  }
 0xa39   :  { %15765 = vmatprep.subr.bf16.mxu1 %v20420_v57  ;;  %v20496_v57 = vld [vmem:[#allocation15 + $0x428] ss:$16 sps:$4 sm:$0xff]  }
 0xa3b   :  { %15602 = vmatpush1.bf16.msra.mxu0 %v20415_v0  ;;  %v20501_v0 = vld [vmem:[#allocation15 + $0x444] ss:$16 sps:$4 sm:$0xff]  }
 0xa3c   :  { %15766 = vmatpush1.bf16.msra.mxu1 %v20418_v15  ;;  %15603 = vmatprep.subr.bf16.mxu0 %v20423_v62  ;;  %v20504_v15 = vld [vmem:[#allocation15 + $0x44c] ss:$16 sps:$4 sm:$0xff]   ;;  %v20499_v62 = vld [vmem:[#allocation15 + $0x440] ss:$16 sps:$4 sm:$0xff]  }
 0xa3d   :  { %15767 = vmatprep.subr.bf16.mxu1 %v20426_v13  ;;  %v20502_v13 = vld [vmem:[#allocation15 + $0x448] ss:$16 sps:$4 sm:$0xff]  }
 0xa3f   :  { %15604 = vmatpush1.bf16.msra.mxu0 %v20421_v40  ;;  %v20507_v40 = vld [vmem:[#allocation15 + $0x464] ss:$16 sps:$4 sm:$0xff]  }
 0xa40   :  { %15768 = vmatpush1.bf16.msra.mxu1 %v20424_v23  ;;  %15605 = vmatprep.subr.bf16.mxu0 %v20429_v21  ;;  %v20510_v23 = vld [vmem:[#allocation15 + $0x46c] ss:$16 sps:$4 sm:$0xff]   ;;  %v20505_v21 = vld [vmem:[#allocation15 + $0x460] ss:$16 sps:$4 sm:$0xff]  }
 0xa41   :  { %15769 = vmatprep.subr.bf16.mxu1 %v20432_v32  ;;  %v20508_v32 = vld [vmem:[#allocation15 + $0x468] ss:$16 sps:$4 sm:$0xff]  }
 0xa43   :  { %15606 = vmatpush1.bf16.msra.mxu0 %v20427_v31  ;;  %v20513_v31 = vld [vmem:[#allocation15 + $0x484] ss:$16 sps:$4 sm:$0xff]  }
 0xa44   :  { %15770 = vmatpush1.bf16.msra.mxu1 %v20430_v59  ;;  %15607 = vmatprep.subr.bf16.mxu0 %v20435_v52  ;;  %v20516_v59 = vld [vmem:[#allocation15 + $0x48c] ss:$16 sps:$4 sm:$0xff]   ;;  %v20511_v52 = vld [vmem:[#allocation15 + $0x480] ss:$16 sps:$4 sm:$0xff]  }
 0xa45   :  { %15771 = vmatprep.subr.bf16.mxu1 %v20438_v16  ;;  %v20514_v16 = vld [vmem:[#allocation15 + $0x488] ss:$16 sps:$4 sm:$0xff]  }
 0xa47   :  { %15608 = vmatpush1.bf16.msra.mxu0 %v20433_v19  ;;  %v20519_v19 = vld [vmem:[#allocation15 + $0x4a4] ss:$16 sps:$4 sm:$0xff]  }
 0xa48   :  { %15772 = vmatpush1.bf16.msra.mxu1 %v20436_v25  ;;  %15609 = vmatprep.subr.bf16.mxu0 %v20441_v61  ;;  %v20522_v25 = vld [vmem:[#allocation15 + $0x4ac] ss:$16 sps:$4 sm:$0xff]   ;;  %v20517_v61 = vld [vmem:[#allocation15 + $0x4a0] ss:$16 sps:$4 sm:$0xff]  }
 0xa49   :  { %15773 = vmatprep.subr.bf16.mxu1 %v20444_v4  ;;  %v20520_v4 = vld [vmem:[#allocation15 + $0x4a8] ss:$16 sps:$4 sm:$0xff]  }
 0xa4b   :  { %15610 = vmatpush1.bf16.msra.mxu0 %v20439_v26  ;;  %v20525_v26 = vld [vmem:[#allocation15 + $0x4c4] ss:$16 sps:$4 sm:$0xff]  }
 0xa4c   :  { %15774 = vmatpush1.bf16.msra.mxu1 %v20442_v56  ;;  %15611 = vmatprep.subr.bf16.mxu0 %v20447_v46  ;;  %v20528_v56 = vld [vmem:[#allocation15 + $0x4cc] ss:$16 sps:$4 sm:$0xff]   ;;  %v20523_v46 = vld [vmem:[#allocation15 + $0x4c0] ss:$16 sps:$4 sm:$0xff]  }
 0xa4d   :  { %15775 = vmatprep.subr.bf16.mxu1 %v20450_v10  ;;  %v20526_v10 = vld [vmem:[#allocation15 + $0x4c8] ss:$16 sps:$4 sm:$0xff]  }
 0xa4f   :  { %15612 = vmatpush1.bf16.msra.mxu0 %v20445_v35  ;;  %v20531_v35 = vld [vmem:[#allocation15 + $0x4e4] ss:$16 sps:$4 sm:$0xff]  }
 0xa50   :  { %15776 = vmatpush1.bf16.msra.mxu1 %v20448_v12  ;;  %15613 = vmatprep.subr.bf16.mxu0 %v20453_v50  ;;  %v20534_v12 = vld [vmem:[#allocation15 + $0x4ec] ss:$16 sps:$4 sm:$0xff]   ;;  %v20529_v50 = vld [vmem:[#allocation15 + $0x4e0] ss:$16 sps:$4 sm:$0xff]  }
 0xa51   :  { %15777 = vmatprep.subr.bf16.mxu1 %v20456_v14  ;;  %v20532_v14 = vld [vmem:[#allocation15 + $0x4e8] ss:$16 sps:$4 sm:$0xff]  }
 0xa53   :  { %15614 = vmatpush1.bf16.msra.mxu0 %v20451_v11  ;;  %v20537_v11 = vld [vmem:[#allocation15 + $0x504] ss:$16 sps:$4 sm:$0xff]  }
 0xa54   :  { %15778 = vmatpush1.bf16.msra.mxu1 %v20454_v22  ;;  %15615 = vmatprep.subr.bf16.mxu0 %v20459_v30  ;;  %v20540_v22 = vld [vmem:[#allocation15 + $0x50c] ss:$16 sps:$4 sm:$0xff]   ;;  %v20535_v30 = vld [vmem:[#allocation15 + $0x500] ss:$16 sps:$4 sm:$0xff]  }
 0xa55   :  { %15779 = vmatprep.subr.bf16.mxu1 %v20462_v47  ;;  %v20538_v47 = vld [vmem:[#allocation15 + $0x508] ss:$16 sps:$4 sm:$0xff]  }
 0xa57   :  { %15616 = vmatpush1.bf16.msra.mxu0 %v20457_v39  ;;  %v20543_v39 = vld [vmem:[#allocation15 + $0x524] ss:$16 sps:$4 sm:$0xff]  }
 0xa58   :  { %15780 = vmatpush1.bf16.msra.mxu1 %v20460_v28  ;;  %15617 = vmatprep.subr.bf16.mxu0 %v20465_v20  ;;  %v20546_v28 = vld [vmem:[#allocation15 + $0x52c] ss:$16 sps:$4 sm:$0xff]   ;;  %v20541_v20 = vld [vmem:[#allocation15 + $0x520] ss:$16 sps:$4 sm:$0xff]  }
 0xa59   :  { %15781 = vmatprep.subr.bf16.mxu1 %v20468_v45  ;;  %v20544_v45 = vld [vmem:[#allocation15 + $0x528] ss:$16 sps:$4 sm:$0xff]  }
 0xa5b   :  { %15618 = vmatpush1.bf16.msra.mxu0 %v20463_v1  ;;  %v20549_v1 = vld [vmem:[#allocation15 + $0x544] ss:$16 sps:$4 sm:$0xff]  }
 0xa5c   :  { %15782 = vmatpush1.bf16.msra.mxu1 %v20466_v49  ;;  %15619 = vmatprep.subr.bf16.mxu0 %v20471_v54  ;;  %v20552_v49 = vld [vmem:[#allocation15 + $0x54c] ss:$16 sps:$4 sm:$0xff]   ;;  %v20547_v54 = vld [vmem:[#allocation15 + $0x540] ss:$16 sps:$4 sm:$0xff]  }
 0xa5d   :  { %15783 = vmatprep.subr.bf16.mxu1 %v20474_v18  ;;  %v20550_v18 = vld [vmem:[#allocation15 + $0x548] ss:$16 sps:$4 sm:$0xff]  }
 0xa5f   :  { %15620 = vmatpush1.bf16.msra.mxu0 %v20469_v55  ;;  %v20555_v55 = vld [vmem:[#allocation15 + $0x564] ss:$16 sps:$4 sm:$0xff]  }
 0xa60   :  { %15784 = vmatpush1.bf16.msra.mxu1 %v20472_v9  ;;  %15621 = vmatprep.subr.bf16.mxu0 %v20477_v6  ;;  %v20553_v9 = vld [vmem:[#allocation15 + $0x560] ss:$16 sps:$4 sm:$0xff]   ;;  %v20556_v6 = vld [vmem:[#allocation15 + $0x568] ss:$16 sps:$4 sm:$0xff]  }
 0xa61   :  { %15785 = vmatprep.subr.bf16.mxu1 %v20480_v53  ;;  %v20561_v53 = vld [vmem:[#allocation15 + $0x584] ss:$16 sps:$4 sm:$0xff]  }
 0xa63   :  { %15622 = vmatpush1.bf16.msra.mxu0 %v20475_v29  ;;  %v20564_v29 = vld [vmem:[#allocation15 + $0x58c] ss:$16 sps:$4 sm:$0xff]  }
 0xa64   :  { %15786 = vmatpush1.bf16.msra.mxu1 %v20478_v37  ;;  %15623 = vmatprep.subr.bf16.mxu0 %v20483_v36  ;;  %v20562_v37 = vld [vmem:[#allocation15 + $0x588] ss:$16 sps:$4 sm:$0xff]   ;;  %v20567_v36 = vld [vmem:[#allocation15 + $0x5a4] ss:$16 sps:$4 sm:$0xff]  }
 0xa65   :  { %15787 = vmatprep.subr.bf16.mxu1 %v20486_v63  ;;  %v20570_v63 = vld [vmem:[#allocation15 + $0x5ac] ss:$16 sps:$4 sm:$0xff]  }
 0xa67   :  { %15624 = vmatpush1.bf16.msra.mxu0 %v20481_v51  ;;  %v20565_v51 = vld [vmem:[#allocation15 + $0x5a0] ss:$16 sps:$4 sm:$0xff]  }
 0xa68   :  { %15788 = vmatpush1.bf16.msra.mxu1 %v20484_v8  ;;  %15634 = vmatprep.subr.bf16.mxu0 %v20489_v48  ;;  %v20573_v8 = vld [vmem:[#allocation15 + $0x5c4] ss:$16 sps:$4 sm:$0xff]   ;;  %v20576_v48 = vld [vmem:[#allocation15 + $0x5cc] ss:$16 sps:$4 sm:$0xff]  }
 0xa69   :  { %15798 = vmatprep.subr.bf16.mxu1 %v20492_v24  ;;  %v20571_v24 = vld [vmem:[#allocation15 + $0x5c0] ss:$16 sps:$4 sm:$0xff]  }
 0xa6a   :  { %15626 = vmatmul.mubr.bf16.vlgmr.msra.gmra.mrb[64].mxu0 %v13988_v33 }
 0xa6b   :  { %15790 = vmatmul.mubr.bf16.vlgmr.msra.gmra.mrb[64].mxu1 %v13988_v33  ;;  %15635 = vmatpush1.bf16.msra.mxu0 %v20487_v41  ;;  %v20574_v41 = vld [vmem:[#allocation15 + $0x5c8] ss:$16 sps:$4 sm:$0xff]   ;;  %v20579_v33 = vld [vmem:[#allocation15 + $0x5e4] ss:$16 sps:$4 sm:$0xff]  }
 0xa6c   :  { %15799 = vmatpush1.bf16.msra.mxu1 %v20490_v17  ;;  %15636 = vmatprep.subr.bf16.mxu0 %v20495_v2  ;;  %v20582_v17 = vld [vmem:[#allocation15 + $0x5ec] ss:$16 sps:$4 sm:$0xff]   ;;  %v20577_v2 = vld [vmem:[#allocation15 + $0x5e0] ss:$16 sps:$4 sm:$0xff]  }
 0xa6d   :  { %15800 = vmatprep.subr.bf16.mxu1 %v20498_v7  ;;  %v20580_v7 = vld [vmem:[#allocation15 + $0x5e8] ss:$16 sps:$4 sm:$0xff]  }
 0xa6f   :  { %15637 = vmatpush1.bf16.msra.mxu0 %v20493_v34  ;;  %v20585_v34 = vld [vmem:[#allocation15 + $0x604] ss:$16 sps:$4 sm:$0xff]  }
 0xa70   :  { %15801 = vmatpush1.bf16.msra.mxu1 %v20496_v57  ;;  %15638 = vmatprep.subr.bf16.mxu0 %v20501_v0  ;;  %v20588_v57 = vld [vmem:[#allocation15 + $0x60c] ss:$16 sps:$4 sm:$0xff]   ;;  %v10740_v0 = vsub.s32 4, %v22261_v27 }
 0xa71   :  { %15802 = vmatprep.subr.bf16.mxu1 %v20504_v15  ;;  %v10744_v15 = vsub.s32 5, %v22261_v27 }
 0xa73   :  { %15639 = vmatpush1.bf16.msra.mxu0 %v20499_v62  ;;  %v10752_v62 = vsub.s32 7, %v22261_v27 }
 0xa74   :  { %15803 = vmatpush1.bf16.msra.mxu1 %v20502_v13  ;;  %15640 = vmatprep.subr.bf16.mxu0 %v20507_v40  ;;  %v10741_v13 = vrot.slane %v22172_v43, %v10740_v0  ;;  %v10745_v40 = vrot.slane %v22172_v43, %v10744_v15  ;;  %v20637_v0 = vld [vmem:[#allocation15 + $0x720] ss:$16 sps:$4 sm:$0xff]   ;;  %v20640_v15 = vld [vmem:[#allocation15 + $0x728] ss:$16 sps:$4 sm:$0xff]  }
 0xa75   :  { %15804 = vmatprep.subr.bf16.mxu1 %v20510_v23  ;;  %v10753_v23 = vrot.slane %v22172_v43, %v10752_v62  ;;  %v20591_v43 = vld [vmem:[#allocation15 + $0x624] ss:$16 sps:$4 sm:$0xff]  }
 0xa76   :  { %v20645_v62 = vld [vmem:[#allocation15 + $0x744] ss:$16 sps:$4 sm:$0xff]  }
 0xa77   :  { %15641 = vmatpush1.bf16.msra.mxu0 %v20505_v21 }
 0xa78   :  { %15805 = vmatpush1.bf16.msra.mxu1 %v20508_v32  ;;  %15642 = vmatprep.subr.bf16.mxu0 %v20513_v31 }
 0xa79   :  { %15806 = vmatprep.subr.bf16.mxu1 %v20516_v59 }
 0xa7b   :  { %15643 = vmatpush1.bf16.msra.mxu0 %v20511_v52 }
 0xa7c   :  { %15807 = vmatpush1.bf16.msra.mxu1 %v20514_v16  ;;  %15644 = vmatprep.subr.bf16.mxu0 %v20519_v19 }
 0xa7d   :  { %15808 = vmatprep.subr.bf16.mxu1 %v20522_v25 }
 0xa7f   :  { %15645 = vmatpush1.bf16.msra.mxu0 %v20517_v61 }
 0xa80   :  { %15809 = vmatpush1.bf16.msra.mxu1 %v20520_v4  ;;  %15646 = vmatprep.subr.bf16.mxu0 %v20525_v26 }
 0xa81   :  { %15810 = vmatprep.subr.bf16.mxu1 %v20528_v56 }
 0xa83   :  { %15647 = vmatpush1.bf16.msra.mxu0 %v20523_v46 }
 0xa84   :  { %15811 = vmatpush1.bf16.msra.mxu1 %v20526_v10  ;;  %15648 = vmatprep.subr.bf16.mxu0 %v20531_v35 }
 0xa85   :  { %15812 = vmatprep.subr.bf16.mxu1 %v20534_v12  ;;  %v20583_v12 = vld [vmem:[#allocation15 + $0x600] ss:$16 sps:$4 sm:$0xff]  }
 0xa87   :  { %15649 = vmatpush1.bf16.msra.mxu0 %v20529_v50  ;;  %v20586_v50 = vld [vmem:[#allocation15 + $0x608] ss:$16 sps:$4 sm:$0xff]  }
 0xa88   :  { %15813 = vmatpush1.bf16.msra.mxu1 %v20532_v14  ;;  %15650 = vmatprep.subr.bf16.mxu0 %v20537_v11  ;;  %v20594_v11 = vld [vmem:[#allocation15 + $0x62c] ss:$16 sps:$4 sm:$0xff]  }
 0xa89   :  { %15814 = vmatprep.subr.bf16.mxu1 %v20540_v22 }
 0xa8b   :  { %15651 = vmatpush1.bf16.msra.mxu0 %v20535_v30  ;;  %v20589_v30 = vld [vmem:[#allocation15 + $0x620] ss:$16 sps:$4 sm:$0xff]  }
 0xa8c   :  { %15815 = vmatpush1.bf16.msra.mxu1 %v20538_v47  ;;  %15652 = vmatprep.subr.bf16.mxu0 %v20543_v39  ;;  %v20592_v47 = vld [vmem:[#allocation15 + $0x628] ss:$16 sps:$4 sm:$0xff]   ;;  %v20597_v39 = vld [vmem:[#allocation15 + $0x644] ss:$16 sps:$4 sm:$0xff]  }
 0xa8d   :  { %15816 = vmatprep.subr.bf16.mxu1 %v20546_v28  ;;  %v20600_v28 = vld [vmem:[#allocation15 + $0x64c] ss:$16 sps:$4 sm:$0xff]  }
 0xa8f   :  { %15653 = vmatpush1.bf16.msra.mxu0 %v20541_v20  ;;  %v20595_v20 = vld [vmem:[#allocation15 + $0x640] ss:$16 sps:$4 sm:$0xff]  }
 0xa90   :  { %15817 = vmatpush1.bf16.msra.mxu1 %v20544_v45  ;;  %15654 = vmatprep.subr.bf16.mxu0 %v20549_v1  ;;  %v20598_v45 = vld [vmem:[#allocation15 + $0x648] ss:$16 sps:$4 sm:$0xff]   ;;  %v20603_v1 = vld [vmem:[#allocation15 + $0x664] ss:$16 sps:$4 sm:$0xff]  }
 0xa91   :  { %15818 = vmatprep.subr.bf16.mxu1 %v20552_v49  ;;  %v20606_v49 = vld [vmem:[#allocation15 + $0x66c] ss:$16 sps:$4 sm:$0xff]  }
 0xa93   :  { %15655 = vmatpush1.bf16.msra.mxu0 %v20547_v54  ;;  %v20601_v54 = vld [vmem:[#allocation15 + $0x660] ss:$16 sps:$4 sm:$0xff]  }
 0xa94   :  { %15819 = vmatpush1.bf16.msra.mxu1 %v20550_v18  ;;  %15656 = vmatprep.subr.bf16.mxu0 %v20555_v55  ;;  %v20604_v18 = vld [vmem:[#allocation15 + $0x668] ss:$16 sps:$4 sm:$0xff]   ;;  %v20609_v55 = vld [vmem:[#allocation15 + $0x684] ss:$16 sps:$4 sm:$0xff]  }
 0xa95   :  { %15820 = vmatprep.subr.bf16.mxu1 %v20558_v5  ;;  %v20612_v5 = vld [vmem:[#allocation15 + $0x68c] ss:$16 sps:$4 sm:$0xff]  }
 0xa97   :  { %15657 = vmatpush1.bf16.msra.mxu0 %v20553_v9  ;;  %v20607_v9 = vld [vmem:[#allocation15 + $0x680] ss:$16 sps:$4 sm:$0xff]  }
 0xa98   :  { %15821 = vmatpush1.bf16.msra.mxu1 %v20556_v6  ;;  %15658 = vmatprep.subr.bf16.mxu0 %v20561_v53  ;;  %v20610_v6 = vld [vmem:[#allocation15 + $0x688] ss:$16 sps:$4 sm:$0xff]   ;;  %v20615_v53 = vld [vmem:[#allocation15 + $0x6a4] ss:$16 sps:$4 sm:$0xff]  }
 0xa99   :  { %15822 = vmatprep.subr.bf16.mxu1 %v20564_v29  ;;  %v20618_v29 = vld [vmem:[#allocation15 + $0x6ac] ss:$16 sps:$4 sm:$0xff]  }
 0xa9b   :  { %15659 = vmatpush1.bf16.msra.mxu0 %v20559_v38  ;;  %v20613_v38 = vld [vmem:[#allocation15 + $0x6a0] ss:$16 sps:$4 sm:$0xff]  }
 0xa9c   :  { %15823 = vmatpush1.bf16.msra.mxu1 %v20562_v37  ;;  %15660 = vmatprep.subr.bf16.mxu0 %v20567_v36  ;;  %v20616_v37 = vld [vmem:[#allocation15 + $0x6a8] ss:$16 sps:$4 sm:$0xff]   ;;  %v20621_v36 = vld [vmem:[#allocation15 + $0x6c4] ss:$16 sps:$4 sm:$0xff]  }
 0xa9d   :  { %15824 = vmatprep.subr.bf16.mxu1 %v20570_v63  ;;  %v20624_v63 = vld [vmem:[#allocation15 + $0x6cc] ss:$16 sps:$4 sm:$0xff]  }
 0xa9f   :  { %15661 = vmatpush1.bf16.msra.mxu0 %v20565_v51  ;;  %v20619_v51 = vld [vmem:[#allocation15 + $0x6c0] ss:$16 sps:$4 sm:$0xff]  }
 0xaa0   :  { %15825 = vmatpush1.bf16.msra.mxu1 %v20568_v58  ;;  %15662 = vmatprep.subr.bf16.mxu0 %v20573_v8  ;;  %v20622_v58 = vld [vmem:[#allocation15 + $0x6c8] ss:$16 sps:$4 sm:$0xff]   ;;  %v20627_v8 = vld [vmem:[#allocation15 + $0x6e4] ss:$16 sps:$4 sm:$0xff]  }
 0xaa1   :  { %15826 = vmatprep.subr.bf16.mxu1 %v20576_v48  ;;  %v20630_v48 = vld [vmem:[#allocation15 + $0x6ec] ss:$16 sps:$4 sm:$0xff]  }
 0xaa3   :  { %15663 = vmatpush1.bf16.msra.mxu0 %v20571_v24  ;;  %v20625_v24 = vld [vmem:[#allocation15 + $0x6e0] ss:$16 sps:$4 sm:$0xff]  }
 0xaa4   :  { %15827 = vmatpush1.bf16.msra.mxu1 %v20574_v41  ;;  %15664 = vmatprep.subr.bf16.mxu0 %v20579_v33  ;;  %v20628_v41 = vld [vmem:[#allocation15 + $0x6e8] ss:$16 sps:$4 sm:$0xff]   ;;  %v20633_v33 = vld [vmem:[#allocation15 + $0x704] ss:$16 sps:$4 sm:$0xff]  }
 0xaa5   :  { %15828 = vmatprep.subr.bf16.mxu1 %v20582_v17  ;;  %v20636_v17 = vld [vmem:[#allocation15 + $0x70c] ss:$16 sps:$4 sm:$0xff]  }
 0xaa7   :  { %15665 = vmatpush1.bf16.msra.mxu0 %v20577_v2  ;;  %v20631_v2 = vld [vmem:[#allocation15 + $0x700] ss:$16 sps:$4 sm:$0xff]  }
 0xaa8   :  { %15829 = vmatpush1.bf16.msra.mxu1 %v20580_v7  ;;  %15675 = vmatprep.subr.bf16.mxu0 %v20585_v34  ;;  %v20634_v7 = vld [vmem:[#allocation15 + $0x708] ss:$16 sps:$4 sm:$0xff]   ;;  %v20639_v34 = vld [vmem:[#allocation15 + $0x724] ss:$16 sps:$4 sm:$0xff]  }
 0xaa9   :  { %15839 = vmatprep.subr.bf16.mxu1 %v20588_v57  ;;  %v20642_v57 = vld [vmem:[#allocation15 + $0x72c] ss:$16 sps:$4 sm:$0xff]  }
 0xabd   :  { %v13807_v21 = vpop.f32.mrb[60].mxu0 }
 0xabe   :  { %v18158_v32 = vadd.f32 %v13807_v21, %v10741_v13  ;;  %v22194_v31 = vpop.f32.mrb[60].mxu1  ;;  %v13809_v59 = vpop.f32.mrb[61].mxu0  ;;  %v20648_v13 = vld [vmem:[#allocation15 + $0x74c] ss:$16 sps:$4 sm:$0xff]   ;;  %v20651_v21 = vld [vmem:[#allocation15 + $0x764] ss:$16 sps:$4 sm:$0xff]  }
 0xabf   :  { %v18159_v52 = vadd.f32 %v13809_v59, %v10745_v40  ;;  %v13973_v16 = vpop.f32.mrb[61].mxu1  ;;  %v13811_v19 = vpop.f32.mrb[62].mxu0  ;;  %v20643_v40 = vld [vmem:[#allocation15 + $0x740] ss:$16 sps:$4 sm:$0xff]  }
 0xac0   :  { %v13982_v25 = vmax.f32 %v18158_v32, 0.0  ;;  %v18161_v61 = vadd.f32 %v13973_v16, %v10753_v23  ;;  %v13975_v4 = vpop.f32.mrb[62].mxu1  ;;  %v13812_v26 = vpop.f32.mrb[63].mxu0  ;;  %v20646_v23 = vld [vmem:[#allocation15 + $0x748] ss:$16 sps:$4 sm:$0xff]  }
 0xac1   :  { %v13983_v56 = vmax.f32 %v18159_v52, 0.0  ;;  %v13976_v46 = vpop.f32.mrb[63].mxu1  ;;  %v20654_v32 = vld [vmem:[#allocation15 + $0x76c] ss:$16 sps:$4 sm:$0xff]   ;;  %v20649_v59 = vld [vmem:[#allocation15 + $0x760] ss:$16 sps:$4 sm:$0xff]  }
 0xac2   :  { %v13985_v10 = vmax.f32 %v18161_v61, 0.0  ;;  %v13990_v14 = vpack.c.bf16 %v13982_v25, %v13982_v25  ;;  %v20652_v52 = vld [vmem:[#allocation15 + $0x768] ss:$16 sps:$4 sm:$0xff]   ;;  %v20657_v16 = vld [vmem:[#allocation15 + $0x784] ss:$16 sps:$4 sm:$0xff]   ;;  %v10748_v4 = vsub.s32 6, %v22261_v27 }
 0xac3   :  { %v13991_v35 = vpack.c.bf16 %v13983_v56, %v13983_v56  ;;  %v20660_v19 = vld [vmem:[#allocation15 + $0x78c] ss:$16 sps:$4 sm:$0xff]   ;;  %v20655_v25 = vld [vmem:[#allocation15 + $0x780] ss:$16 sps:$4 sm:$0xff]   ;;  %v20658_v61 = vld [vmem:[#allocation15 + $0x788] ss:$16 sps:$4 sm:$0xff]  }
 0xac4   :  { %v13993_v22 = vpack.c.bf16 %v13985_v10, %v13985_v10  ;;  %v20663_v26 = vld [vmem:[#allocation15 + $0x7a4] ss:$16 sps:$4 sm:$0xff]   ;;  %v20666_v56 = vld [vmem:[#allocation15 + $0x7ac] ss:$16 sps:$4 sm:$0xff]   ;;  %v20661_v46 = vld [vmem:[#allocation15 + $0x7a0] ss:$16 sps:$4 sm:$0xff]  }
 0xac5   :  { %15666 = vmatprep.mubr.bf16.mxu0 %v13991_v35  ;;  %15830 = vmatprep.mubr.bf16.mxu1 %v13991_v35  ;;  %v20664_v10 = vld [vmem:[#allocation15 + $0x7a8] ss:$16 sps:$4 sm:$0xff]  }
 0xac6   :  { %15667 = vmatmul.mubr.bf16.vlgmr.msra.gmra.mrb[64].mxu0 %v13990_v14  ;;  %15831 = vmatmul.mubr.bf16.vlgmr.msra.gmra.mrb[64].mxu1 %v13990_v14  ;;  %v20711_v35 = vld [vmem:[#allocation13] sm:$0xff] }
 0xac7   :  { %15676 = vmatpush1.bf16.msra.mxu0 %v20583_v12  ;;  %15840 = vmatpush1.bf16.msra.mxu1 %v20586_v50  ;;  %v10749_v12 = vrot.slane %v20711_v35, %v10748_v4  ;;  %v20669_v50 = vld [vmem:[#allocation15 + $0x7c4] ss:$16 sps:$4 sm:$0xff]   ;;  %v20672_v14 = vld [vmem:[#allocation15 + $0x7cc] ss:$16 sps:$4 sm:$0xff]  }
 0xac8   :  { %15707 = vmatprep.mubr.bf16.mxu0 %v13993_v22  ;;  %15871 = vmatprep.mubr.bf16.mxu1 %v13993_v22  ;;  %v20675_v22 = vld [vmem:[#allocation15 + $0x7e4] ss:$16 sps:$4 sm:$0xff]  }
 0xac9   :  { %15677 = vmatprep.subr.bf16.mxu0 %v20591_v43  ;;  %15841 = vmatprep.subr.bf16.mxu1 %v20594_v11  ;;  %v20667_v43 = vld [vmem:[#allocation15 + $0x7c0] ss:$16 sps:$4 sm:$0xff]   ;;  %v20670_v11 = vld [vmem:[#allocation15 + $0x7c8] ss:$16 sps:$4 sm:$0xff]   ;;  %v18160_v27 = vadd.f32 %v22194_v31, %v10749_v12 }
 0xaca   :  { %v20683_v31 = vld [vmem:[#allocation18 + $0x48] sm:$0xff]  }
 0xacb   :  { %15678 = vmatpush1.bf16.msra.mxu0 %v20589_v30  ;;  %15842 = vmatpush1.bf16.msra.mxu1 %v20592_v47  ;;  %v20678_v30 = vld [vmem:[#allocation15 + $0x7ec] ss:$16 sps:$4 sm:$0xff]   ;;  %v20673_v47 = vld [vmem:[#allocation15 + $0x7e0] ss:$16 sps:$4 sm:$0xff]  }
 0xacc   :  { %15679 = vmatprep.subr.bf16.mxu0 %v20597_v39  ;;  %15843 = vmatprep.subr.bf16.mxu1 %v20600_v28  ;;  %v20676_v39 = vld [vmem:[#allocation15 + $0x7e8] ss:$16 sps:$4 sm:$0xff]   ;;  %v13984_v28 = vmax.f32 %v18160_v27, 0.0 }
 0xacf   :  { %15680 = vmatpush1.bf16.msra.mxu0 %v20595_v20  ;;  %15844 = vmatpush1.bf16.msra.mxu1 %v20598_v45  ;;  %v20679_v20 = vld [vmem:[#allocation18 + $0x40] sm:$0xff]  }
 0xad0   :  { %15681 = vmatprep.subr.bf16.mxu0 %v20603_v1  ;;  %15845 = vmatprep.subr.bf16.mxu1 %v20606_v49  ;;  %v20680_v45 = vld [vmem:[#allocation18 + $0xc0] sm:$0xff]  }
 0xad1   :  { %v20681_v1 = vld [vmem:[#allocation18] sm:$0xff]  }
 0xad2   :  { %v20682_v49 = vld [vmem:[#allocation18 + $0x80] sm:$0xff]  }
 0xad3   :  { %15682 = vmatpush1.bf16.msra.mxu0 %v20601_v54  ;;  %15846 = vmatpush1.bf16.msra.mxu1 %v20604_v18  ;;  %v13992_v54 = vpack.c.bf16 %v13984_v28, %v13984_v28  ;;  %v20684_v18 = vld [vmem:[#allocation18 + $0xc8] sm:$0xff]  }
 0xad4   :  { %15683 = vmatprep.subr.bf16.mxu0 %v20609_v55  ;;  %15847 = vmatprep.subr.bf16.mxu1 %v20612_v5  ;;  %v20685_v55 = vld [vmem:[#allocation18 + $0x8] sm:$0xff]  }
 0xad5   :  { %v20686_v5 = vld [vmem:[#allocation18 + $0x88] sm:$0xff]  }
 0xad7   :  { %15684 = vmatpush1.bf16.msra.mxu0 %v20607_v9  ;;  %15848 = vmatpush1.bf16.msra.mxu1 %v20610_v6  ;;  %v20687_v9 = vld [vmem:[#allocation18 + $0x50] sm:$0xff]  }
 0xad8   :  { %15685 = vmatprep.subr.bf16.mxu0 %v20615_v53  ;;  %15849 = vmatprep.subr.bf16.mxu1 %v20618_v29  ;;  %v20688_v6 = vld [vmem:[#allocation18 + $0xd0] sm:$0xff]  }
 0xad9   :  { %v20689_v53 = vld [vmem:[#allocation18 + $0x10] sm:$0xff]  }
 0xada   :  { %v20690_v29 = vld [vmem:[#allocation18 + $0x90] sm:$0xff]  }
 0xadb   :  { %15686 = vmatpush1.bf16.msra.mxu0 %v20613_v38  ;;  %15850 = vmatpush1.bf16.msra.mxu1 %v20616_v37  ;;  %v20691_v38 = vld [vmem:[#allocation18 + $0x58] sm:$0xff]  }
 0xadc   :  { %15687 = vmatprep.subr.bf16.mxu0 %v20621_v36  ;;  %15851 = vmatprep.subr.bf16.mxu1 %v20624_v63  ;;  %v20692_v37 = vld [vmem:[#allocation18 + $0xd8] sm:$0xff]  }
 0xadd   :  { %v20693_v36 = vld [vmem:[#allocation18 + $0x18] sm:$0xff]  }
 0xade   :  { %v20694_v63 = vld [vmem:[#allocation18 + $0x98] sm:$0xff]  }
 0xadf   :  { %15688 = vmatpush1.bf16.msra.mxu0 %v20619_v51  ;;  %15852 = vmatpush1.bf16.msra.mxu1 %v20622_v58  ;;  %v20695_v51 = vld [vmem:[#allocation18 + $0x60] sm:$0xff]  }
 0xae0   :  { %15689 = vmatprep.subr.bf16.mxu0 %v20627_v8  ;;  %15853 = vmatprep.subr.bf16.mxu1 %v20630_v48  ;;  %v20696_v58 = vld [vmem:[#allocation18 + $0xe0] sm:$0xff]  }
 0xae1   :  { %v20697_v8 = vld [vmem:[#allocation18 + $0x20] sm:$0xff]  }
 0xae2   :  { %v20698_v48 = vld [vmem:[#allocation18 + $0xa0] sm:$0xff]  }
 0xae3   :  { %15690 = vmatpush1.bf16.msra.mxu0 %v20625_v24  ;;  %15854 = vmatpush1.bf16.msra.mxu1 %v20628_v41  ;;  %v20699_v24 = vld [vmem:[#allocation18 + $0x68] sm:$0xff]  }
 0xae4   :  { %15691 = vmatprep.subr.bf16.mxu0 %v20633_v33  ;;  %15855 = vmatprep.subr.bf16.mxu1 %v20636_v17  ;;  %v20700_v41 = vld [vmem:[#allocation18 + $0xe8] sm:$0xff]  }
 0xae5   :  { %v20701_v33 = vld [vmem:[#allocation18 + $0x28] sm:$0xff]  }
 0xae6   :  { %v20702_v17 = vld [vmem:[#allocation18 + $0xa8] sm:$0xff]  }
 0xae7   :  { %15692 = vmatpush1.bf16.msra.mxu0 %v20631_v2  ;;  %15856 = vmatpush1.bf16.msra.mxu1 %v20634_v7  ;;  %v20703_v2 = vld [vmem:[#allocation18 + $0x70] sm:$0xff]  }
 0xae8   :  { %15693 = vmatprep.subr.bf16.mxu0 %v20639_v34  ;;  %15857 = vmatprep.subr.bf16.mxu1 %v20642_v57  ;;  %v20704_v7 = vld [vmem:[#allocation18 + $0xf0] sm:$0xff]  }
 0xae9   :  { %v20705_v34 = vld [vmem:[#allocation18 + $0x30] sm:$0xff]  }
 0xaea   :  { %v20706_v57 = vld [vmem:[#allocation18 + $0xb0] sm:$0xff]  }
 0xaeb   :  { %15694 = vmatpush1.bf16.msra.mxu0 %v20637_v0  ;;  %15858 = vmatpush1.bf16.msra.mxu1 %v20640_v15  ;;  %v20707_v0 = vld [vmem:[#allocation18 + $0x78] sm:$0xff]  }
 0xaec   :  { %15695 = vmatprep.subr.bf16.mxu0 %v20645_v62  ;;  %15859 = vmatprep.subr.bf16.mxu1 %v20648_v13  ;;  %v20708_v15 = vld [vmem:[#allocation18 + $0xf8] sm:$0xff]  }
 0xaed   :  { %v20709_v62 = vld [vmem:[#allocation18 + $0x38] sm:$0xff]  }
 0xaee   :  { %v20710_v13 = vld [vmem:[#allocation18 + $0xb8] sm:$0xff]  }
 0xaef   :  { %15696 = vmatpush1.bf16.msra.mxu0 %v20643_v40  ;;  %15860 = vmatpush1.bf16.msra.mxu1 %v20646_v23  ;;  %v14250_v40 = vld [vmem:[#allocation16] sm:$0xf] }
 0xaf0   :  { %15697 = vmatprep.subr.bf16.mxu0 %v20651_v21  ;;  %15861 = vmatprep.subr.bf16.mxu1 %v20654_v32  ;;  %v14255_v23 = vrot.slane %v14250_v40, %v21275_v42  ;;  %v14263_v21 = vrot.slane %v14250_v40, %v21293_v60  ;;  %v14259_v32 = vrot.slane %v14250_v40, %v21278_v44 }
 0xaf3   :  { %15698 = vmatpush1.bf16.msra.mxu0 %v20649_v59  ;;  %15862 = vmatpush1.bf16.msra.mxu1 %v20652_v52  ;;  %v14267_v59 = vrot.slane %v14250_v40, %v21300_v3 }
 0xaf4   :  { %15699 = vmatprep.subr.bf16.mxu0 %v20657_v16  ;;  %15863 = vmatprep.subr.bf16.mxu1 %v20660_v19 }
 0xaf7   :  { %15700 = vmatpush1.bf16.msra.mxu0 %v20655_v25  ;;  %15864 = vmatpush1.bf16.msra.mxu1 %v20658_v61 }
 0xaf8   :  { %15701 = vmatprep.subr.bf16.mxu0 %v20663_v26  ;;  %15865 = vmatprep.subr.bf16.mxu1 %v20666_v56 }
 0xafb   :  { %15702 = vmatpush1.bf16.msra.mxu0 %v20661_v46  ;;  %15866 = vmatpush1.bf16.msra.mxu1 %v20664_v10 }
 0xafc   :  { %15703 = vmatprep.subr.bf16.mxu0 %v20669_v50  ;;  %15867 = vmatprep.subr.bf16.mxu1 %v20672_v14 }
 0xaff   :  { %15704 = vmatpush1.bf16.msra.mxu0 %v20667_v43  ;;  %15868 = vmatpush1.bf16.msra.mxu1 %v20670_v11 }
 0xb00   :  { %15705 = vmatprep.subr.bf16.mxu0 %v20675_v22  ;;  %15869 = vmatprep.subr.bf16.mxu1 %v20678_v30  ;;  %v18077_v30 = vld [vmem:[#allocation19] ss:$0 sm:$0xff] }
 0xb03   :  { %15706 = vmatpush1.bf16.msra.mxu0 %v20673_v47  ;;  %15870 = vmatpush1.bf16.msra.mxu1 %v20676_v39 }
 0xb04   :  { %18110 = vmatprep.subr.bf16.mxu0 %v20679_v20  ;;  %18132 = vmatprep.subr.bf16.mxu1 %v20680_v45 }
 0xb06   :  { %15708 = vmatmul.mubr.bf16.vlgmr.msra.gmra.mrb[64].mxu0 %v13992_v54  ;;  %15872 = vmatmul.mubr.bf16.vlgmr.msra.gmra.mrb[64].mxu1 %v13992_v54 }
 0xb07   :  { %18111 = vmatpush3.bf16.msra.mxu0 %v20681_v1  ;;  %18133 = vmatpush3.bf16.msra.mxu1 %v20682_v49 }
 0xb08   :  { %18112 = vmatprep.subr.bf16.mxu0 %v20683_v31  ;;  %18134 = vmatprep.subr.bf16.mxu1 %v20684_v18 }
 0xb0b   :  { %18113 = vmatpush3.bf16.msra.mxu0 %v20685_v55  ;;  %18135 = vmatpush3.bf16.msra.mxu1 %v20686_v5 }
 0xb0c   :  { %18114 = vmatprep.subr.bf16.mxu0 %v20687_v9  ;;  %18136 = vmatprep.subr.bf16.mxu1 %v20688_v6 }
 0xb0f   :  { %18115 = vmatpush3.bf16.msra.mxu0 %v20689_v53  ;;  %18137 = vmatpush3.bf16.msra.mxu1 %v20690_v29 }
 0xb10   :  { %18116 = vmatprep.subr.bf16.mxu0 %v20691_v38  ;;  %18138 = vmatprep.subr.bf16.mxu1 %v20692_v37 }
 0xb13   :  { %18117 = vmatpush3.bf16.msra.mxu0 %v20693_v36  ;;  %18139 = vmatpush3.bf16.msra.mxu1 %v20694_v63 }
 0xb14   :  { %18118 = vmatprep.subr.bf16.mxu0 %v20695_v51  ;;  %18140 = vmatprep.subr.bf16.mxu1 %v20696_v58 }
 0xb17   :  { %18119 = vmatpush3.bf16.msra.mxu0 %v20697_v8  ;;  %18141 = vmatpush3.bf16.msra.mxu1 %v20698_v48 }
 0xb18   :  { %18120 = vmatprep.subr.bf16.mxu0 %v20699_v24  ;;  %18142 = vmatprep.subr.bf16.mxu1 %v20700_v41 }
 0xb1b   :  { %18121 = vmatpush3.bf16.msra.mxu0 %v20701_v33  ;;  %18143 = vmatpush3.bf16.msra.mxu1 %v20702_v17 }
 0xb1c   :  { %18122 = vmatprep.subr.bf16.mxu0 %v20703_v2  ;;  %18144 = vmatprep.subr.bf16.mxu1 %v20704_v7 }
 0xb1f   :  { %18123 = vmatpush3.bf16.msra.mxu0 %v20705_v34  ;;  %18145 = vmatpush3.bf16.msra.mxu1 %v20706_v57 }
 0xb20   :  { %18124 = vmatprep.subr.bf16.mxu0 %v20707_v0  ;;  %18146 = vmatprep.subr.bf16.mxu1 %v20708_v15 }
 0xb23   :  { %18125 = vmatpush3.bf16.msra.mxu0 %v20709_v62  ;;  %18147 = vmatpush3.bf16.msra.mxu1 %v20710_v13 }
 0xbd9   :  { %v15709_v52 = vpop.f32.mrb[64].mxu0  ;;  %v15873_v16 = vpop.f32.mrb[64].mxu1 }
 0xbda   :  { %v18162_v19 = vadd.f32 %v15709_v52, %v14255_v23  ;;  %v18164_v25 = vadd.f32 %v15873_v16, %v14263_v21  ;;  %v15711_v61 = vpop.f32.mrb[65].mxu0  ;;  %v15875_v4 = vpop.f32.mrb[65].mxu1 }
 0xbdb   :  { %v18163_v26 = vadd.f32 %v15711_v61, %v14259_v32  ;;  %v18165_v56 = vadd.f32 %v15875_v4, %v14267_v59  ;;  %v15713_v46 = vpop.f32.mrb[66].mxu0  ;;  %v15877_v10 = vpop.f32.mrb[66].mxu1 }
 0xbdc   :  { %v15880_v35 = vmax.f32 %v18162_v19, 0.0  ;;  %v15882_v12 = vmax.f32 %v18164_v25, 0.0  ;;  %v15714_v50 = vpop.f32.mrb[67].mxu0  ;;  %v15878_v42 = vpop.f32.mrb[67].mxu1 }
 0xbdd   :  { %v15881_v14 = vmax.f32 %v18163_v26, 0.0  ;;  %v15883_v60 = vmax.f32 %v18165_v56, 0.0 }
 0xbde   :  { %v15884_v11 = vpack.c.bf16 %v15880_v35, %v15880_v35  ;;  %v15886_v3 = vpack.c.bf16 %v15882_v12, %v15882_v12 }
 0xbdf   :  { %v15885_v43 = vpack.c.bf16 %v15881_v14, %v15881_v14  ;;  %v15887_v44 = vpack.c.bf16 %v15883_v60, %v15883_v60 }
 0xbe1   :  { %16183 = vmatprep.mubr.bf16.mxu0 %v15885_v43  ;;  %16223 = vmatprep.mubr.bf16.mxu1 %v15887_v44 }
 0xbe2   :  { %16184 = vmatmul.mubr.bf16.vlgmr.msra.gmra.mrb[68].mxu0 %v15884_v11  ;;  %16224 = vmatmul.mubr.bf16.vlgmr.msra.gmra.mrb[68].mxu1 %v15886_v3 }
 0xcb5   :  { %v18126_v27 = vpop.f32.mrb[68].mxu0  ;;  %v18148_v22 = vpop.f32.mrb[68].mxu1 }
 0xcb6   :  { %v18127_v47 = vpop.f32.mrb[69].mxu0  ;;  %v18149_v39 = vpop.f32.mrb[69].mxu1 }
 0xcb7   :  { %v18128_v28 = vadd.f32 %v18127_v47, %v18126_v27  ;;  %v18150_v20 = vadd.f32 %v18149_v39, %v18148_v22  ;;  %v18129_v45 = vpop.f32.mrb[70].mxu0  ;;  %v18151_v1 = vpop.f32.mrb[70].mxu1 }
 0xcb8   :  { %v18130_v49 = vpop.f32.mrb[71].mxu0  ;;  %v18152_v54 = vpop.f32.mrb[71].mxu1 }
 0xcb9   :  { %v16186_v31 = vadd.f32 %v18128_v28, %v18077_v30 }
 0xcbb   :  { %v16226_v18 = vadd.f32 %v18150_v20, %v16186_v31 }
 0xcbd   :  { %16231 = vst [vmem:[%s22218_s13] sm:$0xff] %v16226_v18 }
 0xcbe   :  { %16236 = vsyncpa [#allocation3], 1 }
 0xcbf   :  { %16237 = vsyncpa [#allocation5], 1 }
 0xcc0   :  { %16238 = vsyncpa [#allocation8], 1 }
 0xcc1   :  { %16239 = vsyncpa [#allocation11], 1 }
 0xcc2   :  { %16240 = vsyncpa [#allocation14], 1 }
 0xcc3   :  { %16241 = vsyncpa [#allocation17], 1 }
 0xcc4   :  { %16242 = vsyncpa [#allocation20], 1 }

</bundles_post_ra>
